<compile_context>
chip_gen: v6e
topology: v6e:2x2x1
jax: 0.10.0
libtpu: 0.0.40
codegen_flags: <defaults>
</compile_context>

<pallas_src>
import functools

import jax
import jax.numpy as jnp
from jax.experimental import pallas as pl
from jax.experimental.pallas import tpu as pltpu


# ---------------------------------------------------------------------------
# helpers
# ---------------------------------------------------------------------------
def _round_up(x, m):
    return ((x + m - 1) // m) * m


def _pad2d(x, rows, cols, dtype):
    """Cast to `dtype` and zero-pad a 2-D array up to (rows, cols)."""
    x = x.astype(dtype)
    pr, pc = rows - x.shape[0], cols - x.shape[1]
    if pr or pc:
        x = jnp.pad(x, ((0, pr), (0, pc)))
    return x


_VMEM_LIMIT = 32 * 1024 * 1024  # explicit, safe on v5e/v6e/v7x; per-step tiles << this


# ---------------------------------------------------------------------------
# Kernel 1: cv1 + cv2 fused   a = ReLU(x@w1+b1), b = ReLU(x@w2+b2)
#           x is read from HBM exactly once; K (=Cin) is the reduction axis (last).
# ---------------------------------------------------------------------------
def _conv1x1_pair_kernel(x_ref, w1_ref, w2_ref, b1_ref, b2_ref,
                         oa_ref, ob_ref, acc1_ref, acc2_ref):
    k = pl.program_id(1)

    @pl.when(k == 0)
    def _():
        acc1_ref[...] = jnp.zeros_like(acc1_ref)
        acc2_ref[...] = jnp.zeros_like(acc2_ref)

    x = x_ref[...]
    acc1_ref[...] += jnp.dot(x, w1_ref[...], preferred_element_type=jnp.float32)
    acc2_ref[...] += jnp.dot(x, w2_ref[...], preferred_element_type=jnp.float32)

    @pl.when(k == pl.num_programs(1) - 1)
    def _():
        oa_ref[...] = jnp.maximum(acc1_ref[...] + b1_ref[...], 0.0).astype(oa_ref.dtype)
        ob_ref[...] = jnp.maximum(acc2_ref[...] + b2_ref[...], 0.0).astype(ob_ref.dtype)


def conv1x1_pair_bias_relu(x2d, w1, b1, w2, b2, n_pad, *, out_dtype=jnp.bfloat16,
                           tm_max=512, tk_max=512):
    """Two 1x1 convs (as matmuls) sharing one input read.
    x2d:(M,K)  w1,w2:(K,N)  b1,b2:(N,). Returns two (M, n_pad) arrays (bf16);
    columns [N:n_pad] are exact zeros."""
    M, K = x2d.shape
    N = w1.shape[1]
    Np = n_pad
    Mp, Kp = _round_up(M, 8), _round_up(K, 128)
    tm, tk = min(tm_max, Mp), min(tk_max, Kp)
    Mp, Kp = _round_up(Mp, tm), _round_up(Kp, tk)

    xp = _pad2d(x2d, Mp, Kp, jnp.bfloat16)
    w1p = _pad2d(w1, Kp, Np, jnp.bfloat16)
    w2p = _pad2d(w2, Kp, Np, jnp.bfloat16)
    b1p = _pad2d(b1.reshape(1, -1), 1, Np, jnp.float32)
    b2p = _pad2d(b2.reshape(1, -1), 1, Np, jnp.float32)

    a, b = pl.pallas_call(
        _conv1x1_pair_kernel,
        out_shape=(jax.ShapeDtypeStruct((Mp, Np), out_dtype),
                   jax.ShapeDtypeStruct((Mp, Np), out_dtype)),
        grid=(Mp // tm, Kp // tk),
        in_specs=[
            pl.BlockSpec((tm, tk), lambda i, k: (i, k)),
            pl.BlockSpec((tk, Np), lambda i, k: (k, 0)),
            pl.BlockSpec((tk, Np), lambda i, k: (k, 0)),
            pl.BlockSpec((1, Np), lambda i, k: (0, 0)),
            pl.BlockSpec((1, Np), lambda i, k: (0, 0)),
        ],
        out_specs=(pl.BlockSpec((tm, Np), lambda i, k: (i, 0)),
                   pl.BlockSpec((tm, Np), lambda i, k: (i, 0))),
        scratch_shapes=[pltpu.VMEM((tm, Np), jnp.float32),
                        pltpu.VMEM((tm, Np), jnp.float32)],
        compiler_params=pltpu.CompilerParams(
            dimension_semantics=("parallel", "arbitrary"),
            vmem_limit_bytes=_VMEM_LIMIT,
        ),
    )(xp, w1p, w2p, b1p, b2p)
    return a[:M], b[:M]


# ---------------------------------------------------------------------------
# Kernel 2: row-tiled 3x3 conv (stride 1, 'same') + bias + ReLU.
#           Per (batch, row-tile) step: stage the 9 shifted taps into a bounded
#           (L, 9*Cp) bf16 im2col VMEM scratch, then ONE fat-K MXU matmul.
# ---------------------------------------------------------------------------
def _conv3x3_kernel(x_ref, w_ref, b_ref, o_ref, stg_ref, *, row_stride, n_rows, cin):
    # x_ref: (1, 1, (TH+3)*Wr, Cp) flattened zero-padded rows (bf16, halo included)
    # w_ref: (9*Cp, Cop) weight slab; b_ref: (1, Cop) f32; o_ref: (1, 1, TH*Wr, Cop)
    for di in range(3):
        for dj in range(3):
            tap = di * 3 + dj
            off = di * row_stride + dj
            stg_ref[:, tap * cin:(tap + 1) * cin] = x_ref[0, 0, off:off + n_rows, :]
    acc = jnp.dot(stg_ref[...], w_ref[...], preferred_element_type=jnp.float32)
    acc = acc + b_ref[...]                       # f32 epilogue
    o_ref[...] = jnp.maximum(acc, 0.0)[None, None].astype(o_ref.dtype)


def conv3x3_bias_relu(x, w, b, *, out_dtype=jnp.bfloat16):
    """'same' 3x3 conv, stride 1.  x:(N,H,W,Ci)  w:(3,3,Cw,Co)  b:(Co,), Cw <= Ci
    (extra input channels get zero weights). Returns (N,H,W,Cop) with
    Cop = round_up(Co,128); channels [Co:Cop] are exact zeros."""
    N, H, W, Ci = x.shape
    _, _, Cw, Co = w.shape
    assert Cw <= Ci
    Cip, Cop = _round_up(Ci, 128), _round_up(Co, 128)
    Wr = _round_up(W + 2, 8)                     # sublane-aligned padded row stride

    # row-tile size: keep the im2col staging buffer ~<=4 MiB
    l_target = min(1024, max(8, (4 << 20) // (9 * Cip * 2)))
    TH = max(1, min(H, l_target // Wr))
    T = pl.cdiv(H, TH)
    Hp = T * TH
    L = TH * Wr                                  # output rows (flattened) per tile
    Lin = (TH + 3) * Wr                          # input rows per tile (halo + slack)

    # zero-pad: 1 top row, (Hp-H+2) bottom rows, 1 left col, (Wr-W-1) right cols,
    # channel pad to Cip. Lazy views feeding this pad fuse into one XLA pass.
    xp = jnp.pad(x, ((0, 0), (1, Hp - H + 2), (1, Wr - W - 1), (0, Cip - Ci)))
    # overlapping row tiles: tile t needs padded rows [t*TH, t*TH + TH + 3)
    xt = jnp.stack([xp[:, t * TH: t * TH + TH + 3] for t in range(T)], axis=1)
    xt = xt.reshape(N, T, Lin, Cip).astype(jnp.bfloat16)

    wp = jnp.zeros((3, 3, Cip, Cop), jnp.float32).at[:, :, :Cw, :Co].set(w)
    w_slab = wp.reshape(9 * Cip, Cop).astype(jnp.bfloat16)
    bp = jnp.zeros((1, Cop), jnp.float32).at[0, :Co].set(b)

    kernel = functools.partial(_conv3x3_kernel, row_stride=Wr, n_rows=L, cin=Cip)
    out = pl.pallas_call(
        kernel,
        out_shape=jax.ShapeDtypeStruct((N, T, L, Cop), out_dtype),
        grid=(N, T),
        in_specs=[
            pl.BlockSpec((1, 1, Lin, Cip), lambda n, t: (n, t, 0, 0)),
            pl.BlockSpec((9 * Cip, Cop), lambda n, t: (0, 0)),
            pl.BlockSpec((1, Cop), lambda n, t: (0, 0)),
        ],
        out_specs=pl.BlockSpec((1, 1, L, Cop), lambda n, t: (n, t, 0, 0)),
        scratch_shapes=[pltpu.VMEM((L, 9 * Cip), jnp.bfloat16)],
        compiler_params=pltpu.CompilerParams(
            dimension_semantics=("parallel", "parallel"),
            vmem_limit_bytes=_VMEM_LIMIT,
        ),
    )(xt, w_slab, bp)
    # (N, T, TH*Wr, Cop) -> (N, H, W, Cop); the slice stays a lazy view and fuses
    # into the consumer's pad/pack pass (no standalone HBM round trip).
    return out.reshape(N, Hp, Wr, Cop)[:, :H, :W, :]


# ---------------------------------------------------------------------------
# Kernel 3: cv3 with the BottleRep shortcut and channel-concat fused in:
#           ReLU((y2 + alpha*a) @ Wa + b_cv2 @ Wb + bias)
# ---------------------------------------------------------------------------
def _cv3_fused_kernel(alpha_ref, y2_ref, a_ref, b_ref, wa_ref, wb_ref, bias_ref, o_ref):
    alpha = alpha_ref[0, 0]
    # BottleRep shortcut in f32 on the VPU (rides under the MXU), cast for the dot.
    m = (y2_ref[...].astype(jnp.float32)
         + alpha * a_ref[...].astype(jnp.float32)).astype(jnp.bfloat16)
    acc = jnp.dot(m, wa_ref[...], preferred_element_type=jnp.float32)
    acc = acc + jnp.dot(b_ref[...], wb_ref[...], preferred_element_type=jnp.float32)
    acc = acc + bias_ref[...]
    o_ref[...] = jnp.maximum(acc, 0.0).astype(o_ref.dtype)


def cv3_fused(alpha, y2_2d, a_2d, b_2d, wa, wb, bias, *, out_dtype=jnp.float32,
              tm_max=512, tn_max=256):
    """ReLU([y2 + alpha*a | b] @ [wa;wb] + bias) without materialising m or the concat.
    y2_2d/a_2d/b_2d: (M, Kp) with Kp a 128 multiple; wa/wb: (c_, N)."""
    M, Ka = y2_2d.shape
    N = wa.shape[1]
    Mp, Kap, Np = _round_up(M, 8), _round_up(Ka, 128), _round_up(N, 128)
    tm, tn = min(tm_max, Mp), min(tn_max, Np)
    Mp, Np = _round_up(Mp, tm), _round_up(Np, tn)

    y2p = _pad2d(y2_2d, Mp, Kap, jnp.bfloat16)
    ap = _pad2d(a_2d, Mp, Kap, jnp.bfloat16)
    bp_ = _pad2d(b_2d, Mp, Kap, jnp.bfloat16)
    wap = _pad2d(wa, Kap, Np, jnp.bfloat16)
    wbp = _pad2d(wb, Kap, Np, jnp.bfloat16)
    biasp = _pad2d(bias.reshape(1, -1), 1, Np, jnp.float32)
    alpha_arr = jnp.asarray(alpha, jnp.float32).reshape(1, 1)

    out = pl.pallas_call(
        _cv3_fused_kernel,
        out_shape=jax.ShapeDtypeStruct((Mp, Np), out_dtype),
        grid=(Mp // tm, Np // tn),
        in_specs=[
            pl.BlockSpec(memory_space=pltpu.MemorySpace.SMEM),      # alpha scalar
            pl.BlockSpec((tm, Kap), lambda i, j: (i, 0)),
            pl.BlockSpec((tm, Kap), lambda i, j: (i, 0)),
            pl.BlockSpec((tm, Kap), lambda i, j: (i, 0)),
            pl.BlockSpec((Kap, tn), lambda i, j: (0, j)),
            pl.BlockSpec((Kap, tn), lambda i, j: (0, j)),
            pl.BlockSpec((1, tn), lambda i, j: (0, j)),
        ],
        out_specs=pl.BlockSpec((tm, tn), lambda i, j: (i, j)),
        compiler_params=pltpu.CompilerParams(
            dimension_semantics=("parallel", "parallel"),
            vmem_limit_bytes=_VMEM_LIMIT,
        ),
    )(alpha_arr, y2p, ap, bp_, wap, wbp, biasp)
    return out[:M, :N]


# ---------------------------------------------------------------------------
# Parameter init (deterministic, synthetic) + BN / RepVGG folding
# ---------------------------------------------------------------------------
def init_bn(key, c):
    k1, k2, k3, k4 = jax.random.split(key, 4)
    return dict(
        gamma=1.0 + 0.1 * jax.random.normal(k1, (c,), jnp.float32),
        beta=0.1 * jax.random.normal(k2, (c,), jnp.float32),
        mean=0.1 * jax.random.normal(k3, (c,), jnp.float32),
        var=jax.nn.softplus(jax.random.normal(k4, (c,), jnp.float32)) + 0.5,
    )


def init_conv_bn(key, cin, cout, k):
    kw, kb = jax.random.split(key)
    fan_in = k * k * cin
    return dict(
        w=jax.random.normal(kw, (k, k, cin, cout), jnp.float32) * fan_in ** -0.5,
        bn=init_bn(kb, cout),
    )


def init_repvgg(key, c):
    k1, k2, k3 = jax.random.split(key, 3)
    return dict(dense=init_conv_bn(k1, c, c, 3),
                one=init_conv_bn(k2, c, c, 1),
                idbn=init_bn(k3, c))


def init_bepc3(key, cin, cout, e=0.5):
    c_ = int(cout * e)
    ks = jax.random.split(key, 5)
    return dict(
        cv1=init_conv_bn(ks[0], cin, c_, 1),
        cv2=init_conv_bn(ks[1], cin, c_, 1),
        cv3=init_conv_bn(ks[2], 2 * c_, cout, 1),
        rep1=init_repvgg(ks[3], c_),
        rep2=init_repvgg(ks[4], c_),
        alpha=jnp.ones((1,), jnp.float32),      # BottleRep weight=True
    )


def _fold_bn_scale_bias(bn, eps=1e-5):          # PyTorch BatchNorm2d default eps
    scale = bn["gamma"] * jax.lax.rsqrt(bn["var"] + eps)
    bias = bn["beta"] - bn["mean"] * scale
    return scale, bias


def fold_conv_bn(p):
    scale, bias = _fold_bn_scale_bias(p["bn"])
    return p["w"] * scale, bias                  # scale broadcasts over out-channel


def fold_repvgg(p, c):
    """Exact RepVGG re-parameterisation (3x3 + padded 1x1 + identity BN)."""
    k3, b3 = fold_conv_bn(p["dense"])                    # (3,3,c,c)
    k1, b1 = fold_conv_bn(p["one"])                      # (1,1,c,c)
    k1p = jnp.zeros((3, 3, c, c), jnp.float32).at[1, 1].set(k1[0, 0])
    sid, bid = _fold_bn_scale_bias(p["idbn"])
    kid = jnp.zeros((3, 3, c, c), jnp.float32).at[1, 1].set(jnp.diag(sid))
    return k3 + k1p + kid, b3 + b1 + bid


# ---------------------------------------------------------------------------
# BepC3 forward (Pallas) and pure-JAX reference
# ---------------------------------------------------------------------------
def bepc3_forward(x_nchw, params):
    # TODO(synk): the NCHW<->NHWC transposes exist only to match the PyTorch module's
    # I/O layout; in a full NHWC network they would be dropped.
    x = jnp.transpose(x_nchw, (0, 2, 3, 1))              # NCHW -> NHWC
    N, H, W, Cin = x.shape
    M = N * H * W
    c_ = params["cv1"]["w"].shape[-1]
    cout = params["cv3"]["w"].shape[-1]
    cp = _round_up(c_, 128)                              # padded hidden width

    w1, b1 = fold_conv_bn(params["cv1"])
    w2, b2 = fold_conv_bn(params["cv2"])
    w3, b3 = fold_conv_bn(params["cv3"])
    kA, bA = fold_repvgg(params["rep1"], c_)
    kB, bB = fold_repvgg(params["rep2"], c_)

    # cv1 + cv2: one kernel, x read once, padded channels [c_:cp] are exact zeros.
    a2d, b2d = conv1x1_pair_bias_relu(x.reshape(M, Cin), w1[0, 0], b1, w2[0, 0], b2, cp)

    # RepVGG blocks: row-tiled 3x3 conv kernels (bf16 activations throughout).
    a4 = a2d.reshape(N, H, W, cp)
    y1 = conv3x3_bias_relu(a4, kA, bA, out_dtype=jnp.bfloat16)          # (N,H,W,cp)
    y2 = conv3x3_bias_relu(y1, kB, bB, out_dtype=jnp.bfloat16)          # (N,H,W,cp)

    # cv3 over concat([y2 + alpha*a, b]) — shortcut + concat fused in-kernel.
    y2_2d = y2.reshape(M, cp)
    out2d = cv3_fused(params["alpha"][0], y2_2d, a2d, b2d,
                      w3[0, 0, :c_, :], w3[0, 0, c_:, :], b3,
                      out_dtype=jnp.float32)
    out = out2d.reshape(N, H, W, cout)
    return jnp.transpose(out, (0, 3, 1, 2))              # -> NCHW


def _conv2d_nhwc(x, w, pad):
    return jax.lax.conv_general_dilated(
        x, w, window_strides=(1, 1), padding=((pad, pad), (pad, pad)),
        dimension_numbers=("NHWC", "HWIO", "NHWC"))


def bepc3_reference(x_nchw, params):
    """Pure-JAX f32 reference of the same (BN-folded) forward."""
    x = jnp.transpose(x_nchw, (0, 2, 3, 1)).astype(jnp.float32)
    c_ = params["cv1"]["w"].shape[-1]
    w1, b1 = fold_conv_bn(params["cv1"])
    w2, b2 = fold_conv_bn(params["cv2"])
    w3, b3 = fold_conv_bn(params["cv3"])
    kA, bA = fold_repvgg(params["rep1"], c_)
    kB, bB = fold_repvgg(params["rep2"], c_)
    a = jax.nn.relu(_conv2d_nhwc(x, w1, 0) + b1)
    bb = jax.nn.relu(_conv2d_nhwc(x, w2, 0) + b2)
    y1 = jax.nn.relu(_conv2d_nhwc(a, kA, 1) + bA)
    y2 = jax.nn.relu(_conv2d_nhwc(y1, kB, 1) + bB)
    m = y2 + params["alpha"][0] * a
    out = jax.nn.relu(_conv2d_nhwc(jnp.concatenate([m, bb], -1), w3, 0) + b3)
    return jnp.transpose(out, (0, 3, 1, 2))


if __name__ == "__main__":
    key = jax.random.PRNGKey(0)
    kx, kp = jax.random.split(key)

    in_channels, out_channels = 4, 8
    x = jax.random.normal(kx, (2, in_channels, 16, 16), jnp.float32)   # NCHW
    params = init_bepc3(kp, in_channels, out_channels, e=0.5)

    out = jax.jit(bepc3_forward)(x, params)
    out = jax.block_until_ready(out)

    assert out.shape == (2, out_channels, 16, 16), out.shape
    assert jnp.all(jnp.isfinite(out)), "non-finite output"

    # numerical check vs the f32 reference (kernels compute in bf16 / f32-acc)
    ref = jax.jit(bepc3_reference)(x, params)
    ref = jax.block_until_ready(ref)
    max_err = float(jnp.max(jnp.abs(out - ref)))
    scale = float(jnp.max(jnp.abs(ref))) + 1.0
    assert max_err <= 0.1 * scale, (max_err, scale)

    print("KERNEL_OK")
</pallas_src>

<mosaic_0001>
module attributes {stable_mosaic.version = 11 : i64} {
  func.func @_conv1x1_pair_kernel(%arg0: i32, %arg1: i32, %arg2: memref<512x128xbf16, #tpu.memory_space<vmem>>, %arg3: memref<128x128xbf16, #tpu.memory_space<vmem>>, %arg4: memref<128x128xbf16, #tpu.memory_space<vmem>>, %arg5: memref<1x128xf32, #tpu.memory_space<vmem>>, %arg6: memref<1x128xf32, #tpu.memory_space<vmem>>, %arg7: memref<512x128xbf16, #tpu.memory_space<vmem>>, %arg8: memref<512x128xbf16, #tpu.memory_space<vmem>>, %arg9: memref<512x128xf32, #tpu.memory_space<vmem>>, %arg10: memref<512x128xf32, #tpu.memory_space<vmem>>) attributes {dimension_semantics = [#tpu.dimension_semantics<parallel>, #tpu.dimension_semantics<arbitrary>], iteration_bounds = array<i64: 1, 1>, scalar_prefetch = 0 : i64, scratch_operands = 2 : i64, tpu.core_type = #tpu.core_type<tc>, window_params = [{transform_indices = @transform_0, window_bounds = array<i64: 512, 128>}, {transform_indices = @transform_1, window_bounds = array<i64: 128, 128>}, {transform_indices = @transform_2, window_bounds = array<i64: 128, 128>}, {pipeline_mode = #tpu.pipeline_mode<synchronous>, transform_indices = @transform_3, window_bounds = array<i64: 1, 128>}, {pipeline_mode = #tpu.pipeline_mode<synchronous>, transform_indices = @transform_4, window_bounds = array<i64: 1, 128>}, {transform_indices = @transform_5, window_bounds = array<i64: 512, 128>}, {transform_indices = @transform_6, window_bounds = array<i64: 512, 128>}]} {
    %c0_i32 = arith.constant 0 : i32
    %0 = arith.cmpi eq, %arg1, %c0_i32 : i32
    %1 = arith.extui %0 : i1 to i32
    %c0_i32_0 = arith.constant 0 : i32
    %2 = arith.cmpi ne, %1, %c0_i32_0 : i32
    scf.if %2 {
      %cst_17 = arith.constant 0.000000e+00 : f32
      %17 = vector.broadcast %cst_17 : f32 to vector<512x128xf32>
      %c0_18 = arith.constant 0 : index
      %c0_19 = arith.constant 0 : index
      %18 = vector.load %arg9[%c0_18, %c0_19] : memref<512x128xf32, #tpu.memory_space<vmem>>, vector<512x128xf32>
      tpu.vector_store %arg9[%c0_18, %c0_19], %17 {strides = array<i32>} : memref<512x128xf32, #tpu.memory_space<vmem>>, vector<512x128xf32>,
      %cst_20 = arith.constant 0.000000e+00 : f32
      %19 = vector.broadcast %cst_20 : f32 to vector<512x128xf32>
      %c0_21 = arith.constant 0 : index
      %c0_22 = arith.constant 0 : index
      %20 = vector.load %arg10[%c0_21, %c0_22] : memref<512x128xf32, #tpu.memory_space<vmem>>, vector<512x128xf32>
      tpu.vector_store %arg10[%c0_21, %c0_22], %19 {strides = array<i32>} : memref<512x128xf32, #tpu.memory_space<vmem>>, vector<512x128xf32>,
    } else {
    }
    %c0 = arith.constant 0 : index
    %c0_1 = arith.constant 0 : index
    %3 = vector.load %arg2[%c0, %c0_1] : memref<512x128xbf16, #tpu.memory_space<vmem>>, vector<512x128xbf16>
    %c0_2 = arith.constant 0 : index
    %c0_3 = arith.constant 0 : index
    %4 = vector.load %arg9[%c0_2, %c0_3] : memref<512x128xf32, #tpu.memory_space<vmem>>, vector<512x128xf32>
    %c0_4 = arith.constant 0 : index
    %c0_5 = arith.constant 0 : index
    %5 = vector.load %arg3[%c0_4, %c0_5] : memref<128x128xbf16, #tpu.memory_space<vmem>>, vector<128x128xbf16>
    %cst = arith.constant dense<0.000000e+00> : vector<512x128xf32>
    %6 = tpu.matmul %3, %5, %cst {dimension_numbers = #tpu.dot_dimension_numbers<[1], [0], [0], [1], [0, 0, 1, 1], [], []>} : vector<512x128xbf16>, vector<128x128xbf16>, vector<512x128xf32> -> vector<512x128xf32>
    %7 = arith.addf %4, %6 : vector<512x128xf32>
    %c0_6 = arith.constant 0 : index
    %c0_7 = arith.constant 0 : index
    %8 = vector.load %arg9[%c0_6, %c0_7] : memref<512x128xf32, #tpu.memory_space<vmem>>, vector<512x128xf32>
    tpu.vector_store %arg9[%c0_6, %c0_7], %7 {strides = array<i32>} : memref<512x128xf32, #tpu.memory_space<vmem>>, vector<512x128xf32>,
    %c0_8 = arith.constant 0 : index
    %c0_9 = arith.constant 0 : index
    %9 = vector.load %arg10[%c0_8, %c0_9] : memref<512x128xf32, #tpu.memory_space<vmem>>, vector<512x128xf32>
    %c0_10 = arith.constant 0 : index
    %c0_11 = arith.constant 0 : index
    %10 = vector.load %arg4[%c0_10, %c0_11] : memref<128x128xbf16, #tpu.memory_space<vmem>>, vector<128x128xbf16>
    %cst_12 = arith.constant dense<0.000000e+00> : vector<512x128xf32>
    %11 = tpu.matmul %3, %10, %cst_12 {dimension_numbers = #tpu.dot_dimension_numbers<[1], [0], [0], [1], [0, 0, 1, 1], [], []>} : vector<512x128xbf16>, vector<128x128xbf16>, vector<512x128xf32> -> vector<512x128xf32>
    %12 = arith.addf %9, %11 : vector<512x128xf32>
    %c0_13 = arith.constant 0 : index
    %c0_14 = arith.constant 0 : index
    %13 = vector.load %arg10[%c0_13, %c0_14] : memref<512x128xf32, #tpu.memory_space<vmem>>, vector<512x128xf32>
    tpu.vector_store %arg10[%c0_13, %c0_14], %12 {strides = array<i32>} : memref<512x128xf32, #tpu.memory_space<vmem>>, vector<512x128xf32>,
    %c0_i32_15 = arith.constant 0 : i32
    %14 = arith.cmpi eq, %arg1, %c0_i32_15 : i32
    %15 = arith.extui %14 : i1 to i32
    %c0_i32_16 = arith.constant 0 : i32
    %16 = arith.cmpi ne, %15, %c0_i32_16 : i32
    scf.if %16 {
      %c0_17 = arith.constant 0 : index
      %c0_18 = arith.constant 0 : index
      %17 = vector.load %arg9[%c0_17, %c0_18] : memref<512x128xf32, #tpu.memory_space<vmem>>, vector<512x128xf32>
      %c0_19 = arith.constant 0 : index
      %c0_20 = arith.constant 0 : index
      %18 = vector.load %arg5[%c0_19, %c0_20] : memref<1x128xf32, #tpu.memory_space<vmem>>, vector<1x128xf32>
      %19 = vector.broadcast %18 : vector<1x128xf32> to vector<512x128xf32>
      %20 = arith.addf %17, %19 : vector<512x128xf32>
      %cst_21 = arith.constant 0.000000e+00 : f32
      %21 = vector.broadcast %cst_21 : f32 to vector<512x128xf32>
      %22 = arith.maximumf %20, %21 : vector<512x128xf32>
      %23 = arith.truncf %22 : vector<512x128xf32> to vector<512x128xbf16>
      %c0_22 = arith.constant 0 : index
      %c0_23 = arith.constant 0 : index
      %24 = vector.load %arg7[%c0_22, %c0_23] : memref<512x128xbf16, #tpu.memory_space<vmem>>, vector<512x128xbf16>
      tpu.vector_store %arg7[%c0_22, %c0_23], %23 {strides = array<i32>} : memref<512x128xbf16, #tpu.memory_space<vmem>>, vector<512x128xbf16>,
      %c0_24 = arith.constant 0 : index
      %c0_25 = arith.constant 0 : index
      %25 = vector.load %arg10[%c0_24, %c0_25] : memref<512x128xf32, #tpu.memory_space<vmem>>, vector<512x128xf32>
      %c0_26 = arith.constant 0 : index
      %c0_27 = arith.constant 0 : index
      %26 = vector.load %arg6[%c0_26, %c0_27] : memref<1x128xf32, #tpu.memory_space<vmem>>, vector<1x128xf32>
      %27 = vector.broadcast %26 : vector<1x128xf32> to vector<512x128xf32>
      %28 = arith.addf %25, %27 : vector<512x128xf32>
      %cst_28 = arith.constant 0.000000e+00 : f32
      %29 = vector.broadcast %cst_28 : f32 to vector<512x128xf32>
      %30 = arith.maximumf %28, %29 : vector<512x128xf32>
      %31 = arith.truncf %30 : vector<512x128xf32> to vector<512x128xbf16>
      %c0_29 = arith.constant 0 : index
      %c0_30 = arith.constant 0 : index
      %32 = vector.load %arg8[%c0_29, %c0_30] : memref<512x128xbf16, #tpu.memory_space<vmem>>, vector<512x128xbf16>
      tpu.vector_store %arg8[%c0_29, %c0_30], %31 {strides = array<i32>} : memref<512x128xbf16, #tpu.memory_space<vmem>>, vector<512x128xbf16>,
    } else {
    }
    return
  }
  func.func @transform_0(%arg0: i32, %arg1: i32) -> (i32, i32) {
    %c0_i32 = arith.constant 0 : i32
    return %arg0, %arg1 : i32, i32
  }
  func.func @transform_1(%arg0: i32, %arg1: i32) -> (i32, i32) {
    %c0_i32 = arith.constant 0 : i32
    %c0_i32_0 = arith.constant 0 : i32
    return %arg1, %c0_i32 : i32, i32
  }
  func.func @transform_2(%arg0: i32, %arg1: i32) -> (i32, i32) {
    %c0_i32 = arith.constant 0 : i32
    %c0_i32_0 = arith.constant 0 : i32
    return %arg1, %c0_i32 : i32, i32
  }
  func.func @transform_3(%arg0: i32, %arg1: i32) -> (i32, i32) {
    %c0_i32 = arith.constant 0 : i32
    %c0_i32_0 = arith.constant 0 : i32
    %c0_i32_1 = arith.constant 0 : i32
    return %c0_i32, %c0_i32_0 : i32, i32
  }
  func.func @transform_4(%arg0: i32, %arg1: i32) -> (i32, i32) {
    %c0_i32 = arith.constant 0 : i32
    %c0_i32_0 = arith.constant 0 : i32
    %c0_i32_1 = arith.constant 0 : i32
    return %c0_i32, %c0_i32_0 : i32, i32
  }
  func.func @transform_5(%arg0: i32, %arg1: i32) -> (i32, i32) {
    %c0_i32 = arith.constant 0 : i32
    %c0_i32_0 = arith.constant 0 : i32
    return %arg0, %c0_i32 : i32, i32
  }
  func.func @transform_6(%arg0: i32, %arg1: i32) -> (i32, i32) {
    %c0_i32 = arith.constant 0 : i32
    %c0_i32_0 = arith.constant 0 : i32
    return %arg0, %c0_i32 : i32, i32
  }
}

module attributes {stable_mosaic.version = 11 : i64} {
  func.func @_conv3x3_kernel(%arg0: i32, %arg1: i32, %arg2: memref<1x1x456x128xbf16, #tpu.memory_space<vmem>>, %arg3: memref<1152x128xbf16, #tpu.memory_space<vmem>>, %arg4: memref<1x128xf32, #tpu.memory_space<vmem>>, %arg5: memref<1x1x384x128xbf16, #tpu.memory_space<vmem>>, %arg6: memref<384x1152xbf16, #tpu.memory_space<vmem>>) attributes {dimension_semantics = [#tpu.dimension_semantics<parallel>, #tpu.dimension_semantics<parallel>], iteration_bounds = array<i64: 2, 1>, scalar_prefetch = 0 : i64, scratch_operands = 1 : i64, tpu.core_type = #tpu.core_type<tc>, window_params = [{transform_indices = @transform_0, window_bounds = array<i64: 1, 1, 456, 128>}, {pipeline_mode = #tpu.pipeline_mode<synchronous>, transform_indices = @transform_1, window_bounds = array<i64: 1152, 128>}, {pipeline_mode = #tpu.pipeline_mode<synchronous>, transform_indices = @transform_2, window_bounds = array<i64: 1, 128>}, {transform_indices = @transform_3, window_bounds = array<i64: 1, 1, 384, 128>}]} {
    %c0 = arith.constant 0 : index
    %c0_0 = arith.constant 0 : index
    %c0_1 = arith.constant 0 : index
    %c0_2 = arith.constant 0 : index
    %0 = vector.load %arg2[%c0, %c0_0, %c0_1, %c0_2] : memref<1x1x456x128xbf16, #tpu.memory_space<vmem>>, vector<1x1x384x128xbf16>
    %1 = vector.shape_cast %0 : vector<1x1x384x128xbf16> to vector<384x128xbf16>
    %c0_3 = arith.constant 0 : index
    %c0_4 = arith.constant 0 : index
    %2 = vector.load %arg6[%c0_3, %c0_4] : memref<384x1152xbf16, #tpu.memory_space<vmem>>, vector<384x128xbf16>
    tpu.vector_store %arg6[%c0_3, %c0_4], %1 {strides = array<i32>} : memref<384x1152xbf16, #tpu.memory_space<vmem>>, vector<384x128xbf16>,
    %c0_5 = arith.constant 0 : index
    %c0_6 = arith.constant 0 : index
    %c1 = arith.constant 1 : index
    %c0_7 = arith.constant 0 : index
    %3 = vector.load %arg2[%c0_5, %c0_6, %c1, %c0_7] : memref<1x1x456x128xbf16, #tpu.memory_space<vmem>>, vector<1x1x384x128xbf16>
    %4 = vector.shape_cast %3 : vector<1x1x384x128xbf16> to vector<384x128xbf16>
    %c0_8 = arith.constant 0 : index
    %c128 = arith.constant 128 : index
    %5 = vector.load %arg6[%c0_8, %c128] : memref<384x1152xbf16, #tpu.memory_space<vmem>>, vector<384x128xbf16>
    tpu.vector_store %arg6[%c0_8, %c128], %4 {strides = array<i32>} : memref<384x1152xbf16, #tpu.memory_space<vmem>>, vector<384x128xbf16>,
    %c0_9 = arith.constant 0 : index
    %c0_10 = arith.constant 0 : index
    %c2 = arith.constant 2 : index
    %c0_11 = arith.constant 0 : index
    %6 = vector.load %arg2[%c0_9, %c0_10, %c2, %c0_11] : memref<1x1x456x128xbf16, #tpu.memory_space<vmem>>, vector<1x1x384x128xbf16>
    %7 = vector.shape_cast %6 : vector<1x1x384x128xbf16> to vector<384x128xbf16>
    %c0_12 = arith.constant 0 : index
    %c256 = arith.constant 256 : index
    %8 = vector.load %arg6[%c0_12, %c256] : memref<384x1152xbf16, #tpu.memory_space<vmem>>, vector<384x128xbf16>
    tpu.vector_store %arg6[%c0_12, %c256], %7 {strides = array<i32>} : memref<384x1152xbf16, #tpu.memory_space<vmem>>, vector<384x128xbf16>,
    %c0_13 = arith.constant 0 : index
    %c0_14 = arith.constant 0 : index
    %c24 = arith.constant 24 : index
    %c0_15 = arith.constant 0 : index
    %9 = vector.load %arg2[%c0_13, %c0_14, %c24, %c0_15] : memref<1x1x456x128xbf16, #tpu.memory_space<vmem>>, vector<1x1x384x128xbf16>
    %10 = vector.shape_cast %9 : vector<1x1x384x128xbf16> to vector<384x128xbf16>
    %c0_16 = arith.constant 0 : index
    %c384 = arith.constant 384 : index
    %11 = vector.load %arg6[%c0_16, %c384] : memref<384x1152xbf16, #tpu.memory_space<vmem>>, vector<384x128xbf16>
    tpu.vector_store %arg6[%c0_16, %c384], %10 {strides = array<i32>} : memref<384x1152xbf16, #tpu.memory_space<vmem>>, vector<384x128xbf16>,
    %c0_17 = arith.constant 0 : index
    %c0_18 = arith.constant 0 : index
    %c25 = arith.constant 25 : index
    %c0_19 = arith.constant 0 : index
    %12 = vector.load %arg2[%c0_17, %c0_18, %c25, %c0_19] : memref<1x1x456x128xbf16, #tpu.memory_space<vmem>>, vector<1x1x384x128xbf16>
    %13 = vector.shape_cast %12 : vector<1x1x384x128xbf16> to vector<384x128xbf16>
    %c0_20 = arith.constant 0 : index
    %c512 = arith.constant 512 : index
    %14 = vector.load %arg6[%c0_20, %c512] : memref<384x1152xbf16, #tpu.memory_space<vmem>>, vector<384x128xbf16>
    tpu.vector_store %arg6[%c0_20, %c512], %13 {strides = array<i32>} : memref<384x1152xbf16, #tpu.memory_space<vmem>>, vector<384x128xbf16>,
    %c0_21 = arith.constant 0 : index
    %c0_22 = arith.constant 0 : index
    %c26 = arith.constant 26 : index
    %c0_23 = arith.constant 0 : index
    %15 = vector.load %arg2[%c0_21, %c0_22, %c26, %c0_23] : memref<1x1x456x128xbf16, #tpu.memory_space<vmem>>, vector<1x1x384x128xbf16>
    %16 = vector.shape_cast %15 : vector<1x1x384x128xbf16> to vector<384x128xbf16>
    %c0_24 = arith.constant 0 : index
    %c640 = arith.constant 640 : index
    %17 = vector.load %arg6[%c0_24, %c640] : memref<384x1152xbf16, #tpu.memory_space<vmem>>, vector<384x128xbf16>
    tpu.vector_store %arg6[%c0_24, %c640], %16 {strides = array<i32>} : memref<384x1152xbf16, #tpu.memory_space<vmem>>, vector<384x128xbf16>,
    %c0_25 = arith.constant 0 : index
    %c0_26 = arith.constant 0 : index
    %c48 = arith.constant 48 : index
    %c0_27 = arith.constant 0 : index
    %18 = vector.load %arg2[%c0_25, %c0_26, %c48, %c0_27] : memref<1x1x456x128xbf16, #tpu.memory_space<vmem>>, vector<1x1x384x128xbf16>
    %19 = vector.shape_cast %18 : vector<1x1x384x128xbf16> to vector<384x128xbf16>
    %c0_28 = arith.constant 0 : index
    %c768 = arith.constant 768 : index
    %20 = vector.load %arg6[%c0_28, %c768] : memref<384x1152xbf16, #tpu.memory_space<vmem>>, vector<384x128xbf16>
    tpu.vector_store %arg6[%c0_28, %c768], %19 {strides = array<i32>} : memref<384x1152xbf16, #tpu.memory_space<vmem>>, vector<384x128xbf16>,
    %c0_29 = arith.constant 0 : index
    %c0_30 = arith.constant 0 : index
    %c49 = arith.constant 49 : index
    %c0_31 = arith.constant 0 : index
    %21 = vector.load %arg2[%c0_29, %c0_30, %c49, %c0_31] : memref<1x1x456x128xbf16, #tpu.memory_space<vmem>>, vector<1x1x384x128xbf16>
    %22 = vector.shape_cast %21 : vector<1x1x384x128xbf16> to vector<384x128xbf16>
    %c0_32 = arith.constant 0 : index
    %c896 = arith.constant 896 : index
    %23 = vector.load %arg6[%c0_32, %c896] : memref<384x1152xbf16, #tpu.memory_space<vmem>>, vector<384x128xbf16>
    tpu.vector_store %arg6[%c0_32, %c896], %22 {strides = array<i32>} : memref<384x1152xbf16, #tpu.memory_space<vmem>>, vector<384x128xbf16>,
    %c0_33 = arith.constant 0 : index
    %c0_34 = arith.constant 0 : index
    %c50 = arith.constant 50 : index
    %c0_35 = arith.constant 0 : index
    %24 = vector.load %arg2[%c0_33, %c0_34, %c50, %c0_35] : memref<1x1x456x128xbf16, #tpu.memory_space<vmem>>, vector<1x1x384x128xbf16>
    %25 = vector.shape_cast %24 : vector<1x1x384x128xbf16> to vector<384x128xbf16>
    %c0_36 = arith.constant 0 : index
    %c1024 = arith.constant 1024 : index
    %26 = vector.load %arg6[%c0_36, %c1024] : memref<384x1152xbf16, #tpu.memory_space<vmem>>, vector<384x128xbf16>
    tpu.vector_store %arg6[%c0_36, %c1024], %25 {strides = array<i32>} : memref<384x1152xbf16, #tpu.memory_space<vmem>>, vector<384x128xbf16>,
    %c0_37 = arith.constant 0 : index
    %c0_38 = arith.constant 0 : index
    %27 = vector.load %arg6[%c0_37, %c0_38] : memref<384x1152xbf16, #tpu.memory_space<vmem>>, vector<384x1152xbf16>
    %c0_39 = arith.constant 0 : index
    %c0_40 = arith.constant 0 : index
    %28 = vector.load %arg3[%c0_39, %c0_40] : memref<1152x128xbf16, #tpu.memory_space<vmem>>, vector<1152x128xbf16>
    %cst = arith.constant dense<0.000000e+00> : vector<384x128xf32>
    %29 = tpu.matmul %27, %28, %cst {dimension_numbers = #tpu.dot_dimension_numbers<[1], [0], [0], [1], [0, 0, 1, 1], [], []>} : vector<384x1152xbf16>, vector<1152x128xbf16>, vector<384x128xf32> -> vector<384x128xf32>
    %c0_41 = arith.constant 0 : index
    %c0_42 = arith.constant 0 : index
    %30 = vector.load %arg4[%c0_41, %c0_42] : memref<1x128xf32, #tpu.memory_space<vmem>>, vector<1x128xf32>
    %31 = vector.broadcast %30 : vector<1x128xf32> to vector<384x128xf32>
    %32 = arith.addf %29, %31 : vector<384x128xf32>
    %cst_43 = arith.constant 0.000000e+00 : f32
    %33 = vector.broadcast %cst_43 : f32 to vector<384x128xf32>
    %34 = arith.maximumf %32, %33 : vector<384x128xf32>
    %35 = vector.shape_cast %34 : vector<384x128xf32> to vector<1x1x384x128xf32>
    %36 = arith.truncf %35 : vector<1x1x384x128xf32> to vector<1x1x384x128xbf16>
    %c0_44 = arith.constant 0 : index
    %c0_45 = arith.constant 0 : index
    %c0_46 = arith.constant 0 : index
    %c0_47 = arith.constant 0 : index
    %37 = vector.load %arg5[%c0_44, %c0_45, %c0_46, %c0_47] : memref<1x1x384x128xbf16, #tpu.memory_space<vmem>>, vector<1x1x384x128xbf16>
    tpu.vector_store %arg5[%c0_44, %c0_45, %c0_46, %c0_47], %36 {strides = array<i32>} : memref<1x1x384x128xbf16, #tpu.memory_space<vmem>>, vector<1x1x384x128xbf16>,
    return
  }
  func.func @transform_0(%arg0: i32, %arg1: i32) -> (i32, i32, i32, i32) {
    %c0_i32 = arith.constant 0 : i32
    %c0_i32_0 = arith.constant 0 : i32
    %c0_i32_1 = arith.constant 0 : i32
    return %arg0, %arg1, %c0_i32, %c0_i32_0 : i32, i32, i32, i32
  }
  func.func @transform_1(%arg0: i32, %arg1: i32) -> (i32, i32) {
    %c0_i32 = arith.constant 0 : i32
    %c0_i32_0 = arith.constant 0 : i32
    %c0_i32_1 = arith.constant 0 : i32
    return %c0_i32, %c0_i32_0 : i32, i32
  }
  func.func @transform_2(%arg0: i32, %arg1: i32) -> (i32, i32) {
    %c0_i32 = arith.constant 0 : i32
    %c0_i32_0 = arith.constant 0 : i32
    %c0_i32_1 = arith.constant 0 : i32
    return %c0_i32, %c0_i32_0 : i32, i32
  }
  func.func @transform_3(%arg0: i32, %arg1: i32) -> (i32, i32, i32, i32) {
    %c0_i32 = arith.constant 0 : i32
    %c0_i32_0 = arith.constant 0 : i32
    %c0_i32_1 = arith.constant 0 : i32
    return %arg0, %arg1, %c0_i32, %c0_i32_0 : i32, i32, i32, i32
  }
}

module attributes {stable_mosaic.version = 11 : i64} {
  func.func @_cv3_fused_kernel(%arg0: i32, %arg1: i32, %arg2: memref<1x1xf32, #tpu.memory_space<smem>>, %arg3: memref<512x128xbf16, #tpu.memory_space<vmem>>, %arg4: memref<512x128xbf16, #tpu.memory_space<vmem>>, %arg5: memref<512x128xbf16, #tpu.memory_space<vmem>>, %arg6: memref<128x128xbf16, #tpu.memory_space<vmem>>, %arg7: memref<128x128xbf16, #tpu.memory_space<vmem>>, %arg8: memref<1x128xf32, #tpu.memory_space<vmem>>, %arg9: memref<512x128xf32, #tpu.memory_space<vmem>>) attributes {dimension_semantics = [#tpu.dimension_semantics<parallel>, #tpu.dimension_semantics<parallel>], iteration_bounds = array<i64: 1, 1>, scalar_prefetch = 0 : i64, scratch_operands = 0 : i64, tpu.core_type = #tpu.core_type<tc>, window_params = [{transform_indices = @transform_0, window_bounds = array<i64: 1, 1>}, {transform_indices = @transform_1, window_bounds = array<i64: 512, 128>}, {transform_indices = @transform_2, window_bounds = array<i64: 512, 128>}, {transform_indices = @transform_3, window_bounds = array<i64: 512, 128>}, {transform_indices = @transform_4, window_bounds = array<i64: 128, 128>}, {transform_indices = @transform_5, window_bounds = array<i64: 128, 128>}, {transform_indices = @transform_6, window_bounds = array<i64: 1, 128>}, {transform_indices = @transform_7, window_bounds = array<i64: 512, 128>}]} {
    %c0 = arith.constant 0 : index
    %c0_0 = arith.constant 0 : index
    %0 = memref.load %arg2[%c0, %c0_0] : memref<1x1xf32, #tpu.memory_space<smem>>
    %c0_1 = arith.constant 0 : index
    %c0_2 = arith.constant 0 : index
    %1 = vector.load %arg3[%c0_1, %c0_2] : memref<512x128xbf16, #tpu.memory_space<vmem>>, vector<512x128xbf16>
    %2 = arith.extf %1 : vector<512x128xbf16> to vector<512x128xf32>
    %c0_3 = arith.constant 0 : index
    %c0_4 = arith.constant 0 : index
    %3 = vector.load %arg4[%c0_3, %c0_4] : memref<512x128xbf16, #tpu.memory_space<vmem>>, vector<512x128xbf16>
    %4 = arith.extf %3 : vector<512x128xbf16> to vector<512x128xf32>
    %5 = vector.broadcast %0 : f32 to vector<512x128xf32>
    %6 = arith.mulf %5, %4 : vector<512x128xf32>
    %7 = arith.addf %2, %6 : vector<512x128xf32>
    %8 = arith.truncf %7 : vector<512x128xf32> to vector<512x128xbf16>
    %c0_5 = arith.constant 0 : index
    %c0_6 = arith.constant 0 : index
    %9 = vector.load %arg6[%c0_5, %c0_6] : memref<128x128xbf16, #tpu.memory_space<vmem>>, vector<128x128xbf16>
    %cst = arith.constant dense<0.000000e+00> : vector<512x128xf32>
    %10 = tpu.matmul %8, %9, %cst {dimension_numbers = #tpu.dot_dimension_numbers<[1], [0], [0], [1], [0, 0, 1, 1], [], []>} : vector<512x128xbf16>, vector<128x128xbf16>, vector<512x128xf32> -> vector<512x128xf32>
    %c0_7 = arith.constant 0 : index
    %c0_8 = arith.constant 0 : index
    %11 = vector.load %arg5[%c0_7, %c0_8] : memref<512x128xbf16, #tpu.memory_space<vmem>>, vector<512x128xbf16>
    %c0_9 = arith.constant 0 : index
    %c0_10 = arith.constant 0 : index
    %12 = vector.load %arg7[%c0_9, %c0_10] : memref<128x128xbf16, #tpu.memory_space<vmem>>, vector<128x128xbf16>
    %cst_11 = arith.constant dense<0.000000e+00> : vector<512x128xf32>
    %13 = tpu.matmul %11, %12, %cst_11 {dimension_numbers = #tpu.dot_dimension_numbers<[1], [0], [0], [1], [0, 0, 1, 1], [], []>} : vector<512x128xbf16>, vector<128x128xbf16>, vector<512x128xf32> -> vector<512x128xf32>
    %14 = arith.addf %10, %13 : vector<512x128xf32>
    %c0_12 = arith.constant 0 : index
    %c0_13 = arith.constant 0 : index
    %15 = vector.load %arg8[%c0_12, %c0_13] : memref<1x128xf32, #tpu.memory_space<vmem>>, vector<1x128xf32>
    %16 = vector.broadcast %15 : vector<1x128xf32> to vector<512x128xf32>
    %17 = arith.addf %14, %16 : vector<512x128xf32>
    %cst_14 = arith.constant 0.000000e+00 : f32
    %18 = vector.broadcast %cst_14 : f32 to vector<512x128xf32>
    %19 = arith.maximumf %17, %18 : vector<512x128xf32>
    %c0_15 = arith.constant 0 : index
    %c0_16 = arith.constant 0 : index
    %20 = vector.load %arg9[%c0_15, %c0_16] : memref<512x128xf32, #tpu.memory_space<vmem>>, vector<512x128xf32>
    tpu.vector_store %arg9[%c0_15, %c0_16], %19 {strides = array<i32>} : memref<512x128xf32, #tpu.memory_space<vmem>>, vector<512x128xf32>,
    return
  }
  func.func @transform_0(%arg0: i32, %arg1: i32) -> (i32, i32) {
    %c0_i32 = arith.constant 0 : i32
    %c0_i32_0 = arith.constant 0 : i32
    %c0_i32_1 = arith.constant 0 : i32
    return %c0_i32, %c0_i32_0 : i32, i32
  }
  func.func @transform_1(%arg0: i32, %arg1: i32) -> (i32, i32) {
    %c0_i32 = arith.constant 0 : i32
    %c0_i32_0 = arith.constant 0 : i32
    return %arg0, %c0_i32 : i32, i32
  }
  func.func @transform_2(%arg0: i32, %arg1: i32) -> (i32, i32) {
    %c0_i32 = arith.constant 0 : i32
    %c0_i32_0 = arith.constant 0 : i32
    return %arg0, %c0_i32 : i32, i32
  }
  func.func @transform_3(%arg0: i32, %arg1: i32) -> (i32, i32) {
    %c0_i32 = arith.constant 0 : i32
    %c0_i32_0 = arith.constant 0 : i32
    return %arg0, %c0_i32 : i32, i32
  }
  func.func @transform_4(%arg0: i32, %arg1: i32) -> (i32, i32) {
    %c0_i32 = arith.constant 0 : i32
    %c0_i32_0 = arith.constant 0 : i32
    return %c0_i32, %arg1 : i32, i32
  }
  func.func @transform_5(%arg0: i32, %arg1: i32) -> (i32, i32) {
    %c0_i32 = arith.constant 0 : i32
    %c0_i32_0 = arith.constant 0 : i32
    return %c0_i32, %arg1 : i32, i32
  }
  func.func @transform_6(%arg0: i32, %arg1: i32) -> (i32, i32) {
    %c0_i32 = arith.constant 0 : i32
    %c0_i32_0 = arith.constant 0 : i32
    return %c0_i32, %arg1 : i32, i32
  }
  func.func @transform_7(%arg0: i32, %arg1: i32) -> (i32, i32) {
    %c0_i32 = arith.constant 0 : i32
    return %arg0, %arg1 : i32, i32
  }
}

</mosaic_0001>

<bundles_post_ra>
// kernel: bepc3_forward.7
= control target key start
LH: loop header
LB: loop body
LE: loop exit
PB: predicated region body
PF: predicated region fallthrough
CT: control target
= control target key end

     0   :  { %s3206_s5 = inlined_call_operand.vmem [shape: bf16[128,128], index: 5, kind: input, shape index: {}]   ;;  %s3207_s4 = inlined_call_operand.vmem [shape: bf16[128,128], index: 4, kind: input, shape index: {}]   ;;  %s3208_s3 = inlined_call_operand.vmem [shape: bf16[512,128], index: 3, kind: input, shape index: {}]   ;;  %s3209_s0 = inlined_call_operand.<no memory space> [shape: f32[1,1], index: 0, kind: input, shape index: {}]   ;;  %s3210_s1 = inlined_call_operand.vmem [shape: bf16[512,128], index: 1, kind: input, shape index: {}]   ;;  %s3211_s2 = inlined_call_operand.vmem [shape: bf16[512,128], index: 2, kind: input, shape index: {}]   ;;  %s3212_s6 = inlined_call_operand.vmem [shape: f32[1,128], index: 6, kind: input, shape index: {}]   ;;  %s3213_s7 = inlined_call_operand.vmem [shape: f32[512,128], index: 7, kind: output, shape index: {}]  }
   0x1   :  { %v2218_v0 = vld [vmem:[%s3206_s5 + $0x38] sm:$0xff]   ;;  %v2220_v2 = vld [vmem:[%s3206_s5 + $0x30] sm:$0xff]   ;;  %v2222_v4 = vld [vmem:[%s3206_s5 + $0x28] sm:$0xff]   ;;  %v2354_v15 = vstv %s3209_s0 }
   0x2   :  { %v2219_v1 = vld [vmem:[%s3207_s4 + $0x38] sm:$0xff]   ;;  %2058 = vmatprep.subr.bf16.mxu0 %v2218_v0  ;;  %v2221_v3 = vld [vmem:[%s3207_s4 + $0x30] sm:$0xff]   ;;  %v2223_v5 = vld [vmem:[%s3207_s4 + $0x28] sm:$0xff]  }
   0x3   :  { %2138 = vmatprep.subr.bf16.mxu1 %v2219_v1  ;;  %2059 = vmatpush3.bf16.msra.mxu0 %v2218_v0  ;;  %v2224_v6 = vld [vmem:[%s3206_s5 + $0x20] sm:$0xff]   ;;  %v2226_v8 = vld [vmem:[%s3206_s5 + $0x18] sm:$0xff]   ;;  %v2228_v10 = vld [vmem:[%s3206_s5 + $0x10] sm:$0xff]  }
   0x4   :  { %2139 = vmatpush3.bf16.msra.mxu1 %v2219_v1  ;;  %2060 = vmatprep.subr.bf16.mxu0 %v2220_v2  ;;  %v2225_v7 = vld [vmem:[%s3207_s4 + $0x20] sm:$0xff]   ;;  %v2227_v9 = vld [vmem:[%s3207_s4 + $0x18] sm:$0xff]   ;;  %v2229_v11 = vld [vmem:[%s3207_s4 + $0x10] sm:$0xff]  }
   0x5   :  { %2140 = vmatprep.subr.bf16.mxu1 %v2221_v3  ;;  %v2234_v12 = vld [vmem:[%s3208_s3] sm:$0xff]   ;;  %v1916_v20 = vld [vmem:[%s3210_s1 + $0x8] sm:$0xff]   ;;  %v1917_v29 = vld [vmem:[%s3210_s1 + $0x10] sm:$0xff]  }
   0x6   :  { %v1661_v13 = vld [vmem:[%s3210_s1] sm:$0xff]   ;;  %2074 = vmatprep.mubr.bf16.mxu0 %v2234_v12  ;;  %v1666_v21 = vunpack.c.l.bf16 %v1916_v20  ;;  %v1667_v22 = vunpack.c.h.bf16 %v1916_v20  ;;  %v1947_v23 = vld [vmem:[%s3211_s2 + $0x8] sm:$0xff]   ;;  %v1948_v30 = vld [vmem:[%s3211_s2 + $0x10] sm:$0xff]   ;;  %v1670_v32 = vunpack.c.l.bf16 %v1917_v29  ;;  %v1671_v33 = vunpack.c.h.bf16 %v1917_v29 }
   0x7   :  { %2061 = vmatpush3.bf16.msra.mxu0 %v2220_v2  ;;  %v1789_v14 = vld [vmem:[%s3211_s2] sm:$0xff]   ;;  %v1662_v16 = vunpack.c.l.bf16 %v1661_v13  ;;  %v1663_v17 = vunpack.c.h.bf16 %v1661_v13  ;;  %v2230_v24 = vld [vmem:[%s3206_s5 + $0x8] sm:$0xff]   ;;  %v1794_v27 = vunpack.c.l.bf16 %v1947_v23  ;;  %v1795_v28 = vunpack.c.h.bf16 %v1947_v23  ;;  %v1918_v40 = vld [vmem:[%s3210_s1 + $0x18] sm:$0xff]  }
   0x8   :  { %2141 = vmatpush3.bf16.msra.mxu1 %v2221_v3  ;;  %2062 = vmatprep.subr.bf16.mxu0 %v2222_v4  ;;  %v1790_v18 = vunpack.c.l.bf16 %v1789_v14  ;;  %v1791_v19 = vunpack.c.h.bf16 %v1789_v14  ;;  %v2231_v31 = vld [vmem:[%s3207_s4 + $0x8] sm:$0xff]   ;;  %v1798_v34 = vunpack.c.l.bf16 %v1948_v30  ;;  %v1799_v35 = vunpack.c.h.bf16 %v1948_v30  ;;  %v1949_v41 = vld [vmem:[%s3211_s2 + $0x18] sm:$0xff]   ;;  %v2232_v42 = vld [vmem:[%s3206_s5] sm:$0xff]  }
   0x9   :  { %2142 = vmatprep.subr.bf16.mxu1 %v2223_v5  ;;  %v288_v38 = vmul.f32 %v1794_v27, %v2354_v15  ;;  %v289_v39 = vmul.f32 %v1795_v28, %v2354_v15  ;;  %v1674_v45 = vunpack.c.l.bf16 %v1918_v40  ;;  %v1675_v46 = vunpack.c.h.bf16 %v1918_v40  ;;  %v1919_v47 = vld [vmem:[%s3210_s1 + $0x20] sm:$0xff]   ;;  %v1920_v58 = vld [vmem:[%s3210_s1 + $0x28] sm:$0xff]   ;;  %v1922_v14 = vld [vmem:[%s3210_s1 + $0x38] sm:$0xff]  }
   0xa   :  { %v286_v25 = vmul.f32 %v1790_v18, %v2354_v15  ;;  %v287_v26 = vmul.f32 %v1791_v19, %v2354_v15  ;;  %v290_v43 = vmul.f32 %v1798_v34, %v2354_v15  ;;  %v291_v44 = vmul.f32 %v1799_v35, %v2354_v15  ;;  %v1950_v52 = vld [vmem:[%s3211_s2 + $0x20] sm:$0xff]   ;;  %v1951_v59 = vld [vmem:[%s3211_s2 + $0x28] sm:$0xff]  }
   0xb   :  { %2063 = vmatpush3.bf16.msra.mxu0 %v2222_v4  ;;  %v2392_v49 = vadd.f32 %v1666_v21, %v288_v38  ;;  %v2394_v50 = vadd.f32 %v1667_v22, %v289_v39  ;;  %v1802_v51 = vunpack.c.l.bf16 %v1949_v41  ;;  %v2233_v53 = vld [vmem:[%s3207_s4] sm:$0xff]   ;;  %v1803_v56 = vunpack.c.h.bf16 %v1949_v41  ;;  %v1921_v4 = vld [vmem:[%s3210_s1 + $0x30] sm:$0xff]   ;;  %v1953_v22 = vld [vmem:[%s3211_s2 + $0x38] sm:$0xff]  }
   0xc   :  { %2143 = vmatpush3.bf16.msra.mxu1 %v2223_v5  ;;  %2064 = vmatprep.subr.bf16.mxu0 %v2224_v6  ;;  %v350_v36 = vadd.f32 %v1662_v16, %v286_v25  ;;  %v351_v37 = vadd.f32 %v1663_v17, %v287_v26  ;;  %v2402_v54 = vadd.f32 %v1670_v32, %v290_v43  ;;  %v1678_v57 = vunpack.c.l.bf16 %v1919_v47  ;;  %v1952_v5 = vld [vmem:[%s3211_s2 + $0x30] sm:$0xff]   ;;  %v2235_v16 = vld [vmem:[%s3208_s3 + $0x8] sm:$0xff]   ;;  %v1923_v27 = vld [vmem:[%s3210_s1 + $0x40] sm:$0xff]  }
   0xd   :  { %2144 = vmatprep.subr.bf16.mxu1 %v2225_v7  ;;  %v2404_v55 = vadd.f32 %v1671_v33, %v291_v44  ;;  %v415_v60 = vpack.c.bf16 %v2394_v50, %v2392_v49  ;;  %v292_v61 = vmul.f32 %v1802_v51, %v2354_v15  ;;  %v1679_v62 = vunpack.c.h.bf16 %v1919_v47  ;;  %v2236_v17 = vld [vmem:[%s3208_s3 + $0x10] sm:$0xff]   ;;  %v1954_v32 = vld [vmem:[%s3211_s2 + $0x40] sm:$0xff]  }
   0xe   :  { %v414_v48 = vpack.c.bf16 %v351_v37, %v350_v36  ;;  %v1806_v63 = vunpack.c.l.bf16 %v1950_v52  ;;  %v293_v1 = vmul.f32 %v1803_v56, %v2354_v15  ;;  %v1807_v2 = vunpack.c.h.bf16 %v1950_v52  ;;  %v1924_v37 = vld [vmem:[%s3210_s1 + $0x48] sm:$0xff]   ;;  %v1925_v47 = vld [vmem:[%s3210_s1 + $0x50] sm:$0xff]  }
   0xf   :  { %2065 = vmatpush3.bf16.msra.mxu0 %v2224_v6  ;;  %v416_v0 = vpack.c.bf16 %v2404_v55, %v2402_v54  ;;  %v1682_v3 = vunpack.c.l.bf16 %v1920_v58  ;;  %v2424_v6 = vadd.f32 %v1674_v45, %v292_v61  ;;  %v1811_v12 = vunpack.c.h.bf16 %v1951_v59  ;;  %v1956_v52 = vld [vmem:[%s3211_s2 + $0x50] sm:$0xff]  }
  0x10   :  { %2145 = vmatpush3.bf16.msra.mxu1 %v2225_v7  ;;  %2066 = vmatprep.subr.bf16.mxu0 %v2226_v8  ;;  %v294_v7 = vmul.f32 %v1806_v63, %v2354_v15  ;;  %v1686_v13 = vunpack.c.l.bf16 %v1921_v4  ;;  %v1687_v20 = vunpack.c.h.bf16 %v1921_v4  ;;  %v1814_v21 = vunpack.c.l.bf16 %v1952_v5  ;;  %v1926_v63 = vld [vmem:[%s3210_s1 + $0x58] sm:$0xff]  }
  0x11   :  { %2146 = vmatprep.subr.bf16.mxu1 %v2227_v9  ;;  %2154 = vmatprep.mubr.bf16.mxu1 %v414_v48  ;;  %v297_v25 = vmul.f32 %v1811_v12, %v2354_v15  ;;  %v1815_v26 = vunpack.c.h.bf16 %v1952_v5  ;;  %v1690_v30 = vunpack.c.l.bf16 %v1922_v14  ;;  %v1818_v36 = vunpack.c.l.bf16 %v1953_v22  ;;  %v1957_v4 = vld [vmem:[%s3211_s2 + $0x58] sm:$0xff]  }
  0x12   :  { %v2439_v18 = vadd.f32 %v1678_v57, %v294_v7  ;;  %v298_v29 = vmul.f32 %v1814_v21, %v2354_v15  ;;  %v1819_v39 = vunpack.c.h.bf16 %v1953_v22  ;;  %v1694_v40 = vunpack.c.l.bf16 %v1923_v27  ;;  %v1928_v22 = vld [vmem:[%s3210_s1 + $0x68] sm:$0xff]  }
  0x13   :  { %2067 = vmatpush3.bf16.msra.mxu0 %v2226_v8  ;;  %v1683_v8 = vunpack.c.h.bf16 %v1920_v58  ;;  %v299_v35 = vmul.f32 %v1815_v26, %v2354_v15  ;;  %v1695_v41 = vunpack.c.h.bf16 %v1923_v27  ;;  %v300_v45 = vmul.f32 %v1818_v36, %v2354_v15  ;;  %v2238_v58 = vld [vmem:[%s3208_s3 + $0x20] sm:$0xff]  }
  0x14   :  { %2147 = vmatpush3.bf16.msra.mxu1 %v2227_v9  ;;  %2068 = vmatprep.subr.bf16.mxu0 %v2228_v10  ;;  %v1810_v9 = vunpack.c.l.bf16 %v1951_v59  ;;  %v2467_v38 = vadd.f32 %v1686_v13, %v298_v29  ;;  %v301_v48 = vmul.f32 %v1819_v39, %v2354_v15  ;;  %v1823_v49 = vunpack.c.h.bf16 %v1954_v32  ;;  %v1959_v29 = vld [vmem:[%s3211_s2 + $0x68] sm:$0xff]  }
  0x15   :  { %2148 = vmatprep.subr.bf16.mxu1 %v2229_v11  ;;  %v2461_v34 = vadd.f32 %v1683_v8, %v297_v25  ;;  %v2474_v44 = vadd.f32 %v1687_v20, %v299_v35  ;;  %v1698_v50 = vunpack.c.l.bf16 %v1924_v37  ;;  %v1699_v51 = vunpack.c.h.bf16 %v1924_v37  ;;  %v2239_v39 = vld [vmem:[%s3208_s3 + $0x28] sm:$0xff]  }
  0x16   :  { %v296_v19 = vmul.f32 %v1810_v9, %v2354_v15  ;;  %v2489_v55 = vadd.f32 %v1690_v30, %v300_v45  ;;  %v1831_v9 = vunpack.c.h.bf16 %v1956_v52  ;;  %v1834_v21 = vunpack.c.l.bf16 %v1957_v4 }
  0x17   :  { %2069 = vmatpush3.bf16.msra.mxu0 %v2228_v10  ;;  %v2427_v10 = vadd.f32 %v1675_v46, %v293_v1  ;;  %v1822_v46 = vunpack.c.l.bf16 %v1954_v32  ;;  %v420_v54 = vpack.c.bf16 %v2474_v44, %v2467_v38  ;;  %v1835_v25 = vunpack.c.h.bf16 %v1957_v4 }
  0x18   :  { %2149 = vmatpush3.bf16.msra.mxu1 %v2229_v11  ;;  %2070 = vmatprep.subr.bf16.mxu0 %v2230_v24  ;;  %v295_v11 = vmul.f32 %v1807_v2, %v2354_v15  ;;  %v2453_v28 = vadd.f32 %v1682_v3, %v296_v19  ;;  %v1703_v2 = vunpack.c.h.bf16 %v1925_v47  ;;  %v1830_v3 = vunpack.c.l.bf16 %v1956_v52 }
  0x19   :  { %2150 = vmatprep.subr.bf16.mxu1 %v2231_v31  ;;  %v417_v23 = vpack.c.bf16 %v2427_v10, %v2424_v6  ;;  %v302_v56 = vmul.f32 %v1822_v46, %v2354_v15  ;;  %v307_v20 = vmul.f32 %v1831_v9, %v2354_v15  ;;  %v308_v32 = vmul.f32 %v1834_v21, %v2354_v15  ;;  %v1929_v10 = vld [vmem:[%s3210_s1 + $0x70] sm:$0xff]   ;;  %v1962_v9 = vld [vmem:[%s3211_s2 + $0x80] sm:$0xff]   ;;  %v1963_v21 = vld [vmem:[%s3211_s2 + $0x88] sm:$0xff]  }
  0x1a   :  { %v419_v43 = vpack.c.bf16 %v2461_v34, %v2453_v28  ;;  %v306_v13 = vmul.f32 %v1830_v3, %v2354_v15  ;;  %v1714_v36 = vunpack.c.l.bf16 %v1928_v22  ;;  %v1715_v37 = vunpack.c.h.bf16 %v1928_v22  ;;  %v2240_v46 = vld [vmem:[%s3208_s3 + $0x30] sm:$0xff]   ;;  %v2241_v22 = vld [vmem:[%s3208_s3 + $0x38] sm:$0xff]  }
  0x1b   :  { %2071 = vmatpush3.bf16.msra.mxu0 %v2230_v24  ;;  %v2447_v24 = vadd.f32 %v1679_v62, %v295_v11  ;;  %v1702_v62 = vunpack.c.l.bf16 %v1925_v47  ;;  %v1927_v11 = vld [vmem:[%s3210_s1 + $0x60] sm:$0xff]   ;;  %v1842_v45 = vunpack.c.l.bf16 %v1959_v29  ;;  %v1854_v44 = vunpack.c.l.bf16 %v1962_v9 }
  0x1c   :  { %2151 = vmatpush3.bf16.msra.mxu1 %v2231_v31  ;;  %2072 = vmatprep.subr.bf16.mxu0 %v2232_v42  ;;  %v1691_v31 = vunpack.c.h.bf16 %v1922_v14  ;;  %v1706_v14 = vunpack.c.l.bf16 %v1926_v63  ;;  %v1710_v26 = vunpack.c.l.bf16 %v1927_v11  ;;  %v1711_v27 = vunpack.c.h.bf16 %v1927_v11 }
  0x1d   :  { %2152 = vmatprep.subr.bf16.mxu1 %v2233_v53  ;;  %v418_v33 = vpack.c.bf16 %v2447_v24, %v2439_v18  ;;  %v2532_v24 = vadd.f32 %v1702_v62, %v306_v13 }
  0x1e   :  { %v2495_v59 = vadd.f32 %v1691_v31, %v301_v48  ;;  %v2539_v31 = vadd.f32 %v1703_v2, %v307_v20 }
  0x1f   :  { %2073 = vmatpush3.bf16.msra.mxu0 %v2232_v42  ;;  %v1955_v42 = vld [vmem:[%s3211_s2 + $0x48] sm:$0xff]  }
  0x20   :  { %2153 = vmatpush3.bf16.msra.mxu1 %v2233_v53  ;;  %v2237_v53 = vld [vmem:[%s3208_s3 + $0x18] sm:$0xff]   ;;  %v1826_v57 = vunpack.c.l.bf16 %v1955_v42  ;;  %v1827_v61 = vunpack.c.h.bf16 %v1955_v42  ;;  %v421_v5 = vpack.c.bf16 %v2495_v59, %v2489_v55 }
  0x22   :  { %2075 = vmatmul.mubr.bf16.vlgmr.msra.gmra.mxu0 %v2235_v16  ;;  %v304_v1 = vmul.f32 %v1826_v57, %v2354_v15  ;;  %v305_v8 = vmul.f32 %v1827_v61, %v2354_v15  ;;  %v1707_v16 = vunpack.c.h.bf16 %v1926_v63 }
  0x23   :  { %2155 = vmatmul.mubr.bf16.vlgmr.msra.gmra.mxu1 %v415_v60  ;;  %2078 = vmatprep.mubr.bf16.mxu0 %v2236_v17  ;;  %v303_v60 = vmul.f32 %v1823_v49, %v2354_v15  ;;  %v1958_v17 = vld [vmem:[%s3211_s2 + $0x60] sm:$0xff]   ;;  %v1843_v49 = vunpack.c.h.bf16 %v1959_v29  ;;  %v1855_v29 = vunpack.c.h.bf16 %v1962_v9 }
  0x24   :  { %2158 = vmatprep.mubr.bf16.mxu1 %v416_v0  ;;  %v2501_v0 = vadd.f32 %v1694_v40, %v302_v56  ;;  %v2515_v12 = vadd.f32 %v1698_v50, %v304_v1  ;;  %v2523_v19 = vadd.f32 %v1699_v51, %v305_v8  ;;  %v1838_v6 = vunpack.c.l.bf16 %v1958_v17  ;;  %v1930_v51 = vld [vmem:[%s3210_s1 + $0x78] sm:$0xff]   ;;  %v1931_v1 = vld [vmem:[%s3210_s1 + $0x80] sm:$0xff]  }
  0x25   :  { %v2509_v7 = vadd.f32 %v1695_v41, %v303_v60  ;;  %v1839_v35 = vunpack.c.h.bf16 %v1958_v17  ;;  %v424_v40 = vpack.c.bf16 %v2539_v31, %v2532_v24  ;;  %v2554_v41 = vadd.f32 %v1706_v14, %v308_v32  ;;  %v1932_v17 = vld [vmem:[%s3210_s1 + $0x88] sm:$0xff]   ;;  %v2245_v31 = vld [vmem:[%s3208_s3 + $0x58] sm:$0xff]  }
  0x26   :  { %v423_v30 = vpack.c.bf16 %v2523_v19, %v2515_v12  ;;  %v310_v42 = vmul.f32 %v1838_v6, %v2354_v15  ;;  %v1718_v50 = vunpack.c.l.bf16 %v1929_v10  ;;  %v1719_v56 = vunpack.c.h.bf16 %v1929_v10  ;;  %v1964_v10 = vld [vmem:[%s3211_s2 + $0x90] sm:$0xff]   ;;  %v1940_v24 = vld [vmem:[%s3210_s1 + $0xc8] sm:$0xff]  }
  0x27   :  { %v422_v18 = vpack.c.bf16 %v2509_v7, %v2501_v0  ;;  %v311_v48 = vmul.f32 %v1839_v35, %v2354_v15  ;;  %v313_v62 = vmul.f32 %v1843_v49, %v2354_v15  ;;  %v1722_v4 = vunpack.c.l.bf16 %v1930_v51  ;;  %v1967_v0 = vld [vmem:[%s3211_s2 + $0xa8] sm:$0xff]  }
  0x28   :  { %v2566_v52 = vadd.f32 %v1710_v26, %v310_v42  ;;  %v1723_v8 = vunpack.c.h.bf16 %v1930_v51  ;;  %v1726_v34 = vunpack.c.l.bf16 %v1931_v1  ;;  %v1730_v32 = vunpack.c.l.bf16 %v1932_v17  ;;  %v2243_v7 = vld [vmem:[%s3208_s3 + $0x48] sm:$0xff]  }
  0x29   :  { %v2574_v61 = vadd.f32 %v1711_v27, %v311_v48  ;;  %v2591_v13 = vadd.f32 %v1715_v37, %v313_v62  ;;  %v1731_v6 = vunpack.c.h.bf16 %v1932_v17  ;;  %v318_v37 = vmul.f32 %v1854_v44, %v2354_v15  ;;  %v1934_v48 = vld [vmem:[%s3210_s1 + $0x98] sm:$0xff]   ;;  %v1936_v17 = vld [vmem:[%s3210_s1 + $0xa8] sm:$0xff]  }
  0x2a   :  { %2079 = vmatmul.mubr.bf16.gmra.mxu0 %v2237_v53  ;;  %v312_v53 = vmul.f32 %v1842_v45, %v2354_v15  ;;  %v319_v42 = vmul.f32 %v1855_v29, %v2354_v15  ;;  %v1859_v45 = vunpack.c.h.bf16 %v1963_v21  ;;  %v1739_v9 = vunpack.c.h.bf16 %v1934_v48 }
  0x2b   :  { %2159 = vmatmul.mubr.bf16.gmra.mxu1 %v417_v23  ;;  %2082 = vmatprep.mubr.bf16.mxu0 %v2238_v58  ;;  %v309_v23 = vmul.f32 %v1835_v25, %v2354_v15  ;;  %v1961_v58 = vld [vmem:[%s3211_s2 + $0x78] sm:$0xff]   ;;  %v426_v11 = vpack.c.bf16 %v2574_v61, %v2566_v52  ;;  %v2634_v49 = vadd.f32 %v1726_v34, %v318_v37  ;;  %v1974_v52 = vld [vmem:[%s3211_s2 + $0xe0] sm:$0xff]   ;;  %v2247_v61 = vld [vmem:[%s3208_s3 + $0x68] sm:$0xff]  }
  0x2c   :  { %2162 = vmatprep.mubr.bf16.mxu1 %v418_v33  ;;  %v1960_v33 = vld [vmem:[%s3211_s2 + $0x70] sm:$0xff]   ;;  %v2580_v2 = vadd.f32 %v1714_v36, %v312_v53  ;;  %v1851_v28 = vunpack.c.h.bf16 %v1961_v58  ;;  %v1862_v53 = vunpack.c.l.bf16 %v1964_v10  ;;  %v321_v62 = vmul.f32 %v1859_v45, %v2354_v15 }
  0x2d   :  { %v2560_v47 = vadd.f32 %v1707_v16, %v309_v23  ;;  %v1846_v57 = vunpack.c.l.bf16 %v1960_v33  ;;  %v1847_v63 = vunpack.c.h.bf16 %v1960_v33  ;;  %v1850_v16 = vunpack.c.l.bf16 %v1961_v58  ;;  %v2242_v23 = vld [vmem:[%s3208_s3 + $0x40] sm:$0xff]  }
  0x2e   :  { %v427_v25 = vpack.c.bf16 %v2591_v13, %v2580_v2  ;;  %v317_v27 = vmul.f32 %v1851_v28, %v2354_v15  ;;  %v1858_v33 = vunpack.c.l.bf16 %v1963_v21  ;;  %v2662_v55 = vadd.f32 %v1731_v6, %v321_v62 }
  0x2f   :  { %v425_v60 = vpack.c.bf16 %v2560_v47, %v2554_v41  ;;  %v314_v3 = vmul.f32 %v1846_v57, %v2354_v15  ;;  %v315_v14 = vmul.f32 %v1847_v63, %v2354_v15  ;;  %v316_v38 = vmul.f32 %v1850_v16, %v2354_v15 }
  0x30   :  { %v1863_v63 = vunpack.c.h.bf16 %v1964_v10  ;;  %v1746_v6 = vunpack.c.l.bf16 %v1936_v17  ;;  %v1747_v10 = vunpack.c.h.bf16 %v1936_v17  ;;  %v1874_v45 = vunpack.c.l.bf16 %v1967_v0 }
  0x31   :  { %v2600_v20 = vadd.f32 %v1718_v50, %v314_v3  ;;  %v2610_v26 = vadd.f32 %v1719_v56, %v315_v14  ;;  %v2625_v36 = vadd.f32 %v1722_v4, %v316_v38  ;;  %v320_v50 = vmul.f32 %v1858_v33, %v2354_v15  ;;  %v1965_v56 = vld [vmem:[%s3211_s2 + $0x98] sm:$0xff]   ;;  %v1966_v14 = vld [vmem:[%s3211_s2 + $0xa0] sm:$0xff]  }
  0x32   :  { %2083 = vmatmul.mubr.bf16.gmra.mxu0 %v2239_v39  ;;  %v2628_v39 = vadd.f32 %v1723_v8, %v317_v27  ;;  %v322_v4 = vmul.f32 %v1862_v53, %v2354_v15  ;;  %v1738_v8 = vunpack.c.l.bf16 %v1934_v48  ;;  %v323_v59 = vmul.f32 %v1863_v63, %v2354_v15  ;;  %v2244_v27 = vld [vmem:[%s3208_s3 + $0x50] sm:$0xff]   ;;  %v1938_v53 = vld [vmem:[%s3210_s1 + $0xb8] sm:$0xff]  }
  0x33   :  { %2163 = vmatmul.mubr.bf16.gmra.mxu1 %v419_v43  ;;  %2086 = vmatprep.mubr.bf16.mxu0 %v2240_v46  ;;  %v1727_v43 = vunpack.c.h.bf16 %v1931_v1  ;;  %v428_v35 = vpack.c.bf16 %v2610_v26, %v2600_v20  ;;  %v1935_v1 = vld [vmem:[%s3210_s1 + $0xa0] sm:$0xff]   ;;  %v2651_v3 = vadd.f32 %v1730_v32, %v320_v50  ;;  %v1867_v34 = vunpack.c.h.bf16 %v1965_v56  ;;  %v2249_v20 = vld [vmem:[%s3208_s3 + $0x78] sm:$0xff]  }
  0x34   :  { %2166 = vmatprep.mubr.bf16.mxu1 %v420_v54  ;;  %v1933_v54 = vld [vmem:[%s3210_s1 + $0x90] sm:$0xff]   ;;  %v429_v57 = vpack.c.bf16 %v2628_v39, %v2625_v36  ;;  %v1743_v21 = vunpack.c.h.bf16 %v1935_v1  ;;  %v1870_v44 = vunpack.c.l.bf16 %v1966_v14  ;;  %v1871_v32 = vunpack.c.h.bf16 %v1966_v14  ;;  %v2253_v36 = vld [vmem:[%s3208_s3 + $0x98] sm:$0xff]   ;;  %v2254_v39 = vld [vmem:[%s3208_s3 + $0xa0] sm:$0xff]  }
  0x35   :  { %v1734_v46 = vunpack.c.l.bf16 %v1933_v54  ;;  %v1735_v51 = vunpack.c.h.bf16 %v1933_v54  ;;  %v2642_v58 = vadd.f32 %v1727_v43, %v319_v42  ;;  %v1742_v43 = vunpack.c.l.bf16 %v1935_v1  ;;  %v1937_v54 = vld [vmem:[%s3210_s1 + $0xb0] sm:$0xff]  }
  0x36   :  { %v325_v29 = vmul.f32 %v1867_v34, %v2354_v15  ;;  %v326_v42 = vmul.f32 %v1870_v44, %v2354_v15  ;;  %v327_v48 = vmul.f32 %v1871_v32, %v2354_v15  ;;  %v1875_v50 = vunpack.c.h.bf16 %v1967_v0  ;;  %v1970_v34 = vld [vmem:[%s3211_s2 + $0xc0] sm:$0xff]  }
  0x37   :  { %v430_v16 = vpack.c.bf16 %v2642_v58, %v2634_v49  ;;  %v2668_v28 = vadd.f32 %v1734_v46, %v322_v4  ;;  %v328_v62 = vmul.f32 %v1874_v45, %v2354_v15  ;;  %v1751_v63 = vunpack.c.h.bf16 %v1937_v54  ;;  %v1969_v4 = vld [vmem:[%s3211_s2 + $0xb8] sm:$0xff]   ;;  %v2255_v49 = vld [vmem:[%s3208_s3 + $0xa8] sm:$0xff]  }
  0x38   :  { %v2696_v46 = vadd.f32 %v1739_v9, %v325_v29  ;;  %v2713_v9 = vadd.f32 %v1743_v21, %v327_v48  ;;  %v329_v14 = vmul.f32 %v1875_v50, %v2354_v15  ;;  %v1754_v19 = vunpack.c.l.bf16 %v1938_v53  ;;  %v2246_v29 = vld [vmem:[%s3208_s3 + $0x60] sm:$0xff]   ;;  %v2257_v58 = vld [vmem:[%s3208_s3 + $0xb8] sm:$0xff]  }
  0x39   :  { %v2722_v17 = vadd.f32 %v1746_v6, %v328_v62  ;;  %v1887_v48 = vunpack.c.h.bf16 %v1970_v34  ;;  %v1762_v50 = vunpack.c.l.bf16 %v1940_v24 }
  0x3a   :  { %2087 = vmatmul.mubr.bf16.gmra.mxu0 %v2241_v22  ;;  %v2678_v22 = vadd.f32 %v1735_v51, %v323_v59  ;;  %v1750_v51 = vunpack.c.l.bf16 %v1937_v54  ;;  %v2730_v21 = vadd.f32 %v1747_v10, %v329_v14 }
  0x3b   :  { %2167 = vmatmul.mubr.bf16.gmra.mxu1 %v421_v5  ;;  %2090 = vmatprep.mubr.bf16.mxu0 %v2242_v23  ;;  %v1866_v5 = vunpack.c.l.bf16 %v1965_v56  ;;  %v1968_v23 = vld [vmem:[%s3211_s2 + $0xb0] sm:$0xff]   ;;  %v2702_v56 = vadd.f32 %v1742_v43, %v326_v42 }
  0x3c   :  { %2170 = vmatprep.mubr.bf16.mxu1 %v422_v18  ;;  %v431_v18 = vpack.c.bf16 %v2662_v55, %v2651_v3  ;;  %v432_v37 = vpack.c.bf16 %v2678_v22, %v2668_v28  ;;  %v1878_v1 = vunpack.c.l.bf16 %v1968_v23  ;;  %v1879_v59 = vunpack.c.h.bf16 %v1968_v23  ;;  %v1941_v42 = vld [vmem:[%s3210_s1 + $0xd0] sm:$0xff]   ;;  %v2258_v3 = vld [vmem:[%s3208_s3 + $0xc0] sm:$0xff]  }
  0x3d   :  { %v324_v38 = vmul.f32 %v1866_v5, %v2354_v15  ;;  %v1939_v5 = vld [vmem:[%s3210_s1 + $0xc0] sm:$0xff]   ;;  %v434_v43 = vpack.c.bf16 %v2713_v9, %v2702_v56  ;;  %v435_v32 = vpack.c.bf16 %v2730_v21, %v2722_v17  ;;  %v1886_v23 = vunpack.c.l.bf16 %v1970_v34  ;;  %v1942_v34 = vld [vmem:[%s3210_s1 + $0xd8] sm:$0xff]   ;;  %v2260_v55 = vld [vmem:[%s3208_s3 + $0xd0] sm:$0xff]  }
  0x3e   :  { %v330_v12 = vmul.f32 %v1878_v1, %v2354_v15  ;;  %v331_v0 = vmul.f32 %v1879_v59, %v2354_v15  ;;  %v1758_v44 = vunpack.c.l.bf16 %v1939_v5  ;;  %v1759_v54 = vunpack.c.h.bf16 %v1939_v5  ;;  %v2262_v22 = vld [vmem:[%s3208_s3 + $0xe0] sm:$0xff]  }
  0x3f   :  { %v2693_v33 = vadd.f32 %v1738_v8, %v324_v38  ;;  %v1883_v38 = vunpack.c.h.bf16 %v1969_v4  ;;  %v334_v1 = vmul.f32 %v1886_v23, %v2354_v15  ;;  %v335_v59 = vmul.f32 %v1887_v48, %v2354_v15  ;;  %v2248_v48 = vld [vmem:[%s3208_s3 + $0x70] sm:$0xff]   ;;  %v2948_v9 = vld [vmem:[%s3212_s6] ss:$0 sm:$0xff] }
  0x40   :  { %v2749_v6 = vadd.f32 %v1751_v63, %v331_v0 }
  0x41   :  { %v433_v8 = vpack.c.bf16 %v2696_v46, %v2693_v33  ;;  %v333_v45 = vmul.f32 %v1883_v38, %v2354_v15  ;;  %v2784_v41 = vadd.f32 %v1759_v54, %v335_v59  ;;  %v1943_v38 = vld [vmem:[%s3210_s1 + $0xe0] sm:$0xff]   ;;  %v2264_v33 = vld [vmem:[%s3208_s3 + $0xf0] sm:$0xff]   ;;  %v2265_v46 = vld [vmem:[%s3208_s3 + $0xf8] sm:$0xff]  }
  0x42   :  { %2091 = vmatmul.mubr.bf16.gmra.mxu0 %v2243_v7  ;;  %v1882_v7 = vunpack.c.l.bf16 %v1969_v4 }
  0x43   :  { %2171 = vmatmul.mubr.bf16.gmra.mxu1 %v423_v30  ;;  %2094 = vmatprep.mubr.bf16.mxu0 %v2244_v27  ;;  %v1755_v30 = vunpack.c.h.bf16 %v1938_v53  ;;  %v1971_v27 = vld [vmem:[%s3211_s2 + $0xc8] sm:$0xff]   ;;  %v1972_v53 = vld [vmem:[%s3211_s2 + $0xd0] sm:$0xff]  }
  0x44   :  { %2174 = vmatprep.mubr.bf16.mxu1 %v424_v40  ;;  %v2739_v40 = vadd.f32 %v1750_v51, %v330_v12  ;;  %v332_v10 = vmul.f32 %v1882_v7, %v2354_v15  ;;  %v1763_v51 = vunpack.c.h.bf16 %v1940_v24  ;;  %v1890_v4 = vunpack.c.l.bf16 %v1971_v27  ;;  %v1973_v24 = vld [vmem:[%s3211_s2 + $0xd8] sm:$0xff]  }
  0x45   :  { %v2764_v14 = vadd.f32 %v1755_v30, %v333_v45  ;;  %v1891_v5 = vunpack.c.h.bf16 %v1971_v27  ;;  %v1766_v12 = vunpack.c.l.bf16 %v1941_v42  ;;  %v1767_v7 = vunpack.c.h.bf16 %v1941_v42  ;;  %v1944_v45 = vld [vmem:[%s3210_s1 + $0xe8] sm:$0xff]  }
  0x46   :  { %v436_v62 = vpack.c.bf16 %v2749_v6, %v2739_v40  ;;  %v2761_v63 = vadd.f32 %v1754_v19, %v332_v10  ;;  %v2773_v19 = vadd.f32 %v1758_v44, %v334_v1  ;;  %v336_v0 = vmul.f32 %v1890_v4, %v2354_v15 }
  0x47   :  { %v1894_v30 = vunpack.c.l.bf16 %v1972_v53  ;;  %v337_v47 = vmul.f32 %v1891_v5, %v2354_v15  ;;  %v1771_v10 = vunpack.c.h.bf16 %v1942_v34  ;;  %v1898_v42 = vunpack.c.l.bf16 %v1973_v24 }
  0x48   :  { %v2790_v44 = vadd.f32 %v1762_v50, %v336_v0  ;;  %v1774_v1 = vunpack.c.l.bf16 %v1943_v38  ;;  %v1775_v4 = vunpack.c.h.bf16 %v1943_v38  ;;  %v1902_v0 = vunpack.c.l.bf16 %v1974_v52  ;;  %v1976_v38 = vld [vmem:[%s3211_s2 + $0xf0] sm:$0xff]  }
  0x49   :  { %v338_v27 = vmul.f32 %v1894_v30, %v2354_v15  ;;  %v2801_v54 = vadd.f32 %v1763_v51, %v337_v47  ;;  %v1975_v51 = vld [vmem:[%s3211_s2 + $0xe8] sm:$0xff]   ;;  %v1778_v47 = vunpack.c.l.bf16 %v1944_v45 }
  0x4a   :  { %2095 = vmatmul.mubr.bf16.gmra.mxu0 %v2245_v31  ;;  %v437_v31 = vpack.c.bf16 %v2764_v14, %v2761_v63 }
  0x4b   :  { %2175 = vmatmul.mubr.bf16.gmra.mxu1 %v425_v60  ;;  %2098 = vmatprep.mubr.bf16.mxu0 %v2246_v29  ;;  %v1895_v60 = vunpack.c.h.bf16 %v1972_v53  ;;  %v1770_v29 = vunpack.c.l.bf16 %v1942_v34  ;;  %v2810_v50 = vadd.f32 %v1766_v12, %v338_v27  ;;  %v1899_v53 = vunpack.c.h.bf16 %v1973_v24  ;;  %v1945_v12 = vld [vmem:[%s3210_s1 + $0xf0] sm:$0xff]  }
  0x4c   :  { %2178 = vmatprep.mubr.bf16.mxu1 %v426_v11  ;;  %v438_v11 = vpack.c.bf16 %v2784_v41, %v2773_v19  ;;  %v340_v34 = vmul.f32 %v1898_v42, %v2354_v15  ;;  %v1903_v24 = vunpack.c.h.bf16 %v1974_v52  ;;  %v1906_v42 = vunpack.c.l.bf16 %v1975_v51 }
  0x4d   :  { %v339_v23 = vmul.f32 %v1895_v60, %v2354_v15  ;;  %v341_v30 = vmul.f32 %v1899_v53, %v2354_v15  ;;  %v1779_v60 = vunpack.c.h.bf16 %v1944_v45  ;;  %v1907_v53 = vunpack.c.h.bf16 %v1975_v51 }
  0x4e   :  { %v2829_v27 = vadd.f32 %v1770_v29, %v340_v34  ;;  %v343_v45 = vmul.f32 %v1903_v24, %v2354_v15  ;;  %v1782_v59 = vunpack.c.l.bf16 %v1945_v12  ;;  %v344_v2 = vmul.f32 %v1906_v42, %v2354_v15 }
  0x4f   :  { %v2817_v5 = vadd.f32 %v1767_v7, %v339_v23  ;;  %v342_v23 = vmul.f32 %v1902_v0, %v2354_v15  ;;  %v2835_v52 = vadd.f32 %v1771_v10, %v341_v30  ;;  %v1783_v13 = vunpack.c.h.bf16 %v1945_v12  ;;  %v1977_v10 = vld [vmem:[%s3211_s2 + $0xf8] sm:$0xff]   ;;  %v2250_v12 = vld [vmem:[%s3208_s3 + $0x80] sm:$0xff]  }
  0x50   :  { %v407_v51 = vadd.f32 %v1775_v4, %v343_v45  ;;  %v345_v34 = vmul.f32 %v1907_v53, %v2354_v15  ;;  %v1911_v0 = vunpack.c.h.bf16 %v1976_v38  ;;  %v408_v26 = vadd.f32 %v1778_v47, %v344_v2 }
  0x51   :  { %v440_v7 = vpack.c.bf16 %v2817_v5, %v2810_v50  ;;  %v2844_v29 = vadd.f32 %v1774_v1, %v342_v23  ;;  %v1915_v42 = vunpack.c.h.bf16 %v1977_v10  ;;  %v3214_v28 = vpack.c.bf16 %v2801_v54, %v2790_v44 }
  0x52   :  { %2099 = vmatmul.mubr.bf16.gmra.mxu0 %v2247_v61  ;;  %v1946_v61 = vld [vmem:[%s3210_s1 + $0xf8] sm:$0xff]   ;;  %v409_v24 = vadd.f32 %v1779_v60, %v345_v34  ;;  %v347_v4 = vmul.f32 %v1911_v0, %v2354_v15 }
  0x53   :  { %2179 = vmatmul.mubr.bf16.gmra.mxu1 %v427_v25  ;;  %2102 = vmatprep.mubr.bf16.mxu0 %v2248_v48  ;;  %v1910_v25 = vunpack.c.l.bf16 %v1976_v38  ;;  %v441_v48 = vpack.c.bf16 %v2835_v52, %v2829_v27  ;;  %v1786_v1 = vunpack.c.l.bf16 %v1946_v61  ;;  %v442_v30 = vpack.c.bf16 %v407_v51, %v2844_v29 }
  0x54   :  { %2182 = vmatprep.mubr.bf16.mxu1 %v428_v35  ;;  %v1914_v27 = vunpack.c.l.bf16 %v1977_v10  ;;  %v1787_v38 = vunpack.c.h.bf16 %v1946_v61  ;;  %v443_v52 = vpack.c.bf16 %v409_v24, %v408_v26  ;;  %v411_v45 = vadd.f32 %v1783_v13, %v347_v4  ;;  %v2251_v61 = vld [vmem:[%s3208_s3 + $0x88] sm:$0xff]  }
  0x55   :  { %v346_v35 = vmul.f32 %v1910_v25, %v2354_v15  ;;  %v349_v53 = vmul.f32 %v1915_v42, %v2354_v15 }
  0x56   :  { %v348_v47 = vmul.f32 %v1914_v27, %v2354_v15  ;;  %v2252_v15 = vld [vmem:[%s3208_s3 + $0x90] sm:$0xff]  }
  0x57   :  { %v410_v23 = vadd.f32 %v1782_v59, %v346_v35  ;;  %v413_v59 = vadd.f32 %v1787_v38, %v349_v53 }
  0x58   :  { %v412_v60 = vadd.f32 %v1786_v1, %v348_v47 }
  0x59   :  { %v444_v29 = vpack.c.bf16 %v411_v45, %v410_v23 }
  0x5a   :  { %2103 = vmatmul.mubr.bf16.gmra.mxu0 %v2249_v20  ;;  %v445_v2 = vpack.c.bf16 %v413_v59, %v412_v60 }
  0x5b   :  { %2183 = vmatmul.mubr.bf16.gmra.mxu1 %v429_v57  ;;  %2106 = vmatprep.mubr.bf16.mxu0 %v2250_v12  ;;  %v2256_v57 = vld [vmem:[%s3208_s3 + $0xb0] sm:$0xff]  }
  0x5c   :  { %2186 = vmatprep.mubr.bf16.mxu1 %v430_v16  ;;  %v2259_v16 = vld [vmem:[%s3208_s3 + $0xc8] sm:$0xff]  }
  0x62   :  { %2107 = vmatmul.mubr.bf16.gmra.mxu0 %v2251_v61 }
  0x63   :  { %2187 = vmatmul.mubr.bf16.gmra.mxu1 %v431_v18  ;;  %2110 = vmatprep.mubr.bf16.mxu0 %v2252_v15  ;;  %v2261_v18 = vld [vmem:[%s3208_s3 + $0xd8] sm:$0xff]  }
  0x64   :  { %2190 = vmatprep.mubr.bf16.mxu1 %v432_v37  ;;  %v2263_v37 = vld [vmem:[%s3208_s3 + $0xe8] sm:$0xff]  }
  0x6a   :  { %2111 = vmatmul.mubr.bf16.gmra.mxu0 %v2253_v36 }
  0x6b   :  { %2191 = vmatmul.mubr.bf16.gmra.mxu1 %v433_v8  ;;  %2114 = vmatprep.mubr.bf16.mxu0 %v2254_v39 }
  0x6c   :  { %2194 = vmatprep.mubr.bf16.mxu1 %v434_v43 }
  0x72   :  { %2115 = vmatmul.mubr.bf16.gmra.mxu0 %v2255_v49 }
  0x73   :  { %2195 = vmatmul.mubr.bf16.gmra.mxu1 %v435_v32  ;;  %2118 = vmatprep.mubr.bf16.mxu0 %v2256_v57 }
  0x74   :  { %2198 = vmatprep.mubr.bf16.mxu1 %v436_v62 }
  0x7a   :  { %2119 = vmatmul.mubr.bf16.gmra.mxu0 %v2257_v58 }
  0x7b   :  { %2199 = vmatmul.mubr.bf16.gmra.mxu1 %v437_v31  ;;  %2122 = vmatprep.mubr.bf16.mxu0 %v2258_v3 }
  0x7c   :  { %2202 = vmatprep.mubr.bf16.mxu1 %v438_v11 }
  0x82   :  { %2123 = vmatmul.mubr.bf16.gmra.mxu0 %v2259_v16 }
  0x83   :  { %2203 = vmatmul.mubr.bf16.gmra.mxu1 %v3214_v28  ;;  %2126 = vmatprep.mubr.bf16.mxu0 %v2260_v55 }
  0x84   :  { %2206 = vmatprep.mubr.bf16.mxu1 %v440_v7 }
  0x8a   :  { %2127 = vmatmul.mubr.bf16.gmra.mxu0 %v2261_v18 }
  0x8b   :  { %2207 = vmatmul.mubr.bf16.gmra.mxu1 %v441_v48  ;;  %2130 = vmatprep.mubr.bf16.mxu0 %v2262_v22 }
  0x8c   :  { %2210 = vmatprep.mubr.bf16.mxu1 %v442_v30 }
  0x92   :  { %2131 = vmatmul.mubr.bf16.gmra.mxu0 %v2263_v37 }
  0x93   :  { %2211 = vmatmul.mubr.bf16.gmra.mxu1 %v443_v52  ;;  %2134 = vmatprep.mubr.bf16.mxu0 %v2264_v33 }
  0x94   :  { %2214 = vmatprep.mubr.bf16.mxu1 %v444_v29 }
  0x9a   :  { %2135 = vmatmul.mubr.bf16.gmra.mxu0 %v2265_v46 }
  0x9b   :  { %2215 = vmatmul.mubr.bf16.gmra.mxu1 %v445_v2 }
  0xe2   :  { %v2076_v56 = vpop.f32.mrf.mxu0 }
  0xe3   :  { %v2156_v8 = vpop.f32.mrf.mxu1 }
  0xe4   :  { %v1162_v17 = vadd.f32 %v2156_v8, %v2076_v56  ;;  %v816_v43 = vpop.f32.mrf.mxu0 }
  0xe5   :  { %v1153_v21 = vpop.f32.mrf.mxu1 }
  0xe6   :  { %v1417_v40 = vadd.f32 %v2948_v9, %v1162_v17  ;;  %v1154_v32 = vadd.f32 %v1153_v21, %v816_v43  ;;  %v2077_v6 = vpop.f32.mrf.mxu0 }
  0xe7   :  { %v2157_v62 = vpop.f32.mrf.mxu1 }
  0xe8   :  { %v1481_v63 = vmax.f32 %v1417_v40, 0.0  ;;  %v1415_v14 = vadd.f32 %v2948_v9, %v1154_v32  ;;  %v1165_v19 = vadd.f32 %v2157_v62, %v2077_v6  ;;  %v819_v31 = vpop.f32.mrf.mxu0 }
  0xe9   :  { %v1156_v41 = vpop.f32.mrf.mxu1 }
  0xea   :  { %1545 = vst [vmem:[%s3213_s7 + $0x10] sm:$0xff] %v1481_v63  ;;  %v1479_v44 = vmax.f32 %v1415_v14, 0.0  ;;  %v1418_v11 = vadd.f32 %v2948_v9, %v1165_v19  ;;  %v1157_v54 = vadd.f32 %v1156_v41, %v819_v31  ;;  %v2080_v50 = vpop.f32.mrf.mxu0 }
  0xeb   :  { %v2160_v5 = vpop.f32.mrf.mxu1 }
  0xec   :  { %1543 = vst [vmem:[%s3213_s7] sm:$0xff] %v1479_v44  ;;  %v1482_v7 = vmax.f32 %v1418_v11, 0.0  ;;  %v1416_v13 = vadd.f32 %v2948_v9, %v1157_v54  ;;  %v1178_v25 = vadd.f32 %v2160_v5, %v2080_v50  ;;  %v832_v10 = vpop.f32.mrf.mxu0 }
  0xed   :  { %v1169_v48 = vpop.f32.mrf.mxu1 }
  0xee   :  { %1546 = vst [vmem:[%s3213_s7 + $0x18] sm:$0xff] %v1482_v7  ;;  %v1480_v51 = vmax.f32 %v1416_v13, 0.0  ;;  %v1421_v34 = vadd.f32 %v2948_v9, %v1178_v25  ;;  %v1170_v0 = vadd.f32 %v1169_v48, %v832_v10  ;;  %v2081_v20 = vpop.f32.mrf.mxu0 }
  0xef   :  { %v2161_v26 = vpop.f32.mrf.mxu1 }
  0xf0   :  { %1544 = vst [vmem:[%s3213_s7 + $0x8] sm:$0xff] %v1480_v51  ;;  %v1485_v35 = vmax.f32 %v1421_v34, 0.0  ;;  %v1419_v1 = vadd.f32 %v2948_v9, %v1170_v0  ;;  %v1181_v12 = vadd.f32 %v2161_v26, %v2081_v20  ;;  %v835_v30 = vpop.f32.mrf.mxu0 }
  0xf1   :  { %v1172_v24 = vpop.f32.mrf.mxu1 }
  0xf2   :  { %1549 = vst [vmem:[%s3213_s7 + $0x30] sm:$0xff] %v1485_v35  ;;  %v1483_v4 = vmax.f32 %v1419_v1, 0.0  ;;  %v1422_v27 = vadd.f32 %v2948_v9, %v1181_v12  ;;  %v1173_v23 = vadd.f32 %v1172_v24, %v835_v30  ;;  %v2084_v38 = vpop.f32.mrf.mxu0 }
  0xf3   :  { %v2164_v42 = vpop.f32.mrf.mxu1 }
  0xf4   :  { %1547 = vst [vmem:[%s3213_s7 + $0x20] sm:$0xff] %v1483_v4  ;;  %v1486_v52 = vmax.f32 %v1422_v27, 0.0  ;;  %v1420_v45 = vadd.f32 %v2948_v9, %v1173_v23  ;;  %v1194_v47 = vadd.f32 %v2164_v42, %v2084_v38  ;;  %v848_v53 = vpop.f32.mrf.mxu0 }
  0xf5   :  { %v1185_v29 = vpop.f32.mrf.mxu1 }
  0xf6   :  { %1550 = vst [vmem:[%s3213_s7 + $0x38] sm:$0xff] %v1486_v52  ;;  %v1484_v60 = vmax.f32 %v1420_v45, 0.0  ;;  %v1425_v59 = vadd.f32 %v2948_v9, %v1194_v47  ;;  %v1186_v61 = vadd.f32 %v1185_v29, %v848_v53  ;;  %v2085_v2 = vpop.f32.mrf.mxu0 }
  0xf7   :  { %v2165_v15 = vpop.f32.mrf.mxu1 }
  0xf8   :  { %1548 = vst [vmem:[%s3213_s7 + $0x28] sm:$0xff] %v1484_v60  ;;  %v1489_v36 = vmax.f32 %v1425_v59, 0.0  ;;  %v1423_v39 = vadd.f32 %v2948_v9, %v1186_v61  ;;  %v1197_v49 = vadd.f32 %v2165_v15, %v2085_v2  ;;  %v851_v57 = vpop.f32.mrf.mxu0 }
  0xf9   :  { %v1188_v58 = vpop.f32.mrf.mxu1 }
  0xfa   :  { %1553 = vst [vmem:[%s3213_s7 + $0x50] sm:$0xff] %v1489_v36  ;;  %v1487_v3 = vmax.f32 %v1423_v39, 0.0  ;;  %v1426_v16 = vadd.f32 %v2948_v9, %v1197_v49  ;;  %v1189_v55 = vadd.f32 %v1188_v58, %v851_v57  ;;  %v2088_v28 = vpop.f32.mrf.mxu0 }
  0xfb   :  { %v2168_v18 = vpop.f32.mrf.mxu1 }
  0xfc   :  { %1551 = vst [vmem:[%s3213_s7 + $0x40] sm:$0xff] %v1487_v3  ;;  %v1490_v22 = vmax.f32 %v1426_v16, 0.0  ;;  %v1424_v37 = vadd.f32 %v2948_v9, %v1189_v55  ;;  %v1210_v33 = vadd.f32 %v2168_v18, %v2088_v28  ;;  %v864_v46 = vpop.f32.mrf.mxu0 }
  0xfd   :  { %v1201_v56 = vpop.f32.mrf.mxu1 }
  0xfe   :  { %1554 = vst [vmem:[%s3213_s7 + $0x58] sm:$0xff] %v1490_v22  ;;  %v1488_v8 = vmax.f32 %v1424_v37, 0.0  ;;  %v1429_v17 = vadd.f32 %v2948_v9, %v1210_v33  ;;  %v1202_v43 = vadd.f32 %v1201_v56, %v864_v46  ;;  %v2089_v21 = vpop.f32.mrf.mxu0 }
  0xff   :  { %v2169_v40 = vpop.f32.mrf.mxu1 }
 0x100   :  { %1552 = vst [vmem:[%s3213_s7 + $0x48] sm:$0xff] %v1488_v8  ;;  %v1493_v32 = vmax.f32 %v1429_v17, 0.0  ;;  %v1427_v6 = vadd.f32 %v2948_v9, %v1202_v43  ;;  %v1213_v62 = vadd.f32 %v2169_v40, %v2089_v21  ;;  %v867_v63 = vpop.f32.mrf.mxu0 }
 0x101   :  { %v1204_v14 = vpop.f32.mrf.mxu1 }
 0x102   :  { %1557 = vst [vmem:[%s3213_s7 + $0x70] sm:$0xff] %v1493_v32  ;;  %v1491_v19 = vmax.f32 %v1427_v6, 0.0  ;;  %v1430_v31 = vadd.f32 %v2948_v9, %v1213_v62  ;;  %v1205_v41 = vadd.f32 %v1204_v14, %v867_v63  ;;  %v2092_v44 = vpop.f32.mrf.mxu0 }
 0x103   :  { %v2172_v11 = vpop.f32.mrf.mxu1 }
 0x104   :  { %1555 = vst [vmem:[%s3213_s7 + $0x60] sm:$0xff] %v1491_v19  ;;  %v1494_v54 = vmax.f32 %v1430_v31, 0.0  ;;  %v1428_v50 = vadd.f32 %v2948_v9, %v1205_v41  ;;  %v1226_v5 = vadd.f32 %v2172_v11, %v2092_v44  ;;  %v880_v7 = vpop.f32.mrf.mxu0 }
 0x105   :  { %v1217_v13 = vpop.f32.mrf.mxu1 }
 0x106   :  { %1558 = vst [vmem:[%s3213_s7 + $0x78] sm:$0xff] %v1494_v54  ;;  %v1492_v25 = vmax.f32 %v1428_v50, 0.0  ;;  %v1433_v10 = vadd.f32 %v2948_v9, %v1226_v5  ;;  %v1218_v48 = vadd.f32 %v1217_v13, %v880_v7  ;;  %v2093_v51 = vpop.f32.mrf.mxu0 }
 0x107   :  { %v2173_v34 = vpop.f32.mrf.mxu1 }
 0x108   :  { %1556 = vst [vmem:[%s3213_s7 + $0x68] sm:$0xff] %v1492_v25  ;;  %v1497_v0 = vmax.f32 %v1433_v10, 0.0  ;;  %v1431_v20 = vadd.f32 %v2948_v9, %v1218_v48  ;;  %v1229_v26 = vadd.f32 %v2173_v34, %v2093_v51  ;;  %v883_v35 = vpop.f32.mrf.mxu0 }
 0x109   :  { %v1220_v1 = vpop.f32.mrf.mxu1 }
 0x10a   :  { %1561 = vst [vmem:[%s3213_s7 + $0x90] sm:$0xff] %v1497_v0  ;;  %v1495_v12 = vmax.f32 %v1431_v20, 0.0  ;;  %v1434_v30 = vadd.f32 %v2948_v9, %v1229_v26  ;;  %v1221_v24 = vadd.f32 %v1220_v1, %v883_v35  ;;  %v2096_v4 = vpop.f32.mrf.mxu0 }
 0x10b   :  { %v2176_v27 = vpop.f32.mrf.mxu1 }
 0x10c   :  { %1559 = vst [vmem:[%s3213_s7 + $0x80] sm:$0xff] %v1495_v12  ;;  %v1498_v23 = vmax.f32 %v1434_v30, 0.0  ;;  %v1432_v38 = vadd.f32 %v2948_v9, %v1221_v24  ;;  %v1242_v42 = vadd.f32 %v2176_v27, %v2096_v4  ;;  %v896_v52 = vpop.f32.mrf.mxu0 }
 0x10d   :  { %v1233_v45 = vpop.f32.mrf.mxu1 }
 0x10e   :  { %1562 = vst [vmem:[%s3213_s7 + $0x98] sm:$0xff] %v1498_v23  ;;  %v1496_v47 = vmax.f32 %v1432_v38, 0.0  ;;  %v1437_v53 = vadd.f32 %v2948_v9, %v1242_v42  ;;  %v1234_v29 = vadd.f32 %v1233_v45, %v896_v52  ;;  %v2097_v60 = vpop.f32.mrf.mxu0 }
 0x10f   :  { %v2177_v59 = vpop.f32.mrf.mxu1 }
 0x110   :  { %1560 = vst [vmem:[%s3213_s7 + $0x88] sm:$0xff] %v1496_v47  ;;  %v1501_v61 = vmax.f32 %v1437_v53, 0.0  ;;  %v1435_v2 = vadd.f32 %v2948_v9, %v1234_v29  ;;  %v1245_v15 = vadd.f32 %v2177_v59, %v2097_v60  ;;  %v899_v36 = vpop.f32.mrf.mxu0 }
 0x111   :  { %v1236_v39 = vpop.f32.mrf.mxu1 }
 0x112   :  { %1565 = vst [vmem:[%s3213_s7 + $0xb0] sm:$0xff] %v1501_v61  ;;  %v1499_v49 = vmax.f32 %v1435_v2, 0.0  ;;  %v1438_v57 = vadd.f32 %v2948_v9, %v1245_v15  ;;  %v1237_v58 = vadd.f32 %v1236_v39, %v899_v36  ;;  %v2100_v3 = vpop.f32.mrf.mxu0 }
 0x113   :  { %v2180_v16 = vpop.f32.mrf.mxu1 }
 0x114   :  { %1563 = vst [vmem:[%s3213_s7 + $0xa0] sm:$0xff] %v1499_v49  ;;  %v1502_v55 = vmax.f32 %v1438_v57, 0.0  ;;  %v1436_v28 = vadd.f32 %v2948_v9, %v1237_v58  ;;  %v1258_v18 = vadd.f32 %v2180_v16, %v2100_v3  ;;  %v912_v22 = vpop.f32.mrf.mxu0 }
 0x115   :  { %v1249_v37 = vpop.f32.mrf.mxu1 }
 0x116   :  { %1566 = vst [vmem:[%s3213_s7 + $0xb8] sm:$0xff] %v1502_v55  ;;  %v1500_v33 = vmax.f32 %v1436_v28, 0.0  ;;  %v1441_v46 = vadd.f32 %v2948_v9, %v1258_v18  ;;  %v1250_v56 = vadd.f32 %v1249_v37, %v912_v22  ;;  %v2101_v8 = vpop.f32.mrf.mxu0 }
 0x117   :  { %v2181_v17 = vpop.f32.mrf.mxu1 }
 0x118   :  { %1564 = vst [vmem:[%s3213_s7 + $0xa8] sm:$0xff] %v1500_v33  ;;  %v1505_v43 = vmax.f32 %v1441_v46, 0.0  ;;  %v1439_v21 = vadd.f32 %v2948_v9, %v1250_v56  ;;  %v1261_v40 = vadd.f32 %v2181_v17, %v2101_v8  ;;  %v915_v32 = vpop.f32.mrf.mxu0 }
 0x119   :  { %v1252_v6 = vpop.f32.mrf.mxu1 }
 0x11a   :  { %1569 = vst [vmem:[%s3213_s7 + $0xd0] sm:$0xff] %v1505_v43  ;;  %v1503_v62 = vmax.f32 %v1439_v21, 0.0  ;;  %v1442_v63 = vadd.f32 %v2948_v9, %v1261_v40  ;;  %v1253_v14 = vadd.f32 %v1252_v6, %v915_v32  ;;  %v2104_v19 = vpop.f32.mrf.mxu0 }
 0x11b   :  { %v2184_v31 = vpop.f32.mrf.mxu1 }
 0x11c   :  { %1567 = vst [vmem:[%s3213_s7 + $0xc0] sm:$0xff] %v1503_v62  ;;  %v1506_v41 = vmax.f32 %v1442_v63, 0.0  ;;  %v1440_v44 = vadd.f32 %v2948_v9, %v1253_v14  ;;  %v1274_v11 = vadd.f32 %v2184_v31, %v2104_v19  ;;  %v928_v54 = vpop.f32.mrf.mxu0 }
 0x11d   :  { %v1265_v50 = vpop.f32.mrf.mxu1 }
 0x11e   :  { %1570 = vst [vmem:[%s3213_s7 + $0xd8] sm:$0xff] %v1506_v41  ;;  %v1504_v5 = vmax.f32 %v1440_v44, 0.0  ;;  %v1445_v7 = vadd.f32 %v2948_v9, %v1274_v11  ;;  %v1266_v13 = vadd.f32 %v1265_v50, %v928_v54  ;;  %v2105_v25 = vpop.f32.mrf.mxu0 }
 0x11f   :  { %v2185_v10 = vpop.f32.mrf.mxu1 }
 0x120   :  { %1568 = vst [vmem:[%s3213_s7 + $0xc8] sm:$0xff] %v1504_v5  ;;  %v1509_v48 = vmax.f32 %v1445_v7, 0.0  ;;  %v1443_v51 = vadd.f32 %v2948_v9, %v1266_v13  ;;  %v1277_v34 = vadd.f32 %v2185_v10, %v2105_v25  ;;  %v931_v0 = vpop.f32.mrf.mxu0 }
 0x121   :  { %v1268_v20 = vpop.f32.mrf.mxu1 }
 0x122   :  { %1573 = vst [vmem:[%s3213_s7 + $0xf0] sm:$0xff] %v1509_v48  ;;  %v1507_v26 = vmax.f32 %v1443_v51, 0.0  ;;  %v1446_v35 = vadd.f32 %v2948_v9, %v1277_v34  ;;  %v1269_v1 = vadd.f32 %v1268_v20, %v931_v0  ;;  %v2108_v12 = vpop.f32.mrf.mxu0 }
 0x123   :  { %v2188_v30 = vpop.f32.mrf.mxu1 }
 0x124   :  { %1571 = vst [vmem:[%s3213_s7 + $0xe0] sm:$0xff] %v1507_v26  ;;  %v1510_v24 = vmax.f32 %v1446_v35, 0.0  ;;  %v1444_v4 = vadd.f32 %v2948_v9, %v1269_v1  ;;  %v1290_v27 = vadd.f32 %v2188_v30, %v2108_v12  ;;  %v944_v23 = vpop.f32.mrf.mxu0 }
 0x125   :  { %v1281_v38 = vpop.f32.mrf.mxu1 }
 0x126   :  { %1574 = vst [vmem:[%s3213_s7 + $0xf8] sm:$0xff] %v1510_v24  ;;  %v1508_v42 = vmax.f32 %v1444_v4, 0.0  ;;  %v1449_v52 = vadd.f32 %v2948_v9, %v1290_v27  ;;  %v1282_v45 = vadd.f32 %v1281_v38, %v944_v23  ;;  %v2109_v47 = vpop.f32.mrf.mxu0 }
 0x127   :  { %v2189_v53 = vpop.f32.mrf.mxu1 }
 0x128   :  { %1572 = vst [vmem:[%s3213_s7 + $0xe8] sm:$0xff] %v1508_v42  ;;  %v1513_v29 = vmax.f32 %v1449_v52, 0.0  ;;  %v1447_v60 = vadd.f32 %v2948_v9, %v1282_v45  ;;  %v1293_v59 = vadd.f32 %v2189_v53, %v2109_v47  ;;  %v947_v61 = vpop.f32.mrf.mxu0 }
 0x129   :  { %v1284_v2 = vpop.f32.mrf.mxu1 }
 0x12a   :  { %1577 = vst [vmem:[%s3213_s7 + $0x110] sm:$0xff] %v1513_v29  ;;  %v1511_v15 = vmax.f32 %v1447_v60, 0.0  ;;  %v1450_v36 = vadd.f32 %v2948_v9, %v1293_v59  ;;  %v1285_v39 = vadd.f32 %v1284_v2, %v947_v61  ;;  %v2112_v49 = vpop.f32.mrf.mxu0 }
 0x12b   :  { %v2192_v57 = vpop.f32.mrf.mxu1 }
 0x12c   :  { %1575 = vst [vmem:[%s3213_s7 + $0x100] sm:$0xff] %v1511_v15  ;;  %v1514_v58 = vmax.f32 %v1450_v36, 0.0  ;;  %v1448_v3 = vadd.f32 %v2948_v9, %v1285_v39  ;;  %v1306_v16 = vadd.f32 %v2192_v57, %v2112_v49  ;;  %v960_v55 = vpop.f32.mrf.mxu0 }
 0x12d   :  { %v1297_v28 = vpop.f32.mrf.mxu1 }
 0x12e   :  { %1578 = vst [vmem:[%s3213_s7 + $0x118] sm:$0xff] %v1514_v58  ;;  %v1512_v18 = vmax.f32 %v1448_v3, 0.0  ;;  %v1453_v22 = vadd.f32 %v2948_v9, %v1306_v16  ;;  %v1298_v37 = vadd.f32 %v1297_v28, %v960_v55  ;;  %v2113_v33 = vpop.f32.mrf.mxu0 }
 0x12f   :  { %v2193_v46 = vpop.f32.mrf.mxu1 }
 0x130   :  { %1576 = vst [vmem:[%s3213_s7 + $0x108] sm:$0xff] %v1512_v18  ;;  %v1517_v56 = vmax.f32 %v1453_v22, 0.0  ;;  %v1451_v8 = vadd.f32 %v2948_v9, %v1298_v37  ;;  %v1309_v17 = vadd.f32 %v2193_v46, %v2113_v33  ;;  %v963_v43 = vpop.f32.mrf.mxu0 }
 0x131   :  { %v1300_v21 = vpop.f32.mrf.mxu1 }
 0x132   :  { %1581 = vst [vmem:[%s3213_s7 + $0x130] sm:$0xff] %v1517_v56  ;;  %v1515_v40 = vmax.f32 %v1451_v8, 0.0  ;;  %v1454_v32 = vadd.f32 %v2948_v9, %v1309_v17  ;;  %v1301_v6 = vadd.f32 %v1300_v21, %v963_v43  ;;  %v2116_v62 = vpop.f32.mrf.mxu0 }
 0x133   :  { %v2196_v63 = vpop.f32.mrf.mxu1 }
 0x134   :  { %1579 = vst [vmem:[%s3213_s7 + $0x120] sm:$0xff] %v1515_v40  ;;  %v1518_v14 = vmax.f32 %v1454_v32, 0.0  ;;  %v1452_v19 = vadd.f32 %v2948_v9, %v1301_v6  ;;  %v1322_v31 = vadd.f32 %v2196_v63, %v2116_v62  ;;  %v976_v41 = vpop.f32.mrf.mxu0 }
 0x135   :  { %v1313_v44 = vpop.f32.mrf.mxu1 }
 0x136   :  { %1582 = vst [vmem:[%s3213_s7 + $0x138] sm:$0xff] %v1518_v14  ;;  %v1516_v11 = vmax.f32 %v1452_v19, 0.0  ;;  %v1457_v54 = vadd.f32 %v2948_v9, %v1322_v31  ;;  %v1314_v50 = vadd.f32 %v1313_v44, %v976_v41  ;;  %v2117_v5 = vpop.f32.mrf.mxu0 }
 0x137   :  { %v2197_v7 = vpop.f32.mrf.mxu1 }
 0x138   :  { %1580 = vst [vmem:[%s3213_s7 + $0x128] sm:$0xff] %v1516_v11  ;;  %v1521_v13 = vmax.f32 %v1457_v54, 0.0  ;;  %v1455_v25 = vadd.f32 %v2948_v9, %v1314_v50  ;;  %v1325_v10 = vadd.f32 %v2197_v7, %v2117_v5  ;;  %v979_v48 = vpop.f32.mrf.mxu0 }
 0x139   :  { %v1316_v51 = vpop.f32.mrf.mxu1 }
 0x13a   :  { %1585 = vst [vmem:[%s3213_s7 + $0x150] sm:$0xff] %v1521_v13  ;;  %v1519_v34 = vmax.f32 %v1455_v25, 0.0  ;;  %v1458_v0 = vadd.f32 %v2948_v9, %v1325_v10  ;;  %v1317_v20 = vadd.f32 %v1316_v51, %v979_v48  ;;  %v2120_v26 = vpop.f32.mrf.mxu0 }
 0x13b   :  { %v2200_v35 = vpop.f32.mrf.mxu1 }
 0x13c   :  { %1583 = vst [vmem:[%s3213_s7 + $0x140] sm:$0xff] %v1519_v34  ;;  %v1522_v1 = vmax.f32 %v1458_v0, 0.0  ;;  %v1456_v12 = vadd.f32 %v2948_v9, %v1317_v20  ;;  %v1338_v30 = vadd.f32 %v2200_v35, %v2120_v26  ;;  %v992_v24 = vpop.f32.mrf.mxu0 }
 0x13d   :  { %v1329_v4 = vpop.f32.mrf.mxu1 }
 0x13e   :  { %1586 = vst [vmem:[%s3213_s7 + $0x158] sm:$0xff] %v1522_v1  ;;  %v1520_v27 = vmax.f32 %v1456_v12, 0.0  ;;  %v1461_v23 = vadd.f32 %v2948_v9, %v1338_v30  ;;  %v1330_v38 = vadd.f32 %v1329_v4, %v992_v24  ;;  %v2121_v42 = vpop.f32.mrf.mxu0 }
 0x13f   :  { %v2201_v52 = vpop.f32.mrf.mxu1 }
 0x140   :  { %1584 = vst [vmem:[%s3213_s7 + $0x148] sm:$0xff] %v1520_v27  ;;  %v1525_v45 = vmax.f32 %v1461_v23, 0.0  ;;  %v1459_v47 = vadd.f32 %v2948_v9, %v1330_v38  ;;  %v1341_v53 = vadd.f32 %v2201_v52, %v2121_v42  ;;  %v995_v29 = vpop.f32.mrf.mxu0 }
 0x141   :  { %v1332_v60 = vpop.f32.mrf.mxu1 }
 0x142   :  { %1589 = vst [vmem:[%s3213_s7 + $0x170] sm:$0xff] %v1525_v45  ;;  %v1523_v59 = vmax.f32 %v1459_v47, 0.0  ;;  %v1462_v61 = vadd.f32 %v2948_v9, %v1341_v53  ;;  %v1333_v2 = vadd.f32 %v1332_v60, %v995_v29  ;;  %v2124_v15 = vpop.f32.mrf.mxu0 }
 0x143   :  { %v2204_v36 = vpop.f32.mrf.mxu1 }
 0x144   :  { %1587 = vst [vmem:[%s3213_s7 + $0x160] sm:$0xff] %v1523_v59  ;;  %v1526_v39 = vmax.f32 %v1462_v61, 0.0  ;;  %v1460_v49 = vadd.f32 %v2948_v9, %v1333_v2  ;;  %v1354_v57 = vadd.f32 %v2204_v36, %v2124_v15  ;;  %v1008_v58 = vpop.f32.mrf.mxu0 }
 0x145   :  { %v1345_v3 = vpop.f32.mrf.mxu1 }
 0x146   :  { %1590 = vst [vmem:[%s3213_s7 + $0x178] sm:$0xff] %v1526_v39  ;;  %v1524_v16 = vmax.f32 %v1460_v49, 0.0  ;;  %v1465_v55 = vadd.f32 %v2948_v9, %v1354_v57  ;;  %v1346_v28 = vadd.f32 %v1345_v3, %v1008_v58  ;;  %v2125_v18 = vpop.f32.mrf.mxu0 }
 0x147   :  { %v2205_v22 = vpop.f32.mrf.mxu1 }
 0x148   :  { %1588 = vst [vmem:[%s3213_s7 + $0x168] sm:$0xff] %v1524_v16  ;;  %v1529_v37 = vmax.f32 %v1465_v55, 0.0  ;;  %v1463_v33 = vadd.f32 %v2948_v9, %v1346_v28  ;;  %v1357_v46 = vadd.f32 %v2205_v22, %v2125_v18  ;;  %v1011_v56 = vpop.f32.mrf.mxu0 }
 0x149   :  { %v1348_v8 = vpop.f32.mrf.mxu1 }
 0x14a   :  { %1593 = vst [vmem:[%s3213_s7 + $0x190] sm:$0xff] %v1529_v37  ;;  %v1527_v17 = vmax.f32 %v1463_v33, 0.0  ;;  %v1466_v43 = vadd.f32 %v2948_v9, %v1357_v46  ;;  %v1349_v21 = vadd.f32 %v1348_v8, %v1011_v56  ;;  %v2128_v40 = vpop.f32.mrf.mxu0 }
 0x14b   :  { %v2208_v32 = vpop.f32.mrf.mxu1 }
 0x14c   :  { %1591 = vst [vmem:[%s3213_s7 + $0x180] sm:$0xff] %v1527_v17  ;;  %v1530_v6 = vmax.f32 %v1466_v43, 0.0  ;;  %v1464_v62 = vadd.f32 %v2948_v9, %v1349_v21  ;;  %v1370_v63 = vadd.f32 %v2208_v32, %v2128_v40  ;;  %v1024_v14 = vpop.f32.mrf.mxu0 }
 0x14d   :  { %v1361_v19 = vpop.f32.mrf.mxu1 }
 0x14e   :  { %1594 = vst [vmem:[%s3213_s7 + $0x198] sm:$0xff] %v1530_v6  ;;  %v1528_v31 = vmax.f32 %v1464_v62, 0.0  ;;  %v1469_v41 = vadd.f32 %v2948_v9, %v1370_v63  ;;  %v1362_v44 = vadd.f32 %v1361_v19, %v1024_v14  ;;  %v2129_v11 = vpop.f32.mrf.mxu0 }
 0x14f   :  { %v2209_v54 = vpop.f32.mrf.mxu1 }
 0x150   :  { %1592 = vst [vmem:[%s3213_s7 + $0x188] sm:$0xff] %v1528_v31  ;;  %v1533_v50 = vmax.f32 %v1469_v41, 0.0  ;;  %v1467_v5 = vadd.f32 %v2948_v9, %v1362_v44  ;;  %v1373_v7 = vadd.f32 %v2209_v54, %v2129_v11  ;;  %v1027_v13 = vpop.f32.mrf.mxu0 }
 0x151   :  { %v1364_v25 = vpop.f32.mrf.mxu1 }
 0x152   :  { %1597 = vst [vmem:[%s3213_s7 + $0x1b0] sm:$0xff] %v1533_v50  ;;  %v1531_v10 = vmax.f32 %v1467_v5, 0.0  ;;  %v1470_v48 = vadd.f32 %v2948_v9, %v1373_v7  ;;  %v1365_v51 = vadd.f32 %v1364_v25, %v1027_v13  ;;  %v2132_v34 = vpop.f32.mrf.mxu0 }
 0x153   :  { %v2212_v0 = vpop.f32.mrf.mxu1 }
 0x154   :  { %1595 = vst [vmem:[%s3213_s7 + $0x1a0] sm:$0xff] %v1531_v10  ;;  %v1534_v20 = vmax.f32 %v1470_v48, 0.0  ;;  %v1468_v26 = vadd.f32 %v2948_v9, %v1365_v51  ;;  %v1386_v35 = vadd.f32 %v2212_v0, %v2132_v34  ;;  %v1040_v1 = vpop.f32.mrf.mxu0 }
 0x155   :  { %v1377_v12 = vpop.f32.mrf.mxu1 }
 0x156   :  { %1598 = vst [vmem:[%s3213_s7 + $0x1b8] sm:$0xff] %v1534_v20  ;;  %v1532_v30 = vmax.f32 %v1468_v26, 0.0  ;;  %v1473_v24 = vadd.f32 %v2948_v9, %v1386_v35  ;;  %v1378_v4 = vadd.f32 %v1377_v12, %v1040_v1  ;;  %v2133_v27 = vpop.f32.mrf.mxu0 }
 0x157   :  { %v2213_v23 = vpop.f32.mrf.mxu1 }
 0x158   :  { %1596 = vst [vmem:[%s3213_s7 + $0x1a8] sm:$0xff] %v1532_v30  ;;  %v1537_v38 = vmax.f32 %v1473_v24, 0.0  ;;  %v1471_v42 = vadd.f32 %v2948_v9, %v1378_v4  ;;  %v1389_v52 = vadd.f32 %v2213_v23, %v2133_v27  ;;  %v1043_v45 = vpop.f32.mrf.mxu0 }
 0x159   :  { %v1380_v47 = vpop.f32.mrf.mxu1 }
 0x15a   :  { %1601 = vst [vmem:[%s3213_s7 + $0x1d0] sm:$0xff] %v1537_v38  ;;  %v1535_v53 = vmax.f32 %v1471_v42, 0.0  ;;  %v1474_v29 = vadd.f32 %v2948_v9, %v1389_v52  ;;  %v1381_v60 = vadd.f32 %v1380_v47, %v1043_v45  ;;  %v2136_v59 = vpop.f32.mrf.mxu0 }
 0x15b   :  { %v2216_v61 = vpop.f32.mrf.mxu1 }
 0x15c   :  { %1599 = vst [vmem:[%s3213_s7 + $0x1c0] sm:$0xff] %v1535_v53  ;;  %v1538_v2 = vmax.f32 %v1474_v29, 0.0  ;;  %v1472_v15 = vadd.f32 %v2948_v9, %v1381_v60  ;;  %v1402_v36 = vadd.f32 %v2216_v61, %v2136_v59  ;;  %v1056_v39 = vpop.f32.mrf.mxu0 }
 0x15d   :  { %v1393_v49 = vpop.f32.mrf.mxu1 }
 0x15e   :  { %1602 = vst [vmem:[%s3213_s7 + $0x1d8] sm:$0xff] %v1538_v2  ;;  %v1536_v57 = vmax.f32 %v1472_v15, 0.0  ;;  %v1477_v58 = vadd.f32 %v2948_v9, %v1402_v36  ;;  %v1394_v3 = vadd.f32 %v1393_v49, %v1056_v39  ;;  %v2137_v16 = vpop.f32.mrf.mxu0 }
 0x15f   :  { %v2217_v55 = vpop.f32.mrf.mxu1 }
 0x160   :  { %1600 = vst [vmem:[%s3213_s7 + $0x1c8] sm:$0xff] %v1536_v57  ;;  %v1541_v28 = vmax.f32 %v1477_v58, 0.0  ;;  %v1475_v18 = vadd.f32 %v2948_v9, %v1394_v3  ;;  %v1405_v22 = vadd.f32 %v2217_v55, %v2137_v16  ;;  %v1059_v37 = vpop.f32.mrf.mxu0 }
 0x161   :  { %v1396_v33 = vpop.f32.mrf.mxu1 }
 0x162   :  { %1605 = vst [vmem:[%s3213_s7 + $0x1f0] sm:$0xff] %v1541_v28  ;;  %v1539_v46 = vmax.f32 %v1475_v18, 0.0  ;;  %v1478_v56 = vadd.f32 %v2948_v9, %v1405_v22  ;;  %v1397_v8 = vadd.f32 %v1396_v33, %v1059_v37 }
 0x164   :  { %1603 = vst [vmem:[%s3213_s7 + $0x1e0] sm:$0xff] %v1539_v46  ;;  %v1542_v17 = vmax.f32 %v1478_v56, 0.0  ;;  %v1476_v43 = vadd.f32 %v2948_v9, %v1397_v8 }
 0x166   :  { %1606 = vst [vmem:[%s3213_s7 + $0x1f8] sm:$0xff] %v1542_v17  ;;  %v1540_v21 = vmax.f32 %v1476_v43, 0.0 }
 0x168   :  { %1604 = vst [vmem:[%s3213_s7 + $0x1e8] sm:$0xff] %v1540_v21 }

// kernel: bepc3_forward.4
= control target key start
LH: loop header
LB: loop body
LE: loop exit
PB: predicated region body
PF: predicated region fallthrough
CT: control target
= control target key end

     0   :  { %s4035_s1 = inlined_call_operand.vmem [shape: bf16[128,128], index: 1, kind: input, shape index: {}]   ;;  %s4036_s2 = inlined_call_operand.vmem [shape: bf16[128,128], index: 2, kind: input, shape index: {}]   ;;  %s4037_s0 = inlined_call_operand.vmem [shape: bf16[512,128], index: 0, kind: input, shape index: {}]   ;;  %s4038_s3 = inlined_call_operand.vmem [shape: f32[1,128], index: 3, kind: input, shape index: {}]   ;;  %s4039_s4 = inlined_call_operand.vmem [shape: f32[1,128], index: 4, kind: input, shape index: {}]   ;;  %s4040_s5 = inlined_call_operand.vmem [shape: bf16[512,128], index: 5, kind: output, shape index: {0}]   ;;  %s4041_s6 = inlined_call_operand.vmem [shape: bf16[512,128], index: 6, kind: output, shape index: {1}]  }
   0x1   :  { %v3478_v0 = vld [vmem:[%s4035_s1 + $0x38] sm:$0xff]   ;;  %v3480_v2 = vld [vmem:[%s4035_s1 + $0x30] sm:$0xff]   ;;  %v3482_v4 = vld [vmem:[%s4035_s1 + $0x28] sm:$0xff]  }
   0x2   :  { %v3479_v1 = vld [vmem:[%s4036_s2 + $0x38] sm:$0xff]   ;;  %3318 = vmatprep.subr.bf16.mxu0 %v3478_v0  ;;  %v3481_v3 = vld [vmem:[%s4036_s2 + $0x30] sm:$0xff]   ;;  %v3483_v5 = vld [vmem:[%s4036_s2 + $0x28] sm:$0xff]  }
   0x3   :  { %3398 = vmatprep.subr.bf16.mxu1 %v3479_v1  ;;  %3319 = vmatpush3.bf16.msra.mxu0 %v3478_v0  ;;  %v3484_v6 = vld [vmem:[%s4035_s1 + $0x20] sm:$0xff]   ;;  %v3486_v8 = vld [vmem:[%s4035_s1 + $0x18] sm:$0xff]   ;;  %v3488_v10 = vld [vmem:[%s4035_s1 + $0x10] sm:$0xff]  }
   0x4   :  { %3399 = vmatpush3.bf16.msra.mxu1 %v3479_v1  ;;  %3320 = vmatprep.subr.bf16.mxu0 %v3480_v2  ;;  %v3485_v7 = vld [vmem:[%s4036_s2 + $0x20] sm:$0xff]   ;;  %v3487_v9 = vld [vmem:[%s4036_s2 + $0x18] sm:$0xff]   ;;  %v3489_v12 = vld [vmem:[%s4036_s2 + $0x10] sm:$0xff]  }
   0x5   :  { %3400 = vmatprep.subr.bf16.mxu1 %v3481_v3  ;;  %v3494_v11 = vld [vmem:[%s4037_s0] sm:$0xff]   ;;  %v3490_v13 = vld [vmem:[%s4035_s1 + $0x8] sm:$0xff]   ;;  %v3496_v18 = vld [vmem:[%s4037_s0 + $0x10] sm:$0xff]  }
   0x6   :  { %3334 = vmatprep.mubr.bf16.mxu0 %v3494_v11  ;;  %3414 = vmatprep.mubr.bf16.mxu1 %v3494_v11  ;;  %v3491_v14 = vld [vmem:[%s4036_s2 + $0x8] sm:$0xff]   ;;  %v3492_v15 = vld [vmem:[%s4035_s1] sm:$0xff]   ;;  %v3497_v19 = vld [vmem:[%s4037_s0 + $0x18] sm:$0xff]  }
   0x7   :  { %3321 = vmatpush3.bf16.msra.mxu0 %v3480_v2  ;;  %v3493_v16 = vld [vmem:[%s4036_s2] sm:$0xff]   ;;  %v3495_v17 = vld [vmem:[%s4037_s0 + $0x8] sm:$0xff]   ;;  %v3500_v22 = vld [vmem:[%s4037_s0 + $0x30] sm:$0xff]  }
   0x8   :  { %3401 = vmatpush3.bf16.msra.mxu1 %v3481_v3  ;;  %3322 = vmatprep.subr.bf16.mxu0 %v3482_v4  ;;  %v3498_v20 = vld [vmem:[%s4037_s0 + $0x20] sm:$0xff]   ;;  %v3499_v21 = vld [vmem:[%s4037_s0 + $0x28] sm:$0xff]   ;;  %v3501_v23 = vld [vmem:[%s4037_s0 + $0x38] sm:$0xff]  }
   0x9   :  { %3402 = vmatprep.subr.bf16.mxu1 %v3483_v5  ;;  %v3502_v24 = vld [vmem:[%s4037_s0 + $0x40] sm:$0xff]   ;;  %v3503_v25 = vld [vmem:[%s4037_s0 + $0x48] sm:$0xff]   ;;  %v3504_v26 = vld [vmem:[%s4037_s0 + $0x50] sm:$0xff]  }
   0xa   :  { %v3505_v27 = vld [vmem:[%s4037_s0 + $0x58] sm:$0xff]   ;;  %v3506_v28 = vld [vmem:[%s4037_s0 + $0x60] sm:$0xff]   ;;  %v3507_v29 = vld [vmem:[%s4037_s0 + $0x68] sm:$0xff]  }
   0xb   :  { %3323 = vmatpush3.bf16.msra.mxu0 %v3482_v4  ;;  %v3508_v30 = vld [vmem:[%s4037_s0 + $0x70] sm:$0xff]   ;;  %v3509_v31 = vld [vmem:[%s4037_s0 + $0x78] sm:$0xff]   ;;  %v3510_v32 = vld [vmem:[%s4037_s0 + $0x80] sm:$0xff]  }
   0xc   :  { %3403 = vmatpush3.bf16.msra.mxu1 %v3483_v5  ;;  %3324 = vmatprep.subr.bf16.mxu0 %v3484_v6  ;;  %v3511_v33 = vld [vmem:[%s4037_s0 + $0x88] sm:$0xff]   ;;  %v3512_v34 = vld [vmem:[%s4037_s0 + $0x90] sm:$0xff]   ;;  %v3513_v35 = vld [vmem:[%s4037_s0 + $0x98] sm:$0xff]  }
   0xd   :  { %3404 = vmatprep.subr.bf16.mxu1 %v3485_v7  ;;  %v3514_v36 = vld [vmem:[%s4037_s0 + $0xa0] sm:$0xff]   ;;  %v3515_v37 = vld [vmem:[%s4037_s0 + $0xa8] sm:$0xff]   ;;  %v3516_v38 = vld [vmem:[%s4037_s0 + $0xb0] sm:$0xff]  }
   0xe   :  { %v3517_v39 = vld [vmem:[%s4037_s0 + $0xb8] sm:$0xff]   ;;  %v3518_v40 = vld [vmem:[%s4037_s0 + $0xc0] sm:$0xff]   ;;  %v3519_v41 = vld [vmem:[%s4037_s0 + $0xc8] sm:$0xff]  }
   0xf   :  { %3325 = vmatpush3.bf16.msra.mxu0 %v3484_v6  ;;  %v3520_v42 = vld [vmem:[%s4037_s0 + $0xd0] sm:$0xff]   ;;  %v3521_v43 = vld [vmem:[%s4037_s0 + $0xd8] sm:$0xff]   ;;  %v3522_v44 = vld [vmem:[%s4037_s0 + $0xe0] sm:$0xff]  }
  0x10   :  { %3405 = vmatpush3.bf16.msra.mxu1 %v3485_v7  ;;  %3326 = vmatprep.subr.bf16.mxu0 %v3486_v8  ;;  %v3523_v45 = vld [vmem:[%s4037_s0 + $0xe8] sm:$0xff]   ;;  %v3524_v46 = vld [vmem:[%s4037_s0 + $0xf0] sm:$0xff]   ;;  %v3525_v47 = vld [vmem:[%s4037_s0 + $0xf8] sm:$0xff]  }
  0x11   :  { %3406 = vmatprep.subr.bf16.mxu1 %v3487_v9  ;;  %v3708_v49 = vld [vmem:[%s4038_s3] ss:$0 sm:$0xff] }
  0x12   :  { %v3713_v51 = vld [vmem:[%s4039_s4] ss:$0 sm:$0xff] }
  0x13   :  { %3327 = vmatpush3.bf16.msra.mxu0 %v3486_v8 }
  0x14   :  { %3407 = vmatpush3.bf16.msra.mxu1 %v3487_v9  ;;  %3328 = vmatprep.subr.bf16.mxu0 %v3488_v10 }
  0x15   :  { %3408 = vmatprep.subr.bf16.mxu1 %v3489_v12 }
  0x17   :  { %3329 = vmatpush3.bf16.msra.mxu0 %v3488_v10 }
  0x18   :  { %3409 = vmatpush3.bf16.msra.mxu1 %v3489_v12  ;;  %3330 = vmatprep.subr.bf16.mxu0 %v3490_v13 }
  0x19   :  { %3410 = vmatprep.subr.bf16.mxu1 %v3491_v14 }
  0x1b   :  { %3331 = vmatpush3.bf16.msra.mxu0 %v3490_v13 }
  0x1c   :  { %3411 = vmatpush3.bf16.msra.mxu1 %v3491_v14  ;;  %3332 = vmatprep.subr.bf16.mxu0 %v3492_v15 }
  0x1d   :  { %3412 = vmatprep.subr.bf16.mxu1 %v3493_v16 }
  0x1f   :  { %3333 = vmatpush3.bf16.msra.mxu0 %v3492_v15 }
  0x20   :  { %3413 = vmatpush3.bf16.msra.mxu1 %v3493_v16 }
  0x22   :  { %3335 = vmatmul.mubr.bf16.vlgmr.msra.gmra.mxu0 %v3495_v17 }
  0x23   :  { %3415 = vmatmul.mubr.bf16.vlgmr.msra.gmra.mxu1 %v3495_v17  ;;  %3338 = vmatprep.mubr.bf16.mxu0 %v3496_v18 }
  0x24   :  { %3418 = vmatprep.mubr.bf16.mxu1 %v3496_v18 }
  0x2a   :  { %3339 = vmatmul.mubr.bf16.gmra.mxu0 %v3497_v19 }
  0x2b   :  { %3419 = vmatmul.mubr.bf16.gmra.mxu1 %v3497_v19  ;;  %3342 = vmatprep.mubr.bf16.mxu0 %v3498_v20 }
  0x2c   :  { %3422 = vmatprep.mubr.bf16.mxu1 %v3498_v20 }
  0x32   :  { %3343 = vmatmul.mubr.bf16.gmra.mxu0 %v3499_v21 }
  0x33   :  { %3423 = vmatmul.mubr.bf16.gmra.mxu1 %v3499_v21  ;;  %3346 = vmatprep.mubr.bf16.mxu0 %v3500_v22 }
  0x34   :  { %3426 = vmatprep.mubr.bf16.mxu1 %v3500_v22 }
  0x3a   :  { %3347 = vmatmul.mubr.bf16.gmra.mxu0 %v3501_v23 }
  0x3b   :  { %3427 = vmatmul.mubr.bf16.gmra.mxu1 %v3501_v23  ;;  %3350 = vmatprep.mubr.bf16.mxu0 %v3502_v24 }
  0x3c   :  { %3430 = vmatprep.mubr.bf16.mxu1 %v3502_v24 }
  0x42   :  { %3351 = vmatmul.mubr.bf16.gmra.mxu0 %v3503_v25 }
  0x43   :  { %3431 = vmatmul.mubr.bf16.gmra.mxu1 %v3503_v25  ;;  %3354 = vmatprep.mubr.bf16.mxu0 %v3504_v26 }
  0x44   :  { %3434 = vmatprep.mubr.bf16.mxu1 %v3504_v26 }
  0x4a   :  { %3355 = vmatmul.mubr.bf16.gmra.mxu0 %v3505_v27 }
  0x4b   :  { %3435 = vmatmul.mubr.bf16.gmra.mxu1 %v3505_v27  ;;  %3358 = vmatprep.mubr.bf16.mxu0 %v3506_v28 }
  0x4c   :  { %3438 = vmatprep.mubr.bf16.mxu1 %v3506_v28 }
  0x52   :  { %3359 = vmatmul.mubr.bf16.gmra.mxu0 %v3507_v29 }
  0x53   :  { %3439 = vmatmul.mubr.bf16.gmra.mxu1 %v3507_v29  ;;  %3362 = vmatprep.mubr.bf16.mxu0 %v3508_v30 }
  0x54   :  { %3442 = vmatprep.mubr.bf16.mxu1 %v3508_v30 }
  0x5a   :  { %3363 = vmatmul.mubr.bf16.gmra.mxu0 %v3509_v31 }
  0x5b   :  { %3443 = vmatmul.mubr.bf16.gmra.mxu1 %v3509_v31  ;;  %3366 = vmatprep.mubr.bf16.mxu0 %v3510_v32 }
  0x5c   :  { %3446 = vmatprep.mubr.bf16.mxu1 %v3510_v32 }
  0x62   :  { %3367 = vmatmul.mubr.bf16.gmra.mxu0 %v3511_v33 }
  0x63   :  { %3447 = vmatmul.mubr.bf16.gmra.mxu1 %v3511_v33  ;;  %3370 = vmatprep.mubr.bf16.mxu0 %v3512_v34 }
  0x64   :  { %3450 = vmatprep.mubr.bf16.mxu1 %v3512_v34 }
  0x6a   :  { %3371 = vmatmul.mubr.bf16.gmra.mxu0 %v3513_v35 }
  0x6b   :  { %3451 = vmatmul.mubr.bf16.gmra.mxu1 %v3513_v35  ;;  %3374 = vmatprep.mubr.bf16.mxu0 %v3514_v36 }
  0x6c   :  { %3454 = vmatprep.mubr.bf16.mxu1 %v3514_v36 }
  0x72   :  { %3375 = vmatmul.mubr.bf16.gmra.mxu0 %v3515_v37 }
  0x73   :  { %3455 = vmatmul.mubr.bf16.gmra.mxu1 %v3515_v37  ;;  %3378 = vmatprep.mubr.bf16.mxu0 %v3516_v38 }
  0x74   :  { %3458 = vmatprep.mubr.bf16.mxu1 %v3516_v38 }
  0x7a   :  { %3379 = vmatmul.mubr.bf16.gmra.mxu0 %v3517_v39 }
  0x7b   :  { %3459 = vmatmul.mubr.bf16.gmra.mxu1 %v3517_v39  ;;  %3382 = vmatprep.mubr.bf16.mxu0 %v3518_v40 }
  0x7c   :  { %3462 = vmatprep.mubr.bf16.mxu1 %v3518_v40 }
  0x82   :  { %3383 = vmatmul.mubr.bf16.gmra.mxu0 %v3519_v41 }
  0x83   :  { %3463 = vmatmul.mubr.bf16.gmra.mxu1 %v3519_v41  ;;  %3386 = vmatprep.mubr.bf16.mxu0 %v3520_v42 }
  0x84   :  { %3466 = vmatprep.mubr.bf16.mxu1 %v3520_v42 }
  0x8a   :  { %3387 = vmatmul.mubr.bf16.gmra.mxu0 %v3521_v43 }
  0x8b   :  { %3467 = vmatmul.mubr.bf16.gmra.mxu1 %v3521_v43  ;;  %3390 = vmatprep.mubr.bf16.mxu0 %v3522_v44 }
  0x8c   :  { %3470 = vmatprep.mubr.bf16.mxu1 %v3522_v44 }
  0x92   :  { %3391 = vmatmul.mubr.bf16.gmra.mxu0 %v3523_v45 }
  0x93   :  { %3471 = vmatmul.mubr.bf16.gmra.mxu1 %v3523_v45  ;;  %3394 = vmatprep.mubr.bf16.mxu0 %v3524_v46 }
  0x94   :  { %3474 = vmatprep.mubr.bf16.mxu1 %v3524_v46 }
  0x9a   :  { %3395 = vmatmul.mubr.bf16.gmra.mxu0 %v3525_v47 }
  0x9b   :  { %3475 = vmatmul.mubr.bf16.gmra.mxu1 %v3525_v47 }
  0xe2   :  { %v3336_v48 = vpop.f32.mrf.mxu0 }
  0xe3   :  { %v3416_v50 = vpop.f32.mrf.mxu1  ;;  %v1577_v53 = vadd.f32 %v3336_v48, %v3708_v49 }
  0xe4   :  { %v573_v52 = vpop.f32.mrf.mxu0  ;;  %v2096_v55 = vadd.f32 %v3416_v50, %v3713_v51 }
  0xe5   :  { %v1118_v54 = vpop.f32.mrf.mxu1  ;;  %v1575_v57 = vadd.f32 %v3708_v49, %v573_v52  ;;  %v1641_v63 = vmax.f32 %v1577_v53, 0.0 }
  0xe6   :  { %v3337_v56 = vpop.f32.mrf.mxu0  ;;  %v2094_v60 = vadd.f32 %v3713_v51, %v1118_v54  ;;  %v2160_v3 = vmax.f32 %v2096_v55, 0.0 }
  0xe7   :  { %v1578_v58 = vadd.f32 %v3337_v56, %v3708_v49  ;;  %v3417_v59 = vpop.f32.mrf.mxu1  ;;  %v1639_v7 = vmax.f32 %v1575_v57, 0.0 }
  0xe8   :  { %v2097_v61 = vadd.f32 %v3417_v59, %v3713_v51  ;;  %v576_v62 = vpop.f32.mrf.mxu0  ;;  %v2158_v11 = vmax.f32 %v2094_v60, 0.0 }
  0xe9   :  { %v1642_v0 = vmax.f32 %v1578_v58, 0.0  ;;  %v1576_v1 = vadd.f32 %v3708_v49, %v576_v62  ;;  %v1121_v2 = vpop.f32.mrf.mxu1 }
  0xea   :  { %v2161_v4 = vmax.f32 %v2097_v61, 0.0  ;;  %v2095_v5 = vadd.f32 %v3713_v51, %v1121_v2  ;;  %v3340_v6 = vpop.f32.mrf.mxu0 }
  0xeb   :  { %v2864_v8 = vpack.c.bf16 %v1642_v0, %v1641_v63  ;;  %v1640_v9 = vmax.f32 %v1576_v1, 0.0  ;;  %v3420_v10 = vpop.f32.mrf.mxu1  ;;  %v1581_v16 = vadd.f32 %v3340_v6, %v3708_v49 }
  0xec   :  { %v3024_v12 = vpack.c.bf16 %v2161_v4, %v2160_v3  ;;  %v2159_v13 = vmax.f32 %v2095_v5, 0.0  ;;  %v589_v14 = vpop.f32.mrf.mxu0  ;;  %v2100_v19 = vadd.f32 %v3420_v10, %v3713_v51 }
  0xed   :  { %3176 = vst [vmem:[%s4040_s5 + $0x8] sm:$0xff] %v2864_v8   ;;  %v2859_v15 = vpack.c.bf16 %v1640_v9, %v1639_v7  ;;  %v1134_v17 = vpop.f32.mrf.mxu1  ;;  %v1579_v21 = vadd.f32 %v3708_v49, %v589_v14  ;;  %v1645_v27 = vmax.f32 %v1581_v16, 0.0 }
  0xee   :  { %3207 = vst [vmem:[%s4041_s6 + $0x8] sm:$0xff] %v3024_v12   ;;  %v3019_v18 = vpack.c.bf16 %v2159_v13, %v2158_v11  ;;  %v3341_v20 = vpop.f32.mrf.mxu0  ;;  %v2098_v24 = vadd.f32 %v3713_v51, %v1134_v17  ;;  %v2164_v31 = vmax.f32 %v2100_v19, 0.0 }
  0xef   :  { %2860 = vst [vmem:[%s4040_s5] sm:$0xff] %v2859_v15   ;;  %v1582_v22 = vadd.f32 %v3341_v20, %v3708_v49  ;;  %v3421_v23 = vpop.f32.mrf.mxu1  ;;  %v1643_v35 = vmax.f32 %v1579_v21, 0.0 }
  0xf0   :  { %3020 = vst [vmem:[%s4041_s6] sm:$0xff] %v3019_v18   ;;  %v2101_v25 = vadd.f32 %v3421_v23, %v3713_v51  ;;  %v592_v26 = vpop.f32.mrf.mxu0  ;;  %v2162_v39 = vmax.f32 %v2098_v24, 0.0 }
  0xf1   :  { %v1646_v28 = vmax.f32 %v1582_v22, 0.0  ;;  %v1580_v29 = vadd.f32 %v3708_v49, %v592_v26  ;;  %v1137_v30 = vpop.f32.mrf.mxu1 }
  0xf2   :  { %v2165_v32 = vmax.f32 %v2101_v25, 0.0  ;;  %v2099_v33 = vadd.f32 %v3713_v51, %v1137_v30  ;;  %v3344_v34 = vpop.f32.mrf.mxu0 }
  0xf3   :  { %v2874_v36 = vpack.c.bf16 %v1646_v28, %v1645_v27  ;;  %v1644_v37 = vmax.f32 %v1580_v29, 0.0  ;;  %v3424_v38 = vpop.f32.mrf.mxu1  ;;  %v1585_v44 = vadd.f32 %v3344_v34, %v3708_v49 }
  0xf4   :  { %v3034_v40 = vpack.c.bf16 %v2165_v32, %v2164_v31  ;;  %v2163_v41 = vmax.f32 %v2099_v33, 0.0  ;;  %v605_v42 = vpop.f32.mrf.mxu0  ;;  %v2104_v47 = vadd.f32 %v3424_v38, %v3713_v51 }
  0xf5   :  { %3178 = vst [vmem:[%s4040_s5 + $0x18] sm:$0xff] %v2874_v36   ;;  %v2869_v43 = vpack.c.bf16 %v1644_v37, %v1643_v35  ;;  %v1150_v45 = vpop.f32.mrf.mxu1  ;;  %v1583_v50 = vadd.f32 %v3708_v49, %v605_v42  ;;  %v1649_v57 = vmax.f32 %v1585_v44, 0.0 }
  0xf6   :  { %3209 = vst [vmem:[%s4041_s6 + $0x18] sm:$0xff] %v3034_v40   ;;  %v3029_v46 = vpack.c.bf16 %v2163_v41, %v2162_v39  ;;  %v3345_v48 = vpop.f32.mrf.mxu0  ;;  %v2102_v54 = vadd.f32 %v3713_v51, %v1150_v45  ;;  %v2168_v61 = vmax.f32 %v2104_v47, 0.0 }
  0xf7   :  { %3177 = vst [vmem:[%s4040_s5 + $0x10] sm:$0xff] %v2869_v43   ;;  %v1586_v52 = vadd.f32 %v3345_v48, %v3708_v49  ;;  %v3425_v53 = vpop.f32.mrf.mxu1  ;;  %v1647_v1 = vmax.f32 %v1583_v50, 0.0 }
  0xf8   :  { %3208 = vst [vmem:[%s4041_s6 + $0x10] sm:$0xff] %v3029_v46   ;;  %v2105_v55 = vadd.f32 %v3425_v53, %v3713_v51  ;;  %v608_v56 = vpop.f32.mrf.mxu0  ;;  %v2166_v5 = vmax.f32 %v2102_v54, 0.0 }
  0xf9   :  { %v1650_v58 = vmax.f32 %v1586_v52, 0.0  ;;  %v1584_v59 = vadd.f32 %v3708_v49, %v608_v56  ;;  %v1153_v60 = vpop.f32.mrf.mxu1 }
  0xfa   :  { %v2169_v62 = vmax.f32 %v2105_v55, 0.0  ;;  %v2103_v63 = vadd.f32 %v3713_v51, %v1153_v60  ;;  %v3348_v0 = vpop.f32.mrf.mxu0 }
  0xfb   :  { %v2884_v2 = vpack.c.bf16 %v1650_v58, %v1649_v57  ;;  %v1648_v3 = vmax.f32 %v1584_v59, 0.0  ;;  %v3428_v4 = vpop.f32.mrf.mxu1  ;;  %v1589_v10 = vadd.f32 %v3348_v0, %v3708_v49 }
  0xfc   :  { %v3044_v6 = vpack.c.bf16 %v2169_v62, %v2168_v61  ;;  %v2167_v7 = vmax.f32 %v2103_v63, 0.0  ;;  %v621_v8 = vpop.f32.mrf.mxu0  ;;  %v2108_v13 = vadd.f32 %v3428_v4, %v3713_v51 }
  0xfd   :  { %3180 = vst [vmem:[%s4040_s5 + $0x28] sm:$0xff] %v2884_v2   ;;  %v2879_v9 = vpack.c.bf16 %v1648_v3, %v1647_v1  ;;  %v1166_v11 = vpop.f32.mrf.mxu1  ;;  %v1587_v15 = vadd.f32 %v3708_v49, %v621_v8  ;;  %v1653_v21 = vmax.f32 %v1589_v10, 0.0 }
  0xfe   :  { %3211 = vst [vmem:[%s4041_s6 + $0x28] sm:$0xff] %v3044_v6   ;;  %v3039_v12 = vpack.c.bf16 %v2167_v7, %v2166_v5  ;;  %v3349_v14 = vpop.f32.mrf.mxu0  ;;  %v2106_v18 = vadd.f32 %v3713_v51, %v1166_v11  ;;  %v2172_v25 = vmax.f32 %v2108_v13, 0.0 }
  0xff   :  { %3179 = vst [vmem:[%s4040_s5 + $0x20] sm:$0xff] %v2879_v9   ;;  %v1590_v16 = vadd.f32 %v3349_v14, %v3708_v49  ;;  %v3429_v17 = vpop.f32.mrf.mxu1  ;;  %v1651_v29 = vmax.f32 %v1587_v15, 0.0 }
 0x100   :  { %3210 = vst [vmem:[%s4041_s6 + $0x20] sm:$0xff] %v3039_v12   ;;  %v2109_v19 = vadd.f32 %v3429_v17, %v3713_v51  ;;  %v624_v20 = vpop.f32.mrf.mxu0  ;;  %v2170_v33 = vmax.f32 %v2106_v18, 0.0 }
 0x101   :  { %v1654_v22 = vmax.f32 %v1590_v16, 0.0  ;;  %v1588_v23 = vadd.f32 %v3708_v49, %v624_v20  ;;  %v1169_v24 = vpop.f32.mrf.mxu1 }
 0x102   :  { %v2173_v26 = vmax.f32 %v2109_v19, 0.0  ;;  %v2107_v27 = vadd.f32 %v3713_v51, %v1169_v24  ;;  %v3352_v28 = vpop.f32.mrf.mxu0 }
 0x103   :  { %v2894_v30 = vpack.c.bf16 %v1654_v22, %v1653_v21  ;;  %v1652_v31 = vmax.f32 %v1588_v23, 0.0  ;;  %v3432_v32 = vpop.f32.mrf.mxu1  ;;  %v1593_v38 = vadd.f32 %v3352_v28, %v3708_v49 }
 0x104   :  { %v3054_v34 = vpack.c.bf16 %v2173_v26, %v2172_v25  ;;  %v2171_v35 = vmax.f32 %v2107_v27, 0.0  ;;  %v637_v36 = vpop.f32.mrf.mxu0  ;;  %v2112_v41 = vadd.f32 %v3432_v32, %v3713_v51 }
 0x105   :  { %3182 = vst [vmem:[%s4040_s5 + $0x38] sm:$0xff] %v2894_v30   ;;  %v2889_v37 = vpack.c.bf16 %v1652_v31, %v1651_v29  ;;  %v1182_v39 = vpop.f32.mrf.mxu1  ;;  %v1591_v43 = vadd.f32 %v3708_v49, %v637_v36  ;;  %v1657_v50 = vmax.f32 %v1593_v38, 0.0 }
 0x106   :  { %3213 = vst [vmem:[%s4041_s6 + $0x38] sm:$0xff] %v3054_v34   ;;  %v3049_v40 = vpack.c.bf16 %v2171_v35, %v2170_v33  ;;  %v3353_v42 = vpop.f32.mrf.mxu0  ;;  %v2110_v46 = vadd.f32 %v3713_v51, %v1182_v39  ;;  %v2176_v55 = vmax.f32 %v2112_v41, 0.0 }
 0x107   :  { %3181 = vst [vmem:[%s4040_s5 + $0x30] sm:$0xff] %v2889_v37   ;;  %v1594_v44 = vadd.f32 %v3353_v42, %v3708_v49  ;;  %v3433_v45 = vpop.f32.mrf.mxu1  ;;  %v1655_v59 = vmax.f32 %v1591_v43, 0.0 }
 0x108   :  { %3212 = vst [vmem:[%s4041_s6 + $0x30] sm:$0xff] %v3049_v40   ;;  %v2113_v47 = vadd.f32 %v3433_v45, %v3713_v51  ;;  %v640_v48 = vpop.f32.mrf.mxu0  ;;  %v2174_v63 = vmax.f32 %v2110_v46, 0.0 }
 0x109   :  { %v1658_v52 = vmax.f32 %v1594_v44, 0.0  ;;  %v1592_v53 = vadd.f32 %v3708_v49, %v640_v48  ;;  %v1185_v54 = vpop.f32.mrf.mxu1 }
 0x10a   :  { %v2177_v56 = vmax.f32 %v2113_v47, 0.0  ;;  %v2111_v57 = vadd.f32 %v3713_v51, %v1185_v54  ;;  %v3356_v58 = vpop.f32.mrf.mxu0 }
 0x10b   :  { %v2904_v60 = vpack.c.bf16 %v1658_v52, %v1657_v50  ;;  %v1656_v61 = vmax.f32 %v1592_v53, 0.0  ;;  %v3436_v62 = vpop.f32.mrf.mxu1  ;;  %v1597_v4 = vadd.f32 %v3356_v58, %v3708_v49 }
 0x10c   :  { %v3064_v0 = vpack.c.bf16 %v2177_v56, %v2176_v55  ;;  %v2175_v1 = vmax.f32 %v2111_v57, 0.0  ;;  %v653_v2 = vpop.f32.mrf.mxu0  ;;  %v2116_v7 = vadd.f32 %v3436_v62, %v3713_v51 }
 0x10d   :  { %3184 = vst [vmem:[%s4040_s5 + $0x48] sm:$0xff] %v2904_v60   ;;  %v2899_v3 = vpack.c.bf16 %v1656_v61, %v1655_v59  ;;  %v1198_v5 = vpop.f32.mrf.mxu1  ;;  %v1595_v9 = vadd.f32 %v3708_v49, %v653_v2  ;;  %v1661_v15 = vmax.f32 %v1597_v4, 0.0 }
 0x10e   :  { %3215 = vst [vmem:[%s4041_s6 + $0x48] sm:$0xff] %v3064_v0   ;;  %v3059_v6 = vpack.c.bf16 %v2175_v1, %v2174_v63  ;;  %v3357_v8 = vpop.f32.mrf.mxu0  ;;  %v2114_v12 = vadd.f32 %v3713_v51, %v1198_v5  ;;  %v2180_v19 = vmax.f32 %v2116_v7, 0.0 }
 0x10f   :  { %3183 = vst [vmem:[%s4040_s5 + $0x40] sm:$0xff] %v2899_v3   ;;  %v1598_v10 = vadd.f32 %v3357_v8, %v3708_v49  ;;  %v3437_v11 = vpop.f32.mrf.mxu1  ;;  %v1659_v23 = vmax.f32 %v1595_v9, 0.0 }
 0x110   :  { %3214 = vst [vmem:[%s4041_s6 + $0x40] sm:$0xff] %v3059_v6   ;;  %v2117_v13 = vadd.f32 %v3437_v11, %v3713_v51  ;;  %v656_v14 = vpop.f32.mrf.mxu0  ;;  %v2178_v27 = vmax.f32 %v2114_v12, 0.0 }
 0x111   :  { %v1662_v16 = vmax.f32 %v1598_v10, 0.0  ;;  %v1596_v17 = vadd.f32 %v3708_v49, %v656_v14  ;;  %v1201_v18 = vpop.f32.mrf.mxu1 }
 0x112   :  { %v2181_v20 = vmax.f32 %v2117_v13, 0.0  ;;  %v2115_v21 = vadd.f32 %v3713_v51, %v1201_v18  ;;  %v3360_v22 = vpop.f32.mrf.mxu0 }
 0x113   :  { %v2914_v24 = vpack.c.bf16 %v1662_v16, %v1661_v15  ;;  %v1660_v25 = vmax.f32 %v1596_v17, 0.0  ;;  %v3440_v26 = vpop.f32.mrf.mxu1  ;;  %v1601_v32 = vadd.f32 %v3360_v22, %v3708_v49 }
 0x114   :  { %v3074_v28 = vpack.c.bf16 %v2181_v20, %v2180_v19  ;;  %v2179_v29 = vmax.f32 %v2115_v21, 0.0  ;;  %v669_v30 = vpop.f32.mrf.mxu0  ;;  %v2120_v35 = vadd.f32 %v3440_v26, %v3713_v51 }
 0x115   :  { %3186 = vst [vmem:[%s4040_s5 + $0x58] sm:$0xff] %v2914_v24   ;;  %v2909_v31 = vpack.c.bf16 %v1660_v25, %v1659_v23  ;;  %v1214_v33 = vpop.f32.mrf.mxu1  ;;  %v1599_v37 = vadd.f32 %v3708_v49, %v669_v30  ;;  %v1665_v43 = vmax.f32 %v1601_v32, 0.0 }
 0x116   :  { %3217 = vst [vmem:[%s4041_s6 + $0x58] sm:$0xff] %v3074_v28   ;;  %v3069_v34 = vpack.c.bf16 %v2179_v29, %v2178_v27  ;;  %v3361_v36 = vpop.f32.mrf.mxu0  ;;  %v2118_v40 = vadd.f32 %v3713_v51, %v1214_v33  ;;  %v2184_v47 = vmax.f32 %v2120_v35, 0.0 }
 0x117   :  { %3185 = vst [vmem:[%s4040_s5 + $0x50] sm:$0xff] %v2909_v31   ;;  %v1602_v38 = vadd.f32 %v3361_v36, %v3708_v49  ;;  %v3441_v39 = vpop.f32.mrf.mxu1  ;;  %v1663_v53 = vmax.f32 %v1599_v37, 0.0 }
 0x118   :  { %3216 = vst [vmem:[%s4041_s6 + $0x50] sm:$0xff] %v3069_v34   ;;  %v2121_v41 = vadd.f32 %v3441_v39, %v3713_v51  ;;  %v672_v42 = vpop.f32.mrf.mxu0  ;;  %v2182_v57 = vmax.f32 %v2118_v40, 0.0 }
 0x119   :  { %v1666_v44 = vmax.f32 %v1602_v38, 0.0  ;;  %v1600_v45 = vadd.f32 %v3708_v49, %v672_v42  ;;  %v1217_v46 = vpop.f32.mrf.mxu1 }
 0x11a   :  { %v2185_v48 = vmax.f32 %v2121_v41, 0.0  ;;  %v2119_v50 = vadd.f32 %v3713_v51, %v1217_v46  ;;  %v3364_v52 = vpop.f32.mrf.mxu0 }
 0x11b   :  { %v2924_v54 = vpack.c.bf16 %v1666_v44, %v1665_v43  ;;  %v1664_v55 = vmax.f32 %v1600_v45, 0.0  ;;  %v3444_v56 = vpop.f32.mrf.mxu1  ;;  %v1605_v62 = vadd.f32 %v3364_v52, %v3708_v49 }
 0x11c   :  { %v3084_v58 = vpack.c.bf16 %v2185_v48, %v2184_v47  ;;  %v2183_v59 = vmax.f32 %v2119_v50, 0.0  ;;  %v685_v60 = vpop.f32.mrf.mxu0  ;;  %v2124_v1 = vadd.f32 %v3444_v56, %v3713_v51 }
 0x11d   :  { %3188 = vst [vmem:[%s4040_s5 + $0x68] sm:$0xff] %v2924_v54   ;;  %v2919_v61 = vpack.c.bf16 %v1664_v55, %v1663_v53  ;;  %v1230_v63 = vpop.f32.mrf.mxu1  ;;  %v1603_v3 = vadd.f32 %v3708_v49, %v685_v60  ;;  %v1669_v9 = vmax.f32 %v1605_v62, 0.0 }
 0x11e   :  { %3219 = vst [vmem:[%s4041_s6 + $0x68] sm:$0xff] %v3084_v58   ;;  %v3079_v0 = vpack.c.bf16 %v2183_v59, %v2182_v57  ;;  %v3365_v2 = vpop.f32.mrf.mxu0  ;;  %v2122_v6 = vadd.f32 %v3713_v51, %v1230_v63  ;;  %v2188_v13 = vmax.f32 %v2124_v1, 0.0 }
 0x11f   :  { %3187 = vst [vmem:[%s4040_s5 + $0x60] sm:$0xff] %v2919_v61   ;;  %v1606_v4 = vadd.f32 %v3365_v2, %v3708_v49  ;;  %v3445_v5 = vpop.f32.mrf.mxu1  ;;  %v1667_v17 = vmax.f32 %v1603_v3, 0.0 }
 0x120   :  { %3218 = vst [vmem:[%s4041_s6 + $0x60] sm:$0xff] %v3079_v0   ;;  %v2125_v7 = vadd.f32 %v3445_v5, %v3713_v51  ;;  %v688_v8 = vpop.f32.mrf.mxu0  ;;  %v2186_v21 = vmax.f32 %v2122_v6, 0.0 }
 0x121   :  { %v1670_v10 = vmax.f32 %v1606_v4, 0.0  ;;  %v1604_v11 = vadd.f32 %v3708_v49, %v688_v8  ;;  %v1233_v12 = vpop.f32.mrf.mxu1 }
 0x122   :  { %v2189_v14 = vmax.f32 %v2125_v7, 0.0  ;;  %v2123_v15 = vadd.f32 %v3713_v51, %v1233_v12  ;;  %v3368_v16 = vpop.f32.mrf.mxu0 }
 0x123   :  { %v2934_v18 = vpack.c.bf16 %v1670_v10, %v1669_v9  ;;  %v1668_v19 = vmax.f32 %v1604_v11, 0.0  ;;  %v3448_v20 = vpop.f32.mrf.mxu1  ;;  %v1609_v26 = vadd.f32 %v3368_v16, %v3708_v49 }
 0x124   :  { %v3094_v22 = vpack.c.bf16 %v2189_v14, %v2188_v13  ;;  %v2187_v23 = vmax.f32 %v2123_v15, 0.0  ;;  %v701_v24 = vpop.f32.mrf.mxu0  ;;  %v2128_v29 = vadd.f32 %v3448_v20, %v3713_v51 }
 0x125   :  { %3190 = vst [vmem:[%s4040_s5 + $0x78] sm:$0xff] %v2934_v18   ;;  %v2929_v25 = vpack.c.bf16 %v1668_v19, %v1667_v17  ;;  %v1246_v27 = vpop.f32.mrf.mxu1  ;;  %v1607_v31 = vadd.f32 %v3708_v49, %v701_v24  ;;  %v1673_v37 = vmax.f32 %v1609_v26, 0.0 }
 0x126   :  { %3221 = vst [vmem:[%s4041_s6 + $0x78] sm:$0xff] %v3094_v22   ;;  %v3089_v28 = vpack.c.bf16 %v2187_v23, %v2186_v21  ;;  %v3369_v30 = vpop.f32.mrf.mxu0  ;;  %v2126_v34 = vadd.f32 %v3713_v51, %v1246_v27  ;;  %v2192_v41 = vmax.f32 %v2128_v29, 0.0 }
 0x127   :  { %3189 = vst [vmem:[%s4040_s5 + $0x70] sm:$0xff] %v2929_v25   ;;  %v1610_v32 = vadd.f32 %v3369_v30, %v3708_v49  ;;  %v3449_v33 = vpop.f32.mrf.mxu1  ;;  %v1671_v45 = vmax.f32 %v1607_v31, 0.0 }
 0x128   :  { %3220 = vst [vmem:[%s4041_s6 + $0x70] sm:$0xff] %v3089_v28   ;;  %v2129_v35 = vadd.f32 %v3449_v33, %v3713_v51  ;;  %v704_v36 = vpop.f32.mrf.mxu0  ;;  %v2190_v50 = vmax.f32 %v2126_v34, 0.0 }
 0x129   :  { %v1674_v38 = vmax.f32 %v1610_v32, 0.0  ;;  %v1608_v39 = vadd.f32 %v3708_v49, %v704_v36  ;;  %v1249_v40 = vpop.f32.mrf.mxu1 }
 0x12a   :  { %v2193_v42 = vmax.f32 %v2129_v35, 0.0  ;;  %v2127_v43 = vadd.f32 %v3713_v51, %v1249_v40  ;;  %v3372_v44 = vpop.f32.mrf.mxu0 }
 0x12b   :  { %v2944_v46 = vpack.c.bf16 %v1674_v38, %v1673_v37  ;;  %v1672_v47 = vmax.f32 %v1608_v39, 0.0  ;;  %v3452_v48 = vpop.f32.mrf.mxu1  ;;  %v1613_v56 = vadd.f32 %v3372_v44, %v3708_v49 }
 0x12c   :  { %v3104_v52 = vpack.c.bf16 %v2193_v42, %v2192_v41  ;;  %v2191_v53 = vmax.f32 %v2127_v43, 0.0  ;;  %v717_v54 = vpop.f32.mrf.mxu0  ;;  %v2132_v59 = vadd.f32 %v3452_v48, %v3713_v51 }
 0x12d   :  { %3192 = vst [vmem:[%s4040_s5 + $0x88] sm:$0xff] %v2944_v46   ;;  %v2939_v55 = vpack.c.bf16 %v1672_v47, %v1671_v45  ;;  %v1262_v57 = vpop.f32.mrf.mxu1  ;;  %v1611_v61 = vadd.f32 %v3708_v49, %v717_v54  ;;  %v1677_v3 = vmax.f32 %v1613_v56, 0.0 }
 0x12e   :  { %3223 = vst [vmem:[%s4041_s6 + $0x88] sm:$0xff] %v3104_v52   ;;  %v3099_v58 = vpack.c.bf16 %v2191_v53, %v2190_v50  ;;  %v3373_v60 = vpop.f32.mrf.mxu0  ;;  %v2130_v0 = vadd.f32 %v3713_v51, %v1262_v57  ;;  %v2196_v7 = vmax.f32 %v2132_v59, 0.0 }
 0x12f   :  { %3191 = vst [vmem:[%s4040_s5 + $0x80] sm:$0xff] %v2939_v55   ;;  %v1614_v62 = vadd.f32 %v3373_v60, %v3708_v49  ;;  %v3453_v63 = vpop.f32.mrf.mxu1  ;;  %v1675_v11 = vmax.f32 %v1611_v61, 0.0 }
 0x130   :  { %3222 = vst [vmem:[%s4041_s6 + $0x80] sm:$0xff] %v3099_v58   ;;  %v2133_v1 = vadd.f32 %v3453_v63, %v3713_v51  ;;  %v720_v2 = vpop.f32.mrf.mxu0  ;;  %v2194_v15 = vmax.f32 %v2130_v0, 0.0 }
 0x131   :  { %v1678_v4 = vmax.f32 %v1614_v62, 0.0  ;;  %v1612_v5 = vadd.f32 %v3708_v49, %v720_v2  ;;  %v1265_v6 = vpop.f32.mrf.mxu1 }
 0x132   :  { %v2197_v8 = vmax.f32 %v2133_v1, 0.0  ;;  %v2131_v9 = vadd.f32 %v3713_v51, %v1265_v6  ;;  %v3376_v10 = vpop.f32.mrf.mxu0 }
 0x133   :  { %v2954_v12 = vpack.c.bf16 %v1678_v4, %v1677_v3  ;;  %v1676_v13 = vmax.f32 %v1612_v5, 0.0  ;;  %v3456_v14 = vpop.f32.mrf.mxu1  ;;  %v1617_v20 = vadd.f32 %v3376_v10, %v3708_v49 }
 0x134   :  { %v3114_v16 = vpack.c.bf16 %v2197_v8, %v2196_v7  ;;  %v2195_v17 = vmax.f32 %v2131_v9, 0.0  ;;  %v733_v18 = vpop.f32.mrf.mxu0  ;;  %v2136_v23 = vadd.f32 %v3456_v14, %v3713_v51 }
 0x135   :  { %3194 = vst [vmem:[%s4040_s5 + $0x98] sm:$0xff] %v2954_v12   ;;  %v2949_v19 = vpack.c.bf16 %v1676_v13, %v1675_v11  ;;  %v1278_v21 = vpop.f32.mrf.mxu1  ;;  %v1615_v25 = vadd.f32 %v3708_v49, %v733_v18  ;;  %v1681_v31 = vmax.f32 %v1617_v20, 0.0 }
 0x136   :  { %3225 = vst [vmem:[%s4041_s6 + $0x98] sm:$0xff] %v3114_v16   ;;  %v3109_v22 = vpack.c.bf16 %v2195_v17, %v2194_v15  ;;  %v3377_v24 = vpop.f32.mrf.mxu0  ;;  %v2134_v28 = vadd.f32 %v3713_v51, %v1278_v21  ;;  %v2200_v35 = vmax.f32 %v2136_v23, 0.0 }
 0x137   :  { %3193 = vst [vmem:[%s4040_s5 + $0x90] sm:$0xff] %v2949_v19   ;;  %v1618_v26 = vadd.f32 %v3377_v24, %v3708_v49  ;;  %v3457_v27 = vpop.f32.mrf.mxu1  ;;  %v1679_v39 = vmax.f32 %v1615_v25, 0.0 }
 0x138   :  { %3224 = vst [vmem:[%s4041_s6 + $0x90] sm:$0xff] %v3109_v22   ;;  %v2137_v29 = vadd.f32 %v3457_v27, %v3713_v51  ;;  %v736_v30 = vpop.f32.mrf.mxu0  ;;  %v2198_v43 = vmax.f32 %v2134_v28, 0.0 }
 0x139   :  { %v1682_v32 = vmax.f32 %v1618_v26, 0.0  ;;  %v1616_v33 = vadd.f32 %v3708_v49, %v736_v30  ;;  %v1281_v34 = vpop.f32.mrf.mxu1 }
 0x13a   :  { %v2201_v36 = vmax.f32 %v2137_v29, 0.0  ;;  %v2135_v37 = vadd.f32 %v3713_v51, %v1281_v34  ;;  %v3380_v38 = vpop.f32.mrf.mxu0 }
 0x13b   :  { %v2964_v40 = vpack.c.bf16 %v1682_v32, %v1681_v31  ;;  %v1680_v41 = vmax.f32 %v1616_v33, 0.0  ;;  %v3460_v42 = vpop.f32.mrf.mxu1  ;;  %v1621_v48 = vadd.f32 %v3380_v38, %v3708_v49 }
 0x13c   :  { %v3124_v44 = vpack.c.bf16 %v2201_v36, %v2200_v35  ;;  %v2199_v45 = vmax.f32 %v2135_v37, 0.0  ;;  %v749_v46 = vpop.f32.mrf.mxu0  ;;  %v2140_v53 = vadd.f32 %v3460_v42, %v3713_v51 }
 0x13d   :  { %3196 = vst [vmem:[%s4040_s5 + $0xa8] sm:$0xff] %v2964_v40   ;;  %v2959_v47 = vpack.c.bf16 %v1680_v41, %v1679_v39  ;;  %v1294_v50 = vpop.f32.mrf.mxu1  ;;  %v1619_v55 = vadd.f32 %v3708_v49, %v749_v46  ;;  %v1685_v61 = vmax.f32 %v1621_v48, 0.0 }
 0x13e   :  { %3227 = vst [vmem:[%s4041_s6 + $0xa8] sm:$0xff] %v3124_v44   ;;  %v3119_v52 = vpack.c.bf16 %v2199_v45, %v2198_v43  ;;  %v3381_v54 = vpop.f32.mrf.mxu0  ;;  %v2138_v58 = vadd.f32 %v3713_v51, %v1294_v50  ;;  %v2204_v1 = vmax.f32 %v2140_v53, 0.0 }
 0x13f   :  { %3195 = vst [vmem:[%s4040_s5 + $0xa0] sm:$0xff] %v2959_v47   ;;  %v1622_v56 = vadd.f32 %v3381_v54, %v3708_v49  ;;  %v3461_v57 = vpop.f32.mrf.mxu1  ;;  %v1683_v5 = vmax.f32 %v1619_v55, 0.0 }
 0x140   :  { %3226 = vst [vmem:[%s4041_s6 + $0xa0] sm:$0xff] %v3119_v52   ;;  %v2141_v59 = vadd.f32 %v3461_v57, %v3713_v51  ;;  %v752_v60 = vpop.f32.mrf.mxu0  ;;  %v2202_v9 = vmax.f32 %v2138_v58, 0.0 }
 0x141   :  { %v1686_v62 = vmax.f32 %v1622_v56, 0.0  ;;  %v1620_v63 = vadd.f32 %v3708_v49, %v752_v60  ;;  %v1297_v0 = vpop.f32.mrf.mxu1 }
 0x142   :  { %v2205_v2 = vmax.f32 %v2141_v59, 0.0  ;;  %v2139_v3 = vadd.f32 %v3713_v51, %v1297_v0  ;;  %v3384_v4 = vpop.f32.mrf.mxu0 }
 0x143   :  { %v2974_v6 = vpack.c.bf16 %v1686_v62, %v1685_v61  ;;  %v1684_v7 = vmax.f32 %v1620_v63, 0.0  ;;  %v3464_v8 = vpop.f32.mrf.mxu1  ;;  %v1625_v14 = vadd.f32 %v3384_v4, %v3708_v49 }
 0x144   :  { %v3134_v10 = vpack.c.bf16 %v2205_v2, %v2204_v1  ;;  %v2203_v11 = vmax.f32 %v2139_v3, 0.0  ;;  %v765_v12 = vpop.f32.mrf.mxu0  ;;  %v2144_v17 = vadd.f32 %v3464_v8, %v3713_v51 }
 0x145   :  { %3198 = vst [vmem:[%s4040_s5 + $0xb8] sm:$0xff] %v2974_v6   ;;  %v2969_v13 = vpack.c.bf16 %v1684_v7, %v1683_v5  ;;  %v1310_v15 = vpop.f32.mrf.mxu1  ;;  %v1623_v19 = vadd.f32 %v3708_v49, %v765_v12  ;;  %v1689_v25 = vmax.f32 %v1625_v14, 0.0 }
 0x146   :  { %3229 = vst [vmem:[%s4041_s6 + $0xb8] sm:$0xff] %v3134_v10   ;;  %v3129_v16 = vpack.c.bf16 %v2203_v11, %v2202_v9  ;;  %v3385_v18 = vpop.f32.mrf.mxu0  ;;  %v2142_v22 = vadd.f32 %v3713_v51, %v1310_v15  ;;  %v2208_v29 = vmax.f32 %v2144_v17, 0.0 }
 0x147   :  { %3197 = vst [vmem:[%s4040_s5 + $0xb0] sm:$0xff] %v2969_v13   ;;  %v1626_v20 = vadd.f32 %v3385_v18, %v3708_v49  ;;  %v3465_v21 = vpop.f32.mrf.mxu1  ;;  %v1687_v33 = vmax.f32 %v1623_v19, 0.0 }
 0x148   :  { %3228 = vst [vmem:[%s4041_s6 + $0xb0] sm:$0xff] %v3129_v16   ;;  %v2145_v23 = vadd.f32 %v3465_v21, %v3713_v51  ;;  %v768_v24 = vpop.f32.mrf.mxu0  ;;  %v2206_v37 = vmax.f32 %v2142_v22, 0.0 }
 0x149   :  { %v1690_v26 = vmax.f32 %v1626_v20, 0.0  ;;  %v1624_v27 = vadd.f32 %v3708_v49, %v768_v24  ;;  %v1313_v28 = vpop.f32.mrf.mxu1 }
 0x14a   :  { %v2209_v30 = vmax.f32 %v2145_v23, 0.0  ;;  %v2143_v31 = vadd.f32 %v3713_v51, %v1313_v28  ;;  %v3388_v32 = vpop.f32.mrf.mxu0 }
 0x14b   :  { %v2984_v34 = vpack.c.bf16 %v1690_v26, %v1689_v25  ;;  %v1688_v35 = vmax.f32 %v1624_v27, 0.0  ;;  %v3468_v36 = vpop.f32.mrf.mxu1  ;;  %v1629_v42 = vadd.f32 %v3388_v32, %v3708_v49 }
 0x14c   :  { %v3144_v38 = vpack.c.bf16 %v2209_v30, %v2208_v29  ;;  %v2207_v39 = vmax.f32 %v2143_v31, 0.0  ;;  %v781_v40 = vpop.f32.mrf.mxu0  ;;  %v2148_v45 = vadd.f32 %v3468_v36, %v3713_v51 }
 0x14d   :  { %3200 = vst [vmem:[%s4040_s5 + $0xc8] sm:$0xff] %v2984_v34   ;;  %v2979_v41 = vpack.c.bf16 %v1688_v35, %v1687_v33  ;;  %v1326_v43 = vpop.f32.mrf.mxu1  ;;  %v1627_v47 = vadd.f32 %v3708_v49, %v781_v40  ;;  %v1693_v55 = vmax.f32 %v1629_v42, 0.0 }
 0x14e   :  { %3231 = vst [vmem:[%s4041_s6 + $0xc8] sm:$0xff] %v3144_v38   ;;  %v3139_v44 = vpack.c.bf16 %v2207_v39, %v2206_v37  ;;  %v3389_v46 = vpop.f32.mrf.mxu0  ;;  %v2146_v52 = vadd.f32 %v3713_v51, %v1326_v43  ;;  %v2212_v59 = vmax.f32 %v2148_v45, 0.0 }
 0x14f   :  { %3199 = vst [vmem:[%s4040_s5 + $0xc0] sm:$0xff] %v2979_v41   ;;  %v1630_v48 = vadd.f32 %v3389_v46, %v3708_v49  ;;  %v3469_v50 = vpop.f32.mrf.mxu1  ;;  %v1691_v63 = vmax.f32 %v1627_v47, 0.0 }
 0x150   :  { %3230 = vst [vmem:[%s4041_s6 + $0xc0] sm:$0xff] %v3139_v44   ;;  %v2149_v53 = vadd.f32 %v3469_v50, %v3713_v51  ;;  %v784_v54 = vpop.f32.mrf.mxu0  ;;  %v2210_v3 = vmax.f32 %v2146_v52, 0.0 }
 0x151   :  { %v1694_v56 = vmax.f32 %v1630_v48, 0.0  ;;  %v1628_v57 = vadd.f32 %v3708_v49, %v784_v54  ;;  %v1329_v58 = vpop.f32.mrf.mxu1 }
 0x152   :  { %v2213_v60 = vmax.f32 %v2149_v53, 0.0  ;;  %v2147_v61 = vadd.f32 %v3713_v51, %v1329_v58  ;;  %v3392_v62 = vpop.f32.mrf.mxu0 }
 0x153   :  { %v2994_v0 = vpack.c.bf16 %v1694_v56, %v1693_v55  ;;  %v1692_v1 = vmax.f32 %v1628_v57, 0.0  ;;  %v3472_v2 = vpop.f32.mrf.mxu1  ;;  %v1633_v8 = vadd.f32 %v3392_v62, %v3708_v49 }
 0x154   :  { %v3154_v4 = vpack.c.bf16 %v2213_v60, %v2212_v59  ;;  %v2211_v5 = vmax.f32 %v2147_v61, 0.0  ;;  %v797_v6 = vpop.f32.mrf.mxu0  ;;  %v2152_v11 = vadd.f32 %v3472_v2, %v3713_v51 }
 0x155   :  { %3202 = vst [vmem:[%s4040_s5 + $0xd8] sm:$0xff] %v2994_v0   ;;  %v2989_v7 = vpack.c.bf16 %v1692_v1, %v1691_v63  ;;  %v1342_v9 = vpop.f32.mrf.mxu1  ;;  %v1631_v13 = vadd.f32 %v3708_v49, %v797_v6  ;;  %v1697_v19 = vmax.f32 %v1633_v8, 0.0 }
 0x156   :  { %3233 = vst [vmem:[%s4041_s6 + $0xd8] sm:$0xff] %v3154_v4   ;;  %v3149_v10 = vpack.c.bf16 %v2211_v5, %v2210_v3  ;;  %v3393_v12 = vpop.f32.mrf.mxu0  ;;  %v2150_v16 = vadd.f32 %v3713_v51, %v1342_v9  ;;  %v2216_v23 = vmax.f32 %v2152_v11, 0.0 }
 0x157   :  { %3201 = vst [vmem:[%s4040_s5 + $0xd0] sm:$0xff] %v2989_v7   ;;  %v1634_v14 = vadd.f32 %v3393_v12, %v3708_v49  ;;  %v3473_v15 = vpop.f32.mrf.mxu1  ;;  %v1695_v27 = vmax.f32 %v1631_v13, 0.0 }
 0x158   :  { %3232 = vst [vmem:[%s4041_s6 + $0xd0] sm:$0xff] %v3149_v10   ;;  %v2153_v17 = vadd.f32 %v3473_v15, %v3713_v51  ;;  %v800_v18 = vpop.f32.mrf.mxu0  ;;  %v2214_v31 = vmax.f32 %v2150_v16, 0.0 }
 0x159   :  { %v1698_v20 = vmax.f32 %v1634_v14, 0.0  ;;  %v1632_v21 = vadd.f32 %v3708_v49, %v800_v18  ;;  %v1345_v22 = vpop.f32.mrf.mxu1 }
 0x15a   :  { %v2217_v24 = vmax.f32 %v2153_v17, 0.0  ;;  %v2151_v25 = vadd.f32 %v3713_v51, %v1345_v22  ;;  %v3396_v26 = vpop.f32.mrf.mxu0 }
 0x15b   :  { %v3004_v28 = vpack.c.bf16 %v1698_v20, %v1697_v19  ;;  %v1696_v29 = vmax.f32 %v1632_v21, 0.0  ;;  %v3476_v30 = vpop.f32.mrf.mxu1  ;;  %v1637_v36 = vadd.f32 %v3396_v26, %v3708_v49 }
 0x15c   :  { %v3164_v32 = vpack.c.bf16 %v2217_v24, %v2216_v23  ;;  %v2215_v33 = vmax.f32 %v2151_v25, 0.0  ;;  %v813_v34 = vpop.f32.mrf.mxu0  ;;  %v2156_v39 = vadd.f32 %v3476_v30, %v3713_v51 }
 0x15d   :  { %3204 = vst [vmem:[%s4040_s5 + $0xe8] sm:$0xff] %v3004_v28   ;;  %v2999_v35 = vpack.c.bf16 %v1696_v29, %v1695_v27  ;;  %v1358_v37 = vpop.f32.mrf.mxu1  ;;  %v1635_v41 = vadd.f32 %v3708_v49, %v813_v34  ;;  %v1701_v47 = vmax.f32 %v1637_v36, 0.0 }
 0x15e   :  { %3235 = vst [vmem:[%s4041_s6 + $0xe8] sm:$0xff] %v3164_v32   ;;  %v3159_v38 = vpack.c.bf16 %v2215_v33, %v2214_v31  ;;  %v3397_v40 = vpop.f32.mrf.mxu0  ;;  %v2154_v44 = vadd.f32 %v3713_v51, %v1358_v37  ;;  %v2220_v53 = vmax.f32 %v2156_v39, 0.0 }
 0x15f   :  { %3203 = vst [vmem:[%s4040_s5 + $0xe0] sm:$0xff] %v2999_v35   ;;  %v1638_v42 = vadd.f32 %v3397_v40, %v3708_v49  ;;  %v3477_v43 = vpop.f32.mrf.mxu1  ;;  %v1699_v56 = vmax.f32 %v1635_v41, 0.0 }
 0x160   :  { %3234 = vst [vmem:[%s4041_s6 + $0xe0] sm:$0xff] %v3159_v38   ;;  %v2157_v45 = vadd.f32 %v3477_v43, %v3713_v51  ;;  %v816_v46 = vpop.f32.mrf.mxu0  ;;  %v2218_v59 = vmax.f32 %v2154_v44, 0.0 }
 0x161   :  { %v1702_v48 = vmax.f32 %v1638_v42, 0.0  ;;  %v1636_v50 = vadd.f32 %v3708_v49, %v816_v46  ;;  %v1361_v52 = vpop.f32.mrf.mxu1 }
 0x162   :  { %v2221_v54 = vmax.f32 %v2157_v45, 0.0  ;;  %v2155_v55 = vadd.f32 %v3713_v51, %v1361_v52 }
 0x163   :  { %v3014_v57 = vpack.c.bf16 %v1702_v48, %v1701_v47  ;;  %v1700_v58 = vmax.f32 %v1636_v50, 0.0 }
 0x164   :  { %v3174_v60 = vpack.c.bf16 %v2221_v54, %v2220_v53  ;;  %v2219_v61 = vmax.f32 %v2155_v55, 0.0 }
 0x165   :  { %3206 = vst [vmem:[%s4040_s5 + $0xf8] sm:$0xff] %v3014_v57   ;;  %v3009_v62 = vpack.c.bf16 %v1700_v58, %v1699_v56 }
 0x166   :  { %3237 = vst [vmem:[%s4041_s6 + $0xf8] sm:$0xff] %v3174_v60   ;;  %v3169_v49 = vpack.c.bf16 %v2219_v61, %v2218_v59 }
 0x167   :  { %3205 = vst [vmem:[%s4040_s5 + $0xf0] sm:$0xff] %v3009_v62  }
 0x168   :  { %3236 = vst [vmem:[%s4041_s6 + $0xf0] sm:$0xff] %v3169_v49  }

// kernel: bepc3_forward.5
= control target key start
LH: loop header
LB: loop body
LE: loop exit
PB: predicated region body
PF: predicated region fallthrough
CT: control target
= control target key end

     0   :  { %s7922_s12 = smov 0   ;;  %s7924_s13 = smov 0   ;;  %s10246_s0 = inlined_call_operand.vmem [shape: bf16[2,1,456,128], index: 0, kind: input, shape index: {}]   ;;  %s10247_s1 = inlined_call_operand.vmem [shape: bf16[1152,128], index: 1, kind: input, shape index: {}]   ;;  %s10248_s2 = inlined_call_operand.vmem [shape: f32[1,128], index: 2, kind: input, shape index: {}]   ;;  %s10249_s3 = inlined_call_operand.vmem [shape: bf16[2,1,384,128], index: 3, kind: output, shape index: {}]  }
   0x1   :  { %s7926_s14 = smov 0  }
   0x2 LB: > { %s25_s15 = sadd.s32 1, %s7895_s13  ;;  %p6842_p0 = scmp.ge.s32.totalorder %s7899_s14, 1  ;;  %s7899_s14 = sphi %s7926_s14, %s13_s14   ;;  %s7895_s13 = sphi %s7924_s13, %s10305_s13   ;;  %s7891_s12 = sphi %s7922_s12, %s10304_s12  }
   0x3   : > { %p27_p1 = scmp.ge.s32.totalorder %s25_s15, 2  ;;  %p157_p2 = scmp.lt.s32.totalorder %s7899_s14, 3 }
   0x5   : > { %s10307_s15 = smov (%p27_p1, %s25_s15), 0  ;;  %p158_p3 = pnand %p6842_p0, %p157_p2 }
   0x7   : > { %161 = sbr.rel (%p158_p3) target bundleno = 793 (0x319), region = 32 }
   0xc   : > { %v7517_v0 = vld [vmem:[%s10247_s1 + $0x38] sm:$0xff]   ;;  %v7901_v1 = vmov 0   ;;  %v7519_v3 = vld [vmem:[%s10247_s1 + $0x30] sm:$0xff]   ;;  %v7521_v5 = vld [vmem:[%s10247_s1 + $0x28] sm:$0xff]   ;;  %p189_p4 = scmp.lt.s32.totalorder %s7891_s12, 1  ;;  %vm1034_vm0 = vcmask 1042432  }
   0xd   : > { %5333 = vmatprep.subr.bf16.mxu0 %v7901_v1  ;;  %5558 = vmatprep.subr.bf16.mxu1 %v7901_v1  ;;  %v7518_v2 = vld [vmem:[%s10247_s1 + $0xb8] sm:$0xff]   ;;  %v7520_v4 = vld [vmem:[%s10247_s1 + $0xb0] sm:$0xff]   ;;  %v7522_v6 = vld [vmem:[%s10247_s1 + $0xa8] sm:$0xff]   ;;  %vm1035_vm1 = vcmask 1046532   ;;  %vm353_vm2 = vsmask.f32 3328 }
   0xe   : > { %5334 = vmatpush1.bf16.msra.mxu0 %v7517_v0  ;;  %5559 = vmatpush1.bf16.msra.mxu1 %v7518_v2  ;;  %v7523_v7 = vld [vmem:[%s10247_s1 + $0x20] sm:$0xff]   ;;  %v7525_v9 = vld [vmem:[%s10247_s1 + $0x18] sm:$0xff]   ;;  %v7527_v11 = vld [vmem:[%s10247_s1 + $0x10] sm:$0xff]   ;;  %s10309_s12 = smov (!%p189_p4, %s7891_s12), 1  ;;  %vm354_vm3 = vsmask.f32 7440 }
   0xf   : > { %5335 = vmatprep.subr.bf16.mxu0 %v7901_v1  ;;  %5560 = vmatprep.subr.bf16.mxu1 %v7901_v1  ;;  %v7524_v8 = vld [vmem:[%s10247_s1 + $0xa0] sm:$0xff]   ;;  %v7526_v10 = vld [vmem:[%s10247_s1 + $0x98] sm:$0xff]   ;;  %v7528_v12 = vld [vmem:[%s10247_s1 + $0x90] sm:$0xff]   ;;  %s7490_s21 = smul.u32 228, %s10309_s12 }
  0x10   : > { %v7529_v13 = vld [vmem:[%s10247_s1 + $0x8] sm:$0xff]   ;;  %v7531_v15 = vld [vmem:[%s10247_s1] sm:$0xff]   ;;  %v7533_v17 = vld [vmem:[%s10247_s1 + $0x78] sm:$0xff]  }
  0x11   : > { %v7530_v14 = vld [vmem:[%s10247_s1 + $0x88] sm:$0xff]   ;;  %v7532_v16 = vld [vmem:[%s10247_s1 + $0x80] sm:$0xff]   ;;  %s8014_s28 = scalar_lea.vmem %s10246_s0, %s7490_s21  ;;  %v7534_v18 = vld [vmem:[%s10247_s1 + $0xf8] sm:$0xff]  }
  0x12   : > { %5336 = vmatpush1.bf16.msra.mxu0 %v7519_v3  ;;  %5561 = vmatpush1.bf16.msra.mxu1 %v7520_v4  ;;  %v208_v19 = vld [vmem:[%s8014_s28] sm:$0xf]  ;;  %v209_v20 = vld [vmem:[%s8014_s28 + $0x4] sm:$0xf]  ;;  %v306_v23 = vld [vmem:[%s8014_s28 + $0x8] sm:$0xf] }
  0x13   : > { %5337 = vmatprep.subr.bf16.mxu0 %v7901_v1  ;;  %5562 = vmatprep.subr.bf16.mxu1 %v7901_v1  ;;  %v304_v21 = vld [vmem:[%s8014_s28] sm:$0xf]  ;;  %256 = vst [vmem:[#allocation2] sm:$0xf] %v208_v19  ;;  %257 = vst [vmem:[#allocation2 + $0x24] sm:$0xf] %v209_v20 }
  0x14   : > { %v305_v22 = vld [vmem:[%s8014_s28 + $0x4] sm:$0xf]  ;;  %v7535_v24 = vld [vmem:[%s10247_s1 + $0x70] sm:$0xff]   ;;  %v357_v25 = vshrl.u32 %v304_v21, 16  ;;  %v360_v26 = vshll.u32 %v304_v21, 16  ;;  %v376_v30 = vshll.u32 %v306_v23, 16  ;;  %vm8044_vm4 = vmor %vm1034_vm0, %vm1035_vm1 }
  0x15   : > { %v366_v27 = vshll.u32 %v305_v22, 16  ;;  %v7536_v28 = vld [vmem:[%s10247_s1 + $0xf0] sm:$0xff]   ;;  %v370_v29 = vshrl.u32 %v305_v22, 16  ;;  %v380_v31 = vshrl.u32 %v306_v23, 16  ;;  %v936_v32 = vld [vmem:[%s8014_s28] sm:$0xe]  ;;  %vm8057_vm5 = vmor %vm353_vm2, %vm354_vm3 }
  0x16   : > { %5338 = vmatpush1.bf16.msra.mxu0 %v7521_v5  ;;  %5563 = vmatpush1.bf16.msra.mxu1 %v7522_v6  ;;  %v7537_v33 = vld [vmem:[%s10247_s1 + $0x68] sm:$0xff]   ;;  %v359_v34 = vrot.slane %v357_v25, 4  ;;  %v362_v35 = vrot.slane %v360_v26, 5  ;;  %v937_v37 = vld [vmem:[%s8014_s28 + $0x4] sm:$0xf]  ;;  %v6845_v39 = vrot.slane %v936_v32, 9 }
  0x17   : > { %5339 = vmatprep.subr.bf16.mxu0 %v7901_v1  ;;  %5564 = vmatprep.subr.bf16.mxu1 %v7901_v1  ;;  %v368_v36 = vrot.slane %v366_v27, 5  ;;  %v372_v40 = vrot.slane %v370_v29, 4  ;;  %v378_v41 = vrot.slane %v376_v30, 5  ;;  %v382_v42 = vrot.slane %v380_v31, 4  ;;  %v938_v43 = vld [vmem:[%s8014_s28 + $0x8] sm:$0xf] }
  0x18   : > { %v1039_v44 = vrot.slane %v937_v37, 5  ;;  %v7538_v45 = vld [vmem:[%s10247_s1 + $0xe8] sm:$0xff]   ;;  %v363_v46 = vor.u32 %v362_v35, %v359_v34  ;;  %v1042_v47 = vrot.slane %v938_v43, 5  ;;  %v1279_v49 = vld [vmem:[%s8014_s28 + $0x10] sm:$0xf]  ;;  %v7539_v55 = vld [vmem:[%s10247_s1 + $0x60] sm:$0xff]  }
  0x19   : > { %v1278_v48 = vld [vmem:[%s8014_s28 + $0xc] sm:$0xf]  ;;  %v373_v51 = vor.u32 %v372_v40, %v368_v36  ;;  %v383_v52 = vor.u32 %v382_v42, %v378_v41  ;;  %1327 = vst [vmem:[#allocation2 + $0x30] sm:$0xf] %v1279_v49  ;;  %v210_v61 = vld [vmem:[%s8014_s28 + $0x8] sm:$0xf] }
  0x1a   : > { %5340 = vmatpush1.bf16.msra.mxu0 %v7523_v7  ;;  %5565 = vmatpush1.bf16.msra.mxu1 %v7524_v8  ;;  %v1040_v53 = vsel %vm8044_vm4, %v6845_v39, %v1039_v44  ;;  %v1041_v54 = vrot.slane %v1039_v44, 4  ;;  %1326 = vst [vmem:[#allocation2 + $0xc] sm:$0xf] %v1278_v48  ;;  %v364_v56 = vrot.slane %v363_v46, 4  ;;  %v1044_v57 = vrot.slane %v1042_v47, 4  ;;  %v7540_v4 = vld [vmem:[%s10247_s1 + $0xe0] sm:$0xff]  }
  0x1b   : > { %5341 = vmatprep.subr.bf16.mxu0 %v7901_v1  ;;  %5566 = vmatprep.subr.bf16.mxu1 %v7901_v1  ;;  %1230 = vst [vmem:[#allocation2 + $0x8] sm:$0xf] %v1040_v53  ;;  %v374_v58 = vrot.slane %v373_v51, 4  ;;  %v384_v59 = vrot.slane %v383_v52, 4  ;;  %v211_v62 = vld [vmem:[%s8014_s28 + $0xc] sm:$0xf] }
  0x1c   : > { %v1043_v60 = vsel %vm8044_vm4, %v1041_v54, %v1042_v47  ;;  %v369_v63 = vsel %vm8057_vm5, %v364_v56, %v368_v36  ;;  %258 = vst [vmem:[#allocation2 + $0x48] sm:$0xf] %v210_v61  ;;  %259 = vst [vmem:[#allocation2 + $0x6c] sm:$0xf] %v211_v62  ;;  %v307_v0 = vld [vmem:[%s8014_s28 + $0xc] sm:$0xf] }
  0x1d   : > { %1231 = vst [vmem:[#allocation2 + $0x2c] sm:$0xf] %v1043_v60  ;;  %v308_v2 = vld [vmem:[%s8014_s28 + $0x10] sm:$0xf]  ;;  %v939_v3 = vld [vmem:[%s8014_s28 + $0xc] sm:$0xf]  ;;  %v379_v5 = vsel %vm8057_vm5, %v374_v58, %v378_v41 }
  0x1e   : > { %5342 = vmatpush1.bf16.msra.mxu0 %v7525_v9  ;;  %5567 = vmatpush1.bf16.msra.mxu1 %v7526_v10  ;;  %888 = vst [vmem:[#allocation2 + $0x4] sm:$0xf] %v369_v63  ;;  %v386_v6 = vshll.u32 %v307_v0, 16  ;;  %v390_v7 = vshrl.u32 %v307_v0, 16  ;;  %v396_v8 = vshll.u32 %v308_v2, 16  ;;  %v7541_v10 = vld [vmem:[%s10247_s1 + $0x58] sm:$0xff]  }
  0x1f   : > { %5343 = vmatprep.subr.bf16.mxu0 %v7901_v1  ;;  %5568 = vmatprep.subr.bf16.mxu1 %v7901_v1  ;;  %v940_v9 = vld [vmem:[%s8014_s28 + $0x10] sm:$0xf]  ;;  %889 = vst [vmem:[#allocation2 + $0x28] sm:$0xf] %v379_v5  ;;  %v1281_v19 = vld [vmem:[%s8014_s28 + $0x18] sm:$0xf] }
  0x20   : > { %1329 = vst [vmem:[#allocation2 + $0x78] sm:$0xf] %v1281_v19  ;;  %v212_v26 = vld [vmem:[%s8014_s28 + $0x10] sm:$0xf]  ;;  %v213_v27 = vld [vmem:[%s8014_s28 + $0x14] sm:$0xf] }
  0x21   : > { %v7543_v30 = vld [vmem:[%s10247_s1 + $0x50] sm:$0xff]   ;;  %260 = vst [vmem:[#allocation2 + $0x90] sm:$0xf] %v212_v26  ;;  %261 = vst [vmem:[#allocation2 + $0xb4] sm:$0xf] %v213_v27  ;;  %v7545_v43 = vld [vmem:[%s10247_s1 + $0x48] sm:$0xff]  }
  0x22   : > { %5344 = vmatpush1.bf16.msra.mxu0 %v7527_v11  ;;  %5569 = vmatpush1.bf16.msra.mxu1 %v7528_v12  ;;  %v400_v11 = vshrl.u32 %v308_v2, 16  ;;  %v1045_v12 = vrot.slane %v939_v3, 5  ;;  %v7554_v31 = vld [vmem:[#allocation2 + $0xc] ss:$36 sps:$4 sm:$0xff]   ;;  %v941_v47 = vld [vmem:[%s8014_s28 + $0x14] sm:$0xf] }
  0x23   : > { %5345 = vmatprep.subr.bf16.mxu0 %v7901_v1  ;;  %5570 = vmatprep.subr.bf16.mxu1 %v7901_v1  ;;  %v7544_v37 = vld [vmem:[%s10247_s1 + $0xd0] sm:$0xff]   ;;  %v942_v49 = vld [vmem:[%s8014_s28 + $0x18] sm:$0xf]  ;;  %v1051_v51 = vrot.slane %v941_v47, 5  ;;  %v1282_v52 = vld [vmem:[%s8014_s28 + $0x1c] sm:$0xf] }
  0x24   : > { %v1046_v20 = vsel %vm8044_vm4, %v1044_v57, %v1045_v12  ;;  %v1047_v21 = vrot.slane %v1045_v12, 4  ;;  %v402_v22 = vrot.slane %v400_v11, 4  ;;  %5590 = vmatprep.mubr.bf16.mxu1 %v7554_v31  ;;  %v1283_v56 = vld [vmem:[%s8014_s28 + $0x20] sm:$0xf]  ;;  %1330 = vst [vmem:[#allocation2 + $0x9c] sm:$0xf] %v1282_v52 }
  0x25   : > { %1232 = vst [vmem:[#allocation2 + $0x50] sm:$0xf] %v1046_v20  ;;  %v214_v57 = vld [vmem:[%s8014_s28 + $0x18] sm:$0xf]  ;;  %v7546_v58 = vld [vmem:[%s10247_s1 + $0xc8] sm:$0xff]   ;;  %v1053_v60 = vrot.slane %v1051_v51, 4 }
  0x26   : > { %5346 = vmatpush1.bf16.msra.mxu0 %v7529_v13  ;;  %5571 = vmatpush1.bf16.msra.mxu1 %v7530_v14  ;;  %v1048_v13 = vrot.slane %v940_v9, 5  ;;  %v1280_v14 = vld [vmem:[%s8014_s28 + $0x14] sm:$0xf]  ;;  %v7551_v39 = vld [vmem:[#allocation2 + $0x4] ss:$36 sps:$4 sm:$0xff]   ;;  %v7555_v19 = vld [vmem:[%s10247_s1 + $0x138] sm:$0xff]  }
  0x27   : > { %5347 = vmatprep.subr.bf16.mxu0 %v7901_v1  ;;  %5572 = vmatprep.subr.bf16.mxu1 %v7901_v1  ;;  %1328 = vst [vmem:[#allocation2 + $0x54] sm:$0xf] %v1280_v14  ;;  %1331 = vst [vmem:[#allocation2 + $0xc0] sm:$0xf] %v1283_v56  ;;  %v215_v61 = vld [vmem:[%s8014_s28 + $0x1c] sm:$0xf] }
  0x28   : > { %v1049_v25 = vsel %vm8044_vm4, %v1047_v21, %v1048_v13  ;;  %v1050_v42 = vrot.slane %v1048_v13, 4  ;;  %5365 = vmatprep.mubr.bf16.mxu0 %v7551_v39  ;;  %262 = vst [vmem:[#allocation2 + $0xd8] sm:$0xf] %v214_v57  ;;  %v311_v62 = vld [vmem:[%s8014_s28 + $0x1c] sm:$0xf]  ;;  %v7547_v0 = vld [vmem:[%s10247_s1 + $0x40] sm:$0xff]  }
  0x29   : > { %1233 = vst [vmem:[#allocation2 + $0x74] sm:$0xf] %v1049_v25  ;;  %263 = vst [vmem:[#allocation2 + $0xfc] sm:$0xf] %v215_v61  ;;  %v312_v3 = vld [vmem:[%s8014_s28 + $0x20] sm:$0xf] }
  0x2a   : > { %5348 = vmatpush1.bf16.msra.mxu0 %v7531_v15  ;;  %5573 = vmatpush1.bf16.msra.mxu1 %v7532_v16  ;;  %v7542_v15 = vld [vmem:[%s10247_s1 + $0xd8] sm:$0xff]   ;;  %v388_v16 = vrot.slane %v386_v6, 5  ;;  %v426_v5 = vshll.u32 %v311_v62, 16  ;;  %v430_v6 = vshrl.u32 %v311_v62, 16  ;;  %v440_v9 = vshrl.u32 %v312_v3, 16  ;;  %v7548_v12 = vld [vmem:[%s10247_s1 + $0xc0] sm:$0xff]  }
  0x2b   : > { %5349 = vmatprep.subr.bf16.mxu0 %v7901_v1  ;;  %5574 = vmatprep.subr.bf16.mxu1 %v7901_v1  ;;  %v8143_v11 = vld [vmem:[%s8014_s28 + $0x20] sm:$0xf]  ;;  %v1285_v27 = vld [vmem:[%s8014_s28 + $0x28] sm:$0xf]  ;;  %v217_v39 = vld [vmem:[%s8014_s28 + $0x24] sm:$0xf] }
  0x2c   : > { %v389_v23 = vsel %vm8057_vm5, %v384_v59, %v388_v16  ;;  %v1052_v59 = vsel %vm8044_vm4, %v1050_v42, %v1051_v51  ;;  %v7549_v13 = vld [vmem:[#allocation2] ss:$36 sps:$4 sm:$0xff]   ;;  %1333 = vst [vmem:[#allocation2 + $0x108] sm:$0xf] %v1285_v27  ;;  %v7562_v42 = vld [vmem:[%s10247_s1 + $0x130] sm:$0xff]  }
  0x2d   : > { %890 = vst [vmem:[#allocation2 + $0x4c] sm:$0xf] %v389_v23  ;;  %1234 = vst [vmem:[#allocation2 + $0x98] sm:$0xf] %v1052_v59  ;;  %v1284_v23 = vld [vmem:[%s8014_s28 + $0x24] sm:$0xf] }
  0x2e   : > { %5350 = vmatpush2.bf16.msra.mxu0 %v7533_v17  ;;  %5575 = vmatpush2.bf16.msra.mxu1 %v7534_v18  ;;  %v392_v17 = vrot.slane %v390_v7, 4  ;;  %v398_v18 = vrot.slane %v396_v8, 5  ;;  %v436_v8 = vshll.u32 %v312_v3, 16  ;;  %1332 = vst [vmem:[#allocation2 + $0xe4] sm:$0xf] %v1284_v23 }
  0x2f   : > { %5351 = vmatprep.subr.bf16.mxu0 %v7901_v1  ;;  %5576 = vmatprep.subr.bf16.mxu1 %v7901_v1  ;;  %265 = vst [vmem:[#allocation2 + $0x144] sm:$0xf] %v217_v39  ;;  %v1286_v62 = vld [vmem:[%s8014_s28 + $0x2c] sm:$0xf]  ;;  %v1287_v3 = vld [vmem:[%s8014_s28 + $0x30] sm:$0xf] }
  0x30   : > { %v403_v29 = vor.u32 %v402_v22, %v398_v18  ;;  %v438_v20 = vrot.slane %v436_v8, 5  ;;  %v1060_v22 = vrot.slane %v8143_v11, 5  ;;  %v7561_v56 = vld [vmem:[#allocation2 + $0x50] ss:$36 sps:$4 sm:$0xff]   ;;  %1334 = vst [vmem:[#allocation2 + $0x12c] sm:$0xf] %v1286_v62 }
  0x31   : > { %1335 = vst [vmem:[#allocation2 + $0x150] sm:$0xf] %v1287_v3  ;;  %v315_v23 = vld [vmem:[%s8014_s28 + $0x2c] sm:$0xf] }
  0x32   : > { %5352 = vmatpush2.bf16.msra.mxu0 %v7535_v24  ;;  %5577 = vmatpush2.bf16.msra.mxu1 %v7536_v28  ;;  %v393_v24 = vor.u32 %v392_v17, %v388_v16  ;;  %v309_v28 = vld [vmem:[%s8014_s28 + $0x14] sm:$0xf]  ;;  %v404_v34 = vrot.slane %v403_v29, 4  ;;  %v432_v16 = vrot.slane %v430_v6, 4  ;;  %v7556_v29 = vld [vmem:[%s10247_s1 + $0x1b8] sm:$0xff]   ;;  %v470_v27 = vshrl.u32 %v315_v23, 16 }
  0x33   : > { %5353 = vmatprep.subr.bf16.mxu0 %v7901_v1  ;;  %5578 = vmatprep.subr.bf16.mxu1 %v7901_v1  ;;  %v406_v35 = vshll.u32 %v309_v28, 16  ;;  %v410_v36 = vshrl.u32 %v309_v28, 16  ;;  %v442_v28 = vrot.slane %v440_v9, 4  ;;  %v7566_v9 = vld [vmem:[#allocation2 + $0x9c] ss:$36 sps:$4 sm:$0xff]  }
  0x34   : > { %v394_v32 = vrot.slane %v393_v24, 4 }
  0x35   : > { %v408_v44 = vrot.slane %v406_v35, 5  ;;  %v216_v35 = vld [vmem:[%s8014_s28 + $0x20] sm:$0xf] }
  0x36   : > { %5354 = vmatpush2.bf16.msra.mxu0 %v7537_v33  ;;  %5579 = vmatpush2.bf16.msra.mxu1 %v7538_v45  ;;  %v310_v33 = vld [vmem:[%s8014_s28 + $0x18] sm:$0xf]  ;;  %v399_v40 = vsel %vm8057_vm5, %v394_v32, %v398_v18  ;;  %v412_v45 = vrot.slane %v410_v36, 4  ;;  %v7552_v18 = vld [vmem:[#allocation2 + $0x8] ss:$36 sps:$4 sm:$0xff]   ;;  %v443_v36 = vor.u32 %v442_v28, %v438_v20 }
  0x37   : > { %5355 = vmatprep.subr.bf16.mxu0 %v7901_v1  ;;  %5580 = vmatprep.subr.bf16.mxu1 %v7901_v1  ;;  %v416_v41 = vshll.u32 %v310_v33, 16  ;;  %891 = vst [vmem:[#allocation2 + $0x70] sm:$0xf] %v399_v40  ;;  %v420_v46 = vshrl.u32 %v310_v33, 16  ;;  %v409_v53 = vsel %vm8057_vm5, %v404_v34, %v408_v44  ;;  %264 = vst [vmem:[#allocation2 + $0x120] sm:$0xf] %v216_v35 }
  0x38   : > { %v413_v54 = vor.u32 %v412_v45, %v408_v44  ;;  %892 = vst [vmem:[#allocation2 + $0x94] sm:$0xf] %v409_v53  ;;  %v313_v40 = vld [vmem:[%s8014_s28 + $0x24] sm:$0xf]  ;;  %v3416_v45 = vld [vmem:[#allocation2 + $0x48] sm:$0xff]  ;;  %v444_v47 = vrot.slane %v443_v36, 4 }
  0x39   : > { %v418_v48 = vrot.slane %v416_v41, 5  ;;  %v314_v41 = vld [vmem:[%s8014_s28 + $0x28] sm:$0xf]  ;;  %v945_v53 = vld [vmem:[%s8014_s28 + $0x24] sm:$0xf] }
  0x3a   : > { %5356 = vmatpush2.bf16.msra.mxu0 %v7539_v55  ;;  %5581 = vmatpush2.bf16.msra.mxu1 %v7540_v4  ;;  %v1054_v55 = vrot.slane %v942_v49, 5  ;;  %v414_v63 = vrot.slane %v413_v54, 4  ;;  %v422_v4 = vrot.slane %v420_v46, 4  ;;  %v450_v49 = vshrl.u32 %v313_v40, 16  ;;  %v946_v54 = vld [vmem:[%s8014_s28 + $0x28] sm:$0xf] }
  0x3b   : > { %5357 = vmatprep.subr.bf16.mxu0 %v7901_v1  ;;  %5582 = vmatprep.subr.bf16.mxu1 %v7901_v1  ;;  %v456_v51 = vshll.u32 %v314_v41, 16  ;;  %v460_v52 = vshrl.u32 %v314_v41, 16  ;;  %v1063_v61 = vrot.slane %v945_v53, 5  ;;  %v1288_v35 = vld [vmem:[%s8014_s28 + $0x34] sm:$0xf] }
  0x3c   : > { %v1055_v2 = vsel %vm8044_vm4, %v1053_v60, %v1054_v55  ;;  %v419_v7 = vsel %vm8057_vm5, %v414_v63, %v418_v48  ;;  %v423_v14 = vor.u32 %v422_v4, %v418_v48  ;;  %v1056_v17 = vrot.slane %v1054_v55, 4  ;;  %v1289_v36 = vld [vmem:[%s8014_s28 + $0x38] sm:$0xf]  ;;  %1336 = vst [vmem:[#allocation2 + $0x174] sm:$0xf] %v1288_v35 }
  0x3d   : > { %1235 = vst [vmem:[#allocation2 + $0xbc] sm:$0xf] %v1055_v2  ;;  %893 = vst [vmem:[#allocation2 + $0xb8] sm:$0xf] %v419_v7  ;;  %v446_v48 = vshll.u32 %v313_v40, 16  ;;  %v1062_v55 = vrot.slane %v1060_v22, 4 }
  0x3e   : > { %5358 = vmatpush2.bf16.msra.mxu0 %v7541_v10  ;;  %5583 = vmatpush2.bf16.msra.mxu1 %v7542_v15  ;;  %v943_v10 = vld [vmem:[%s8014_s28 + $0x1c] sm:$0xf]  ;;  %v428_v15 = vrot.slane %v426_v5, 5  ;;  %v7557_v24 = vld [vmem:[#allocation2 + $0x4c] ss:$36 sps:$4 sm:$0xff]   ;;  %v424_v25 = vrot.slane %v423_v14, 4 }
  0x3f   : > { %5359 = vmatprep.subr.bf16.mxu0 %v7901_v1  ;;  %5584 = vmatprep.subr.bf16.mxu1 %v7901_v1  ;;  %v1057_v21 = vrot.slane %v943_v10, 5  ;;  %v3421_v46 = vld [vmem:[#allocation2 + $0x6c] sm:$0xff]  ;;  %v452_v59 = vrot.slane %v450_v49, 4  ;;  %v458_v60 = vrot.slane %v456_v51, 5  ;;  %v1066_v2 = vrot.slane %v946_v54, 5 }
  0x40   : > { %v433_v26 = vor.u32 %v432_v16, %v428_v15  ;;  %v429_v33 = vsel %vm8057_vm5, %v424_v25, %v428_v15  ;;  %v6858_v63 = vcombine.low %v3416_v45, %v3421_v46  ;;  %v462_v4 = vrot.slane %v460_v52, 4  ;;  %v218_v10 = vld [vmem:[%s8014_s28 + $0x28] sm:$0xf]  ;;  %v3426_v15 = vld [vmem:[#allocation2 + $0x90] sm:$0xff]  ;;  %v947_v25 = vld [vmem:[%s8014_s28 + $0x2c] sm:$0xf] }
  0x41   : > { %v1058_v31 = vsel %vm8044_vm4, %v1056_v17, %v1057_v21  ;;  %v1059_v32 = vrot.slane %v1057_v21, 4  ;;  %894 = vst [vmem:[#allocation2 + $0xdc] sm:$0xf] %v429_v33  ;;  %v1064_v7 = vsel %vm8044_vm4, %v1062_v55, %v1063_v61  ;;  %v1065_v8 = vrot.slane %v1063_v61, 4  ;;  %266 = vst [vmem:[#allocation2 + $0x168] sm:$0xf] %v218_v10 }
  0x42   : > { %5360 = vmatpush2.bf16.msra.mxu0 %v7543_v30  ;;  %5585 = vmatpush2.bf16.msra.mxu1 %v7544_v37  ;;  %v7559_v30 = vld [vmem:[#allocation2 + $0x54] ss:$36 sps:$4 sm:$0xff]   ;;  %v434_v34 = vrot.slane %v433_v26, 4  ;;  %1236 = vst [vmem:[#allocation2 + $0xe0] sm:$0xf] %v1058_v31  ;;  %v463_v11 = vor.u32 %v462_v4, %v458_v60  ;;  %v7581_v17 = vld [vmem:[%s10247_s1 + $0x120] sm:$0xff]  }
  0x43   : > { %5361 = vmatprep.subr.bf16.mxu0 %v7901_v1  ;;  %5586 = vmatprep.subr.bf16.mxu1 %v7901_v1  ;;  %v1061_v37 = vsel %vm8044_vm4, %v1059_v32, %v1060_v22  ;;  %1238 = vst [vmem:[#allocation2 + $0x128] sm:$0xf] %v1064_v7  ;;  %v1067_v14 = vsel %vm8044_vm4, %v1065_v8, %v1066_v2  ;;  %v7582_v22 = vld [vmem:[%s10247_s1 + $0x1a0] sm:$0xff]   ;;  %v466_v26 = vshll.u32 %v315_v23, 16  ;;  %v1069_v33 = vrot.slane %v947_v25, 5 }
  0x44   : > { %v439_v44 = vsel %vm8057_vm5, %v434_v34, %v438_v20  ;;  %1237 = vst [vmem:[#allocation2 + $0x104] sm:$0xf] %v1061_v37  ;;  %v7564_v57 = vld [vmem:[#allocation2 + $0x94] ss:$36 sps:$4 sm:$0xff]   ;;  %1239 = vst [vmem:[#allocation2 + $0x14c] sm:$0xf] %v1067_v14 }
  0x45   : > { %895 = vst [vmem:[#allocation2 + $0x100] sm:$0xf] %v439_v44  ;;  %v3431_v16 = vld [vmem:[#allocation2 + $0xb4] sm:$0xff]  ;;  %v1068_v20 = vrot.slane %v1066_v2, 4  ;;  %v7571_v37 = vld [vmem:[#allocation2 + $0xe4] ss:$36 sps:$4 sm:$0xff]  }
  0x46   : > { %5362 = vmatpush2.bf16.msra.mxu0 %v7545_v43  ;;  %5587 = vmatpush2.bf16.msra.mxu1 %v7546_v58  ;;  %v7563_v43 = vld [vmem:[%s10247_s1 + $0x1b0] sm:$0xff]   ;;  %v448_v58 = vrot.slane %v446_v48, 5  ;;  %v6867_v31 = vcombine.low %v3426_v15, %v3431_v16  ;;  %v7568_v32 = vld [vmem:[#allocation2 + $0x98] ss:$36 sps:$4 sm:$0xff]   ;;  %v468_v39 = vrot.slane %v466_v26, 5  ;;  %v472_v40 = vrot.slane %v470_v27, 4 }
  0x47   : > { %5363 = vmatprep.subr.bf16.mxu0 %v7901_v1  ;;  %5588 = vmatprep.subr.bf16.mxu1 %v7901_v1  ;;  %1337 = vst [vmem:[#allocation2 + $0x198] sm:$0xf] %v1289_v36  ;;  %v7593_v44 = vld [vmem:[%s10247_s1 + $0x118] sm:$0xff]   ;;  %v1070_v46 = vsel %vm8044_vm4, %v1068_v20, %v1069_v33  ;;  %v221_v48 = vld [vmem:[%s8014_s28 + $0x34] sm:$0xf] }
  0x48   : > { %v449_v5 = vsel %vm8057_vm5, %v444_v47, %v448_v58  ;;  %v453_v6 = vor.u32 %v452_v59, %v448_v58  ;;  %v1071_v47 = vrot.slane %v1069_v33, 4  ;;  %v473_v51 = vor.u32 %v472_v40, %v468_v39  ;;  %1240 = vst [vmem:[#allocation2 + $0x170] sm:$0xf] %v1070_v46  ;;  %269 = vst [vmem:[#allocation2 + $0x1d4] sm:$0xf] %v221_v48  ;;  %v7594_v59 = vld [vmem:[%s10247_s1 + $0x198] sm:$0xff]  }
  0x49   : > { %896 = vst [vmem:[#allocation2 + $0x124] sm:$0xf] %v449_v5  ;;  %v317_v52 = vld [vmem:[%s8014_s28 + $0x34] sm:$0xf]  ;;  %v318_v53 = vld [vmem:[%s8014_s28 + $0x38] sm:$0xf] }
  0x4a   : > { %5364 = vmatpush2.bf16.msra.mxu0 %v7547_v0  ;;  %5589 = vmatpush2.bf16.msra.mxu1 %v7548_v12  ;;  %v7574_v0 = vld [vmem:[%s10247_s1 + $0x128] sm:$0xff]   ;;  %v949_v55 = vld [vmem:[%s8014_s28 + $0x34] sm:$0xf]  ;;  %v490_v62 = vshrl.u32 %v317_v52, 16  ;;  %v3436_v2 = vld [vmem:[#allocation2 + $0xd8] sm:$0xff]  ;;  %v500_v5 = vshrl.u32 %v318_v53, 16 }
  0x4b   : > { %5783 = vmatprep.subr.bf16.mxu0 %v7901_v1  ;;  %6008 = vmatprep.subr.bf16.mxu1 %v7901_v1  ;;  %v7575_v12 = vld [vmem:[%s10247_s1 + $0x1a8] sm:$0xff]   ;;  %v1290_v10 = vld [vmem:[%s8014_s28 + $0x3c] sm:$0xf]  ;;  %v320_v27 = vld [vmem:[%s8014_s28 + $0x40] sm:$0xf] }
  0x4c   : > { %v7569_v45 = vld [vmem:[#allocation2 + $0xdc] ss:$36 sps:$4 sm:$0xff]   ;;  %v492_v8 = vrot.slane %v490_v62, 4  ;;  %1338 = vst [vmem:[#allocation2 + $0x1bc] sm:$0xf] %v1290_v10  ;;  %v502_v25 = vrot.slane %v500_v5, 4 }
  0x4d   : > { %5366 = vmatmul.mubr.bf16.vlgmr.msra.gmra.mxu0 %v7549_v13  ;;  %5591 = vmatmul.mubr.bf16.vlgmr.msra.gmra.mxu1 %v7552_v18  ;;  %v454_v13 = vrot.slane %v453_v6, 4  ;;  %v219_v18 = vld [vmem:[%s8014_s28 + $0x2c] sm:$0xf]  ;;  %v3441_v3 = vld [vmem:[#allocation2 + $0xfc] sm:$0xff]  ;;  %v1075_v6 = vrot.slane %v949_v55, 5 }
  0x4e   : > { %5784 = vmatpush1.bf16.msra.mxu0 %v7555_v19  ;;  %6009 = vmatpush1.bf16.msra.mxu1 %v7556_v29  ;;  %v464_v19 = vrot.slane %v463_v11, 4  ;;  %267 = vst [vmem:[#allocation2 + $0x18c] sm:$0xf] %v219_v18  ;;  %v1291_v11 = vld [vmem:[%s8014_s28 + $0x40] sm:$0xf]  ;;  %v6876_v18 = vcombine.low %v3436_v2, %v3441_v3 }
  0x4f   : > { %5373 = vmatprep.mubr.bf16.mxu0 %v7557_v24  ;;  %5598 = vmatprep.mubr.bf16.mxu1 %v7559_v30  ;;  %v459_v21 = vsel %vm8057_vm5, %v454_v13, %v458_v60  ;;  %v316_v24 = vld [vmem:[%s8014_s28 + $0x30] sm:$0xf]  ;;  %v474_v60 = vrot.slane %v473_v51, 4  ;;  %v1077_v16 = vrot.slane %v1075_v6, 4  ;;  %1339 = vst [vmem:[#allocation2 + $0x1e0] sm:$0xf] %v1291_v11 }
  0x50   : > { %5785 = vmatprep.subr.bf16.mxu0 %v7901_v1  ;;  %6010 = vmatprep.subr.bf16.mxu1 %v7901_v1  ;;  %897 = vst [vmem:[#allocation2 + $0x148] sm:$0xf] %v459_v21  ;;  %v476_v28 = vshll.u32 %v316_v24, 16  ;;  %v480_v29 = vshrl.u32 %v316_v24, 16  ;;  %v948_v30 = vld [vmem:[%s8014_s28 + $0x30] sm:$0xf]  ;;  %v469_v49 = vsel %vm8057_vm5, %v464_v19, %v468_v39 }
  0x51   : > { %v1072_v34 = vrot.slane %v948_v30, 5  ;;  %898 = vst [vmem:[#allocation2 + $0x16c] sm:$0xf] %v469_v49  ;;  %v7578_v19 = vld [vmem:[#allocation2 + $0x12c] ss:$36 sps:$4 sm:$0xff]   ;;  %v3446_v30 = vld [vmem:[#allocation2 + $0x120] sm:$0xff] }
  0x52   : > { %5786 = vmatpush1.bf16.msra.mxu0 %v7562_v42  ;;  %6011 = vmatpush1.bf16.msra.mxu1 %v7563_v43  ;;  %v478_v41 = vrot.slane %v476_v28, 5  ;;  %v220_v42 = vld [vmem:[%s8014_s28 + $0x30] sm:$0xf]  ;;  %v482_v43 = vrot.slane %v480_v29, 4  ;;  %v222_v21 = vld [vmem:[%s8014_s28 + $0x38] sm:$0xf] }
  0x53   : > { %5787 = vmatprep.subr.bf16.mxu0 %v7901_v1  ;;  %6012 = vmatprep.subr.bf16.mxu1 %v7901_v1  ;;  %268 = vst [vmem:[#allocation2 + $0x1b0] sm:$0xf] %v220_v42  ;;  %v1074_v58 = vrot.slane %v1072_v34, 4  ;;  %v223_v23 = vld [vmem:[%s8014_s28 + $0x3c] sm:$0xf]  ;;  %v7600_v39 = vld [vmem:[%s10247_s1 + $0x110] sm:$0xff]  }
  0x54   : > { %v483_v54 = vor.u32 %v482_v43, %v478_v41  ;;  %v479_v7 = vsel %vm8057_vm5, %v474_v60, %v478_v41  ;;  %270 = vst [vmem:[#allocation2 + $0x1f8] sm:$0xf] %v222_v21  ;;  %v319_v24 = vld [vmem:[%s8014_s28 + $0x3c] sm:$0xf]  ;;  %271 = vst [vmem:[#allocation2 + $0x21c] sm:$0xf] %v223_v23 }
  0x55   : > { %5374 = vmatmul.mubr.bf16.gmra.mxu0 %v6858_v63  ;;  %5599 = vmatmul.mubr.bf16.gmra.mxu1 %v7561_v56  ;;  %v1073_v56 = vsel %vm8044_vm4, %v1071_v47, %v1072_v34  ;;  %v496_v63 = vshll.u32 %v318_v53, 16  ;;  %899 = vst [vmem:[#allocation2 + $0x190] sm:$0xf] %v479_v7  ;;  %v1076_v15 = vsel %vm8044_vm4, %v1074_v58, %v1075_v6  ;;  %v506_v28 = vshll.u32 %v319_v24, 16  ;;  %v952_v42 = vld [vmem:[%s8014_s28 + $0x40] sm:$0xf] }
  0x56   : > { %5381 = vmatprep.mubr.bf16.mxu0 %v7564_v57  ;;  %5606 = vmatprep.mubr.bf16.mxu1 %v7566_v9  ;;  %v486_v57 = vshll.u32 %v317_v52, 16  ;;  %1241 = vst [vmem:[#allocation2 + $0x194] sm:$0xf] %v1073_v56  ;;  %v484_v61 = vrot.slane %v483_v54, 4  ;;  %1242 = vst [vmem:[#allocation2 + $0x1b8] sm:$0xf] %v1076_v15 }
  0x57   : > { %5788 = vmatpush1.bf16.msra.mxu0 %v7574_v0  ;;  %6013 = vmatpush1.bf16.msra.mxu1 %v7575_v12  ;;  %v950_v0 = vld [vmem:[%s8014_s28 + $0x38] sm:$0xf]  ;;  %v498_v9 = vrot.slane %v496_v63, 5  ;;  %v7573_v12 = vld [vmem:[#allocation2 + $0xe0] ss:$36 sps:$4 sm:$0xff]   ;;  %v510_v29 = vshrl.u32 %v319_v24, 16 }
  0x58   : > { %5789 = vmatprep.subr.bf16.mxu0 %v7901_v1  ;;  %6014 = vmatprep.subr.bf16.mxu1 %v7901_v1  ;;  %v488_v4 = vrot.slane %v486_v57, 5  ;;  %v7576_v13 = vld [vmem:[#allocation2 + $0x124] ss:$36 sps:$4 sm:$0xff]   ;;  %v508_v35 = vrot.slane %v506_v28, 5  ;;  %v520_v41 = vshrl.u32 %v320_v27, 16  ;;  %v1084_v47 = vrot.slane %v952_v42, 5 }
  0x59   : > { %v3451_v33 = vld [vmem:[#allocation2 + $0x144] sm:$0xff]  ;;  %v512_v36 = vrot.slane %v510_v29, 4  ;;  %v7601_v57 = vld [vmem:[%s10247_s1 + $0x190] sm:$0xff]   ;;  %v224_v63 = vld [vmem:[%s8014_s28 + $0x40] sm:$0xf] }
  0x5a   : > { %v489_v14 = vsel %vm8057_vm5, %v484_v61, %v488_v4  ;;  %v493_v20 = vor.u32 %v492_v8, %v488_v4  ;;  %v1292_v48 = vld [vmem:[%s8014_s28 + $0x44] sm:$0xf]  ;;  %v7580_v49 = vld [vmem:[#allocation2 + $0x128] ss:$36 sps:$4 sm:$0xff]   ;;  %v6885_v55 = vcombine.low %v3446_v30, %v3451_v33  ;;  %v522_v61 = vrot.slane %v520_v41, 4 }
  0x5b   : > { %5790 = vmatpush1.bf16.msra.mxu0 %v7581_v17  ;;  %6015 = vmatpush1.bf16.msra.mxu1 %v7582_v22  ;;  %v1078_v17 = vrot.slane %v950_v0, 5  ;;  %900 = vst [vmem:[#allocation2 + $0x1b4] sm:$0xf] %v489_v14  ;;  %v1293_v54 = vld [vmem:[%s8014_s28 + $0x48] sm:$0xf] }
  0x5c   : > { %5791 = vmatprep.subr.bf16.mxu0 %v7901_v1  ;;  %6016 = vmatprep.subr.bf16.mxu1 %v7901_v1  ;;  %v494_v26 = vrot.slane %v493_v20, 4  ;;  %1340 = vst [vmem:[#allocation2 + $0x204] sm:$0xf] %v1292_v48  ;;  %1341 = vst [vmem:[#allocation2 + $0x228] sm:$0xf] %v1293_v54  ;;  %v3456_v5 = vld [vmem:[#allocation2 + $0x168] sm:$0xff] }
  0x5d   : > { %5382 = vmatmul.mubr.bf16.gmra.mxu0 %v6867_v31  ;;  %5607 = vmatmul.mubr.bf16.gmra.mxu1 %v7568_v32  ;;  %v1079_v22 = vsel %vm8044_vm4, %v1077_v16, %v1078_v17  ;;  %v503_v31 = vor.u32 %v502_v25, %v498_v9  ;;  %v516_v32 = vshll.u32 %v320_v27, 16  ;;  %v1080_v43 = vrot.slane %v1078_v17, 4  ;;  %v7583_v58 = vld [vmem:[#allocation2 + $0x16c] ss:$36 sps:$4 sm:$0xff]   ;;  %v225_v0 = vld [vmem:[%s8014_s28 + $0x44] sm:$0xf] }
  0x5e   : > { %5389 = vmatprep.mubr.bf16.mxu0 %v7569_v45  ;;  %5614 = vmatprep.mubr.bf16.mxu1 %v7571_v37  ;;  %1243 = vst [vmem:[#allocation2 + $0x1dc] sm:$0xf] %v1079_v22  ;;  %v499_v34 = vsel %vm8057_vm5, %v494_v26, %v498_v9  ;;  %v951_v37 = vld [vmem:[%s8014_s28 + $0x3c] sm:$0xf]  ;;  %v513_v45 = vor.u32 %v512_v36, %v508_v35  ;;  %272 = vst [vmem:[#allocation2 + $0x240] sm:$0xf] %v224_v63 }
  0x5f   : > { %5792 = vmatpush1.bf16.msra.mxu0 %v7593_v44  ;;  %6017 = vmatpush1.bf16.msra.mxu1 %v7594_v59  ;;  %901 = vst [vmem:[#allocation2 + $0x1d8] sm:$0xf] %v499_v34  ;;  %v504_v40 = vrot.slane %v503_v31, 4  ;;  %v1081_v44 = vrot.slane %v951_v37, 5  ;;  %v518_v46 = vrot.slane %v516_v32, 5  ;;  %v3461_v9 = vld [vmem:[#allocation2 + $0x18c] sm:$0xff] }
  0x60   : > { %5793 = vmatprep.subr.bf16.mxu0 %v7901_v1  ;;  %6018 = vmatprep.subr.bf16.mxu1 %v7901_v1  ;;  %v514_v56 = vrot.slane %v513_v45, 4  ;;  %v7585_v59 = vld [vmem:[#allocation2 + $0x174] ss:$36 sps:$4 sm:$0xff]   ;;  %v321_v2 = vld [vmem:[%s8014_s28 + $0x44] sm:$0xf]  ;;  %v1086_v16 = vrot.slane %v1084_v47, 4  ;;  %v6894_v22 = vcombine.low %v3456_v5, %v3461_v9 }
  0x61   : > { %v509_v51 = vsel %vm8057_vm5, %v504_v40, %v508_v35  ;;  %v1082_v52 = vsel %vm8044_vm4, %v1080_v43, %v1081_v44  ;;  %v1083_v53 = vrot.slane %v1081_v44, 4  ;;  %v322_v3 = vld [vmem:[%s8014_s28 + $0x48] sm:$0xf]  ;;  %v523_v4 = vor.u32 %v522_v61, %v518_v46  ;;  %273 = vst [vmem:[#allocation2 + $0x264] sm:$0xf] %v225_v0 }
  0x62   : > { %902 = vst [vmem:[#allocation2 + $0x1fc] sm:$0xf] %v509_v51  ;;  %1244 = vst [vmem:[#allocation2 + $0x200] sm:$0xf] %v1082_v52  ;;  %v519_v62 = vsel %vm8057_vm5, %v514_v56, %v518_v46  ;;  %v526_v6 = vshll.u32 %v321_v2, 16  ;;  %v530_v7 = vshrl.u32 %v321_v2, 16 }
  0x63   : > { %5794 = vmatpush1.bf16.msra.mxu0 %v7600_v39  ;;  %v1085_v60 = vsel %vm8044_vm4, %v1083_v53, %v1084_v47  ;;  %6019 = vmatpush1.bf16.msra.mxu1 %v7601_v57  ;;  %903 = vst [vmem:[#allocation2 + $0x220] sm:$0xf] %v519_v62  ;;  %v536_v8 = vshll.u32 %v322_v3, 16  ;;  %v524_v10 = vrot.slane %v523_v4, 4  ;;  %v953_v11 = vld [vmem:[%s8014_s28 + $0x44] sm:$0xf] }
  0x64   : > { %5795 = vmatprep.subr.bf16.mxu0 %v7901_v1  ;;  %1245 = vst [vmem:[#allocation2 + $0x224] sm:$0xf] %v1085_v60  ;;  %6020 = vmatprep.subr.bf16.mxu1 %v7901_v1  ;;  %v532_v14 = vrot.slane %v530_v7, 4  ;;  %v540_v15 = vshrl.u32 %v322_v3, 16  ;;  %v1294_v17 = vld [vmem:[%s8014_s28 + $0x4c] sm:$0xf] }
  0x65   : > { %5390 = vmatmul.mubr.bf16.gmra.mxu0 %v6876_v18  ;;  %5615 = vmatmul.mubr.bf16.gmra.mxu1 %v7573_v12  ;;  %v954_v12 = vld [vmem:[%s8014_s28 + $0x48] sm:$0xf]  ;;  %v538_v18 = vrot.slane %v536_v8, 5  ;;  %v1295_v21 = vld [vmem:[%s8014_s28 + $0x50] sm:$0xf] }
  0x66   : > { %5397 = vmatprep.mubr.bf16.mxu0 %v7576_v13  ;;  %5622 = vmatprep.mubr.bf16.mxu1 %v7578_v19  ;;  %v528_v13 = vrot.slane %v526_v6, 5  ;;  %v1087_v19 = vrot.slane %v953_v11, 5  ;;  %v1090_v20 = vrot.slane %v954_v12, 5  ;;  %1342 = vst [vmem:[#allocation2 + $0x24c] sm:$0xf] %v1294_v17  ;;  %v3466_v35 = vld [vmem:[#allocation2 + $0x1b0] sm:$0xff] }
  0x67   : > { %1343 = vst [vmem:[#allocation2 + $0x270] sm:$0xf] %v1295_v21  ;;  %v226_v25 = vld [vmem:[%s8014_s28 + $0x48] sm:$0xf]  ;;  %v227_v26 = vld [vmem:[%s8014_s28 + $0x4c] sm:$0xf] }
  0x68   : > { %v529_v23 = vsel %vm8057_vm5, %v524_v10, %v528_v13  ;;  %v533_v24 = vor.u32 %v532_v14, %v528_v13  ;;  %v323_v27 = vld [vmem:[%s8014_s28 + $0x4c] sm:$0xf]  ;;  %v7587_v28 = vld [vmem:[#allocation2 + $0x170] ss:$36 sps:$4 sm:$0xff]   ;;  %v1088_v30 = vsel %vm8044_vm4, %v1086_v16, %v1087_v19  ;;  %v1089_v31 = vrot.slane %v1087_v19, 4 }
  0x69   : > { %v7588_v29 = vld [vmem:[#allocation2 + $0x1b4] ss:$36 sps:$4 sm:$0xff]   ;;  %904 = vst [vmem:[#allocation2 + $0x244] sm:$0xf] %v529_v23  ;;  %274 = vst [vmem:[#allocation2 + $0x288] sm:$0xf] %v226_v25 }
  0x6a   : > { %275 = vst [vmem:[#allocation2 + $0x2ac] sm:$0xf] %v227_v26  ;;  %v7590_v32 = vld [vmem:[#allocation2 + $0x1bc] ss:$36 sps:$4 sm:$0xff]   ;;  %v534_v33 = vrot.slane %v533_v24, 4  ;;  %v3471_v36 = vld [vmem:[#allocation2 + $0x1d4] sm:$0xff]  ;;  %v1091_v37 = vsel %vm8044_vm4, %v1089_v31, %v1090_v20 }
  0x6b   : > { %1246 = vst [vmem:[#allocation2 + $0x248] sm:$0xf] %v1088_v30  ;;  %v324_v34 = vld [vmem:[%s8014_s28 + $0x50] sm:$0xf]  ;;  %v542_v39 = vrot.slane %v540_v15, 4  ;;  %v546_v40 = vshll.u32 %v323_v27, 16  ;;  %v6903_v0 = vcombine.low %v3466_v35, %v3471_v36 }
  0x6c   : > { %v955_v41 = vld [vmem:[%s8014_s28 + $0x4c] sm:$0xf]  ;;  %v956_v42 = vld [vmem:[%s8014_s28 + $0x50] sm:$0xf]  ;;  %v539_v43 = vsel %vm8057_vm5, %v534_v33, %v538_v18  ;;  %1247 = vst [vmem:[#allocation2 + $0x26c] sm:$0xf] %v1091_v37 }
  0x6d   : > { %5398 = vmatmul.mubr.bf16.gmra.mxu0 %v6885_v55  ;;  %5623 = vmatmul.mubr.bf16.gmra.mxu1 %v7580_v49  ;;  %v550_v44 = vshrl.u32 %v323_v27, 16  ;;  %v556_v45 = vshll.u32 %v324_v34, 16  ;;  %v560_v46 = vshrl.u32 %v324_v34, 16  ;;  %v1296_v47 = vld [vmem:[%s8014_s28 + $0x54] sm:$0xf]  ;;  %v7612_v48 = vld [vmem:[%s10247_s1 + $0x108] sm:$0xff]   ;;  %v543_v49 = vor.u32 %v542_v39, %v538_v18 }
  0x6e   : > { %5405 = vmatprep.mubr.bf16.mxu0 %v7583_v58  ;;  %5630 = vmatprep.mubr.bf16.mxu1 %v7585_v59  ;;  %905 = vst [vmem:[#allocation2 + $0x268] sm:$0xf] %v539_v43  ;;  %v548_v51 = vrot.slane %v546_v40, 5  ;;  %v1092_v52 = vrot.slane %v1090_v20, 4  ;;  %v1093_v53 = vrot.slane %v955_v41, 5  ;;  %v7613_v55 = vld [vmem:[%s10247_s1 + $0x188] sm:$0xff]  }
  0x6f   : > { %v1297_v54 = vld [vmem:[%s8014_s28 + $0x58] sm:$0xf]  ;;  %1344 = vst [vmem:[#allocation2 + $0x294] sm:$0xf] %v1296_v47  ;;  %v552_v56 = vrot.slane %v550_v44, 4  ;;  %v558_v57 = vrot.slane %v556_v45, 5  ;;  %5796 = vmatpush1.bf16.msra.mxu0 %v7612_v48  ;;  %6021 = vmatpush1.bf16.msra.mxu1 %v7613_v55 }
  0x70   : > { %v1096_v58 = vrot.slane %v956_v42, 5  ;;  %1345 = vst [vmem:[#allocation2 + $0x2b8] sm:$0xf] %v1297_v54  ;;  %v562_v59 = vrot.slane %v560_v46, 4  ;;  %v7592_v60 = vld [vmem:[#allocation2 + $0x1b8] ss:$36 sps:$4 sm:$0xff]   ;;  %v1094_v62 = vsel %vm8044_vm4, %v1092_v52, %v1093_v53  ;;  %5797 = vmatprep.subr.bf16.mxu0 %v7901_v1  ;;  %6022 = vmatprep.subr.bf16.mxu1 %v7901_v1 }
  0x71   : > { %v544_v61 = vrot.slane %v543_v49, 4  ;;  %v1095_v63 = vrot.slane %v1093_v53, 4  ;;  %v7595_v2 = vld [vmem:[#allocation2 + $0x1fc] ss:$36 sps:$4 sm:$0xff]   ;;  %v7597_v3 = vld [vmem:[#allocation2 + $0x204] ss:$36 sps:$4 sm:$0xff]   ;;  %v553_v4 = vor.u32 %v552_v56, %v548_v51 }
  0x72   : > { %1248 = vst [vmem:[#allocation2 + $0x290] sm:$0xf] %v1094_v62  ;;  %v228_v5 = vld [vmem:[%s8014_s28 + $0x50] sm:$0xf]  ;;  %v563_v6 = vor.u32 %v562_v59, %v558_v57  ;;  %v229_v9 = vld [vmem:[%s8014_s28 + $0x54] sm:$0xf] }
  0x73   : > { %v549_v7 = vsel %vm8057_vm5, %v544_v61, %v548_v51  ;;  %v1097_v8 = vsel %vm8044_vm4, %v1095_v63, %v1096_v58  ;;  %276 = vst [vmem:[#allocation2 + $0x2d0] sm:$0xf] %v228_v5  ;;  %v325_v10 = vld [vmem:[%s8014_s28 + $0x54] sm:$0xf]  ;;  %v554_v11 = vrot.slane %v553_v4, 4  ;;  %v1098_v17 = vrot.slane %v1096_v58, 4 }
  0x74   : > { %906 = vst [vmem:[#allocation2 + $0x28c] sm:$0xf] %v549_v7  ;;  %1249 = vst [vmem:[#allocation2 + $0x2b4] sm:$0xf] %v1097_v8  ;;  %v326_v12 = vld [vmem:[%s8014_s28 + $0x58] sm:$0xf] }
  0x75   : > { %5406 = vmatmul.mubr.bf16.gmra.mxu0 %v6894_v22  ;;  %5631 = vmatmul.mubr.bf16.gmra.mxu1 %v7587_v28  ;;  %277 = vst [vmem:[#allocation2 + $0x2f4] sm:$0xf] %v229_v9  ;;  %v564_v13 = vrot.slane %v563_v6, 4  ;;  %v566_v14 = vshll.u32 %v325_v10, 16  ;;  %v570_v15 = vshrl.u32 %v325_v10, 16  ;;  %v576_v16 = vshll.u32 %v326_v12, 16 }
  0x76   : > { %5413 = vmatprep.mubr.bf16.mxu0 %v7588_v29  ;;  %5638 = vmatprep.mubr.bf16.mxu1 %v7590_v32  ;;  %v3476_v18 = vld [vmem:[#allocation2 + $0x1f8] sm:$0xff]  ;;  %v559_v20 = vsel %vm8057_vm5, %v554_v11, %v558_v57  ;;  %v580_v23 = vshrl.u32 %v326_v12, 16  ;;  %v957_v25 = vld [vmem:[%s8014_s28 + $0x54] sm:$0xf]  ;;  %v7619_v27 = vld [vmem:[%s10247_s1 + $0x100] sm:$0xff]  }
  0x77   : > { %v3481_v19 = vld [vmem:[#allocation2 + $0x21c] sm:$0xff]  ;;  %v568_v21 = vrot.slane %v566_v14, 5  ;;  %v572_v22 = vrot.slane %v570_v15, 4  ;;  %907 = vst [vmem:[#allocation2 + $0x2b0] sm:$0xf] %v559_v20  ;;  %v578_v24 = vrot.slane %v576_v16, 5  ;;  %5798 = vmatpush1.bf16.msra.mxu0 %v7619_v27 }
  0x78   : > { %v958_v26 = vld [vmem:[%s8014_s28 + $0x58] sm:$0xf]  ;;  %v1099_v30 = vrot.slane %v957_v25, 5  ;;  %v1298_v32 = vld [vmem:[%s8014_s28 + $0x5c] sm:$0xf]  ;;  %v582_v34 = vrot.slane %v580_v23, 4  ;;  %v6912_v35 = vcombine.low %v3476_v18, %v3481_v19  ;;  %5799 = vmatprep.subr.bf16.mxu0 %v7901_v1 }
  0x79   : > { %v569_v28 = vsel %vm8057_vm5, %v564_v13, %v568_v21  ;;  %v573_v29 = vor.u32 %v572_v22, %v568_v21  ;;  %v1102_v31 = vrot.slane %v958_v26, 5  ;;  %v1299_v33 = vld [vmem:[%s8014_s28 + $0x60] sm:$0xf]  ;;  %1346 = vst [vmem:[#allocation2 + $0x2dc] sm:$0xf] %v1298_v32  ;;  %v3491_v53 = vld [vmem:[#allocation2 + $0x264] sm:$0xff] }
  0x7a   : > { %908 = vst [vmem:[#allocation2 + $0x2d4] sm:$0xf] %v569_v28  ;;  %1347 = vst [vmem:[#allocation2 + $0x300] sm:$0xf] %v1299_v33  ;;  %v1100_v37 = vsel %vm8044_vm4, %v1098_v17, %v1099_v30  ;;  %v1101_v39 = vrot.slane %v1099_v30, 4  ;;  %v583_v42 = vor.u32 %v582_v34, %v578_v24  ;;  %v7620_v46 = vld [vmem:[%s10247_s1 + $0x180] sm:$0xff]  }
  0x7b   : > { %v574_v36 = vrot.slane %v573_v29, 4  ;;  %v7599_v40 = vld [vmem:[#allocation2 + $0x200] ss:$36 sps:$4 sm:$0xff]   ;;  %1250 = vst [vmem:[#allocation2 + $0x2d8] sm:$0xf] %v1100_v37  ;;  %6023 = vmatpush1.bf16.msra.mxu1 %v7620_v46  ;;  %v1104_v57 = vrot.slane %v1102_v31, 4 }
  0x7c   : > { %v7602_v41 = vld [vmem:[#allocation2 + $0x244] ss:$36 sps:$4 sm:$0xff]   ;;  %v7604_v43 = vld [vmem:[#allocation2 + $0x24c] ss:$36 sps:$4 sm:$0xff]   ;;  %v1103_v45 = vsel %vm8044_vm4, %v1101_v39, %v1102_v31  ;;  %v230_v47 = vld [vmem:[%s8014_s28 + $0x58] sm:$0xf]  ;;  %6024 = vmatprep.subr.bf16.mxu1 %v7901_v1 }
  0x7d   : > { %5414 = vmatmul.mubr.bf16.gmra.mxu0 %v6903_v0  ;;  %5639 = vmatmul.mubr.bf16.gmra.mxu1 %v7592_v60  ;;  %v579_v44 = vsel %vm8057_vm5, %v574_v36, %v578_v24  ;;  %1251 = vst [vmem:[#allocation2 + $0x2fc] sm:$0xf] %v1103_v45  ;;  %v231_v48 = vld [vmem:[%s8014_s28 + $0x5c] sm:$0xf]  ;;  %278 = vst [vmem:[#allocation2 + $0x318] sm:$0xf] %v230_v47 }
  0x7e   : > { %5421 = vmatprep.mubr.bf16.mxu0 %v7595_v2  ;;  %5646 = vmatprep.mubr.bf16.mxu1 %v7597_v3  ;;  %909 = vst [vmem:[#allocation2 + $0x2f8] sm:$0xf] %v579_v44  ;;  %v327_v49 = vld [vmem:[%s8014_s28 + $0x5c] sm:$0xf]  ;;  %v328_v51 = vld [vmem:[%s8014_s28 + $0x60] sm:$0xf] }
  0x7f   : > { %v3486_v52 = vld [vmem:[#allocation2 + $0x240] sm:$0xff]  ;;  %279 = vst [vmem:[#allocation2 + $0x33c] sm:$0xf] %v231_v48  ;;  %v584_v54 = vrot.slane %v583_v42, 4  ;;  %v586_v55 = vshll.u32 %v327_v49, 16  ;;  %v590_v56 = vshrl.u32 %v327_v49, 16 }
  0x80   : > { %v596_v58 = vshll.u32 %v328_v51, 16  ;;  %v600_v59 = vshrl.u32 %v328_v51, 16  ;;  %v959_v60 = vld [vmem:[%s8014_s28 + $0x5c] sm:$0xf]  ;;  %v960_v61 = vld [vmem:[%s8014_s28 + $0x60] sm:$0xf]  ;;  %v6921_v4 = vcombine.low %v3486_v52, %v3491_v53 }
  0x81   : > { %v588_v62 = vrot.slane %v586_v55, 5  ;;  %v592_v63 = vrot.slane %v590_v56, 4  ;;  %v1105_v0 = vrot.slane %v959_v60, 5  ;;  %v1108_v2 = vrot.slane %v960_v61, 5  ;;  %v7631_v3 = vld [vmem:[%s10247_s1 + $0x178] sm:$0xff]   ;;  %v3496_v25 = vld [vmem:[#allocation2 + $0x288] sm:$0xff] }
  0x82   : > { %v7606_v5 = vld [vmem:[#allocation2 + $0x248] ss:$36 sps:$4 sm:$0xff]   ;;  %v598_v6 = vrot.slane %v596_v58, 5  ;;  %v1300_v7 = vld [vmem:[%s8014_s28 + $0x64] sm:$0xf]  ;;  %v602_v9 = vrot.slane %v600_v59, 4  ;;  %5800 = vmatpush2.bf16.msra.mxu0 %v7631_v3 }
  0x83   : > { %v1301_v8 = vld [vmem:[%s8014_s28 + $0x68] sm:$0xf]  ;;  %v7609_v10 = vld [vmem:[#allocation2 + $0x294] ss:$36 sps:$4 sm:$0xff]   ;;  %v589_v11 = vsel %vm8057_vm5, %v584_v54, %v588_v62  ;;  %v593_v12 = vor.u32 %v592_v63, %v588_v62  ;;  %v1106_v13 = vsel %vm8044_vm4, %v1104_v57, %v1105_v0  ;;  %v1107_v14 = vrot.slane %v1105_v0, 4  ;;  %5801 = vmatprep.subr.bf16.mxu0 %v7901_v1  ;;  %v3501_v26 = vld [vmem:[#allocation2 + $0x2ac] sm:$0xff] }
  0x84   : > { %1348 = vst [vmem:[#allocation2 + $0x324] sm:$0xf] %v1300_v7  ;;  %1349 = vst [vmem:[#allocation2 + $0x348] sm:$0xf] %v1301_v8  ;;  %v232_v15 = vld [vmem:[%s8014_s28 + $0x60] sm:$0xf]  ;;  %v603_v20 = vor.u32 %v602_v9, %v598_v6  ;;  %v6930_v49 = vcombine.low %v3496_v25, %v3501_v26 }
  0x85   : > { %5422 = vmatmul.mubr.bf16.gmra.mxu0 %v6912_v35  ;;  %5647 = vmatmul.mubr.bf16.gmra.mxu1 %v7599_v40  ;;  %v233_v16 = vld [vmem:[%s8014_s28 + $0x64] sm:$0xf]  ;;  %v7607_v17 = vld [vmem:[#allocation2 + $0x28c] ss:$36 sps:$4 sm:$0xff]   ;;  %910 = vst [vmem:[#allocation2 + $0x31c] sm:$0xf] %v589_v11  ;;  %v1109_v22 = vsel %vm8044_vm4, %v1107_v14, %v1108_v2 }
  0x86   : > { %5429 = vmatprep.mubr.bf16.mxu0 %v7602_v41  ;;  %5654 = vmatprep.mubr.bf16.mxu1 %v7604_v43  ;;  %1252 = vst [vmem:[#allocation2 + $0x320] sm:$0xf] %v1106_v13  ;;  %280 = vst [vmem:[#allocation2 + $0x360] sm:$0xf] %v232_v15  ;;  %v329_v18 = vld [vmem:[%s8014_s28 + $0x64] sm:$0xf] }
  0x87   : > { %281 = vst [vmem:[#allocation2 + $0x384] sm:$0xf] %v233_v16  ;;  %v330_v19 = vld [vmem:[%s8014_s28 + $0x68] sm:$0xf]  ;;  %v594_v21 = vrot.slane %v593_v12, 4  ;;  %v606_v23 = vshll.u32 %v329_v18, 16 }
  0x88   : > { %v961_v24 = vld [vmem:[%s8014_s28 + $0x64] sm:$0xf]  ;;  %1253 = vst [vmem:[#allocation2 + $0x344] sm:$0xf] %v1109_v22  ;;  %v604_v27 = vrot.slane %v603_v20, 4  ;;  %v610_v28 = vshrl.u32 %v329_v18, 16 }
  0x89   : > { %v599_v29 = vsel %vm8057_vm5, %v594_v21, %v598_v6  ;;  %v608_v30 = vrot.slane %v606_v23, 5  ;;  %v616_v31 = vshll.u32 %v330_v19, 16  ;;  %v620_v32 = vshrl.u32 %v330_v19, 16  ;;  %v962_v33 = vld [vmem:[%s8014_s28 + $0x68] sm:$0xf]  ;;  %v7632_v34 = vld [vmem:[%s10247_s1 + $0x1f8] sm:$0xff]  }
  0x8a   : > { %911 = vst [vmem:[#allocation2 + $0x340] sm:$0xf] %v599_v29  ;;  %v612_v35 = vrot.slane %v610_v28, 4  ;;  %v1110_v36 = vrot.slane %v1108_v2, 4  ;;  %v1111_v37 = vrot.slane %v961_v24, 5  ;;  %v1114_v39 = vrot.slane %v962_v33, 5  ;;  %6025 = vmatpush2.bf16.msra.mxu1 %v7632_v34 }
  0x8b   : > { %v1302_v40 = vld [vmem:[%s8014_s28 + $0x6c] sm:$0xf]  ;;  %v609_v41 = vsel %vm8057_vm5, %v604_v27, %v608_v30  ;;  %v618_v42 = vrot.slane %v616_v31, 5  ;;  %v1303_v43 = vld [vmem:[%s8014_s28 + $0x70] sm:$0xf]  ;;  %v622_v44 = vrot.slane %v620_v32, 4  ;;  %6026 = vmatprep.subr.bf16.mxu1 %v7901_v1 }
  0x8c   : > { %1350 = vst [vmem:[#allocation2 + $0x36c] sm:$0xf] %v1302_v40  ;;  %v7611_v45 = vld [vmem:[#allocation2 + $0x290] ss:$36 sps:$4 sm:$0xff]   ;;  %v613_v46 = vor.u32 %v612_v35, %v608_v30  ;;  %912 = vst [vmem:[#allocation2 + $0x364] sm:$0xf] %v609_v41  ;;  %v1112_v47 = vsel %vm8044_vm4, %v1110_v36, %v1111_v37 }
  0x8d   : > { %5430 = vmatmul.mubr.bf16.gmra.mxu0 %v6921_v4  ;;  %5655 = vmatmul.mubr.bf16.gmra.mxu1 %v7606_v5  ;;  %v1113_v48 = vrot.slane %v1111_v37, 4  ;;  %1351 = vst [vmem:[#allocation2 + $0x390] sm:$0xf] %v1303_v43  ;;  %v7614_v51 = vld [vmem:[#allocation2 + $0x2d4] ss:$36 sps:$4 sm:$0xff]   ;;  %v623_v52 = vor.u32 %v622_v44, %v618_v42  ;;  %v1116_v59 = vrot.slane %v1114_v39, 4 }
  0x8e   : > { %5437 = vmatprep.mubr.bf16.mxu0 %v7607_v17  ;;  %5662 = vmatprep.mubr.bf16.mxu1 %v7609_v10  ;;  %1254 = vst [vmem:[#allocation2 + $0x368] sm:$0xf] %v1112_v47  ;;  %v614_v53 = vrot.slane %v613_v46, 4  ;;  %v234_v55 = vld [vmem:[%s8014_s28 + $0x68] sm:$0xf]  ;;  %v7638_v57 = vld [vmem:[%s10247_s1 + $0x170] sm:$0xff]  }
  0x8f   : > { %v1115_v54 = vsel %vm8044_vm4, %v1113_v48, %v1114_v39  ;;  %v235_v56 = vld [vmem:[%s8014_s28 + $0x6c] sm:$0xf]  ;;  %v7616_v58 = vld [vmem:[#allocation2 + $0x2dc] ss:$36 sps:$4 sm:$0xff]   ;;  %282 = vst [vmem:[#allocation2 + $0x3a8] sm:$0xf] %v234_v55  ;;  %5802 = vmatpush2.bf16.msra.mxu0 %v7638_v57 }
  0x90   : > { %1255 = vst [vmem:[#allocation2 + $0x38c] sm:$0xf] %v1115_v54  ;;  %283 = vst [vmem:[#allocation2 + $0x3cc] sm:$0xf] %v235_v56  ;;  %v619_v60 = vsel %vm8057_vm5, %v614_v53, %v618_v42  ;;  %v331_v61 = vld [vmem:[%s8014_s28 + $0x6c] sm:$0xf]  ;;  %5803 = vmatprep.subr.bf16.mxu0 %v7901_v1 }
  0x91   : > { %v332_v62 = vld [vmem:[%s8014_s28 + $0x70] sm:$0xf]  ;;  %v963_v63 = vld [vmem:[%s8014_s28 + $0x6c] sm:$0xf]  ;;  %v3511_v2 = vld [vmem:[#allocation2 + $0x2f4] sm:$0xff]  ;;  %v624_v3 = vrot.slane %v623_v52, 4 }
  0x92   : > { %v3506_v0 = vld [vmem:[#allocation2 + $0x2d0] sm:$0xff]  ;;  %913 = vst [vmem:[#allocation2 + $0x388] sm:$0xf] %v619_v60  ;;  %v626_v4 = vshll.u32 %v331_v61, 16  ;;  %v630_v5 = vshrl.u32 %v331_v61, 16  ;;  %v636_v6 = vshll.u32 %v332_v62, 16 }
  0x93   : > { %v640_v7 = vshrl.u32 %v332_v62, 16  ;;  %v964_v8 = vld [vmem:[%s8014_s28 + $0x70] sm:$0xf]  ;;  %v1117_v9 = vrot.slane %v963_v63, 5  ;;  %v1304_v10 = vld [vmem:[%s8014_s28 + $0x74] sm:$0xf]  ;;  %v6939_v20 = vcombine.low %v3506_v0, %v3511_v2 }
  0x94   : > { %v628_v11 = vrot.slane %v626_v4, 5  ;;  %v632_v12 = vrot.slane %v630_v5, 4  ;;  %v638_v13 = vrot.slane %v636_v6, 5  ;;  %v1120_v14 = vrot.slane %v964_v8, 5  ;;  %1352 = vst [vmem:[#allocation2 + $0x3b4] sm:$0xf] %v1304_v10 }
  0x95   : > { %5438 = vmatmul.mubr.bf16.gmra.mxu0 %v6930_v49  ;;  %5663 = vmatmul.mubr.bf16.gmra.mxu1 %v7611_v45  ;;  %v7639_v15 = vld [vmem:[%s10247_s1 + $0x1f0] sm:$0xff]   ;;  %v7618_v16 = vld [vmem:[#allocation2 + $0x2d8] ss:$36 sps:$4 sm:$0xff]   ;;  %v1118_v17 = vsel %vm8044_vm4, %v1116_v59, %v1117_v9  ;;  %v1119_v18 = vrot.slane %v1117_v9, 4  ;;  %v7623_v24 = vld [vmem:[#allocation2 + $0x324] ss:$36 sps:$4 sm:$0xff]  }
  0x96   : > { %5445 = vmatprep.mubr.bf16.mxu0 %v7614_v51  ;;  %5670 = vmatprep.mubr.bf16.mxu1 %v7616_v58  ;;  %v1305_v19 = vld [vmem:[%s8014_s28 + $0x78] sm:$0xf]  ;;  %v629_v21 = vsel %vm8057_vm5, %v624_v3, %v628_v11  ;;  %v633_v22 = vor.u32 %v632_v12, %v628_v11  ;;  %1256 = vst [vmem:[#allocation2 + $0x3b0] sm:$0xf] %v1118_v17  ;;  %v7621_v23 = vld [vmem:[#allocation2 + $0x31c] ss:$36 sps:$4 sm:$0xff]  }
  0x97   : > { %1353 = vst [vmem:[#allocation2 + $0x3d8] sm:$0xf] %v1305_v19  ;;  %6027 = vmatpush2.bf16.msra.mxu1 %v7639_v15  ;;  %914 = vst [vmem:[#allocation2 + $0x3ac] sm:$0xf] %v629_v21  ;;  %v1121_v25 = vsel %vm8044_vm4, %v1119_v18, %v1120_v14  ;;  %v642_v26 = vrot.slane %v640_v7, 4  ;;  %v3516_v30 = vld [vmem:[#allocation2 + $0x318] sm:$0xff] }
  0x98   : > { %6028 = vmatprep.subr.bf16.mxu1 %v7901_v1  ;;  %v634_v27 = vrot.slane %v633_v22, 4  ;;  %1257 = vst [vmem:[#allocation2 + $0x3d4] sm:$0xf] %v1121_v25  ;;  %v236_v28 = vld [vmem:[%s8014_s28 + $0x70] sm:$0xf]  ;;  %v3521_v31 = vld [vmem:[#allocation2 + $0x33c] sm:$0xff] }
  0x99   : > { %v237_v29 = vld [vmem:[%s8014_s28 + $0x74] sm:$0xf]  ;;  %284 = vst [vmem:[#allocation2 + $0x3f0] sm:$0xf] %v236_v28  ;;  %v643_v33 = vor.u32 %v642_v26, %v638_v13  ;;  %v1122_v34 = vrot.slane %v1120_v14, 4  ;;  %v7650_v51 = vld [vmem:[%s10247_s1 + $0x168] sm:$0xff]   ;;  %v6948_v57 = vcombine.low %v3516_v30, %v3521_v31 }
  0x9a   : > { %285 = vst [vmem:[#allocation2 + $0x414] sm:$0xf] %v237_v29  ;;  %v333_v32 = vld [vmem:[%s8014_s28 + $0x74] sm:$0xf]  ;;  %v639_v35 = vsel %vm8057_vm5, %v634_v27, %v638_v13  ;;  %v334_v36 = vld [vmem:[%s8014_s28 + $0x78] sm:$0xf]  ;;  %5804 = vmatpush2.bf16.msra.mxu0 %v7650_v51 }
  0x9b   : > { %v646_v37 = vshll.u32 %v333_v32, 16  ;;  %v650_v39 = vshrl.u32 %v333_v32, 16  ;;  %v965_v40 = vld [vmem:[%s8014_s28 + $0x74] sm:$0xf]  ;;  %915 = vst [vmem:[#allocation2 + $0x3d0] sm:$0xf] %v639_v35  ;;  %5805 = vmatprep.subr.bf16.mxu0 %v7901_v1 }
  0x9c   : > { %v644_v41 = vrot.slane %v643_v33, 4  ;;  %v656_v42 = vshll.u32 %v334_v36, 16  ;;  %v660_v43 = vshrl.u32 %v334_v36, 16  ;;  %v966_v44 = vld [vmem:[%s8014_s28 + $0x78] sm:$0xf]  ;;  %v1123_v45 = vrot.slane %v965_v40, 5 }
  0x9d   : > { %5446 = vmatmul.mubr.bf16.gmra.mxu0 %v6939_v20  ;;  %5671 = vmatmul.mubr.bf16.gmra.mxu1 %v7618_v16  ;;  %v648_v46 = vrot.slane %v646_v37, 5  ;;  %v652_v47 = vrot.slane %v650_v39, 4  ;;  %v1126_v48 = vrot.slane %v966_v44, 5  ;;  %v1306_v49 = vld [vmem:[%s8014_s28 + $0x7c] sm:$0xf]  ;;  %v7651_v7 = vld [vmem:[%s10247_s1 + $0x1e8] sm:$0xff]  }
  0x9e   : > { %5453 = vmatprep.mubr.bf16.mxu0 %v7621_v23  ;;  %5678 = vmatprep.mubr.bf16.mxu1 %v7623_v24  ;;  %v658_v52 = vrot.slane %v656_v42, 5  ;;  %v1124_v53 = vsel %vm8044_vm4, %v1122_v34, %v1123_v45  ;;  %v1125_v54 = vrot.slane %v1123_v45, 4  ;;  %v1307_v55 = vld [vmem:[%s8014_s28 + $0x80] sm:$0xf]  ;;  %1354 = vst [vmem:[#allocation2 + $0x3fc] sm:$0xf] %v1306_v49 }
  0x9f   : > { %v662_v56 = vrot.slane %v660_v43, 4  ;;  %v7625_v58 = vld [vmem:[#allocation2 + $0x320] ss:$36 sps:$4 sm:$0xff]   ;;  %v649_v59 = vsel %vm8057_vm5, %v644_v41, %v648_v46  ;;  %v653_v60 = vor.u32 %v652_v47, %v648_v46  ;;  %1258 = vst [vmem:[#allocation2 + $0x3f8] sm:$0xf] %v1124_v53  ;;  %v1128_v18 = vrot.slane %v1126_v48, 4  ;;  %6029 = vmatpush2.bf16.msra.mxu1 %v7651_v7 }
  0xa0   : > { %1355 = vst [vmem:[#allocation2 + $0x420] sm:$0xf] %v1307_v55  ;;  %v238_v61 = vld [vmem:[%s8014_s28 + $0x78] sm:$0xf]  ;;  %v239_v62 = vld [vmem:[%s8014_s28 + $0x7c] sm:$0xf]  ;;  %v1127_v2 = vsel %vm8044_vm4, %v1125_v54, %v1126_v48  ;;  %6030 = vmatprep.subr.bf16.mxu1 %v7901_v1 }
  0xa1   : > { %v7626_v63 = vld [vmem:[#allocation2 + $0x364] ss:$36 sps:$4 sm:$0xff]   ;;  %v7628_v0 = vld [vmem:[#allocation2 + $0x36c] ss:$36 sps:$4 sm:$0xff]   ;;  %916 = vst [vmem:[#allocation2 + $0x3f4] sm:$0xf] %v649_v59  ;;  %v663_v3 = vor.u32 %v662_v56, %v658_v52 }
  0xa2   : > { %286 = vst [vmem:[#allocation2 + $0x438] sm:$0xf] %v238_v61  ;;  %287 = vst [vmem:[#allocation2 + $0x45c] sm:$0xf] %v239_v62  ;;  %v654_v4 = vrot.slane %v653_v60, 4  ;;  %v3526_v13 = vld [vmem:[#allocation2 + $0x360] sm:$0xff] }
  0xa3   : > { %1259 = vst [vmem:[#allocation2 + $0x41c] sm:$0xf] %v1127_v2  ;;  %v335_v5 = vld [vmem:[%s8014_s28 + $0x7c] sm:$0xf]  ;;  %v336_v6 = vld [vmem:[%s8014_s28 + $0x80] sm:$0xf] }
  0xa4   : > { %v664_v8 = vrot.slane %v663_v3, 4  ;;  %v666_v9 = vshll.u32 %v335_v5, 16  ;;  %v670_v10 = vshrl.u32 %v335_v5, 16  ;;  %v676_v11 = vshll.u32 %v336_v6, 16  ;;  %v967_v12 = vld [vmem:[%s8014_s28 + $0x7c] sm:$0xf] }
  0xa5   : > { %5454 = vmatmul.mubr.bf16.gmra.mxu0 %v6948_v57  ;;  %v3531_v14 = vld [vmem:[#allocation2 + $0x384] sm:$0xff]  ;;  %v659_v15 = vsel %vm8057_vm5, %v654_v4, %v658_v52  ;;  %v680_v16 = vshrl.u32 %v336_v6, 16  ;;  %v968_v17 = vld [vmem:[%s8014_s28 + $0x80] sm:$0xf]  ;;  %5679 = vmatmul.mubr.bf16.gmra.mxu1 %v7625_v58  ;;  %v1129_v24 = vrot.slane %v967_v12, 5  ;;  %v3541_v52 = vld [vmem:[#allocation2 + $0x3cc] sm:$0xff] }
  0xa6   : > { %5461 = vmatprep.mubr.bf16.mxu0 %v7626_v63  ;;  %917 = vst [vmem:[#allocation2 + $0x418] sm:$0xf] %v659_v15  ;;  %v668_v19 = vrot.slane %v666_v9, 5  ;;  %v672_v20 = vrot.slane %v670_v10, 4  ;;  %v678_v21 = vrot.slane %v676_v11, 5  ;;  %v7657_v23 = vld [vmem:[%s10247_s1 + $0x160] sm:$0xff]   ;;  %5686 = vmatprep.mubr.bf16.mxu1 %v7628_v0  ;;  %v6957_v31 = vcombine.low %v3526_v13, %v3531_v14 }
  0xa7   : > { %v1308_v22 = vld [vmem:[%s8014_s28 + $0x84] sm:$0xf]  ;;  %v1132_v25 = vrot.slane %v968_v17, 5  ;;  %v1309_v26 = vld [vmem:[%s8014_s28 + $0x88] sm:$0xf]  ;;  %v682_v30 = vrot.slane %v680_v16, 4  ;;  %5806 = vmatpush2.bf16.msra.mxu0 %v7657_v23  ;;  %v1130_v32 = vsel %vm8044_vm4, %v1128_v18, %v1129_v24 }
  0xa8   : > { %1356 = vst [vmem:[#allocation2 + $0x444] sm:$0xf] %v1308_v22  ;;  %v7630_v27 = vld [vmem:[#allocation2 + $0x368] ss:$36 sps:$4 sm:$0xff]   ;;  %v669_v28 = vsel %vm8057_vm5, %v664_v8, %v668_v19  ;;  %v673_v29 = vor.u32 %v672_v20, %v668_v19  ;;  %1357 = vst [vmem:[#allocation2 + $0x468] sm:$0xf] %v1309_v26  ;;  %5807 = vmatprep.subr.bf16.mxu0 %v7901_v1 }
  0xa9   : > { %918 = vst [vmem:[#allocation2 + $0x43c] sm:$0xf] %v669_v28  ;;  %v1131_v33 = vrot.slane %v1129_v24, 4  ;;  %v240_v34 = vld [vmem:[%s8014_s28 + $0x80] sm:$0xf]  ;;  %v683_v39 = vor.u32 %v682_v30, %v678_v21  ;;  %v3536_v51 = vld [vmem:[#allocation2 + $0x3a8] sm:$0xff] }
  0xaa   : > { %v7633_v35 = vld [vmem:[#allocation2 + $0x3ac] ss:$36 sps:$4 sm:$0xff]   ;;  %v7635_v36 = vld [vmem:[#allocation2 + $0x3b4] ss:$36 sps:$4 sm:$0xff]   ;;  %v674_v37 = vrot.slane %v673_v29, 4  ;;  %v7658_v49 = vld [vmem:[%s10247_s1 + $0x1e0] sm:$0xff]   ;;  %v6966_v8 = vcombine.low %v3536_v51, %v3541_v52 }
  0xab   : > { %1260 = vst [vmem:[#allocation2 + $0x440] sm:$0xf] %v1130_v32  ;;  %288 = vst [vmem:[#allocation2 + $0x480] sm:$0xf] %v240_v34  ;;  %v1133_v40 = vsel %vm8044_vm4, %v1131_v33, %v1132_v25  ;;  %v241_v41 = vld [vmem:[%s8014_s28 + $0x84] sm:$0xf]  ;;  %6031 = vmatpush2.bf16.msra.mxu1 %v7658_v49 }
  0xac   : > { %v337_v42 = vld [vmem:[%s8014_s28 + $0x84] sm:$0xf]  ;;  %v338_v43 = vld [vmem:[%s8014_s28 + $0x88] sm:$0xf]  ;;  %v679_v44 = vsel %vm8057_vm5, %v674_v37, %v678_v21  ;;  %1261 = vst [vmem:[#allocation2 + $0x464] sm:$0xf] %v1133_v40  ;;  %6032 = vmatprep.subr.bf16.mxu1 %v7901_v1 }
  0xad   : > { %289 = vst [vmem:[#allocation2 + $0x4a4] sm:$0xf] %v241_v41  ;;  %v684_v45 = vrot.slane %v683_v39, 4  ;;  %v686_v46 = vshll.u32 %v337_v42, 16  ;;  %v690_v47 = vshrl.u32 %v337_v42, 16  ;;  %5462 = vmatmul.mubr.bf16.gmra.mxu0 %v6957_v31  ;;  %v696_v53 = vshll.u32 %v338_v43, 16  ;;  %5687 = vmatmul.mubr.bf16.gmra.mxu1 %v7630_v27 }
  0xae   : > { %v969_v48 = vld [vmem:[%s8014_s28 + $0x84] sm:$0xf]  ;;  %919 = vst [vmem:[#allocation2 + $0x460] sm:$0xf] %v679_v44  ;;  %v700_v54 = vshrl.u32 %v338_v43, 16  ;;  %v1134_v55 = vrot.slane %v1132_v25, 4  ;;  %5469 = vmatprep.mubr.bf16.mxu0 %v7633_v35  ;;  %5694 = vmatprep.mubr.bf16.mxu1 %v7635_v36 }
  0xaf   : > { %v688_v56 = vrot.slane %v686_v46, 5  ;;  %v692_v57 = vrot.slane %v690_v47, 4  ;;  %v970_v58 = vld [vmem:[%s8014_s28 + $0x88] sm:$0xf]  ;;  %v1135_v59 = vrot.slane %v969_v48, 5  ;;  %v7669_v60 = vld [vmem:[%s10247_s1 + $0x158] sm:$0xff]  }
  0xb0   : > { %v698_v61 = vrot.slane %v696_v53, 5  ;;  %v1138_v62 = vrot.slane %v970_v58, 5  ;;  %v1310_v63 = vld [vmem:[%s8014_s28 + $0x8c] sm:$0xf]  ;;  %v1311_v0 = vld [vmem:[%s8014_s28 + $0x90] sm:$0xf]  ;;  %5808 = vmatpush2.bf16.msra.mxu0 %v7669_v60 }
  0xb1   : > { %v7637_v2 = vld [vmem:[#allocation2 + $0x3b0] ss:$36 sps:$4 sm:$0xff]   ;;  %v689_v4 = vsel %vm8057_vm5, %v684_v45, %v688_v56  ;;  %v693_v5 = vor.u32 %v692_v57, %v688_v56  ;;  %v1136_v6 = vsel %vm8044_vm4, %v1134_v55, %v1135_v59  ;;  %v1137_v7 = vrot.slane %v1135_v59, 4  ;;  %1358 = vst [vmem:[#allocation2 + $0x48c] sm:$0xf] %v1310_v63  ;;  %5809 = vmatprep.subr.bf16.mxu0 %v7901_v1  ;;  %v7670_v25 = vld [vmem:[%s10247_s1 + $0x1d8] sm:$0xff]  }
  0xb2   : > { %v7640_v3 = vld [vmem:[#allocation2 + $0x3f4] ss:$36 sps:$4 sm:$0xff]   ;;  %1359 = vst [vmem:[#allocation2 + $0x4b0] sm:$0xf] %v1311_v0  ;;  %920 = vst [vmem:[#allocation2 + $0x484] sm:$0xf] %v689_v4  ;;  %6033 = vmatpush2.bf16.msra.mxu1 %v7670_v25 }
  0xb3   : > { %1262 = vst [vmem:[#allocation2 + $0x488] sm:$0xf] %v1136_v6  ;;  %v702_v9 = vrot.slane %v700_v54, 4  ;;  %v694_v10 = vrot.slane %v693_v5, 4  ;;  %v1139_v11 = vsel %vm8044_vm4, %v1137_v7, %v1138_v62  ;;  %v242_v12 = vld [vmem:[%s8014_s28 + $0x88] sm:$0xf]  ;;  %6034 = vmatprep.subr.bf16.mxu1 %v7901_v1 }
  0xb4   : > { %v243_v13 = vld [vmem:[%s8014_s28 + $0x8c] sm:$0xf]  ;;  %v7642_v14 = vld [vmem:[#allocation2 + $0x3fc] ss:$36 sps:$4 sm:$0xff]   ;;  %1263 = vst [vmem:[#allocation2 + $0x4ac] sm:$0xf] %v1139_v11 }
  0xb5   : > { %290 = vst [vmem:[#allocation2 + $0x4c8] sm:$0xf] %v242_v12  ;;  %291 = vst [vmem:[#allocation2 + $0x4ec] sm:$0xf] %v243_v13  ;;  %v703_v15 = vor.u32 %v702_v9, %v698_v61  ;;  %v3546_v16 = vld [vmem:[#allocation2 + $0x3f0] sm:$0xff]  ;;  %v699_v18 = vsel %vm8057_vm5, %v694_v10, %v698_v61  ;;  %v1140_v20 = vrot.slane %v1138_v62, 4  ;;  %5470 = vmatmul.mubr.bf16.gmra.mxu0 %v6966_v8  ;;  %5695 = vmatmul.mubr.bf16.gmra.mxu1 %v7637_v2 }
  0xb6   : > { %v3551_v17 = vld [vmem:[#allocation2 + $0x414] sm:$0xff]  ;;  %v339_v19 = vld [vmem:[%s8014_s28 + $0x8c] sm:$0xf]  ;;  %921 = vst [vmem:[#allocation2 + $0x4a8] sm:$0xf] %v699_v18  ;;  %5477 = vmatprep.mubr.bf16.mxu0 %v7640_v3  ;;  %5702 = vmatprep.mubr.bf16.mxu1 %v7642_v14  ;;  %v3561_v58 = vld [vmem:[#allocation2 + $0x45c] sm:$0xff] }
  0xb7   : > { %v340_v21 = vld [vmem:[%s8014_s28 + $0x90] sm:$0xf]  ;;  %v704_v22 = vrot.slane %v703_v15, 4  ;;  %v706_v23 = vshll.u32 %v339_v19, 16  ;;  %v710_v24 = vshrl.u32 %v339_v19, 16  ;;  %v6975_v35 = vcombine.low %v3546_v16, %v3551_v17  ;;  %v3556_v57 = vld [vmem:[#allocation2 + $0x438] sm:$0xff] }
  0xb8   : > { %v716_v26 = vshll.u32 %v340_v21, 16  ;;  %v720_v27 = vshrl.u32 %v340_v21, 16  ;;  %v971_v28 = vld [vmem:[%s8014_s28 + $0x8c] sm:$0xf]  ;;  %v972_v29 = vld [vmem:[%s8014_s28 + $0x90] sm:$0xf]  ;;  %v6984_v19 = vcombine.low %v3556_v57, %v3561_v58 }
  0xb9   : > { %v708_v30 = vrot.slane %v706_v23, 5  ;;  %v712_v31 = vrot.slane %v710_v24, 4  ;;  %v1141_v32 = vrot.slane %v971_v28, 5  ;;  %v1144_v33 = vrot.slane %v972_v29, 5  ;;  %v1312_v34 = vld [vmem:[%s8014_s28 + $0x94] sm:$0xf] }
  0xba   : > { %v7644_v36 = vld [vmem:[#allocation2 + $0x3f8] ss:$36 sps:$4 sm:$0xff]   ;;  %v718_v37 = vrot.slane %v716_v26, 5  ;;  %1360 = vst [vmem:[#allocation2 + $0x4d4] sm:$0xf] %v1312_v34  ;;  %v722_v40 = vrot.slane %v720_v27, 4 }
  0xbb   : > { %v1313_v39 = vld [vmem:[%s8014_s28 + $0x98] sm:$0xf]  ;;  %v709_v41 = vsel %vm8057_vm5, %v704_v22, %v708_v30  ;;  %v713_v42 = vor.u32 %v712_v31, %v708_v30  ;;  %v1142_v43 = vsel %vm8044_vm4, %v1140_v20, %v1141_v32  ;;  %v1143_v44 = vrot.slane %v1141_v32, 4  ;;  %v244_v45 = vld [vmem:[%s8014_s28 + $0x90] sm:$0xf]  ;;  %v7688_v18 = vld [vmem:[%s10247_s1 + $0x148] sm:$0xff]  }
  0xbc   : > { %1361 = vst [vmem:[#allocation2 + $0x4f8] sm:$0xf] %v1313_v39  ;;  %v245_v46 = vld [vmem:[%s8014_s28 + $0x94] sm:$0xf]  ;;  %v7645_v48 = vld [vmem:[#allocation2 + $0x43c] ss:$36 sps:$4 sm:$0xff]   ;;  %v723_v51 = vor.u32 %v722_v40, %v718_v37 }
  0xbd   : > { %v7676_v47 = vld [vmem:[%s10247_s1 + $0x150] sm:$0xff]   ;;  %v7647_v49 = vld [vmem:[#allocation2 + $0x444] ss:$36 sps:$4 sm:$0xff]   ;;  %922 = vst [vmem:[#allocation2 + $0x4cc] sm:$0xf] %v709_v41  ;;  %v714_v52 = vrot.slane %v713_v42, 4  ;;  %v1145_v53 = vsel %vm8044_vm4, %v1143_v44, %v1144_v33  ;;  %5478 = vmatmul.mubr.bf16.gmra.mxu0 %v6975_v35  ;;  %5703 = vmatmul.mubr.bf16.gmra.mxu1 %v7644_v36 }
  0xbe   : > { %1264 = vst [vmem:[#allocation2 + $0x4d0] sm:$0xf] %v1142_v43  ;;  %292 = vst [vmem:[#allocation2 + $0x510] sm:$0xf] %v244_v45  ;;  %v341_v54 = vld [vmem:[%s8014_s28 + $0x94] sm:$0xf]  ;;  %5810 = vmatpush2.bf16.msra.mxu0 %v7676_v47  ;;  %5485 = vmatprep.mubr.bf16.mxu0 %v7645_v48 }
  0xbf   : > { %293 = vst [vmem:[#allocation2 + $0x534] sm:$0xf] %v245_v46  ;;  %v342_v55 = vld [vmem:[%s8014_s28 + $0x98] sm:$0xf]  ;;  %v7677_v56 = vld [vmem:[%s10247_s1 + $0x1d0] sm:$0xff]   ;;  %v724_v59 = vrot.slane %v723_v51, 4  ;;  %5811 = vmatprep.subr.bf16.mxu0 %v7901_v1  ;;  %v719_v63 = vsel %vm8057_vm5, %v714_v52, %v718_v37  ;;  %5710 = vmatprep.mubr.bf16.mxu1 %v7647_v49 }
  0xc0   : > { %1265 = vst [vmem:[#allocation2 + $0x4f4] sm:$0xf] %v1145_v53  ;;  %v726_v60 = vshll.u32 %v341_v54, 16  ;;  %v730_v61 = vshrl.u32 %v341_v54, 16  ;;  %v1146_v62 = vrot.slane %v1144_v33, 4  ;;  %v736_v0 = vshll.u32 %v342_v55, 16  ;;  %6035 = vmatpush2.bf16.msra.mxu1 %v7677_v56 }
  0xc1   : > { %v740_v2 = vshrl.u32 %v342_v55, 16  ;;  %v973_v3 = vld [vmem:[%s8014_s28 + $0x94] sm:$0xf]  ;;  %v974_v4 = vld [vmem:[%s8014_s28 + $0x98] sm:$0xf]  ;;  %6036 = vmatprep.subr.bf16.mxu1 %v7901_v1  ;;  %v7689_v26 = vld [vmem:[%s10247_s1 + $0x1c8] sm:$0xff]  }
  0xc2   : > { %923 = vst [vmem:[#allocation2 + $0x4f0] sm:$0xf] %v719_v63  ;;  %v728_v5 = vrot.slane %v726_v60, 5  ;;  %v732_v6 = vrot.slane %v730_v61, 4  ;;  %v1147_v7 = vrot.slane %v973_v3, 5  ;;  %v1150_v8 = vrot.slane %v974_v4, 5  ;;  %5812 = vmatpush2.bf16.msra.mxu0 %v7688_v18 }
  0xc3   : > { %v1314_v9 = vld [vmem:[%s8014_s28 + $0x9c] sm:$0xf]  ;;  %v738_v10 = vrot.slane %v736_v0, 5  ;;  %v1315_v11 = vld [vmem:[%s8014_s28 + $0xa0] sm:$0xf]  ;;  %v742_v12 = vrot.slane %v740_v2, 4  ;;  %5813 = vmatprep.subr.bf16.mxu0 %v7901_v1 }
  0xc4   : > { %1362 = vst [vmem:[#allocation2 + $0x51c] sm:$0xf] %v1314_v9  ;;  %v7649_v13 = vld [vmem:[#allocation2 + $0x440] ss:$36 sps:$4 sm:$0xff]   ;;  %v729_v14 = vsel %vm8057_vm5, %v724_v59, %v728_v5  ;;  %v733_v15 = vor.u32 %v732_v6, %v728_v5  ;;  %v1148_v16 = vsel %vm8044_vm4, %v1146_v62, %v1147_v7  ;;  %v1149_v17 = vrot.slane %v1147_v7, 4  ;;  %6037 = vmatpush2.bf16.msra.mxu1 %v7689_v26  ;;  %v3576_v0 = vld [vmem:[#allocation2 + $0x4c8] sm:$0xff] }
  0xc5   : > { %1363 = vst [vmem:[#allocation2 + $0x540] sm:$0xf] %v1315_v11  ;;  %v7652_v20 = vld [vmem:[#allocation2 + $0x484] ss:$36 sps:$4 sm:$0xff]   ;;  %924 = vst [vmem:[#allocation2 + $0x514] sm:$0xf] %v729_v14  ;;  %v743_v21 = vor.u32 %v742_v12, %v738_v10  ;;  %5486 = vmatmul.mubr.bf16.gmra.mxu0 %v6984_v19  ;;  %6038 = vmatprep.subr.bf16.mxu1 %v7901_v1 }
  0xc6   : > { %1266 = vst [vmem:[#allocation2 + $0x518] sm:$0xf] %v1148_v16  ;;  %v734_v22 = vrot.slane %v733_v15, 4  ;;  %v1151_v23 = vsel %vm8044_vm4, %v1149_v17, %v1150_v8  ;;  %v246_v24 = vld [vmem:[%s8014_s28 + $0x98] sm:$0xf]  ;;  %v1152_v28 = vrot.slane %v1150_v8, 4  ;;  %5711 = vmatmul.mubr.bf16.gmra.mxu1 %v7649_v13  ;;  %5493 = vmatprep.mubr.bf16.mxu0 %v7652_v20 }
  0xc7   : > { %v247_v25 = vld [vmem:[%s8014_s28 + $0x9c] sm:$0xf]  ;;  %v7654_v27 = vld [vmem:[#allocation2 + $0x48c] ss:$36 sps:$4 sm:$0xff]   ;;  %1267 = vst [vmem:[#allocation2 + $0x53c] sm:$0xf] %v1151_v23 }
  0xc8   : > { %294 = vst [vmem:[#allocation2 + $0x558] sm:$0xf] %v246_v24  ;;  %295 = vst [vmem:[#allocation2 + $0x57c] sm:$0xf] %v247_v25  ;;  %v739_v29 = vsel %vm8057_vm5, %v734_v22, %v738_v10  ;;  %v343_v30 = vld [vmem:[%s8014_s28 + $0x9c] sm:$0xf]  ;;  %5718 = vmatprep.mubr.bf16.mxu1 %v7654_v27 }
  0xc9   : > { %v344_v31 = vld [vmem:[%s8014_s28 + $0xa0] sm:$0xf]  ;;  %v975_v32 = vld [vmem:[%s8014_s28 + $0x9c] sm:$0xf]  ;;  %v3571_v34 = vld [vmem:[#allocation2 + $0x4a4] sm:$0xff]  ;;  %v744_v35 = vrot.slane %v743_v21, 4 }
  0xca   : > { %v3566_v33 = vld [vmem:[#allocation2 + $0x480] sm:$0xff]  ;;  %925 = vst [vmem:[#allocation2 + $0x538] sm:$0xf] %v739_v29  ;;  %v746_v36 = vshll.u32 %v343_v30, 16  ;;  %v750_v37 = vshrl.u32 %v343_v30, 16  ;;  %v756_v39 = vshll.u32 %v344_v31, 16 }
  0xcb   : > { %v760_v40 = vshrl.u32 %v344_v31, 16  ;;  %v976_v41 = vld [vmem:[%s8014_s28 + $0xa0] sm:$0xf]  ;;  %v1153_v42 = vrot.slane %v975_v32, 5  ;;  %v1316_v43 = vld [vmem:[%s8014_s28 + $0xa4] sm:$0xf]  ;;  %v6993_v53 = vcombine.low %v3566_v33, %v3571_v34 }
  0xcc   : > { %v748_v44 = vrot.slane %v746_v36, 5  ;;  %v752_v45 = vrot.slane %v750_v37, 4  ;;  %v1156_v46 = vrot.slane %v976_v41, 5  ;;  %v1317_v47 = vld [vmem:[%s8014_s28 + $0xa8] sm:$0xf]  ;;  %v758_v49 = vrot.slane %v756_v39, 5 }
  0xcd   : > { %1364 = vst [vmem:[#allocation2 + $0x564] sm:$0xf] %v1316_v43  ;;  %v7656_v48 = vld [vmem:[#allocation2 + $0x488] ss:$36 sps:$4 sm:$0xff]   ;;  %v1154_v51 = vsel %vm8044_vm4, %v1152_v28, %v1153_v42  ;;  %v1155_v1 = vrot.slane %v1153_v42, 4  ;;  %v762_v52 = vrot.slane %v760_v40, 4  ;;  %5494 = vmatmul.mubr.bf16.gmra.mxu0 %v6993_v53 }
  0xce   : > { %1365 = vst [vmem:[#allocation2 + $0x588] sm:$0xf] %v1317_v47  ;;  %v749_v54 = vsel %vm8057_vm5, %v744_v35, %v748_v44  ;;  %v753_v55 = vor.u32 %v752_v45, %v748_v44  ;;  %1268 = vst [vmem:[#allocation2 + $0x560] sm:$0xf] %v1154_v51  ;;  %v7659_v56 = vld [vmem:[#allocation2 + $0x4cc] ss:$36 sps:$4 sm:$0xff]   ;;  %5719 = vmatmul.mubr.bf16.gmra.mxu1 %v7656_v48 }
  0xcf   : > { %v7661_v57 = vld [vmem:[#allocation2 + $0x4d4] ss:$36 sps:$4 sm:$0xff]   ;;  %926 = vst [vmem:[#allocation2 + $0x55c] sm:$0xf] %v749_v54  ;;  %v1157_v58 = vsel %vm8044_vm4, %v1155_v1, %v1156_v46  ;;  %v763_v59 = vor.u32 %v762_v52, %v758_v49  ;;  %v248_v61 = vld [vmem:[%s8014_s28 + $0xa0] sm:$0xf]  ;;  %5501 = vmatprep.mubr.bf16.mxu0 %v7659_v56 }
  0xd0   : > { %v754_v60 = vrot.slane %v753_v55, 4  ;;  %1269 = vst [vmem:[#allocation2 + $0x584] sm:$0xf] %v1157_v58  ;;  %v249_v62 = vld [vmem:[%s8014_s28 + $0xa4] sm:$0xf]  ;;  %v3581_v2 = vld [vmem:[#allocation2 + $0x4ec] sm:$0xff]  ;;  %5726 = vmatprep.mubr.bf16.mxu1 %v7661_v57 }
  0xd1   : > { %v7695_v63 = vld [vmem:[%s10247_s1 + $0x140] sm:$0xff]   ;;  %296 = vst [vmem:[#allocation2 + $0x5a0] sm:$0xf] %v248_v61  ;;  %297 = vst [vmem:[#allocation2 + $0x5c4] sm:$0xf] %v249_v62  ;;  %v764_v4 = vrot.slane %v763_v59, 4  ;;  %v7002_v26 = vcombine.low %v3576_v0, %v3581_v2 }
  0xd2   : > { %v345_v3 = vld [vmem:[%s8014_s28 + $0xa4] sm:$0xf]  ;;  %v1158_v5 = vrot.slane %v1156_v46, 4  ;;  %v759_v6 = vsel %vm8057_vm5, %v754_v60, %v758_v49  ;;  %v346_v7 = vld [vmem:[%s8014_s28 + $0xa8] sm:$0xf]  ;;  %5814 = vmatpush2.bf16.msra.mxu0 %v7695_v63  ;;  %v8555_v20 = vld [vmem:[%s10247_s1 + $0x238] sm:$0xff]  }
  0xd3   : > { %v766_v8 = vshll.u32 %v345_v3, 16  ;;  %v770_v9 = vshrl.u32 %v345_v3, 16  ;;  %v977_v10 = vld [vmem:[%s8014_s28 + $0xa4] sm:$0xf]  ;;  %927 = vst [vmem:[#allocation2 + $0x580] sm:$0xf] %v759_v6  ;;  %7410 = vmatprep.subr.bf16.mxu0 %v8555_v20 }
  0xd4   : > { %v776_v11 = vshll.u32 %v346_v7, 16  ;;  %v780_v12 = vshrl.u32 %v346_v7, 16  ;;  %v978_v13 = vld [vmem:[%s8014_s28 + $0xa8] sm:$0xf]  ;;  %v1159_v14 = vrot.slane %v977_v10, 5  ;;  %v7696_v15 = vld [vmem:[%s10247_s1 + $0x1c0] sm:$0xff]  }
  0xd5   : > { %v768_v16 = vrot.slane %v766_v8, 5  ;;  %v772_v17 = vrot.slane %v770_v9, 4  ;;  %v1162_v18 = vrot.slane %v978_v13, 5  ;;  %v1318_v19 = vld [vmem:[%s8014_s28 + $0xac] sm:$0xf]  ;;  %6039 = vmatpush2.bf16.msra.mxu1 %v7696_v15  ;;  %5502 = vmatmul.mubr.bf16.gmra.mxu0 %v7002_v26  ;;  %v3586_v45 = vld [vmem:[#allocation2 + $0x510] sm:$0xff] }
  0xd6   : > { %v778_v21 = vrot.slane %v776_v11, 5  ;;  %v1160_v22 = vsel %vm8044_vm4, %v1158_v5, %v1159_v14  ;;  %v1161_v23 = vrot.slane %v1159_v14, 4  ;;  %v1319_v24 = vld [vmem:[%s8014_s28 + $0xb0] sm:$0xf]  ;;  %1366 = vst [vmem:[#allocation2 + $0x5ac] sm:$0xf] %v1318_v19  ;;  %7474 = vmatprep.subr.bf16.mxu1 %v8555_v20 }
  0xd7   : > { %v782_v25 = vrot.slane %v780_v12, 4  ;;  %v7663_v27 = vld [vmem:[#allocation2 + $0x4d0] ss:$36 sps:$4 sm:$0xff]   ;;  %v769_v28 = vsel %vm8057_vm5, %v764_v4, %v768_v16  ;;  %v773_v29 = vor.u32 %v772_v17, %v768_v16  ;;  %1270 = vst [vmem:[#allocation2 + $0x5a8] sm:$0xf] %v1160_v22  ;;  %v1164_v49 = vrot.slane %v1162_v18, 4 }
  0xd8   : > { %1367 = vst [vmem:[#allocation2 + $0x5d0] sm:$0xf] %v1319_v24  ;;  %v250_v30 = vld [vmem:[%s8014_s28 + $0xa8] sm:$0xf]  ;;  %v251_v31 = vld [vmem:[%s8014_s28 + $0xac] sm:$0xf]  ;;  %v1163_v34 = vsel %vm8044_vm4, %v1161_v23, %v1162_v18  ;;  %5727 = vmatmul.mubr.bf16.gmra.mxu1 %v7663_v27 }
  0xd9   : > { %v7664_v32 = vld [vmem:[#allocation2 + $0x514] ss:$36 sps:$4 sm:$0xff]   ;;  %v7666_v33 = vld [vmem:[#allocation2 + $0x51c] ss:$36 sps:$4 sm:$0xff]   ;;  %928 = vst [vmem:[#allocation2 + $0x5a4] sm:$0xf] %v769_v28  ;;  %v783_v35 = vor.u32 %v782_v25, %v778_v21 }
  0xda   : > { %298 = vst [vmem:[#allocation2 + $0x5e8] sm:$0xf] %v250_v30  ;;  %299 = vst [vmem:[#allocation2 + $0x60c] sm:$0xf] %v251_v31  ;;  %v774_v36 = vrot.slane %v773_v29, 4  ;;  %v3591_v51 = vld [vmem:[#allocation2 + $0x534] sm:$0xff]  ;;  %5509 = vmatprep.mubr.bf16.mxu0 %v7664_v32  ;;  %5734 = vmatprep.mubr.bf16.mxu1 %v7666_v33 }
  0xdb   : > { %1271 = vst [vmem:[#allocation2 + $0x5cc] sm:$0xf] %v1163_v34  ;;  %v347_v37 = vld [vmem:[%s8014_s28 + $0xac] sm:$0xf]  ;;  %v348_v39 = vld [vmem:[%s8014_s28 + $0xb0] sm:$0xf]  ;;  %v7011_v62 = vcombine.low %v3586_v45, %v3591_v51 }
  0xdc   : > { %v784_v40 = vrot.slane %v783_v35, 4  ;;  %v786_v41 = vshll.u32 %v347_v37, 16  ;;  %v790_v42 = vshrl.u32 %v347_v37, 16  ;;  %v796_v43 = vshll.u32 %v348_v39, 16  ;;  %v979_v44 = vld [vmem:[%s8014_s28 + $0xac] sm:$0xf] }
  0xdd   : > { %v779_v46 = vsel %vm8057_vm5, %v774_v36, %v778_v21  ;;  %v800_v47 = vshrl.u32 %v348_v39, 16  ;;  %v980_v48 = vld [vmem:[%s8014_s28 + $0xb0] sm:$0xf]  ;;  %v1320_v54 = vld [vmem:[%s8014_s28 + $0xb4] sm:$0xf]  ;;  %v1165_v55 = vrot.slane %v979_v44, 5  ;;  %5510 = vmatmul.mubr.bf16.gmra.mxu0 %v7011_v62 }
  0xde   : > { %929 = vst [vmem:[#allocation2 + $0x5c8] sm:$0xf] %v779_v46  ;;  %v788_v1 = vrot.slane %v786_v41, 5  ;;  %v792_v52 = vrot.slane %v790_v42, 4  ;;  %v798_v53 = vrot.slane %v796_v43, 5  ;;  %v1168_v56 = vrot.slane %v980_v48, 5 }
  0xdf   : > { %v1321_v57 = vld [vmem:[%s8014_s28 + $0xb8] sm:$0xf]  ;;  %1368 = vst [vmem:[#allocation2 + $0x5f4] sm:$0xf] %v1320_v54  ;;  %v802_v61 = vrot.slane %v800_v47, 4  ;;  %v1166_v63 = vsel %vm8044_vm4, %v1164_v49, %v1165_v55  ;;  %v1167_v0 = vrot.slane %v1165_v55, 4 }
  0xe0   : > { %v7668_v58 = vld [vmem:[#allocation2 + $0x518] ss:$36 sps:$4 sm:$0xff]   ;;  %v789_v59 = vsel %vm8057_vm5, %v784_v40, %v788_v1  ;;  %v793_v60 = vor.u32 %v792_v52, %v788_v1  ;;  %1369 = vst [vmem:[#allocation2 + $0x618] sm:$0xf] %v1321_v57  ;;  %v252_v2 = vld [vmem:[%s8014_s28 + $0xb0] sm:$0xf] }
  0xe1   : > { %930 = vst [vmem:[#allocation2 + $0x5ec] sm:$0xf] %v789_v59  ;;  %v7671_v3 = vld [vmem:[#allocation2 + $0x55c] ss:$36 sps:$4 sm:$0xff]   ;;  %v7673_v4 = vld [vmem:[#allocation2 + $0x564] ss:$36 sps:$4 sm:$0xff]   ;;  %v803_v6 = vor.u32 %v802_v61, %v798_v53  ;;  %v1169_v7 = vsel %vm8044_vm4, %v1167_v0, %v1168_v56  ;;  %5735 = vmatmul.mubr.bf16.gmra.mxu1 %v7668_v58 }
  0xe2   : > { %v794_v5 = vrot.slane %v793_v60, 4  ;;  %1272 = vst [vmem:[#allocation2 + $0x5f0] sm:$0xf] %v1166_v63  ;;  %300 = vst [vmem:[#allocation2 + $0x630] sm:$0xf] %v252_v2  ;;  %v3596_v16 = vld [vmem:[#allocation2 + $0x558] sm:$0xff]  ;;  %5517 = vmatprep.mubr.bf16.mxu0 %v7671_v3  ;;  %5742 = vmatprep.mubr.bf16.mxu1 %v7673_v4 }
  0xe3   : > { %v253_v8 = vld [vmem:[%s8014_s28 + $0xb4] sm:$0xf]  ;;  %v350_v10 = vld [vmem:[%s8014_s28 + $0xb8] sm:$0xf]  ;;  %1273 = vst [vmem:[#allocation2 + $0x614] sm:$0xf] %v1169_v7 }
  0xe4   : > { %v349_v9 = vld [vmem:[%s8014_s28 + $0xb4] sm:$0xf]  ;;  %v799_v11 = vsel %vm8057_vm5, %v794_v5, %v798_v53  ;;  %301 = vst [vmem:[#allocation2 + $0x654] sm:$0xf] %v253_v8  ;;  %v804_v12 = vrot.slane %v803_v6, 4  ;;  %v816_v17 = vshll.u32 %v350_v10, 16 }
  0xe5   : > { %v806_v13 = vshll.u32 %v349_v9, 16  ;;  %v810_v14 = vshrl.u32 %v349_v9, 16  ;;  %v981_v15 = vld [vmem:[%s8014_s28 + $0xb4] sm:$0xf]  ;;  %931 = vst [vmem:[#allocation2 + $0x610] sm:$0xf] %v799_v11 }
  0xe6   : > { %v820_v18 = vshrl.u32 %v350_v10, 16  ;;  %v1170_v19 = vrot.slane %v1168_v56, 4  ;;  %v3601_v21 = vld [vmem:[#allocation2 + $0x57c] sm:$0xff]  ;;  %v982_v24 = vld [vmem:[%s8014_s28 + $0xb8] sm:$0xf]  ;;  %v1171_v25 = vrot.slane %v981_v15, 5 }
  0xe7   : > { %v808_v22 = vrot.slane %v806_v13, 5  ;;  %v812_v23 = vrot.slane %v810_v14, 4  ;;  %v818_v26 = vrot.slane %v816_v17, 5  ;;  %v1174_v27 = vrot.slane %v982_v24, 5  ;;  %v1322_v28 = vld [vmem:[%s8014_s28 + $0xbc] sm:$0xf] }
  0xe8   : > { %v1323_v29 = vld [vmem:[%s8014_s28 + $0xc0] sm:$0xf]  ;;  %v7678_v31 = vld [vmem:[#allocation2 + $0x5a4] ss:$36 sps:$4 sm:$0xff]   ;;  %v1172_v34 = vsel %vm8044_vm4, %v1170_v19, %v1171_v25  ;;  %v1173_v35 = vrot.slane %v1171_v25, 4  ;;  %v7020_v36 = vcombine.low %v3596_v16, %v3601_v21  ;;  %v822_v37 = vrot.slane %v820_v18, 4 }
  0xe9   : > { %v7675_v30 = vld [vmem:[#allocation2 + $0x560] ss:$36 sps:$4 sm:$0xff]   ;;  %v809_v32 = vsel %vm8057_vm5, %v804_v12, %v808_v22  ;;  %v813_v33 = vor.u32 %v812_v23, %v808_v22  ;;  %1370 = vst [vmem:[#allocation2 + $0x63c] sm:$0xf] %v1322_v28  ;;  %1371 = vst [vmem:[#allocation2 + $0x660] sm:$0xf] %v1323_v29 }
  0xea   : > { %932 = vst [vmem:[#allocation2 + $0x634] sm:$0xf] %v809_v32  ;;  %1274 = vst [vmem:[#allocation2 + $0x638] sm:$0xf] %v1172_v34  ;;  %v1175_v40 = vsel %vm8044_vm4, %v1173_v35, %v1174_v27  ;;  %v254_v41 = vld [vmem:[%s8014_s28 + $0xb8] sm:$0xf]  ;;  %v823_v44 = vor.u32 %v822_v37, %v818_v26  ;;  %5518 = vmatmul.mubr.bf16.gmra.mxu0 %v7020_v36  ;;  %5743 = vmatmul.mubr.bf16.gmra.mxu1 %v7675_v30 }
  0xeb   : > { %v814_v39 = vrot.slane %v813_v33, 4  ;;  %v255_v42 = vld [vmem:[%s8014_s28 + $0xbc] sm:$0xf]  ;;  %v7680_v43 = vld [vmem:[#allocation2 + $0x5ac] ss:$36 sps:$4 sm:$0xff]   ;;  %v3606_v45 = vld [vmem:[#allocation2 + $0x5a0] sm:$0xff]  ;;  %5525 = vmatprep.mubr.bf16.mxu0 %v7678_v31 }
  0xec   : > { %1275 = vst [vmem:[#allocation2 + $0x65c] sm:$0xf] %v1175_v40  ;;  %302 = vst [vmem:[#allocation2 + $0x678] sm:$0xf] %v254_v41  ;;  %v3611_v46 = vld [vmem:[#allocation2 + $0x5c4] sm:$0xff]  ;;  %v824_v51 = vrot.slane %v823_v44, 4  ;;  %5750 = vmatprep.mubr.bf16.mxu1 %v7680_v43 }
  0xed   : > { %303 = vst [vmem:[#allocation2 + $0x69c] sm:$0xf] %v255_v42  ;;  %v819_v47 = vsel %vm8057_vm5, %v814_v39, %v818_v26  ;;  %v351_v48 = vld [vmem:[%s8014_s28 + $0xbc] sm:$0xf]  ;;  %v352_v49 = vld [vmem:[%s8014_s28 + $0xc0] sm:$0x1]  ;;  %v7029_v62 = vcombine.low %v3606_v45, %v3611_v46 }
  0xee   : > { %933 = vst [vmem:[#allocation2 + $0x658] sm:$0xf] %v819_v47  ;;  %v826_v1 = vshll.u32 %v351_v48, 16  ;;  %v830_v52 = vshrl.u32 %v351_v48, 16  ;;  %v1176_v53 = vrot.slane %v1174_v27, 4  ;;  %v836_v54 = vshll.u32 %v352_v49, 16 }
  0xef   : > { %v983_v55 = vld [vmem:[%s8014_s28 + $0xbc] sm:$0xf]  ;;  %v984_v56 = vld [vmem:[%s8014_s28 + $0xc0] sm:$0x1]  ;;  %v1324_v61 = vld [vmem:[%s8014_s28 + $0xc4] sm:$0xf] }
  0xf0   : > { %v828_v57 = vrot.slane %v826_v1, 5  ;;  %v832_v58 = vrot.slane %v830_v52, 4  ;;  %v1177_v59 = vrot.slane %v983_v55, 5  ;;  %v1180_v60 = vrot.slane %v984_v56, 5  ;;  %v7682_v63 = vld [vmem:[#allocation2 + $0x5a8] ss:$36 sps:$4 sm:$0xff]  }
  0xf1   : > { %v838_v0 = vrot.slane %v836_v54, 5  ;;  %v1325_v2 = vld [vmem:[%s8014_s28 + $0xc8] sm:$0xf]  ;;  %1372 = vst [vmem:[#allocation2 + $0x684] sm:$0xf] %v1324_v61  ;;  %v3621_v18 = vld [vmem:[#allocation2 + $0x60c] sm:$0xff] }
  0xf2   : > { %v829_v3 = vsel %vm8057_vm5, %v824_v51, %v828_v57  ;;  %v833_v4 = vor.u32 %v832_v58, %v828_v57  ;;  %v1178_v5 = vsel %vm8044_vm4, %v1176_v53, %v1177_v59  ;;  %v1179_v6 = vrot.slane %v1177_v59, 4  ;;  %1373 = vst [vmem:[#allocation2 + $0x6a8] sm:$0xf] %v1325_v2  ;;  %v1374_v7 = vld [vmem:[%s8014_s28 + $0xc] sm:$0xf]  ;;  %5526 = vmatmul.mubr.bf16.gmra.mxu0 %v7029_v62  ;;  %v8633_v44 = vld [vmem:[#allocation2 + $0x630] sm:$0xff] }
  0xf3   : > { %v1375_v8 = vld [vmem:[%s8014_s28 + $0x10] sm:$0xf]  ;;  %v7685_v10 = vld [vmem:[#allocation2 + $0x5f4] ss:$36 sps:$4 sm:$0xff]   ;;  %934 = vst [vmem:[#allocation2 + $0x67c] sm:$0xf] %v829_v3  ;;  %5751 = vmatmul.mubr.bf16.gmra.mxu1 %v7682_v63 }
  0xf4   : > { %v7683_v9 = vld [vmem:[#allocation2 + $0x5ec] ss:$36 sps:$4 sm:$0xff]   ;;  %1276 = vst [vmem:[#allocation2 + $0x680] sm:$0xf] %v1178_v5  ;;  %v1424_v11 = vshrl.u32 %v1374_v7, 16  ;;  %v834_v12 = vrot.slane %v833_v4, 4  ;;  %v1181_v13 = vsel %vm8044_vm4, %v1179_v6, %v1180_v60  ;;  %5758 = vmatprep.mubr.bf16.mxu1 %v7685_v10 }
  0xf5   : > { %v8617_v14 = vld [vmem:[%s8014_s28 + $0x14] sm:$0xf]  ;;  %v1427_v15 = vshll.u32 %v1374_v7, 16  ;;  %v1433_v16 = vshll.u32 %v1375_v8, 16  ;;  %v3616_v17 = vld [vmem:[#allocation2 + $0x5e8] sm:$0xff]  ;;  %v1437_v21 = vshrl.u32 %v1375_v8, 16  ;;  %5533 = vmatprep.mubr.bf16.mxu0 %v7683_v9 }
  0xf6   : > { %1277 = vst [vmem:[#allocation2 + $0x6a4] sm:$0xf] %v1181_v13  ;;  %v1426_v19 = vrot.slane %v1424_v11, 4  ;;  %v1443_v22 = vshll.u32 %v8617_v14, 16  ;;  %v839_v23 = vsel %vm8057_vm5, %v834_v12, %v838_v0  ;;  %v2003_v26 = vld [vmem:[%s8014_s28 + $0xc] sm:$0xe]  ;;  %v7038_v36 = vcombine.low %v3616_v17, %v3621_v18 }
  0xf7   : > { %v1429_v24 = vrot.slane %v1427_v15, 5  ;;  %v1435_v25 = vrot.slane %v1433_v16, 5  ;;  %v2004_v27 = vld [vmem:[%s8014_s28 + $0x10] sm:$0xf]  ;;  %935 = vst [vmem:[#allocation2 + $0x6a0] sm:$0xf] %v839_v23 }
  0xf8   : > { %v1439_v28 = vrot.slane %v1437_v21, 4  ;;  %v8625_v29 = vld [vmem:[%s8014_s28 + $0x14] sm:$0xf]  ;;  %v6846_v30 = vrot.slane %v2003_v26, 9  ;;  %v2103_v32 = vrot.slane %v2004_v27, 5  ;;  %v1445_v40 = vrot.slane %v1443_v22, 5 }
  0xf9   : > { %v1430_v31 = vor.u32 %v1429_v24, %v1426_v19  ;;  %v2106_v33 = vrot.slane %v8625_v29, 5  ;;  %v2342_v34 = vld [vmem:[%s8014_s28 + $0x18] sm:$0xf]  ;;  %v2343_v35 = vld [vmem:[%s8014_s28 + $0x1c] sm:$0xf]  ;;  %v1447_v41 = vshrl.u32 %v8617_v14, 16 }
  0xfa   : > { %v7687_v37 = vld [vmem:[#allocation2 + $0x5f0] ss:$36 sps:$4 sm:$0xff]   ;;  %v1440_v39 = vor.u32 %v1439_v28, %v1435_v25  ;;  %2390 = vst [vmem:[#allocation2 + $0x18] sm:$0xf] %v2342_v34  ;;  %2391 = vst [vmem:[#allocation2 + $0x3c] sm:$0xf] %v2343_v35  ;;  %v2104_v47 = vsel %vm8044_vm4, %v6846_v30, %v2103_v32  ;;  %5534 = vmatmul.mubr.bf16.gmra.mxu0 %v7038_v36 }
  0xfb   : > { %v2438_v42 = vld [vmem:[%s8014_s28 + $0x18] sm:$0xf]  ;;  %v2439_v43 = vld [vmem:[%s8014_s28 + $0x1c] sm:$0xf]  ;;  %v1431_v46 = vrot.slane %v1430_v31, 4  ;;  %v2105_v48 = vrot.slane %v2103_v32, 4  ;;  %5759 = vmatmul.mubr.bf16.gmra.mxu1 %v7687_v37 }
  0xfc   : > { %v7690_v45 = vld [vmem:[#allocation2 + $0x634] ss:$36 sps:$4 sm:$0xff]   ;;  %v2488_v49 = vshrl.u32 %v2438_v42, 16  ;;  %v1441_v51 = vrot.slane %v1440_v39, 4  ;;  %2294 = vst [vmem:[#allocation2 + $0x14] sm:$0xf] %v2104_v47 }
  0xfd   : > { %v2440_v1 = vld [vmem:[%s8014_s28 + $0x20] sm:$0xf]  ;;  %v2491_v52 = vshll.u32 %v2438_v42, 16  ;;  %v2497_v53 = vshll.u32 %v2439_v43, 16  ;;  %v2501_v54 = vshrl.u32 %v2439_v43, 16  ;;  %v3631_v55 = vld [vmem:[#allocation2 + $0x654] sm:$0xff]  ;;  %v1436_v57 = vsel %vm8057_vm5, %v1431_v46, %v1435_v25  ;;  %5541 = vmatprep.mubr.bf16.mxu0 %v7690_v45 }
  0xfe   : > { %v7692_v56 = vld [vmem:[#allocation2 + $0x63c] ss:$36 sps:$4 sm:$0xff]   ;;  %v2107_v58 = vsel %vm8044_vm4, %v2105_v48, %v2106_v33  ;;  %v2490_v59 = vrot.slane %v2488_v49, 4  ;;  %v1446_v60 = vsel %vm8057_vm5, %v1441_v51, %v1445_v40  ;;  %1955 = vst [vmem:[#allocation2 + $0x10] sm:$0xf] %v1436_v57  ;;  %v2507_v0 = vshll.u32 %v2440_v1, 16 }
  0xff   : > { %2295 = vst [vmem:[#allocation2 + $0x38] sm:$0xf] %v2107_v58  ;;  %v2493_v61 = vrot.slane %v2491_v52, 5  ;;  %v2499_v62 = vrot.slane %v2497_v53, 5  ;;  %v2503_v63 = vrot.slane %v2501_v54, 4  ;;  %v2511_v2 = vshrl.u32 %v2440_v1, 16  ;;  %5766 = vmatprep.mubr.bf16.mxu1 %v7692_v56 }
 0x100   : > { %1956 = vst [vmem:[#allocation2 + $0x34] sm:$0xf] %v1446_v60  ;;  %v1449_v3 = vrot.slane %v1447_v41, 4  ;;  %v7047_v4 = vcombine.low %v8633_v44, %v3631_v55  ;;  %v1377_v7 = vld [vmem:[%s8014_s28 + $0x18] sm:$0xf]  ;;  %v2509_v9 = vrot.slane %v2507_v0, 5 }
 0x101   : > { %v2494_v5 = vor.u32 %v2493_v61, %v2490_v59  ;;  %v2504_v6 = vor.u32 %v2503_v63, %v2499_v62  ;;  %v1378_v8 = vld [vmem:[%s8014_s28 + $0x1c] sm:$0xf]  ;;  %v1453_v11 = vshll.u32 %v1377_v7, 16  ;;  %v1457_v12 = vshrl.u32 %v1377_v7, 16  ;;  %v2006_v13 = vld [vmem:[%s8014_s28 + $0x18] sm:$0xf] }
 0x102   : > { %v1450_v10 = vor.u32 %v1449_v3, %v1445_v40  ;;  %v7694_v14 = vld [vmem:[#allocation2 + $0x638] ss:$36 sps:$4 sm:$0xff]   ;;  %v1463_v18 = vshll.u32 %v1378_v8, 16  ;;  %v1467_v19 = vshrl.u32 %v1378_v8, 16  ;;  %v7699_v22 = vld [vmem:[#allocation2 + $0x684] ss:$36 sps:$4 sm:$0xff]   ;;  %5542 = vmatmul.mubr.bf16.gmra.mxu0 %v7047_v4 }
 0x103   : > { %v7697_v15 = vld [vmem:[#allocation2 + $0x67c] ss:$36 sps:$4 sm:$0xff]   ;;  %v2495_v16 = vrot.slane %v2494_v5, 4  ;;  %v2505_v17 = vrot.slane %v2504_v6, 4  ;;  %v1455_v24 = vrot.slane %v1453_v11, 5  ;;  %v1459_v25 = vrot.slane %v1457_v12, 4  ;;  %5767 = vmatmul.mubr.bf16.gmra.mxu1 %v7694_v14 }
 0x104   : > { %v8651_v21 = vld [vmem:[%s8014_s28 + $0x1c] sm:$0xf]  ;;  %v1451_v23 = vrot.slane %v1450_v10, 4  ;;  %v2108_v26 = vrot.slane %v2106_v33, 4  ;;  %v2344_v27 = vld [vmem:[%s8014_s28 + $0x20] sm:$0xf]  ;;  %5549 = vmatprep.mubr.bf16.mxu0 %v7697_v15  ;;  %5774 = vmatprep.mubr.bf16.mxu1 %v7699_v22 }
 0x105   : > { %v2500_v28 = vsel %vm8057_vm5, %v2495_v16, %v2499_v62  ;;  %v2510_v30 = vsel %vm8057_vm5, %v2505_v17, %v2509_v9  ;;  %v1465_v31 = vrot.slane %v1463_v18, 5  ;;  %v2109_v32 = vrot.slane %v2006_v13, 5  ;;  %v2345_v34 = vld [vmem:[%s8014_s28 + $0x24] sm:$0xf]  ;;  %2392 = vst [vmem:[#allocation2 + $0x60] sm:$0xf] %v2344_v27 }
 0x106   : > { %v2441_v35 = vld [vmem:[%s8014_s28 + $0x24] sm:$0xf]  ;;  %3019 = vst [vmem:[#allocation2 + $0x1c] sm:$0xf] %v2500_v28  ;;  %3020 = vst [vmem:[#allocation2 + $0x40] sm:$0xf] %v2510_v30  ;;  %v1456_v36 = vsel %vm8057_vm5, %v1451_v23, %v1455_v24  ;;  %v1460_v29 = vor.u32 %v1459_v25, %v1455_v24 }
 0x107   : > { %v2112_v33 = vrot.slane %v8651_v21, 5  ;;  %2393 = vst [vmem:[#allocation2 + $0x84] sm:$0xf] %v2345_v34  ;;  %v2442_v37 = vld [vmem:[%s8014_s28 + $0x28] sm:$0xf]  ;;  %v2513_v39 = vrot.slane %v2511_v2, 4  ;;  %v2110_v41 = vsel %vm8044_vm4, %v2108_v26, %v2109_v32 }
 0x108   : > { %v3636_v40 = vld [vmem:[#allocation2 + $0x678] sm:$0xff]  ;;  %1957 = vst [vmem:[#allocation2 + $0x58] sm:$0xf] %v1456_v36  ;;  %v2111_v42 = vrot.slane %v2109_v32, 4  ;;  %v1461_v44 = vrot.slane %v1460_v29, 4  ;;  %v2517_v46 = vshll.u32 %v2441_v35, 16 }
 0x109   : > { %v3641_v43 = vld [vmem:[#allocation2 + $0x69c] sm:$0xff]  ;;  %2296 = vst [vmem:[#allocation2 + $0x5c] sm:$0xf] %v2110_v41  ;;  %v2514_v45 = vor.u32 %v2513_v39, %v2509_v9  ;;  %v2521_v47 = vshrl.u32 %v2441_v35, 16  ;;  %v2527_v51 = vshll.u32 %v2442_v37, 16  ;;  %v2531_v1 = vshrl.u32 %v2442_v37, 16 }
 0x10a   : > { %v1379_v48 = vld [vmem:[%s8014_s28 + $0x20] sm:$0xf]  ;;  %v2113_v49 = vsel %vm8044_vm4, %v2111_v42, %v2112_v33  ;;  %v8672_v52 = vld [vmem:[%s8014_s28 + $0x24] sm:$0xf]  ;;  %v1469_v53 = vrot.slane %v1467_v19, 4  ;;  %v1466_v54 = vsel %vm8057_vm5, %v1461_v44, %v1465_v31  ;;  %v2519_v56 = vrot.slane %v2517_v46, 5 }
 0x10b   : > { %2297 = vst [vmem:[#allocation2 + $0x80] sm:$0xf] %v2113_v49  ;;  %v2515_v55 = vrot.slane %v2514_v45, 4  ;;  %v2523_v57 = vrot.slane %v2521_v47, 4  ;;  %v7056_v58 = vcombine.low %v3636_v40, %v3641_v43  ;;  %v7701_v59 = vld [vmem:[#allocation2 + $0x680] ss:$36 sps:$4 sm:$0xff]  }
 0x10c   : > { %v7704_v60 = vld [vmem:[#allocation2 + $0x14] ss:$36 sps:$4 sm:$0xff]   ;;  %1958 = vst [vmem:[#allocation2 + $0x7c] sm:$0xf] %v1466_v54  ;;  %v1470_v61 = vor.u32 %v1469_v53, %v1465_v31  ;;  %v1473_v62 = vshll.u32 %v1379_v48, 16  ;;  %v1477_v63 = vshrl.u32 %v1379_v48, 16  ;;  %5775 = vmatmul.mubr.bf16.gmra.mxu1 %v7701_v59 }
 0x10d   : > { %v2008_v0 = vld [vmem:[%s8014_s28 + $0x20] sm:$0xf]  ;;  %v8678_v2 = vld [vmem:[%s8014_s28 + $0x24] sm:$0xf]  ;;  %v2520_v3 = vsel %vm8057_vm5, %v2515_v55, %v2519_v56  ;;  %v2524_v4 = vor.u32 %v2523_v57, %v2519_v56  ;;  %v2529_v5 = vrot.slane %v2527_v51, 5  ;;  %v1483_v6 = vshll.u32 %v8672_v52, 16  ;;  %5550 = vmatmul.mubr.bf16.gmra.mxu0 %v7056_v58 }
 0x10e   : > { %v2346_v7 = vld [vmem:[%s8014_s28 + $0x28] sm:$0xf]  ;;  %v2347_v8 = vld [vmem:[%s8014_s28 + $0x2c] sm:$0xf]  ;;  %3021 = vst [vmem:[#allocation2 + $0x64] sm:$0xf] %v2520_v3  ;;  %5815 = vmatprep.mubr.bf16.mxu0 %v7704_v60  ;;  %v5367_v3 = vpop.f32.mrf.mxu0 }
 0x10f   : > { %v1471_v9 = vrot.slane %v1470_v61, 4  ;;  %v1475_v10 = vrot.slane %v1473_v62, 5  ;;  %v1487_v11 = vshrl.u32 %v8672_v52, 16  ;;  %2394 = vst [vmem:[#allocation2 + $0xa8] sm:$0xf] %v2346_v7  ;;  %v2525_v13 = vrot.slane %v2524_v4, 4 }
 0x110   : > { %2395 = vst [vmem:[#allocation2 + $0xcc] sm:$0xf] %v2347_v8  ;;  %v7707_v12 = vld [vmem:[#allocation2 + $0x1c] ss:$36 sps:$4 sm:$0xff]   ;;  %v1479_v14 = vrot.slane %v1477_v63, 4  ;;  %v8686_v15 = vrot.slane %v1483_v6, 5 }
 0x111   : > { %v2114_v16 = vrot.slane %v2112_v33, 4  ;;  %v1476_v17 = vsel %vm8057_vm5, %v1471_v9, %v1475_v10  ;;  %v2115_v18 = vrot.slane %v2008_v0, 5  ;;  %v2118_v19 = vrot.slane %v8678_v2, 5  ;;  %v2443_v21 = vld [vmem:[%s8014_s28 + $0x2c] sm:$0xf]  ;;  %6040 = vmatprep.mubr.bf16.mxu1 %v7707_v12  ;;  %v7724_v2 = vld [vmem:[%s10247_s1 + $0x230] sm:$0xff]  }
 0x112   : > { %v2533_v22 = vrot.slane %v2531_v1, 4  ;;  %v2530_v23 = vsel %vm8057_vm5, %v2525_v13, %v2529_v5  ;;  %v1480_v24 = vor.u32 %v1479_v14, %v1475_v10  ;;  %1959 = vst [vmem:[#allocation2 + $0xa0] sm:$0xf] %v1476_v17  ;;  %v8695_v25 = vld [vmem:[%s8014_s28 + $0x30] sm:$0xf]  ;;  %v2537_v26 = vshll.u32 %v2443_v21, 16  ;;  %v5592_v10 = vpop.f32.mrf.mxu1 }
 0x113   : > { %v2541_v27 = vshrl.u32 %v2443_v21, 16  ;;  %3022 = vst [vmem:[#allocation2 + $0x88] sm:$0xf] %v2530_v23  ;;  %v2116_v28 = vsel %vm8044_vm4, %v2114_v16, %v2115_v18  ;;  %v2117_v30 = vrot.slane %v2115_v18, 4  ;;  %v2547_v32 = vshll.u32 %v8695_v25, 16  ;;  %v3423_v12 = vld [vmem:[#allocation2 + $0x7c] sm:$0xff]  ;;  %v5369_v16 = vpop.f32.mrf.mxu0 }
 0x114   : > { %v2534_v31 = vor.u32 %v2533_v22, %v2529_v5  ;;  %v1381_v34 = vld [vmem:[%s8014_s28 + $0x28] sm:$0xf]  ;;  %v7702_v35 = vld [vmem:[#allocation2 + $0x10] ss:$36 sps:$4 sm:$0xff]   ;;  %v1481_v36 = vrot.slane %v1480_v24, 4  ;;  %v2539_v29 = vrot.slane %v2537_v26, 5  ;;  %v5594_v24 = vpop.f32.mrf.mxu1 }
 0x115   : > { %2298 = vst [vmem:[#allocation2 + $0xa4] sm:$0xf] %v2116_v28  ;;  %v2543_v33 = vrot.slane %v2541_v27, 4  ;;  %v8702_v37 = vld [vmem:[%s8014_s28 + $0x2c] sm:$0xf]  ;;  %v2119_v40 = vsel %vm8044_vm4, %v2117_v30, %v2118_v19  ;;  %v8706_v42 = vrot.slane %v2547_v32, 5  ;;  %5816 = vmatmul.mubr.bf16.vlgmr.msra.gmra.mxu0 %v7702_v35  ;;  %v5370_v30 = vpop.f32.mrf.mxu0 }
 0x116   : > { %v7705_v39 = vld [vmem:[#allocation2 + $0x18] ss:$36 sps:$4 sm:$0xff]   ;;  %v2535_v41 = vrot.slane %v2534_v31, 4  ;;  %v2010_v43 = vld [vmem:[%s8014_s28 + $0x28] sm:$0xf]  ;;  %v1486_v47 = vsel %vm8057_vm5, %v1481_v36, %v8686_v15  ;;  %v2551_v49 = vshrl.u32 %v8695_v25, 16  ;;  %7411 = vmatpush3.bf16.msra.mxu0 %v8555_v20 }
 0x117   : > { %v2348_v44 = vld [vmem:[%s8014_s28 + $0x30] sm:$0xf]  ;;  %v8713_v45 = vld [vmem:[%s10248_s2] ss:$0 sm:$0xff]  ;;  %2299 = vst [vmem:[#allocation2 + $0xc8] sm:$0xf] %v2119_v40  ;;  %v2544_v48 = vor.u32 %v2543_v33, %v2539_v29  ;;  %6041 = vmatmul.mubr.bf16.vlgmr.msra.gmra.mxu1 %v7705_v39  ;;  %7412 = vmatprep.subr.bf16.mxu0 %v7724_v2  ;;  %v5595_v39 = vpop.f32.mrf.mxu1 }
 0x118   : > { %v7709_v46 = vld [vmem:[#allocation2 + $0x5c] ss:$36 sps:$4 sm:$0xff]   ;;  %v1489_v51 = vrot.slane %v1487_v11, 4  ;;  %v2349_v1 = vld [vmem:[%s8014_s28 + $0x34] sm:$0xf]  ;;  %v2540_v52 = vsel %vm8057_vm5, %v2535_v41, %v2539_v29  ;;  %v1493_v53 = vshll.u32 %v1381_v34, 16  ;;  %v5368_v9 = vadd.f32 %v8713_v45, %v5367_v3  ;;  %7482 = vmatpush3.bf16.msra.mxu1 %v8555_v20 }
 0x119   : > { %2396 = vst [vmem:[#allocation2 + $0xf0] sm:$0xf] %v2348_v44  ;;  %1960 = vst [vmem:[#allocation2 + $0xc4] sm:$0xf] %v1486_v47  ;;  %v1497_v54 = vshrl.u32 %v1381_v34, 16  ;;  %v1503_v55 = vshll.u32 %v8702_v37, 16  ;;  %5823 = vmatprep.mubr.bf16.mxu0 %v7709_v46  ;;  %7475 = vmatprep.subr.bf16.mxu1 %v7724_v2  ;;  %v5372_v46 = vpop.f32.mrf.mxu0 }
 0x11a   : > { %v8724_v56 = vld [vmem:[%s8014_s28 + $0x2c] sm:$0xf]  ;;  %2397 = vst [vmem:[#allocation2 + $0x114] sm:$0xf] %v2349_v1  ;;  %v2545_v57 = vrot.slane %v2544_v48, 4  ;;  %v1490_v58 = vor.u32 %v1489_v51, %v8686_v15  ;;  %v2120_v59 = vrot.slane %v2118_v19, 4  ;;  %v8755_v23 = vadd.f32 %v5592_v10, %v5368_v9  ;;  %7413 = vmatpush3.bf16.msra.mxu0 %v7724_v2 }
 0x11b   : > { %3023 = vst [vmem:[#allocation2 + $0xac] sm:$0xf] %v2540_v52  ;;  %v2445_v60 = vld [vmem:[%s8014_s28 + $0x34] sm:$0xf]  ;;  %v8729_v61 = vld [vmem:[%s8014_s28 + $0x38] sm:$0xf] }
 0x11c   : > { %v1495_v62 = vrot.slane %v1493_v53, 5  ;;  %v1499_v63 = vrot.slane %v1497_v54, 4  ;;  %v2121_v0 = vrot.slane %v2010_v43, 5  ;;  %v7711_v4 = vld [vmem:[#allocation2 + $0x64] ss:$36 sps:$4 sm:$0xff]   ;;  %v2550_v5 = vsel %vm8057_vm5, %v2545_v57, %v8706_v42  ;;  %v8742_v11 = vld [vmem:[#allocation2 + $0x58] sm:$0xff]  ;;  %7483 = vmatpush3.bf16.msra.mxu1 %v7724_v2  ;;  %v5597_v53 = vpop.f32.mrf.mxu1 }
 0x11d   : > { %v1491_v6 = vrot.slane %v1490_v58, 4  ;;  %v8737_v7 = vrot.slane %v1503_v55, 5  ;;  %v1507_v8 = vshrl.u32 %v8702_v37, 16  ;;  %3024 = vst [vmem:[#allocation2 + $0xd0] sm:$0xf] %v2550_v5  ;;  %v2124_v18 = vrot.slane %v8724_v56, 5  ;;  %6048 = vmatprep.mubr.bf16.mxu1 %v7711_v4 }
 0x11e   : > { %v1500_v13 = vor.u32 %v1499_v63, %v1495_v62  ;;  %v2122_v14 = vsel %vm8044_vm4, %v2120_v59, %v2121_v0  ;;  %v2123_v15 = vrot.slane %v2121_v0, 4  ;;  %v2553_v19 = vrot.slane %v2551_v49, 4  ;;  %v8753_v22 = vld [vmem:[%s10247_s1 + $0x228] sm:$0xff]   ;;  %v7713_v20 = vld [vmem:[#allocation2 + $0x60] ss:$36 sps:$4 sm:$0xff]   ;;  %v5600_v5 = vpop.f32.mrf.mxu1  ;;  %v8822_v56 = vld [vmem:[%s10247_s1 + $0x218] sm:$0xff]  }
 0x11f   : > { %v1496_v17 = vsel %vm8057_vm5, %v1491_v6, %v1495_v62  ;;  %2300 = vst [vmem:[#allocation2 + $0xec] sm:$0xf] %v2122_v14  ;;  %v2557_v21 = vshll.u32 %v2445_v60, 16  ;;  %v2561_v26 = vshrl.u32 %v2445_v60, 16  ;;  %v2567_v27 = vshll.u32 %v8729_v61, 16  ;;  %v8760_v32 = vld [vmem:[#allocation2 + $0xa0] sm:$0xff]  ;;  %7414 = vmatprep.subr.bf16.mxu0 %v8753_v22  ;;  %7476 = vmatprep.subr.bf16.mxu1 %v8753_v22  ;;  %v5375_v60 = vpop.f32.mrf.mxu0 }
 0x120   : > { %v1501_v25 = vrot.slane %v1500_v13, 4  ;;  %1961 = vst [vmem:[#allocation2 + $0xe8] sm:$0xf] %v1496_v17  ;;  %v1383_v28 = vld [vmem:[%s8014_s28 + $0x30] sm:$0xf]  ;;  %v6862_v31 = vcombine.low %v8742_v11, %v3423_v12  ;;  %v2125_v35 = vsel %vm8044_vm4, %v2123_v15, %v2124_v18  ;;  %v2554_v36 = vor.u32 %v2553_v19, %v8706_v42  ;;  %v8771_v40 = vld [vmem:[#allocation2 + $0xc4] sm:$0xff]  ;;  %6049 = vmatmul.mubr.bf16.gmra.mxu1 %v7713_v20  ;;  %v5602_v16 = vpop.f32.mrf.mxu1 }
 0x121   : > { %v7714_v34 = vld [vmem:[#allocation2 + $0xa4] ss:$36 sps:$4 sm:$0xff]   ;;  %v2559_v29 = vrot.slane %v2557_v21, 5  ;;  %v8768_v33 = vld [vmem:[%s8014_s28 + $0x34] sm:$0xf]  ;;  %v5371_v37 = vadd.f32 %v8713_v45, %v5370_v30  ;;  %v2563_v43 = vrot.slane %v2561_v26, 4  ;;  %v6871_v62 = vcombine.low %v8760_v32, %v8771_v40  ;;  %v5377_v10 = vpop.f32.mrf.mxu0  ;;  %7415 = vmatpush3.bf16.msra.mxu0 %v8753_v22  ;;  %7484 = vmatpush3.bf16.msra.mxu1 %v8753_v22 }
 0x122   : > { %v1506_v41 = vsel %vm8057_vm5, %v1501_v25, %v8737_v7  ;;  %2301 = vst [vmem:[#allocation2 + $0x110] sm:$0xf] %v2125_v35  ;;  %v2571_v44 = vshrl.u32 %v8729_v61, 16  ;;  %v2350_v42 = vld [vmem:[%s8014_s28 + $0x38] sm:$0xf]  ;;  %v2555_v47 = vrot.slane %v2554_v36, 4  ;;  %5824 = vmatmul.mubr.bf16.gmra.mxu0 %v6862_v31  ;;  %v5376_v4 = vadd.f32 %v8713_v45, %v5375_v60  ;;  %v5603_v31 = vpop.f32.mrf.mxu1 }
 0x123   : > { %1962 = vst [vmem:[#allocation2 + $0x10c] sm:$0xf] %v1506_v41  ;;  %v8778_v48 = vrot.slane %v2567_v27, 5  ;;  %v1509_v49 = vrot.slane %v1507_v8, 4  ;;  %v1513_v51 = vshll.u32 %v1383_v28, 16  ;;  %v8782_v52 = vadd.f32 %v5595_v39, %v5371_v37  ;;  %v8790_v59 = vld [vmem:[%s10247_s1 + $0x220] sm:$0xff]   ;;  %5831 = vmatprep.mubr.bf16.mxu0 %v7714_v34 }
 0x124   : > { %v2351_v1 = vld [vmem:[%s8014_s28 + $0x3c] sm:$0xf]  ;;  %2398 = vst [vmem:[#allocation2 + $0x138] sm:$0xf] %v2350_v42  ;;  %v2564_v54 = vor.u32 %v2563_v43, %v2559_v29  ;;  %v1517_v55 = vshrl.u32 %v1383_v28, 16  ;;  %v1523_v57 = vshll.u32 %v8768_v33, 16  ;;  %v2560_v63 = vsel %vm8057_vm5, %v2555_v47, %v2559_v29  ;;  %7416 = vmatprep.subr.bf16.mxu0 %v8790_v59  ;;  %7477 = vmatprep.subr.bf16.mxu1 %v8790_v59  ;;  %v5605_v46 = vpop.f32.mrf.mxu1 }
 0x125   : > { %v2012_v58 = vld [vmem:[%s8014_s28 + $0x30] sm:$0xf]  ;;  %2399 = vst [vmem:[#allocation2 + $0x15c] sm:$0xf] %v2351_v1  ;;  %v1510_v0 = vor.u32 %v1509_v49, %v8737_v7  ;;  %v1515_v2 = vrot.slane %v1513_v51, 5  ;;  %v1527_v7 = vshrl.u32 %v8768_v33, 16  ;;  %v8808_v15 = vadd.f32 %v5600_v5, %v5376_v4  ;;  %7417 = vmatpush3.bf16.msra.mxu0 %v8790_v59  ;;  %7485 = vmatpush3.bf16.msra.mxu1 %v8790_v59 }
 0x126   : > { %v7716_v61 = vld [vmem:[#allocation2 + $0xac] ss:$36 sps:$4 sm:$0xff]   ;;  %v8798_v3 = vld [vmem:[%s8014_s28 + $0x34] sm:$0xf]  ;;  %v2565_v6 = vrot.slane %v2564_v54, 4  ;;  %v1519_v8 = vrot.slane %v1517_v55, 4  ;;  %7418 = vmatprep.subr.bf16.mxu0 %v8822_v56  ;;  %7478 = vmatprep.subr.bf16.mxu1 %v8822_v56  ;;  %v5608_v60 = vpop.f32.mrf.mxu1 }
 0x127   : > { %3025 = vst [vmem:[#allocation2 + $0xf4] sm:$0xf] %v2560_v63  ;;  %v8801_v9 = vrot.slane %v1523_v57, 5  ;;  %6056 = vmatprep.mubr.bf16.mxu1 %v7716_v61  ;;  %v1511_v11 = vrot.slane %v1510_v0, 4  ;;  %v2126_v12 = vrot.slane %v2124_v18, 4  ;;  %v2127_v13 = vrot.slane %v2012_v58, 5  ;;  %v5378_v18 = vpop.f32.mrf.mxu0 }
 0x128   : > { %v2447_v14 = vld [vmem:[%s8014_s28 + $0x3c] sm:$0xf]  ;;  %v2570_v17 = vsel %vm8057_vm5, %v2565_v6, %v8778_v48  ;;  %v1520_v19 = vor.u32 %v1519_v8, %v1515_v2  ;;  %v2130_v21 = vrot.slane %v8798_v3, 5  ;;  %v8815_v24 = vld [vmem:[%s8014_s28 + $0x40] sm:$0xf]  ;;  %v2573_v28 = vrot.slane %v2571_v44, 4 }
 0x129   : > { %v7718_v20 = vld [vmem:[#allocation2 + $0xa8] ss:$36 sps:$4 sm:$0xff]   ;;  %3026 = vst [vmem:[#allocation2 + $0x118] sm:$0xf] %v2570_v17  ;;  %v1516_v25 = vsel %vm8057_vm5, %v1511_v11, %v1515_v2  ;;  %v2128_v26 = vsel %vm8044_vm4, %v2126_v12, %v2127_v13  ;;  %v2129_v27 = vrot.slane %v2127_v13, 4  ;;  %v5379_v30 = vadd.f32 %v8713_v45, %v5378_v18  ;;  %v5380_v33 = vpop.f32.mrf.mxu0  ;;  %7419 = vmatpush3.bf16.msra.mxu0 %v8822_v56  ;;  %v5610_v11 = vpop.f32.mrf.mxu1 }
 0x12a   : > { %v2352_v22 = vld [vmem:[%s8014_s28 + $0x40] sm:$0xf]  ;;  %v7719_v34 = vld [vmem:[#allocation2 + $0xec] ss:$36 sps:$4 sm:$0xff]   ;;  %v1521_v35 = vrot.slane %v1520_v19, 4  ;;  %v2577_v36 = vshll.u32 %v2447_v14, 16  ;;  %v2574_v39 = vor.u32 %v2573_v28, %v8778_v48  ;;  %5832 = vmatmul.mubr.bf16.gmra.mxu0 %v6871_v62  ;;  %6057 = vmatmul.mubr.bf16.gmra.mxu1 %v7718_v20 }
 0x12b   : > { %1963 = vst [vmem:[#allocation2 + $0x130] sm:$0xf] %v1516_v25  ;;  %2302 = vst [vmem:[#allocation2 + $0x134] sm:$0xf] %v2128_v26  ;;  %v2581_v29 = vshrl.u32 %v2447_v14, 16  ;;  %v2131_v37 = vsel %vm8044_vm4, %v2129_v27, %v2130_v21  ;;  %v2587_v41 = vshll.u32 %v8815_v24, 16  ;;  %v8840_v42 = vadd.f32 %v5603_v31, %v5379_v30  ;;  %v5383_v48 = vpop.f32.mrf.mxu0  ;;  %5839 = vmatprep.mubr.bf16.mxu0 %v7719_v34  ;;  %v5611_v26 = vpop.f32.mrf.mxu1 }
 0x12c   : > { %2400 = vst [vmem:[#allocation2 + $0x180] sm:$0xf] %v2352_v22  ;;  %v1385_v43 = vld [vmem:[%s8014_s28 + $0x38] sm:$0xf]  ;;  %v2353_v44 = vld [vmem:[%s8014_s28 + $0x44] sm:$0xf]  ;;  %v1526_v47 = vsel %vm8057_vm5, %v1521_v35, %v8801_v9  ;;  %v5384_v59 = vadd.f32 %v8713_v45, %v5383_v48  ;;  %7486 = vmatpush3.bf16.msra.mxu1 %v8822_v56 }
 0x12d   : > { %2303 = vst [vmem:[#allocation2 + $0x158] sm:$0xf] %v2131_v37  ;;  %v2579_v49 = vrot.slane %v2577_v36, 5  ;;  %v2583_v51 = vrot.slane %v2581_v29, 4  ;;  %v8846_v1 = vld [vmem:[%s8014_s28 + $0x3c] sm:$0xf]  ;;  %v5385_v63 = vpop.f32.mrf.mxu0 }
 0x12e   : > { %2401 = vst [vmem:[#allocation2 + $0x1a4] sm:$0xf] %v2353_v44  ;;  %v8853_v53 = vld [vmem:[#allocation2 + $0xe8] sm:$0xff]  ;;  %1964 = vst [vmem:[#allocation2 + $0x154] sm:$0xf] %v1526_v47  ;;  %v2575_v55 = vrot.slane %v2574_v39, 4  ;;  %v8872_v10 = vadd.f32 %v5608_v60, %v5384_v59  ;;  %v5613_v39 = vpop.f32.mrf.mxu1 }
 0x12f   : > { %v8855_v54 = vld [vmem:[#allocation2 + $0x10c] sm:$0xff]  ;;  %v8857_v57 = vrot.slane %v2587_v41, 5  ;;  %v1529_v58 = vrot.slane %v1527_v7, 4  ;;  %v2584_v32 = vor.u32 %v2583_v51, %v2579_v49  ;;  %v1533_v40 = vshll.u32 %v1385_v43, 16  ;;  %v2014_v62 = vld [vmem:[%s8014_s28 + $0x38] sm:$0xf] }
 0x130   : > { %v1537_v61 = vshrl.u32 %v1385_v43, 16  ;;  %v2580_v0 = vsel %vm8057_vm5, %v2575_v55, %v2579_v49  ;;  %v2591_v2 = vshrl.u32 %v8815_v24, 16  ;;  %v1543_v5 = vshll.u32 %v8846_v1, 16  ;;  %v8868_v6 = vld [vmem:[%s8014_s28 + $0x3c] sm:$0xf]  ;;  %v7800_v20 = vld [vmem:[%s10247_s1 + $0x210] sm:$0xff]  }
 0x131   : > { %v1530_v4 = vor.u32 %v1529_v58, %v8801_v9  ;;  %v2354_v8 = vld [vmem:[%s8014_s28 + $0x48] sm:$0xf]  ;;  %v7721_v7 = vld [vmem:[#allocation2 + $0xf4] ss:$36 sps:$4 sm:$0xff]   ;;  %v6880_v12 = vcombine.low %v8853_v53, %v8855_v54  ;;  %v2585_v13 = vrot.slane %v2584_v32, 4  ;;  %v5386_v9 = vpop.f32.mrf.mxu0  ;;  %v1535_v17 = vrot.slane %v1533_v40, 5  ;;  %7420 = vmatprep.subr.bf16.mxu0 %v7800_v20  ;;  %7479 = vmatprep.subr.bf16.mxu1 %v7800_v20 }
 0x132   : > { %3027 = vst [vmem:[#allocation2 + $0x13c] sm:$0xf] %v2580_v0  ;;  %v2449_v14 = vld [vmem:[%s8014_s28 + $0x44] sm:$0xf]  ;;  %2402 = vst [vmem:[#allocation2 + $0x1c8] sm:$0xf] %v2354_v8  ;;  %v5387_v25 = vadd.f32 %v8713_v45, %v5386_v9  ;;  %6064 = vmatprep.mubr.bf16.mxu1 %v7721_v7  ;;  %7421 = vmatpush3.bf16.msra.mxu0 %v7800_v20 }
 0x133   : > { %v1531_v16 = vrot.slane %v1530_v4, 4  ;;  %v1539_v19 = vrot.slane %v1537_v61, 4  ;;  %v8878_v24 = vrot.slane %v1543_v5, 5  ;;  %v8881_v18 = vld [vmem:[%s8014_s28 + $0x48] sm:$0xf]  ;;  %v2590_v56 = vsel %vm8057_vm5, %v2585_v13, %v8857_v57  ;;  %v5388_v31 = vpop.f32.mrf.mxu0  ;;  %7487 = vmatpush3.bf16.msra.mxu1 %v7800_v20  ;;  %5840 = vmatmul.mubr.bf16.gmra.mxu0 %v6880_v12 }
 0x134   : > { %v7723_v27 = vld [vmem:[#allocation2 + $0xf0] ss:$36 sps:$4 sm:$0xff]   ;;  %v2132_v28 = vrot.slane %v2130_v21, 4  ;;  %v2133_v22 = vrot.slane %v2014_v62, 5  ;;  %v2355_v30 = vld [vmem:[%s8014_s28 + $0x4c] sm:$0xf]  ;;  %v8897_v37 = vadd.f32 %v5611_v26, %v5387_v25 }
 0x135   : > { %3028 = vst [vmem:[#allocation2 + $0x160] sm:$0xf] %v2590_v56  ;;  %v1536_v34 = vsel %vm8057_vm5, %v1531_v16, %v1535_v17  ;;  %v1540_v35 = vor.u32 %v1539_v19, %v1535_v17  ;;  %v2136_v36 = vrot.slane %v8868_v6, 5  ;;  %v2593_v29 = vrot.slane %v2591_v2, 4  ;;  %v1387_v33 = vld [vmem:[%s8014_s28 + $0x40] sm:$0xf]  ;;  %v5391_v44 = vpop.f32.mrf.mxu0  ;;  %6065 = vmatmul.mubr.bf16.gmra.mxu1 %v7723_v27 }
 0x136   : > { %2403 = vst [vmem:[#allocation2 + $0x1ec] sm:$0xf] %v2355_v30  ;;  %v7727_v3 = vld [vmem:[#allocation2 + $0x134] ss:$36 sps:$4 sm:$0xff]   ;;  %v1547_v21 = vshrl.u32 %v8846_v1, 16  ;;  %v2134_v41 = vsel %vm8044_vm4, %v2132_v28, %v2133_v22  ;;  %v2135_v43 = vrot.slane %v2133_v22, 4  ;;  %v5392_v48 = vadd.f32 %v8713_v45, %v5391_v44  ;;  %v5616_v1 = vpop.f32.mrf.mxu1 }
 0x137   : > { %1965 = vst [vmem:[#allocation2 + $0x178] sm:$0xf] %v1536_v34  ;;  %v1541_v46 = vrot.slane %v1540_v35, 4  ;;  %2304 = vst [vmem:[#allocation2 + $0x17c] sm:$0xf] %v2134_v41  ;;  %v2594_v47 = vor.u32 %v2593_v29, %v8857_v57  ;;  %v2597_v49 = vshll.u32 %v2449_v14, 16  ;;  %5847 = vmatprep.mubr.bf16.mxu0 %v7727_v3  ;;  %v5393_v57 = vpop.f32.mrf.mxu0 }
 0x138   : > { %v2601_v51 = vshrl.u32 %v2449_v14, 16  ;;  %v2137_v53 = vsel %vm8044_vm4, %v2135_v43, %v2136_v36  ;;  %v2607_v54 = vshll.u32 %v8881_v18, 16  ;;  %v2611_v55 = vshrl.u32 %v8881_v18, 16  ;;  %v8911_v58 = vld [vmem:[%s8014_s28 + $0x44] sm:$0xf]  ;;  %v5618_v63 = vpop.f32.mrf.mxu1 }
 0x139   : > { %v1546_v59 = vsel %vm8057_vm5, %v1541_v46, %v8878_v24  ;;  %2305 = vst [vmem:[#allocation2 + $0x1a0] sm:$0xf] %v2137_v53  ;;  %v2595_v60 = vrot.slane %v2594_v47, 4  ;;  %v2599_v32 = vrot.slane %v2597_v49, 5  ;;  %v2016_v61 = vld [vmem:[%s8014_s28 + $0x40] sm:$0xf]  ;;  %v8917_v62 = vadd.f32 %v5616_v1, %v5392_v48  ;;  %v5394_v11 = vpop.f32.mrf.mxu0 }
 0x13a   : > { %v2603_v40 = vrot.slane %v2601_v51, 4  ;;  %v7725_v0 = vld [vmem:[#allocation2 + $0x130] ss:$36 sps:$4 sm:$0xff]   ;;  %1966 = vst [vmem:[#allocation2 + $0x19c] sm:$0xf] %v1546_v59  ;;  %v8919_v2 = vrot.slane %v2607_v54, 5  ;;  %v5395_v17 = vadd.f32 %v8713_v45, %v5394_v11  ;;  %v5619_v19 = vpop.f32.mrf.mxu1 }
 0x13b   : > { %v1549_v4 = vrot.slane %v1547_v21, 4  ;;  %v1553_v5 = vshll.u32 %v1387_v33, 16  ;;  %v8922_v8 = vld [vmem:[%s8014_s28 + $0x44] sm:$0xf]  ;;  %v2600_v7 = vsel %vm8057_vm5, %v2595_v60, %v2599_v32  ;;  %v1557_v13 = vshrl.u32 %v1387_v33, 16  ;;  %v5396_v27 = vpop.f32.mrf.mxu0  ;;  %5848 = vmatmul.mubr.bf16.gmra.mxu0 %v7725_v0 }
 0x13c   : > { %v2604_v12 = vor.u32 %v2603_v40, %v2599_v32  ;;  %v1563_v14 = vshll.u32 %v8911_v58, 16  ;;  %v2356_v9 = vld [vmem:[%s8014_s28 + $0x50] sm:$0xf]  ;;  %v2357_v16 = vld [vmem:[%s8014_s28 + $0x54] sm:$0xf]  ;;  %v1567_v30 = vshrl.u32 %v8911_v58, 16  ;;  %v8934_v31 = vadd.f32 %v5619_v19, %v5395_v17  ;;  %v5621_v34 = vpop.f32.mrf.mxu1 }
 0x13d   : > { %v7728_v18 = vld [vmem:[#allocation2 + $0x138] ss:$36 sps:$4 sm:$0xff]   ;;  %3029 = vst [vmem:[#allocation2 + $0x184] sm:$0xf] %v2600_v7  ;;  %v1550_v25 = vor.u32 %v1549_v4, %v8878_v24  ;;  %v1555_v26 = vrot.slane %v1553_v5, 5  ;;  %v1559_v28 = vrot.slane %v1557_v13, 4  ;;  %v5399_v33 = vpop.f32.mrf.mxu0 }
 0x13e   : > { %v7730_v20 = vld [vmem:[#allocation2 + $0x13c] ss:$36 sps:$4 sm:$0xff]   ;;  %2404 = vst [vmem:[#allocation2 + $0x210] sm:$0xf] %v2356_v9  ;;  %2405 = vst [vmem:[#allocation2 + $0x234] sm:$0xf] %v2357_v16  ;;  %v5400_v44 = vadd.f32 %v8713_v45, %v5399_v33  ;;  %v5624_v46 = vpop.f32.mrf.mxu1 }
 0x13f   : > { %v2605_v56 = vrot.slane %v2604_v12, 4  ;;  %v8931_v22 = vrot.slane %v1563_v14, 5  ;;  %6072 = vmatprep.mubr.bf16.mxu1 %v7730_v20  ;;  %v1551_v35 = vrot.slane %v1550_v25, 4  ;;  %v2138_v29 = vrot.slane %v2136_v36, 4  ;;  %v2451_v41 = vld [vmem:[%s8014_s28 + $0x4c] sm:$0xf]  ;;  %v5401_v48 = vpop.f32.mrf.mxu0 }
 0x140   : > { %v2139_v24 = vrot.slane %v2016_v61, 5  ;;  %v1560_v3 = vor.u32 %v1559_v28, %v1555_v26  ;;  %v2142_v21 = vrot.slane %v8922_v8, 5  ;;  %v2613_v43 = vrot.slane %v2611_v55, 4  ;;  %6073 = vmatmul.mubr.bf16.gmra.mxu1 %v7728_v18  ;;  %v8949_v49 = vld [vmem:[%s8014_s28 + $0x50] sm:$0xf]  ;;  %v5626_v57 = vpop.f32.mrf.mxu1 }
 0x141   : > { %v2610_v39 = vsel %vm8057_vm5, %v2605_v56, %v8919_v2  ;;  %v1556_v6 = vsel %vm8057_vm5, %v1551_v35, %v1555_v26  ;;  %v1389_v51 = vld [vmem:[%s8014_s28 + $0x48] sm:$0xf]  ;;  %v7733_v1 = vld [vmem:[#allocation2 + $0x17c] ss:$36 sps:$4 sm:$0xff]   ;;  %v8954_v55 = vld [vmem:[%s8014_s28 + $0x4c] sm:$0xf]  ;;  %v8956_v58 = vadd.f32 %v5624_v46, %v5400_v44  ;;  %v5402_v63 = vpop.f32.mrf.mxu0 }
 0x142   : > { %3030 = vst [vmem:[#allocation2 + $0x1a8] sm:$0xf] %v2610_v39  ;;  %v2140_v36 = vsel %vm8044_vm4, %v2138_v29, %v2139_v24  ;;  %v2141_v47 = vrot.slane %v2139_v24, 4  ;;  %v1561_v53 = vrot.slane %v1560_v3, 4  ;;  %1967 = vst [vmem:[#allocation2 + $0x1c0] sm:$0xf] %v1556_v6  ;;  %v2614_v54 = vor.u32 %v2613_v43, %v8919_v2  ;;  %5855 = vmatprep.mubr.bf16.mxu0 %v7733_v1  ;;  %v5627_v12 = vpop.f32.mrf.mxu1 }
 0x143   : > { %2306 = vst [vmem:[#allocation2 + $0x1c4] sm:$0xf] %v2140_v36  ;;  %v2617_v60 = vshll.u32 %v2451_v41, 16  ;;  %v2621_v32 = vshrl.u32 %v2451_v41, 16  ;;  %v2358_v40 = vld [vmem:[%s8014_s28 + $0x58] sm:$0xf]  ;;  %v5403_v7 = vadd.f32 %v8713_v45, %v5402_v63  ;;  %v5404_v16 = vpop.f32.mrf.mxu0 }
 0x144   : > { %v2143_v59 = vsel %vm8044_vm4, %v2141_v47, %v2142_v21  ;;  %v2359_v61 = vld [vmem:[%s8014_s28 + $0x5c] sm:$0xf]  ;;  %v1566_v2 = vsel %vm8057_vm5, %v1561_v53, %v8931_v22  ;;  %v2615_v4 = vrot.slane %v2614_v54, 4  ;;  %v2627_v5 = vshll.u32 %v8949_v49, 16  ;;  %2406 = vst [vmem:[#allocation2 + $0x258] sm:$0xf] %v2358_v40  ;;  %v5629_v26 = vpop.f32.mrf.mxu1 }
 0x145   : > { %v7731_v0 = vld [vmem:[#allocation2 + $0x178] ss:$36 sps:$4 sm:$0xff]   ;;  %2307 = vst [vmem:[#allocation2 + $0x1e8] sm:$0xf] %v2143_v59  ;;  %v2631_v11 = vshrl.u32 %v8949_v49, 16  ;;  %v2619_v13 = vrot.slane %v2617_v60, 5  ;;  %v8973_v25 = vadd.f32 %v5627_v12, %v5403_v7  ;;  %v5407_v29 = vpop.f32.mrf.mxu0 }
 0x146   : > { %2407 = vst [vmem:[#allocation2 + $0x27c] sm:$0xf] %v2359_v61  ;;  %1968 = vst [vmem:[#allocation2 + $0x1e4] sm:$0xf] %v1566_v2  ;;  %v2623_v14 = vrot.slane %v2621_v32, 4  ;;  %v1569_v9 = vrot.slane %v1567_v30, 4  ;;  %5856 = vmatmul.mubr.bf16.gmra.mxu0 %v7731_v0  ;;  %v5408_v39 = vadd.f32 %v8713_v45, %v5407_v29  ;;  %v5632_v3 = vpop.f32.mrf.mxu1 }
 0x147   : > { %v8970_v17 = vrot.slane %v2627_v5, 5  ;;  %v1573_v19 = vshll.u32 %v1389_v51, 16  ;;  %v1577_v18 = vshrl.u32 %v1389_v51, 16  ;;  %v1583_v20 = vshll.u32 %v8954_v55, 16  ;;  %v2018_v34 = vld [vmem:[%s8014_s28 + $0x48] sm:$0xf] }
 0x148   : > { %v2620_v27 = vsel %vm8057_vm5, %v2615_v4, %v2619_v13  ;;  %v2624_v56 = vor.u32 %v2623_v14, %v2619_v13  ;;  %v1570_v28 = vor.u32 %v1569_v9, %v8931_v22  ;;  %v7734_v30 = vld [vmem:[#allocation2 + $0x180] ss:$36 sps:$4 sm:$0xff]   ;;  %v8980_v33 = vld [vmem:[%s8014_s28 + $0x4c] sm:$0xf]  ;;  %v5409_v22 = vpop.f32.mrf.mxu0  ;;  %v1587_v36 = vshrl.u32 %v8954_v55, 16  ;;  %v5634_v1 = vpop.f32.mrf.mxu1 }
 0x149   : > { %v7736_v35 = vld [vmem:[#allocation2 + $0x184] ss:$36 sps:$4 sm:$0xff]   ;;  %3031 = vst [vmem:[#allocation2 + $0x1cc] sm:$0xf] %v2620_v27  ;;  %v1575_v24 = vrot.slane %v1573_v19, 5  ;;  %v1579_v44 = vrot.slane %v1577_v18, 4  ;;  %v8990_v48 = vadd.f32 %v5632_v3, %v5408_v39 }
 0x14a   : > { %v2625_v41 = vrot.slane %v2624_v56, 4  ;;  %v1571_v43 = vrot.slane %v1570_v28, 4  ;;  %v2360_v46 = vld [vmem:[%s8014_s28 + $0x60] sm:$0xf]  ;;  %6080 = vmatprep.mubr.bf16.mxu1 %v7736_v35  ;;  %v8984_v6 = vrot.slane %v1583_v20, 5  ;;  %v2144_v47 = vrot.slane %v2142_v21, 4  ;;  %v5410_v8 = vpop.f32.mrf.mxu0  ;;  %v5635_v63 = vpop.f32.mrf.mxu1 }
 0x14b   : > { %v2145_v49 = vrot.slane %v2018_v34, 5  ;;  %v2361_v51 = vld [vmem:[%s8014_s28 + $0x64] sm:$0xf]  ;;  %2408 = vst [vmem:[#allocation2 + $0x2a0] sm:$0xf] %v2360_v46  ;;  %6081 = vmatmul.mubr.bf16.gmra.mxu1 %v7734_v30  ;;  %v1580_v57 = vor.u32 %v1579_v44, %v1575_v24  ;;  %v5411_v61 = vadd.f32 %v8713_v45, %v5410_v8  ;;  %v2148_v2 = vrot.slane %v8980_v33, 5 }
 0x14c   : > { %v2630_v53 = vsel %vm8057_vm5, %v2625_v41, %v8970_v17  ;;  %v1576_v54 = vsel %vm8057_vm5, %v1571_v43, %v1575_v24  ;;  %v2453_v59 = vld [vmem:[%s8014_s28 + $0x54] sm:$0xf]  ;;  %v8999_v55 = vld [vmem:[%s8014_s28 + $0x58] sm:$0xf]  ;;  %2409 = vst [vmem:[#allocation2 + $0x2c4] sm:$0xf] %v2361_v51  ;;  %v5412_v5 = vpop.f32.mrf.mxu0  ;;  %v5637_v19 = vpop.f32.mrf.mxu1 }
 0x14d   : > { %v7737_v21 = vld [vmem:[#allocation2 + $0x1c0] ss:$36 sps:$4 sm:$0xff]   ;;  %3032 = vst [vmem:[#allocation2 + $0x1f0] sm:$0xf] %v2630_v53  ;;  %1969 = vst [vmem:[#allocation2 + $0x208] sm:$0xf] %v1576_v54  ;;  %v2146_v32 = vsel %vm8044_vm4, %v2144_v47, %v2145_v49  ;;  %v9008_v16 = vadd.f32 %v5635_v63, %v5411_v61 }
 0x14e   : > { %v7739_v60 = vld [vmem:[#allocation2 + $0x1c4] ss:$36 sps:$4 sm:$0xff]   ;;  %v2147_v40 = vrot.slane %v2145_v49, 4  ;;  %v1581_v0 = vrot.slane %v1580_v57, 4  ;;  %2308 = vst [vmem:[#allocation2 + $0x20c] sm:$0xf] %v2146_v32  ;;  %v5415_v27 = vpop.f32.mrf.mxu0  ;;  %v5640_v24 = vpop.f32.mrf.mxu1 }
 0x14f   : > { %v2633_v4 = vrot.slane %v2631_v11, 4  ;;  %5863 = vmatprep.mubr.bf16.mxu0 %v7739_v60  ;;  %v2637_v7 = vshll.u32 %v2453_v59, 16  ;;  %v2641_v12 = vshrl.u32 %v2453_v59, 16  ;;  %v2647_v13 = vshll.u32 %v8999_v55, 16  ;;  %v1391_v9 = vld [vmem:[%s8014_s28 + $0x50] sm:$0xf] }
 0x150   : > { %v2651_v14 = vshrl.u32 %v8999_v55, 16  ;;  %v1586_v18 = vsel %vm8057_vm5, %v1581_v0, %v8984_v6  ;;  %v2149_v11 = vsel %vm8044_vm4, %v2147_v40, %v2148_v2  ;;  %v9017_v26 = vld [vmem:[%s8014_s28 + $0x54] sm:$0xf]  ;;  %5864 = vmatmul.mubr.bf16.gmra.mxu0 %v7737_v21  ;;  %v1589_v30 = vrot.slane %v1587_v36, 4  ;;  %v2020_v35 = vld [vmem:[%s8014_s28 + $0x50] sm:$0xf]  ;;  %v5417_v41 = vpop.f32.mrf.mxu0  ;;  %v5642_v53 = vpop.f32.mrf.mxu1 }
 0x151   : > { %v2634_v20 = vor.u32 %v2633_v4, %v8970_v17  ;;  %1970 = vst [vmem:[#allocation2 + $0x22c] sm:$0xf] %v1586_v18  ;;  %2309 = vst [vmem:[#allocation2 + $0x230] sm:$0xf] %v2149_v11  ;;  %v2639_v56 = vrot.slane %v2637_v7, 5  ;;  %v2643_v28 = vrot.slane %v2641_v12, 4  ;;  %v5416_v29 = vadd.f32 %v8713_v45, %v5415_v27 }
 0x152   : > { %v9019_v34 = vrot.slane %v2647_v13, 5  ;;  %v1593_v17 = vshll.u32 %v1391_v9, 16  ;;  %v1597_v39 = vshrl.u32 %v1391_v9, 16  ;;  %v2362_v3 = vld [vmem:[%s8014_s28 + $0x68] sm:$0xf]  ;;  %v1590_v44 = vor.u32 %v1589_v30, %v8984_v6  ;;  %v5418_v6 = vpop.f32.mrf.mxu0  ;;  %v5643_v40 = vpop.f32.mrf.mxu1 }
 0x153   : > { %v2635_v33 = vrot.slane %v2634_v20, 4  ;;  %v2644_v43 = vor.u32 %v2643_v28, %v2639_v56  ;;  %v1603_v46 = vshll.u32 %v9017_v26, 16  ;;  %v1607_v22 = vshrl.u32 %v9017_v26, 16  ;;  %v9028_v47 = vld [vmem:[%s8014_s28 + $0x54] sm:$0xf]  ;;  %v7819_v60 = vld [vmem:[%s10247_s1 + $0x208] sm:$0xff]  }
 0x154   : > { %v2363_v49 = vld [vmem:[%s8014_s28 + $0x6c] sm:$0xf]  ;;  %2410 = vst [vmem:[#allocation2 + $0x2e8] sm:$0xf] %v2362_v3  ;;  %v9031_v1 = vadd.f32 %v5640_v24, %v5416_v29  ;;  %v1595_v57 = vrot.slane %v1593_v17, 5  ;;  %v1591_v55 = vrot.slane %v1590_v44, 4  ;;  %v5419_v32 = vadd.f32 %v8713_v45, %v5418_v6  ;;  %v5420_v5 = vpop.f32.mrf.mxu0  ;;  %7422 = vmatprep.subr.bf16.mxu0 %v7819_v60  ;;  %7480 = vmatprep.subr.bf16.mxu1 %v7819_v60 }
 0x155   : > { %v7740_v36 = vld [vmem:[#allocation2 + $0x1c8] ss:$36 sps:$4 sm:$0xff]   ;;  %v2640_v54 = vsel %vm8057_vm5, %v2635_v33, %v2639_v56  ;;  %2411 = vst [vmem:[#allocation2 + $0x30c] sm:$0xf] %v2363_v49  ;;  %v2645_v59 = vrot.slane %v2644_v43, 4  ;;  %v1599_v8 = vrot.slane %v1597_v39, 4  ;;  %7423 = vmatpush3.bf16.msra.mxu0 %v7819_v60  ;;  %7488 = vmatpush3.bf16.msra.mxu1 %v7819_v60 }
 0x156   : > { %v7742_v51 = vld [vmem:[#allocation2 + $0x1cc] ss:$36 sps:$4 sm:$0xff]   ;;  %3033 = vst [vmem:[#allocation2 + $0x214] sm:$0xf] %v2640_v54  ;;  %v9035_v21 = vrot.slane %v1603_v46, 5  ;;  %v2150_v61 = vrot.slane %v2148_v2, 4  ;;  %v1596_v12 = vsel %vm8057_vm5, %v1591_v55, %v1595_v57  ;;  %v9051_v18 = vadd.f32 %v5643_v40, %v5419_v32  ;;  %v5645_v2 = vpop.f32.mrf.mxu1  ;;  %v5423_v28 = vpop.f32.mrf.mxu0 }
 0x157   : > { %6088 = vmatprep.mubr.bf16.mxu1 %v7742_v51  ;;  %v2151_v63 = vrot.slane %v2020_v35, 5  ;;  %v2154_v0 = vrot.slane %v9028_v47, 5  ;;  %v2455_v4 = vld [vmem:[%s8014_s28 + $0x5c] sm:$0xf]  ;;  %v2650_v7 = vsel %vm8057_vm5, %v2645_v59, %v9019_v34  ;;  %v1600_v13 = vor.u32 %v1599_v8, %v1595_v57  ;;  %v9049_v9 = vld [vmem:[%s8014_s28 + $0x60] sm:$0xf] }
 0x158   : > { %6089 = vmatmul.mubr.bf16.gmra.mxu1 %v7740_v36  ;;  %v2653_v19 = vrot.slane %v2651_v14, 4  ;;  %v7744_v11 = vld [vmem:[#allocation2 + $0x208] ss:$36 sps:$4 sm:$0xff]   ;;  %3034 = vst [vmem:[#allocation2 + $0x238] sm:$0xf] %v2650_v7  ;;  %v2657_v35 = vshll.u32 %v2455_v4, 16  ;;  %v5424_v33 = vadd.f32 %v8713_v45, %v5423_v28  ;;  %v5648_v17 = vpop.f32.mrf.mxu1  ;;  %v5425_v44 = vpop.f32.mrf.mxu0 }
 0x159   : > { %v7746_v20 = vld [vmem:[#allocation2 + $0x20c] ss:$36 sps:$4 sm:$0xff]   ;;  %1971 = vst [vmem:[#allocation2 + $0x250] sm:$0xf] %v1596_v12  ;;  %v2152_v27 = vsel %vm8044_vm4, %v2150_v61, %v2151_v63  ;;  %v2153_v56 = vrot.slane %v2151_v63, 4  ;;  %v1601_v30 = vrot.slane %v1600_v13, 4 }
 0x15a   : > { %2310 = vst [vmem:[#allocation2 + $0x254] sm:$0xf] %v2152_v27  ;;  %v2654_v14 = vor.u32 %v2653_v19, %v9019_v34  ;;  %v2661_v29 = vshrl.u32 %v2455_v4, 16  ;;  %v1393_v24 = vld [vmem:[%s8014_s28 + $0x58] sm:$0xf]  ;;  %5871 = vmatprep.mubr.bf16.mxu0 %v7746_v20  ;;  %v2667_v3 = vshll.u32 %v9049_v9, 16  ;;  %v9072_v53 = vadd.f32 %v5648_v17, %v5424_v33  ;;  %v5650_v54 = vpop.f32.mrf.mxu1  ;;  %v5426_v55 = vpop.f32.mrf.mxu0 }
 0x15b   : > { %v2155_v39 = vsel %vm8044_vm4, %v2153_v56, %v2154_v0  ;;  %v2671_v41 = vshrl.u32 %v9049_v9, 16  ;;  %v9065_v43 = vld [vmem:[%s8014_s28 + $0x5c] sm:$0xf]  ;;  %v2364_v34 = vld [vmem:[%s8014_s28 + $0x70] sm:$0xf]  ;;  %5872 = vmatmul.mubr.bf16.gmra.mxu0 %v7744_v11  ;;  %v1606_v46 = vsel %vm8057_vm5, %v1601_v30, %v9035_v21  ;;  %v2659_v49 = vrot.slane %v2657_v35, 5 }
 0x15c   : > { %2311 = vst [vmem:[#allocation2 + $0x278] sm:$0xf] %v2155_v39  ;;  %v2655_v45 = vrot.slane %v2654_v14, 4  ;;  %v2663_v36 = vrot.slane %v2661_v29, 4  ;;  %v2365_v51 = vld [vmem:[%s8014_s28 + $0x74] sm:$0xf]  ;;  %v5428_v19 = vpop.f32.mrf.mxu0 }
 0x15d   : > { %2412 = vst [vmem:[#allocation2 + $0x330] sm:$0xf] %v2364_v34  ;;  %1972 = vst [vmem:[#allocation2 + $0x274] sm:$0xf] %v1606_v46  ;;  %v9074_v57 = vrot.slane %v2667_v3, 5  ;;  %v1609_v6 = vrot.slane %v1607_v22, 4  ;;  %v5651_v22 = vpop.f32.mrf.mxu1 }
 0x15e   : > { %v1613_v59 = vshll.u32 %v1393_v24, 16  ;;  %2413 = vst [vmem:[#allocation2 + $0x354] sm:$0xf] %v2365_v51  ;;  %v2660_v8 = vsel %vm8057_vm5, %v2655_v45, %v2659_v49  ;;  %v2664_v60 = vor.u32 %v2663_v36, %v2659_v49  ;;  %v1617_v32 = vshrl.u32 %v1393_v24, 16  ;;  %v9084_v61 = vld [vmem:[%s10248_s2] ss:$0 sm:$0xff]  ;;  %v5431_v35 = vpop.f32.mrf.mxu0 }
 0x15f   : > { %v1623_v40 = vshll.u32 %v9065_v43, 16  ;;  %v5427_v26 = vadd.f32 %v9084_v61, %v5426_v55  ;;  %3035 = vst [vmem:[#allocation2 + $0x25c] sm:$0xf] %v2660_v8  ;;  %v1610_v63 = vor.u32 %v1609_v6, %v9035_v21  ;;  %v1627_v5 = vshrl.u32 %v9065_v43, 16  ;;  %v2022_v7 = vld [vmem:[%s8014_s28 + $0x58] sm:$0xf]  ;;  %v5653_v27 = vpop.f32.mrf.mxu1 }
 0x160   : > { %v1615_v4 = vrot.slane %v1613_v59, 5  ;;  %v9091_v12 = vld [vmem:[%s8014_s28 + $0x5c] sm:$0xf]  ;;  %v7747_v13 = vld [vmem:[#allocation2 + $0x210] ss:$36 sps:$4 sm:$0xff]   ;;  %v2665_v2 = vrot.slane %v2664_v60, 4  ;;  %v5432_v39 = vadd.f32 %v9084_v61, %v5431_v35  ;;  %v5433_v49 = vpop.f32.mrf.mxu0 }
 0x161   : > { %v7749_v9 = vld [vmem:[#allocation2 + $0x214] ss:$36 sps:$4 sm:$0xff]   ;;  %v2457_v11 = vld [vmem:[%s8014_s28 + $0x64] sm:$0xf]  ;;  %v9094_v20 = vadd.f32 %v5651_v22, %v5427_v26  ;;  %v1611_v56 = vrot.slane %v1610_v63, 4  ;;  %v1619_v28 = vrot.slane %v1617_v32, 4  ;;  %v5656_v3 = vpop.f32.mrf.mxu1 }
 0x162   : > { %v9096_v30 = vrot.slane %v1623_v40, 5  ;;  %v9099_v21 = vld [vmem:[%s8014_s28 + $0x68] sm:$0xf]  ;;  %6096 = vmatprep.mubr.bf16.mxu1 %v7749_v9  ;;  %v2670_v14 = vsel %vm8057_vm5, %v2665_v2, %v9074_v57  ;;  %v2156_v29 = vrot.slane %v2154_v0, 4  ;;  %v2157_v24 = vrot.slane %v2022_v7, 5  ;;  %v5434_v60 = vpop.f32.mrf.mxu0 }
 0x163   : > { %v2160_v33 = vrot.slane %v9091_v12, 5  ;;  %v2366_v17 = vld [vmem:[%s8014_s28 + $0x78] sm:$0xf]  ;;  %6097 = vmatmul.mubr.bf16.gmra.mxu1 %v7747_v13  ;;  %3036 = vst [vmem:[#allocation2 + $0x280] sm:$0xf] %v2670_v14  ;;  %v1616_v43 = vsel %vm8057_vm5, %v1611_v56, %v1615_v4  ;;  %v1620_v34 = vor.u32 %v1619_v28, %v1615_v4  ;;  %v2673_v44 = vrot.slane %v2671_v41, 4  ;;  %v5658_v6 = vpop.f32.mrf.mxu1 }
 0x164   : > { %v1395_v46 = vld [vmem:[%s8014_s28 + $0x60] sm:$0xf]  ;;  %v2367_v45 = vld [vmem:[%s8014_s28 + $0x7c] sm:$0xf]  ;;  %2414 = vst [vmem:[#allocation2 + $0x378] sm:$0xf] %v2366_v17  ;;  %v2158_v36 = vsel %vm8044_vm4, %v2156_v29, %v2157_v24  ;;  %v9115_v54 = vadd.f32 %v5656_v3, %v5432_v39  ;;  %v5435_v63 = vadd.f32 %v9084_v61, %v5434_v60  ;;  %v5436_v9 = vpop.f32.mrf.mxu0 }
 0x165   : > { %v7750_v47 = vld [vmem:[#allocation2 + $0x250] ss:$36 sps:$4 sm:$0xff]   ;;  %1973 = vst [vmem:[#allocation2 + $0x298] sm:$0xf] %v1616_v43  ;;  %v2159_v51 = vrot.slane %v2157_v24, 4  ;;  %v1621_v59 = vrot.slane %v1620_v34, 4  ;;  %v2674_v41 = vor.u32 %v2673_v44, %v9074_v57  ;;  %v5659_v57 = vpop.f32.mrf.mxu1 }
 0x166   : > { %v7752_v0 = vld [vmem:[#allocation2 + $0x254] ss:$36 sps:$4 sm:$0xff]   ;;  %2415 = vst [vmem:[#allocation2 + $0x39c] sm:$0xf] %v2367_v45  ;;  %2312 = vst [vmem:[#allocation2 + $0x29c] sm:$0xf] %v2158_v36  ;;  %v9134_v28 = vadd.f32 %v5659_v57, %v5435_v63 }
 0x167   : > { %v2677_v55 = vshll.u32 %v2457_v11, 16  ;;  %v9119_v8 = vld [vmem:[%s8014_s28 + $0x64] sm:$0xf]  ;;  %5879 = vmatprep.mubr.bf16.mxu0 %v7752_v0  ;;  %v2161_v32 = vsel %vm8044_vm4, %v2159_v51, %v2160_v33  ;;  %v2681_v40 = vshrl.u32 %v2457_v11, 16  ;;  %v2687_v26 = vshll.u32 %v9099_v21, 16 }
 0x168   : > { %v2691_v22 = vshrl.u32 %v9099_v21, 16  ;;  %5880 = vmatmul.mubr.bf16.gmra.mxu0 %v7750_v47  ;;  %v1626_v4 = vsel %vm8057_vm5, %v1621_v59, %v9096_v30  ;;  %2313 = vst [vmem:[#allocation2 + $0x2c0] sm:$0xf] %v2161_v32  ;;  %v2675_v7 = vrot.slane %v2674_v41, 4  ;;  %v1629_v11 = vrot.slane %v1627_v5, 4  ;;  %v5661_v21 = vpop.f32.mrf.mxu1  ;;  %v5439_v5 = vpop.f32.mrf.mxu0 }
 0x169   : > { %v2679_v13 = vrot.slane %v2677_v55, 5  ;;  %1974 = vst [vmem:[#allocation2 + $0x2bc] sm:$0xf] %v1626_v4  ;;  %v2683_v19 = vrot.slane %v2681_v40, 4  ;;  %v9131_v2 = vrot.slane %v2687_v26, 5  ;;  %v1633_v27 = vshll.u32 %v1395_v46, 16 }
 0x16a   : > { %v2024_v56 = vld [vmem:[%s8014_s28 + $0x60] sm:$0xf]  ;;  %v1637_v35 = vshrl.u32 %v1395_v46, 16  ;;  %v1643_v29 = vshll.u32 %v9119_v8, 16  ;;  %v9140_v24 = vld [vmem:[%s8014_s28 + $0x64] sm:$0xf]  ;;  %v1630_v34 = vor.u32 %v1629_v11, %v9096_v30  ;;  %v5440_v45 = vadd.f32 %v9084_v61, %v5439_v5  ;;  %v5664_v47 = vpop.f32.mrf.mxu1  ;;  %v5441_v6 = vpop.f32.mrf.mxu0 }
 0x16b   : > { %v2680_v14 = vsel %vm8057_vm5, %v2675_v7, %v2679_v13  ;;  %v2368_v17 = vld [vmem:[%s8014_s28 + $0x80] sm:$0xf]  ;;  %v7753_v39 = vld [vmem:[#allocation2 + $0x258] ss:$36 sps:$4 sm:$0xff]   ;;  %v2684_v43 = vor.u32 %v2683_v19, %v2679_v13  ;;  %v1635_v44 = vrot.slane %v1633_v27, 5  ;;  %v1647_v49 = vshrl.u32 %v9119_v8, 16 }
 0x16c   : > { %v7755_v3 = vld [vmem:[#allocation2 + $0x25c] ss:$36 sps:$4 sm:$0xff]   ;;  %3037 = vst [vmem:[#allocation2 + $0x2a4] sm:$0xf] %v2680_v14  ;;  %2416 = vst [vmem:[#allocation2 + $0x3c0] sm:$0xf] %v2368_v17  ;;  %v9151_v55 = vadd.f32 %v5664_v47, %v5440_v45  ;;  %v5666_v60 = vpop.f32.mrf.mxu1  ;;  %v5442_v12 = vpop.f32.mrf.mxu0 }
 0x16d   : > { %v1639_v0 = vrot.slane %v1637_v35, 4  ;;  %v9145_v46 = vrot.slane %v1643_v29, 5  ;;  %v2369_v36 = vld [vmem:[%s8014_s28 + $0x84] sm:$0xf]  ;;  %6104 = vmatprep.mubr.bf16.mxu1 %v7755_v3  ;;  %v2685_v51 = vrot.slane %v2684_v43, 4  ;;  %v1631_v59 = vrot.slane %v1630_v34, 4 }
 0x16e   : > { %v2162_v30 = vrot.slane %v2160_v33, 4  ;;  %v2163_v41 = vrot.slane %v2024_v56, 5  ;;  %2417 = vst [vmem:[#allocation2 + $0x3e4] sm:$0xf] %v2369_v36  ;;  %6105 = vmatmul.mubr.bf16.gmra.mxu1 %v7753_v39  ;;  %v2166_v40 = vrot.slane %v9140_v24, 5  ;;  %v2693_v63 = vrot.slane %v2691_v22, 4  ;;  %v5667_v22 = vpop.f32.mrf.mxu1  ;;  %v5444_v21 = vpop.f32.mrf.mxu0 }
 0x16f   : > { %v1640_v32 = vor.u32 %v1639_v0, %v1635_v44  ;;  %v2459_v26 = vld [vmem:[%s8014_s28 + $0x6c] sm:$0xf]  ;;  %v9156_v8 = vld [vmem:[%s8014_s28 + $0x70] sm:$0xf]  ;;  %v2690_v57 = vsel %vm8057_vm5, %v2685_v51, %v9131_v2  ;;  %v1636_v33 = vsel %vm8057_vm5, %v1631_v59, %v1635_v44  ;;  %v1397_v13 = vld [vmem:[%s8014_s28 + $0x68] sm:$0xf]  ;;  %v5443_v11 = vadd.f32 %v9084_v61, %v5442_v12 }
 0x170   : > { %v2164_v4 = vsel %vm8044_vm4, %v2162_v30, %v2163_v41  ;;  %v2165_v7 = vrot.slane %v2163_v41, 4  ;;  %v7756_v9 = vld [vmem:[#allocation2 + $0x298] ss:$36 sps:$4 sm:$0xff]   ;;  %3038 = vst [vmem:[#allocation2 + $0x2c8] sm:$0xf] %v2690_v57  ;;  %v2694_v56 = vor.u32 %v2693_v63, %v9131_v2  ;;  %v2697_v35 = vshll.u32 %v2459_v26, 16  ;;  %v5669_v43 = vpop.f32.mrf.mxu1  ;;  %v5447_v0 = vpop.f32.mrf.mxu0 }
 0x171   : > { %v7758_v19 = vld [vmem:[#allocation2 + $0x29c] ss:$36 sps:$4 sm:$0xff]   ;;  %v1641_v27 = vrot.slane %v1640_v32, 4  ;;  %1975 = vst [vmem:[#allocation2 + $0x2e0] sm:$0xf] %v1636_v33  ;;  %v2701_v29 = vshrl.u32 %v2459_v26, 16  ;;  %v9176_v3 = vadd.f32 %v5667_v22, %v5443_v11  ;;  %v5448_v6 = vadd.f32 %v9084_v61, %v5447_v0 }
 0x172   : > { %2314 = vst [vmem:[#allocation2 + $0x2e4] sm:$0xf] %v2164_v4  ;;  %v2167_v14 = vsel %vm8044_vm4, %v2165_v7, %v2166_v40  ;;  %v2707_v17 = vshll.u32 %v9156_v8, 16  ;;  %v9174_v39 = vld [vmem:[%s8014_s28 + $0x6c] sm:$0xf]  ;;  %5887 = vmatprep.mubr.bf16.mxu0 %v7758_v19  ;;  %v2695_v5 = vrot.slane %v2694_v56, 4  ;;  %v5672_v59 = vpop.f32.mrf.mxu1  ;;  %v5449_v63 = vpop.f32.mrf.mxu0 }
 0x173   : > { %v1646_v2 = vsel %vm8057_vm5, %v1641_v27, %v9145_v46  ;;  %2315 = vst [vmem:[#allocation2 + $0x308] sm:$0xf] %v2167_v14  ;;  %v2711_v34 = vshrl.u32 %v9156_v8, 16  ;;  %5888 = vmatmul.mubr.bf16.gmra.mxu0 %v7756_v9  ;;  %v2699_v44 = vrot.slane %v2697_v35, 5  ;;  %v2703_v45 = vrot.slane %v2701_v29, 4  ;;  %v7838_v26 = vld [vmem:[%s10247_s1 + $0x200] sm:$0xff]  }
 0x174   : > { %1976 = vst [vmem:[#allocation2 + $0x304] sm:$0xf] %v1646_v2  ;;  %v9182_v47 = vrot.slane %v2707_v17, 5  ;;  %v1649_v36 = vrot.slane %v1647_v49, 4  ;;  %v2370_v51 = vld [vmem:[%s8014_s28 + $0x88] sm:$0xf]  ;;  %v9199_v7 = vadd.f32 %v5672_v59, %v5448_v6  ;;  %7424 = vmatprep.subr.bf16.mxu0 %v7838_v26  ;;  %7481 = vmatprep.subr.bf16.mxu1 %v7838_v26  ;;  %v5450_v21 = vpop.f32.mrf.mxu0 }
 0x175   : > { %v1653_v30 = vshll.u32 %v1397_v13, 16  ;;  %v1657_v41 = vshrl.u32 %v1397_v13, 16  ;;  %v1663_v60 = vshll.u32 %v9174_v39, 16  ;;  %v2371_v32 = vld [vmem:[%s8014_s28 + $0x8c] sm:$0xf]  ;;  %v2700_v8 = vsel %vm8057_vm5, %v2695_v5, %v2699_v44  ;;  %v5674_v13 = vpop.f32.mrf.mxu1  ;;  %7425 = vmatpush3.bf16.msra.mxu0 %v7838_v26  ;;  %7489 = vmatpush3.bf16.msra.mxu1 %v7838_v26 }
 0x176   : > { %2418 = vst [vmem:[#allocation2 + $0x408] sm:$0xf] %v2370_v51  ;;  %v2704_v49 = vor.u32 %v2703_v45, %v2699_v44  ;;  %v1650_v57 = vor.u32 %v1649_v36, %v9145_v46  ;;  %v1667_v12 = vshrl.u32 %v9174_v39, 16  ;;  %v2026_v33 = vld [vmem:[%s8014_s28 + $0x68] sm:$0xf]  ;;  %v5451_v14 = vadd.f32 %v9084_v61, %v5450_v21  ;;  %v5452_v44 = vpop.f32.mrf.mxu0 }
 0x177   : > { %v9197_v4 = vld [vmem:[%s8014_s28 + $0x6c] sm:$0xf]  ;;  %2419 = vst [vmem:[#allocation2 + $0x42c] sm:$0xf] %v2371_v32  ;;  %3039 = vst [vmem:[#allocation2 + $0x2ec] sm:$0xf] %v2700_v8  ;;  %v5675_v35 = vpop.f32.mrf.mxu1 }
 0x178   : > { %v1655_v9 = vrot.slane %v1653_v30, 5  ;;  %v1659_v19 = vrot.slane %v1657_v41, 4  ;;  %v9201_v11 = vrot.slane %v1663_v60, 5  ;;  %v2461_v22 = vld [vmem:[%s8014_s28 + $0x74] sm:$0xf]  ;;  %v2705_v56 = vrot.slane %v2704_v49, 4  ;;  %v5455_v8 = vpop.f32.mrf.mxu0 }
 0x179   : > { %v7759_v27 = vld [vmem:[#allocation2 + $0x2a0] ss:$36 sps:$4 sm:$0xff]   ;;  %v1651_v29 = vrot.slane %v1650_v57, 4  ;;  %v2168_v43 = vrot.slane %v2166_v40, 4  ;;  %v9208_v2 = vld [vmem:[%s8014_s28 + $0x78] sm:$0xf]  ;;  %v9215_v24 = vadd.f32 %v5675_v35, %v5451_v14  ;;  %v5677_v40 = vpop.f32.mrf.mxu1  ;;  %v5456_v21 = vadd.f32 %v9084_v61, %v5455_v8 }
 0x17a   : > { %v7761_v46 = vld [vmem:[#allocation2 + $0x2a4] ss:$36 sps:$4 sm:$0xff]   ;;  %v1660_v17 = vor.u32 %v1659_v19, %v1655_v9  ;;  %v2710_v5 = vsel %vm8057_vm5, %v2705_v56, %v9182_v47  ;;  %v2169_v45 = vrot.slane %v2026_v33, 5  ;;  %v2172_v0 = vrot.slane %v9197_v4, 5  ;;  %v1399_v51 = vld [vmem:[%s8014_s28 + $0x70] sm:$0xf]  ;;  %v5457_v14 = vpop.f32.mrf.mxu0 }
 0x17b   : > { %6112 = vmatprep.mubr.bf16.mxu1 %v7761_v46  ;;  %v2713_v36 = vrot.slane %v2711_v34, 4  ;;  %v7763_v6 = vld [vmem:[#allocation2 + $0x2e0] ss:$36 sps:$4 sm:$0xff]   ;;  %3040 = vst [vmem:[#allocation2 + $0x310] sm:$0xf] %v2710_v5  ;;  %v1656_v30 = vsel %vm8057_vm5, %v1651_v29, %v1655_v9  ;;  %v2717_v26 = vshll.u32 %v2461_v22, 16  ;;  %v5680_v19 = vpop.f32.mrf.mxu1 }
 0x17c   : > { %6113 = vmatmul.mubr.bf16.gmra.mxu1 %v7759_v27  ;;  %v7765_v59 = vld [vmem:[#allocation2 + $0x2e4] ss:$36 sps:$4 sm:$0xff]   ;;  %v1661_v41 = vrot.slane %v1660_v17, 4  ;;  %1977 = vst [vmem:[#allocation2 + $0x328] sm:$0xf] %v1656_v30  ;;  %v2170_v60 = vsel %vm8044_vm4, %v2168_v43, %v2169_v45  ;;  %v2171_v34 = vrot.slane %v2169_v45, 4  ;;  %v9243_v5 = vadd.f32 %v5680_v19, %v5456_v21  ;;  %v5458_v44 = vpop.f32.mrf.mxu0 }
 0x17d   : > { %v2714_v32 = vor.u32 %v2713_v36, %v9182_v47  ;;  %v9223_v49 = vld [vmem:[%s8014_s28 + $0x74] sm:$0xf]  ;;  %v2372_v63 = vld [vmem:[%s8014_s28 + $0x90] sm:$0xf]  ;;  %5895 = vmatprep.mubr.bf16.mxu0 %v7765_v59  ;;  %2316 = vst [vmem:[#allocation2 + $0x32c] sm:$0xf] %v2170_v60  ;;  %v5682_v29 = vpop.f32.mrf.mxu1  ;;  %v5459_v59 = vadd.f32 %v9084_v61, %v5458_v44 }
 0x17e   : > { %v1666_v57 = vsel %vm8057_vm5, %v1661_v41, %v9201_v11  ;;  %v2721_v33 = vshrl.u32 %v2461_v22, 16  ;;  %v2727_v13 = vshll.u32 %v9208_v2, 16  ;;  %v2731_v9 = vshrl.u32 %v9208_v2, 16  ;;  %v2373_v27 = vld [vmem:[%s8014_s28 + $0x94] sm:$0xf]  ;;  %5896 = vmatmul.mubr.bf16.gmra.mxu0 %v7763_v6 }
 0x17f   : > { %2420 = vst [vmem:[#allocation2 + $0x450] sm:$0xf] %v2372_v63  ;;  %1978 = vst [vmem:[#allocation2 + $0x34c] sm:$0xf] %v1666_v57  ;;  %v2173_v47 = vsel %vm8044_vm4, %v2171_v34, %v2172_v0  ;;  %v2715_v46 = vrot.slane %v2714_v32, 4  ;;  %v2719_v56 = vrot.slane %v2717_v26, 5  ;;  %v5683_v40 = vpop.f32.mrf.mxu1  ;;  %v5460_v32 = vpop.f32.mrf.mxu0 }
 0x180   : > { %2421 = vst [vmem:[#allocation2 + $0x474] sm:$0xf] %v2373_v27  ;;  %2317 = vst [vmem:[#allocation2 + $0x350] sm:$0xf] %v2173_v47  ;;  %v2723_v22 = vrot.slane %v2721_v33, 4  ;;  %v9237_v35 = vrot.slane %v2727_v13, 5  ;;  %v9252_v8 = vadd.f32 %v5683_v40, %v5459_v59 }
 0x181   : > { %v1669_v17 = vrot.slane %v1667_v12, 4  ;;  %v1673_v43 = vshll.u32 %v1399_v51, 16  ;;  %v2720_v2 = vsel %vm8057_vm5, %v2715_v46, %v2719_v56  ;;  %v1677_v45 = vshrl.u32 %v1399_v51, 16  ;;  %v2028_v12 = vld [vmem:[%s8014_s28 + $0x70] sm:$0xf]  ;;  %v5685_v63 = vpop.f32.mrf.mxu1 }
 0x182   : > { %v1683_v36 = vshll.u32 %v9223_v49, 16  ;;  %v2724_v6 = vor.u32 %v2723_v22, %v2719_v56  ;;  %3041 = vst [vmem:[#allocation2 + $0x334] sm:$0xf] %v2720_v2  ;;  %v9250_v41 = vld [vmem:[%s8014_s28 + $0x74] sm:$0xf]  ;;  %v1687_v19 = vshrl.u32 %v9223_v49, 16  ;;  %v5463_v56 = vpop.f32.mrf.mxu0 }
 0x183   : > { %v1670_v30 = vor.u32 %v1669_v17, %v9201_v11  ;;  %v1675_v39 = vrot.slane %v1673_v43, 5  ;;  %v7766_v60 = vld [vmem:[#allocation2 + $0x2e8] ss:$36 sps:$4 sm:$0xff]   ;;  %v1679_v26 = vrot.slane %v1677_v45, 4  ;;  %v2463_v13 = vld [vmem:[%s8014_s28 + $0x7c] sm:$0xf]  ;;  %v5688_v17 = vpop.f32.mrf.mxu1  ;;  %v5464_v45 = vadd.f32 %v9084_v61, %v5463_v56 }
 0x184   : > { %v7768_v34 = vld [vmem:[#allocation2 + $0x2ec] ss:$36 sps:$4 sm:$0xff]   ;;  %v2725_v51 = vrot.slane %v2724_v6, 4  ;;  %v9254_v33 = vrot.slane %v1683_v36, 5  ;;  %v2174_v27 = vrot.slane %v2172_v0, 4  ;;  %v2175_v47 = vrot.slane %v2028_v12, 5  ;;  %v5465_v36 = vpop.f32.mrf.mxu0 }
 0x185   : > { %v1671_v57 = vrot.slane %v1670_v30, 4  ;;  %6120 = vmatprep.mubr.bf16.mxu1 %v7768_v34  ;;  %v1680_v11 = vor.u32 %v1679_v26, %v1675_v39  ;;  %v9261_v46 = vld [vmem:[%s8014_s28 + $0x80] sm:$0xf]  ;;  %v2178_v22 = vrot.slane %v9250_v41, 5  ;;  %v2733_v29 = vrot.slane %v2731_v9, 4  ;;  %v5690_v30 = vpop.f32.mrf.mxu1 }
 0x186   : > { %6121 = vmatmul.mubr.bf16.gmra.mxu1 %v7766_v60  ;;  %v2730_v21 = vsel %vm8057_vm5, %v2725_v51, %v9237_v35  ;;  %v2374_v49 = vld [vmem:[%s8014_s28 + $0x98] sm:$0xf]  ;;  %v2375_v43 = vld [vmem:[%s8014_s28 + $0x9c] sm:$0xf]  ;;  %v7769_v4 = vld [vmem:[#allocation2 + $0x328] ss:$36 sps:$4 sm:$0xff]   ;;  %v2176_v44 = vsel %vm8044_vm4, %v2174_v27, %v2175_v47  ;;  %v9281_v32 = vadd.f32 %v5688_v17, %v5464_v45  ;;  %v5466_v26 = vpop.f32.mrf.mxu0 }
 0x187   : > { %v1676_v14 = vsel %vm8057_vm5, %v1671_v57, %v1675_v39  ;;  %v7771_v0 = vld [vmem:[#allocation2 + $0x32c] ss:$36 sps:$4 sm:$0xff]   ;;  %3042 = vst [vmem:[#allocation2 + $0x358] sm:$0xf] %v2730_v21  ;;  %v1681_v2 = vrot.slane %v1680_v11, 4  ;;  %v2177_v6 = vrot.slane %v2175_v47, 4  ;;  %v2734_v9 = vor.u32 %v2733_v29, %v9237_v35  ;;  %v5691_v11 = vpop.f32.mrf.mxu1 }
 0x188   : > { %1979 = vst [vmem:[#allocation2 + $0x370] sm:$0xf] %v1676_v14  ;;  %2422 = vst [vmem:[#allocation2 + $0x498] sm:$0xf] %v2374_v49  ;;  %v2737_v59 = vshll.u32 %v2463_v13, 16  ;;  %v2741_v40 = vshrl.u32 %v2463_v13, 16  ;;  %5903 = vmatprep.mubr.bf16.mxu0 %v7771_v0  ;;  %v5467_v47 = vadd.f32 %v9084_v61, %v5466_v26 }
 0x189   : > { %2423 = vst [vmem:[#allocation2 + $0x4bc] sm:$0xf] %v2375_v43  ;;  %2318 = vst [vmem:[#allocation2 + $0x374] sm:$0xf] %v2176_v44  ;;  %v1401_v39 = vld [vmem:[%s8014_s28 + $0x78] sm:$0xf]  ;;  %v1686_v12 = vsel %vm8057_vm5, %v1681_v2, %v9254_v33  ;;  %5904 = vmatmul.mubr.bf16.gmra.mxu0 %v7769_v4  ;;  %v2179_v35 = vsel %vm8044_vm4, %v2177_v6, %v2178_v22  ;;  %v5693_v49 = vpop.f32.mrf.mxu1 }
 0x18a   : > { %v2747_v60 = vshll.u32 %v9261_v46, 16  ;;  %v2751_v34 = vshrl.u32 %v9261_v46, 16  ;;  %v9284_v51 = vld [vmem:[%s8014_s28 + $0x7c] sm:$0xf]  ;;  %1980 = vst [vmem:[#allocation2 + $0x394] sm:$0xf] %v1686_v12  ;;  %v5468_v46 = vpop.f32.mrf.mxu0  ;;  %v9301_v44 = vadd.f32 %v5691_v11, %v5467_v47 }
 0x18b   : > { %v2735_v63 = vrot.slane %v2734_v9, 4  ;;  %v2739_v57 = vrot.slane %v2737_v59, 5  ;;  %v2743_v13 = vrot.slane %v2741_v40, 4  ;;  %2319 = vst [vmem:[#allocation2 + $0x398] sm:$0xf] %v2179_v35  ;;  %v1689_v56 = vrot.slane %v1687_v19, 4 }
 0x18c   : > { %v9290_v27 = vrot.slane %v2747_v60, 5  ;;  %v1693_v21 = vshll.u32 %v1401_v39, 16  ;;  %v2030_v14 = vld [vmem:[%s8014_s28 + $0x78] sm:$0xf]  ;;  %v1697_v43 = vshrl.u32 %v1401_v39, 16  ;;  %v1703_v4 = vshll.u32 %v9284_v51, 16  ;;  %v5471_v6 = vpop.f32.mrf.mxu0  ;;  %v5696_v60 = vpop.f32.mrf.mxu1 }
 0x18d   : > { %v2740_v29 = vsel %vm8057_vm5, %v2735_v63, %v2739_v57  ;;  %v2744_v17 = vor.u32 %v2743_v13, %v2739_v57  ;;  %v9298_v0 = vld [vmem:[%s8014_s28 + $0x7c] sm:$0xf]  ;;  %v2465_v2 = vld [vmem:[%s8014_s28 + $0x84] sm:$0xf]  ;;  %v1690_v19 = vor.u32 %v1689_v56, %v9254_v33  ;;  %v1707_v36 = vshrl.u32 %v9284_v51, 16 }
 0x18e   : > { %3043 = vst [vmem:[#allocation2 + $0x37c] sm:$0xf] %v2740_v29  ;;  %v1695_v45 = vrot.slane %v1693_v21, 5  ;;  %v2376_v9 = vld [vmem:[%s8014_s28 + $0xa0] sm:$0xf]  ;;  %v5472_v12 = vadd.f32 %v9084_v61, %v5471_v6  ;;  %v1699_v35 = vrot.slane %v1697_v43, 4  ;;  %v5473_v51 = vpop.f32.mrf.mxu0  ;;  %v5698_v56 = vpop.f32.mrf.mxu1 }
 0x18f   : > { %v2377_v59 = vld [vmem:[%s8014_s28 + $0xa4] sm:$0xf]  ;;  %v7772_v40 = vld [vmem:[#allocation2 + $0x330] ss:$36 sps:$4 sm:$0xff]   ;;  %v2745_v39 = vrot.slane %v2744_v17, 4  ;;  %v1691_v26 = vrot.slane %v1690_v19, 4 }
 0x190   : > { %v7774_v30 = vld [vmem:[#allocation2 + $0x334] ss:$36 sps:$4 sm:$0xff]   ;;  %2424 = vst [vmem:[#allocation2 + $0x4e0] sm:$0xf] %v2376_v9  ;;  %2425 = vst [vmem:[#allocation2 + $0x504] sm:$0xf] %v2377_v59  ;;  %v1700_v41 = vor.u32 %v1699_v35, %v1695_v45  ;;  %v5474_v17 = vpop.f32.mrf.mxu0  ;;  %v9324_v19 = vadd.f32 %v5696_v60, %v5472_v12  ;;  %v5699_v6 = vpop.f32.mrf.mxu1 }
 0x191   : > { %v9308_v63 = vrot.slane %v1703_v4, 5  ;;  %v2180_v33 = vrot.slane %v2178_v22, 4  ;;  %6128 = vmatprep.mubr.bf16.mxu1 %v7774_v30  ;;  %v2750_v57 = vsel %vm8057_vm5, %v2745_v39, %v9290_v27  ;;  %v2181_v13 = vrot.slane %v2030_v14, 5  ;;  %v9317_v47 = vld [vmem:[%s8014_s28 + $0x88] sm:$0xf] }
 0x192   : > { %v2184_v11 = vrot.slane %v9298_v0, 5  ;;  %v2753_v46 = vrot.slane %v2751_v34, 4  ;;  %6129 = vmatmul.mubr.bf16.gmra.mxu1 %v7772_v40  ;;  %3044 = vst [vmem:[#allocation2 + $0x3a0] sm:$0xf] %v2750_v57  ;;  %v1696_v21 = vsel %vm8057_vm5, %v1691_v26, %v1695_v45  ;;  %v2757_v22 = vshll.u32 %v2465_v2, 16  ;;  %v5476_v40 = vpop.f32.mrf.mxu0  ;;  %v5701_v26 = vpop.f32.mrf.mxu1 }
 0x193   : > { %v2761_v29 = vshrl.u32 %v2465_v2, 16  ;;  %v7775_v49 = vld [vmem:[#allocation2 + $0x370] ss:$36 sps:$4 sm:$0xff]   ;;  %1981 = vst [vmem:[#allocation2 + $0x3b8] sm:$0xf] %v1696_v21  ;;  %v2182_v14 = vsel %vm8044_vm4, %v2180_v33, %v2181_v13  ;;  %v2183_v4 = vrot.slane %v2181_v13, 4  ;;  %v5475_v60 = vadd.f32 %v9084_v61, %v5474_v17 }
 0x194   : > { %v7777_v43 = vld [vmem:[#allocation2 + $0x374] ss:$36 sps:$4 sm:$0xff]   ;;  %v2754_v34 = vor.u32 %v2753_v46, %v9290_v27  ;;  %v1701_v9 = vrot.slane %v1700_v41, 4  ;;  %2320 = vst [vmem:[#allocation2 + $0x3bc] sm:$0xf] %v2182_v14  ;;  %v2759_v45 = vrot.slane %v2757_v22, 5 }
 0x195   : > { %v2763_v59 = vrot.slane %v2761_v29, 4  ;;  %v2767_v2 = vshll.u32 %v9317_v47, 16  ;;  %v1403_v30 = vld [vmem:[%s8014_s28 + $0x80] sm:$0xf]  ;;  %5911 = vmatprep.mubr.bf16.mxu0 %v7777_v43  ;;  %v2185_v27 = vsel %vm8044_vm4, %v2183_v4, %v2184_v11  ;;  %v2771_v12 = vshrl.u32 %v9317_v47, 16  ;;  %v5479_v47 = vpop.f32.mrf.mxu0  ;;  %v5704_v43 = vpop.f32.mrf.mxu1 }
 0x196   : > { %v2755_v39 = vrot.slane %v2754_v34, 4  ;;  %v9335_v35 = vld [vmem:[%s8014_s28 + $0x84] sm:$0xf]  ;;  %5912 = vmatmul.mubr.bf16.gmra.mxu0 %v7775_v49  ;;  %v1706_v33 = vsel %vm8057_vm5, %v1701_v9, %v9308_v63  ;;  %2321 = vst [vmem:[#allocation2 + $0x3e0] sm:$0xf] %v2185_v27  ;;  %v1709_v13 = vrot.slane %v1707_v36, 4  ;;  %v9347_v22 = vadd.f32 %v5699_v6, %v5475_v60 }
 0x197   : > { %v2764_v51 = vor.u32 %v2763_v59, %v2759_v45  ;;  %v2769_v57 = vrot.slane %v2767_v2, 5  ;;  %v2032_v46 = vld [vmem:[%s8014_s28 + $0x80] sm:$0xf]  ;;  %v9342_v56 = vld [vmem:[%s8014_s28 + $0x84] sm:$0xf]  ;;  %v1713_v29 = vshll.u32 %v1403_v30, 16  ;;  %v5481_v2 = vpop.f32.mrf.mxu0  ;;  %v5706_v27 = vpop.f32.mrf.mxu1 }
 0x198   : > { %v2378_v21 = vld [vmem:[%s8014_s28 + $0xa8] sm:$0xf]  ;;  %1982 = vst [vmem:[#allocation2 + $0x3dc] sm:$0xf] %v1706_v33  ;;  %v2760_v41 = vsel %vm8057_vm5, %v2755_v39, %v2759_v45  ;;  %v1717_v17 = vshrl.u32 %v1403_v30, 16  ;;  %v1710_v36 = vor.u32 %v1709_v13, %v9308_v63  ;;  %v1723_v34 = vshll.u32 %v9335_v35, 16 }
 0x199   : > { %v2467_v49 = vld [vmem:[%s8014_s28 + $0x8c] sm:$0xf]  ;;  %2426 = vst [vmem:[#allocation2 + $0x528] sm:$0xf] %v2378_v21  ;;  %v2765_v4 = vrot.slane %v2764_v51, 4  ;;  %v1727_v9 = vshrl.u32 %v9335_v35, 16  ;;  %v5480_v30 = vadd.f32 %v9084_v61, %v5479_v47  ;;  %v5482_v33 = vpop.f32.mrf.mxu0  ;;  %v5707_v47 = vpop.f32.mrf.mxu1 }
 0x19a   : > { %v2379_v14 = vld [vmem:[%s8014_s28 + $0xac] sm:$0xf]  ;;  %3045 = vst [vmem:[#allocation2 + $0x3c4] sm:$0xf] %v2760_v41  ;;  %v9355_v59 = vld [vmem:[%s8014_s28 + $0x90] sm:$0xf] }
 0x19b   : > { %2427 = vst [vmem:[#allocation2 + $0x54c] sm:$0xf] %v2379_v14  ;;  %v7778_v6 = vld [vmem:[#allocation2 + $0x378] ss:$36 sps:$4 sm:$0xff]   ;;  %v1715_v40 = vrot.slane %v1713_v29, 5  ;;  %v2770_v39 = vsel %vm8057_vm5, %v2765_v4, %v2769_v57  ;;  %v1711_v60 = vrot.slane %v1710_v36, 4  ;;  %v5484_v4 = vpop.f32.mrf.mxu0  ;;  %v9371_v27 = vadd.f32 %v5704_v43, %v5480_v30 }
 0x19c   : > { %v7780_v45 = vld [vmem:[#allocation2 + $0x37c] ss:$36 sps:$4 sm:$0xff]   ;;  %v1719_v26 = vrot.slane %v1717_v17, 4  ;;  %v9360_v63 = vrot.slane %v1723_v34, 5  ;;  %3046 = vst [vmem:[#allocation2 + $0x3e8] sm:$0xf] %v2770_v39  ;;  %v5709_v34 = vpop.f32.mrf.mxu1 }
 0x19d   : > { %6136 = vmatprep.mubr.bf16.mxu1 %v7780_v45  ;;  %v2186_v35 = vrot.slane %v2184_v11, 4  ;;  %v2187_v51 = vrot.slane %v2032_v46, 5  ;;  %v2190_v13 = vrot.slane %v9342_v56, 5  ;;  %v2773_v21 = vrot.slane %v2771_v12, 4  ;;  %v1405_v12 = vld [vmem:[%s8014_s28 + $0x88] sm:$0xf] }
 0x19e   : > { %6137 = vmatmul.mubr.bf16.gmra.mxu1 %v7778_v6  ;;  %v1716_v41 = vsel %vm8057_vm5, %v1711_v60, %v1715_v40  ;;  %v1720_v29 = vor.u32 %v1719_v26, %v1715_v40  ;;  %v2777_v17 = vshll.u32 %v2467_v49, 16  ;;  %v2781_v14 = vshrl.u32 %v2467_v49, 16  ;;  %v7784_v6 = vld [vmem:[#allocation2 + $0x3bc] ss:$36 sps:$4 sm:$0xff]   ;;  %v5487_v40 = vpop.f32.mrf.mxu0  ;;  %v9397_v34 = vld [vmem:[%s8014_s28 + $0x8c] sm:$0xf] }
 0x19f   : > { %1983 = vst [vmem:[#allocation2 + $0x400] sm:$0xf] %v1716_v41  ;;  %v2188_v36 = vsel %vm8044_vm4, %v2186_v35, %v2187_v51  ;;  %v2189_v0 = vrot.slane %v2187_v51, 4  ;;  %v2774_v11 = vor.u32 %v2773_v21, %v2769_v57  ;;  %v2787_v46 = vshll.u32 %v9355_v59, 16  ;;  %v7782_v2 = vld [vmem:[#allocation2 + $0x3b8] ss:$36 sps:$4 sm:$0xff]   ;;  %v9381_v51 = vpop.f32.mrf.mxu1  ;;  %5919 = vmatprep.mubr.bf16.mxu0 %v7784_v6 }
 0x1a0   : > { %v1721_v45 = vrot.slane %v1720_v29, 4  ;;  %2322 = vst [vmem:[#allocation2 + $0x404] sm:$0xf] %v2188_v36  ;;  %v5483_v49 = vadd.f32 %v9084_v61, %v5482_v33  ;;  %v2779_v60 = vrot.slane %v2777_v17, 5  ;;  %v2783_v26 = vrot.slane %v2781_v14, 4  ;;  %v5489_v41 = vpop.f32.mrf.mxu0  ;;  %5920 = vmatmul.mubr.bf16.gmra.mxu0 %v7782_v2 }
 0x1a1   : > { %v2191_v57 = vsel %vm8044_vm4, %v2189_v0, %v2190_v13  ;;  %v2775_v39 = vrot.slane %v2774_v11, 4  ;;  %v9379_v35 = vld [vmem:[%s8014_s28 + $0x8c] sm:$0xf]  ;;  %v9386_v30 = vrot.slane %v2787_v46, 5  ;;  %v2791_v33 = vshrl.u32 %v9355_v59, 16  ;;  %v5714_v46 = vpop.f32.mrf.mxu1 }
 0x1a2   : > { %v1726_v43 = vsel %vm8057_vm5, %v1721_v45, %v9360_v63  ;;  %2323 = vst [vmem:[#allocation2 + $0x428] sm:$0xf] %v2191_v57  ;;  %v9389_v21 = vadd.f32 %v5707_v47, %v5483_v49  ;;  %v2380_v29 = vld [vmem:[%s8014_s28 + $0xb0] sm:$0xf]  ;;  %v2381_v17 = vld [vmem:[%s8014_s28 + $0xb4] sm:$0xf]  ;;  %v2784_v4 = vor.u32 %v2783_v26, %v2779_v60  ;;  %v5488_v2 = vadd.f32 %v9084_v61, %v5487_v40  ;;  %v5490_v45 = vpop.f32.mrf.mxu0 }
 0x1a3   : > { %1984 = vst [vmem:[#allocation2 + $0x424] sm:$0xf] %v1726_v43  ;;  %v2780_v14 = vsel %vm8057_vm5, %v2775_v39, %v2779_v60  ;;  %v1729_v36 = vrot.slane %v1727_v9, 4  ;;  %v1733_v0 = vshll.u32 %v1405_v12, 16  ;;  %v2034_v11 = vld [vmem:[%s8014_s28 + $0x88] sm:$0xf]  ;;  %v9403_v26 = vpop.f32.mrf.mxu1 }
 0x1a4   : > { %10255 = vst [vmem:[#allocation3_spill] sm:$0xff] %v9389_v21  ;;  %2428 = vst [vmem:[#allocation2 + $0x570] sm:$0xf] %v2380_v29  ;;  %v7785_v59 = vld [vmem:[#allocation2 + $0x3c0] ss:$36 sps:$4 sm:$0xff]   ;;  %v1737_v6 = vshrl.u32 %v1405_v12, 16 }
 0x1a5   : > { %2429 = vst [vmem:[#allocation2 + $0x594] sm:$0xf] %v2381_v17  ;;  %v7787_v47 = vld [vmem:[#allocation2 + $0x3c4] ss:$36 sps:$4 sm:$0xff]   ;;  %3047 = vst [vmem:[#allocation2 + $0x40c] sm:$0xf] %v2780_v14  ;;  %v1730_v57 = vor.u32 %v1729_v36, %v9360_v63  ;;  %v5492_v63 = vpop.f32.mrf.mxu0 }
 0x1a6   : > { %v2785_v49 = vrot.slane %v2784_v4, 4  ;;  %v1735_v9 = vrot.slane %v1733_v0, 5  ;;  %v1743_v39 = vshll.u32 %v9379_v35, 16  ;;  %v2469_v60 = vld [vmem:[%s8014_s28 + $0x94] sm:$0xf]  ;;  %6144 = vmatprep.mubr.bf16.mxu1 %v7787_v47  ;;  %v1739_v43 = vrot.slane %v1737_v6, 4  ;;  %v5717_v4 = vpop.f32.mrf.mxu1 }
 0x1a7   : > { %v1747_v41 = vshrl.u32 %v9379_v35, 16  ;;  %v2192_v12 = vrot.slane %v2190_v13, 4  ;;  %v2193_v61 = vrot.slane %v2034_v11, 5  ;;  %v9409_v40 = vld [vmem:[%s8014_s28 + $0x98] sm:$0xf]  ;;  %6145 = vmatmul.mubr.bf16.gmra.mxu1 %v7785_v59  ;;  %v1731_v17 = vrot.slane %v1730_v57, 4  ;;  %v5495_v59 = vpop.f32.mrf.mxu0 }
 0x1a8   : > { %v2790_v29 = vsel %vm8057_vm5, %v2785_v49, %v9386_v30  ;;  %v9414_v14 = vrot.slane %v1743_v39, 5  ;;  %v10250_v35 = vrot.slane %v9397_v34, 5  ;;  %v1740_v56 = vor.u32 %v1739_v43, %v1735_v9  ;;  %v1407_v11 = vld [vmem:[%s8014_s28 + $0x90] sm:$0xf]  ;;  %v9421_v46 = vld [vmem:[%s8014_s28 + $0x94] sm:$0xf]  ;;  %v9427_v63 = vpop.f32.mrf.mxu1 }
 0x1a9   : > { %3048 = vst [vmem:[#allocation2 + $0x430] sm:$0xf] %v2790_v29  ;;  %v2194_v13 = vsel %vm8044_vm4, %v2192_v12, %v2193_v61  ;;  %v2195_v36 = vrot.slane %v2193_v61, 4  ;;  %v2793_v0 = vrot.slane %v2791_v33, 4  ;;  %v2382_v47 = vld [vmem:[%s8014_s28 + $0xb8] sm:$0xf]  ;;  %v1736_v6 = vsel %vm8057_vm5, %v1731_v17, %v1735_v9 }
 0x1aa   : > { %2324 = vst [vmem:[#allocation2 + $0x44c] sm:$0xf] %v2194_v13  ;;  %v2797_v49 = vshll.u32 %v2469_v60, 16  ;;  %v2801_v57 = vshrl.u32 %v2469_v60, 16  ;;  %v2807_v39 = vshll.u32 %v9409_v40, 16  ;;  %v1741_v33 = vrot.slane %v1740_v56, 4  ;;  %v5497_v60 = vpop.f32.mrf.mxu0 }
 0x1ab   : > { %v2383_v43 = vld [vmem:[%s8014_s28 + $0xbc] sm:$0xf]  ;;  %2430 = vst [vmem:[#allocation2 + $0x5b8] sm:$0xf] %v2382_v47  ;;  %v7788_v12 = vld [vmem:[#allocation2 + $0x400] ss:$36 sps:$4 sm:$0xff]   ;;  %v2197_v29 = vsel %vm8044_vm4, %v2195_v36, %v10250_v35  ;;  %v2794_v9 = vor.u32 %v2793_v0, %v9386_v30  ;;  %v9436_v17 = vadd.f32 %v9381_v51, %v5488_v2 }
 0x1ac   : > { %v7790_v61 = vld [vmem:[#allocation2 + $0x404] ss:$36 sps:$4 sm:$0xff]   ;;  %1985 = vst [vmem:[#allocation2 + $0x448] sm:$0xf] %v1736_v6  ;;  %2431 = vst [vmem:[#allocation2 + $0x5dc] sm:$0xf] %v2383_v43  ;;  %v5722_v6 = vpop.f32.mrf.mxu1  ;;  %v1746_v36 = vsel %vm8057_vm5, %v1741_v33, %v9414_v14 }
 0x1ad   : > { %10256 = vst [vmem:[#allocation4_spill] sm:$0xff] %v9436_v17  ;;  %2325 = vst [vmem:[#allocation2 + $0x470] sm:$0xf] %v2197_v29  ;;  %v2799_v4 = vrot.slane %v2797_v49, 5  ;;  %v2803_v13 = vrot.slane %v2801_v57, 4  ;;  %v9438_v47 = vrot.slane %v2807_v39, 5  ;;  %5927 = vmatprep.mubr.bf16.mxu0 %v7790_v61  ;;  %v5498_v49 = vpop.f32.mrf.mxu0 }
 0x1ae   : > { %v2811_v56 = vshrl.u32 %v9409_v40, 16  ;;  %v2795_v30 = vrot.slane %v2794_v9, 4  ;;  %v9447_v51 = vld [vmem:[%s10248_s2] ss:$0 sm:$0xff]  ;;  %v1749_v0 = vrot.slane %v1747_v41, 4  ;;  %5928 = vmatmul.mubr.bf16.gmra.mxu0 %v7788_v12  ;;  %v1753_v57 = vshll.u32 %v1407_v11, 16  ;;  %v5723_v33 = vpop.f32.mrf.mxu1 }
 0x1af   : > { %v5491_v2 = vadd.f32 %v9447_v51, %v5490_v45  ;;  %1986 = vst [vmem:[#allocation2 + $0x46c] sm:$0xf] %v1746_v36  ;;  %v2804_v40 = vor.u32 %v2803_v13, %v2799_v4  ;;  %v1757_v39 = vshrl.u32 %v1407_v11, 16  ;;  %v1763_v43 = vshll.u32 %v9421_v46, 16  ;;  %v2036_v61 = vld [vmem:[%s8014_s28 + $0x90] sm:$0xf]  ;;  %v5500_v13 = vpop.f32.mrf.mxu0 }
 0x1b0   : > { %v2800_v29 = vsel %vm8057_vm5, %v2795_v30, %v2799_v4  ;;  %v1750_v45 = vor.u32 %v1749_v0, %v9414_v14  ;;  %v1767_v41 = vshrl.u32 %v9421_v46, 16  ;;  %v9460_v12 = vld [vmem:[%s8014_s28 + $0x94] sm:$0xf]  ;;  %v2471_v60 = vld [vmem:[%s8014_s28 + $0x9c] sm:$0xf]  ;;  %v5496_v35 = vadd.f32 %v9447_v51, %v5495_v59 }
 0x1b1   : > { %v9455_v9 = vadd.f32 %v9403_v26, %v5491_v2  ;;  %v7791_v11 = vld [vmem:[#allocation2 + $0x408] ss:$36 sps:$4 sm:$0xff]   ;;  %v2805_v36 = vrot.slane %v2804_v40, 4  ;;  %3049 = vst [vmem:[#allocation2 + $0x454] sm:$0xf] %v2800_v29  ;;  %v5499_v4 = vadd.f32 %v9447_v51, %v5498_v49  ;;  %v5725_v26 = vpop.f32.mrf.mxu1  ;;  %v1755_v2 = vrot.slane %v1753_v57, 5 }
 0x1b2   : > { %v7793_v6 = vld [vmem:[#allocation2 + $0x40c] ss:$36 sps:$4 sm:$0xff]   ;;  %v1751_v30 = vrot.slane %v1750_v45, 4  ;;  %v1759_v14 = vrot.slane %v1757_v39, 4  ;;  %v9465_v0 = vrot.slane %v1763_v43, 5  ;;  %v10258_v59 = vrot.slane %v9397_v34, 5 }
 0x1b3   : > { %10257 = vst [vmem:[#allocation5_spill] sm:$0xff] %v9455_v9  ;;  %v9468_v46 = vld [vmem:[%s8014_s28 + $0xa0] sm:$0xf]  ;;  %v9470_v9 = vpop.f32.mrf.mxu0  ;;  %6152 = vmatprep.mubr.bf16.mxu1 %v7793_v6  ;;  %v2810_v40 = vsel %vm8057_vm5, %v2805_v36, %v9438_v47  ;;  %v2199_v29 = vrot.slane %v2036_v61, 5  ;;  %v2202_v57 = vrot.slane %v9460_v12, 5  ;;  %v9478_v39 = vpop.f32.mrf.mxu1  ;;  %v2813_v6 = vrot.slane %v2811_v56, 4 }
 0x1b4   : > { %v2198_v49 = vrot.slane %v10258_v59, 4  ;;  %v2384_v43 = vld [vmem:[%s8014_s28 + $0xc0] sm:$0xf]  ;;  %6153 = vmatmul.mubr.bf16.gmra.mxu1 %v7791_v11  ;;  %3050 = vst [vmem:[#allocation2 + $0x478] sm:$0xf] %v2810_v40  ;;  %v1756_v45 = vsel %vm8057_vm5, %v1751_v30, %v1755_v2  ;;  %v1760_v13 = vor.u32 %v1759_v14, %v1755_v2  ;;  %v2817_v26 = vshll.u32 %v2471_v60, 16 }
 0x1b5   : > { %v1409_v17 = vld [vmem:[%s8014_s28 + $0x98] sm:$0xf]  ;;  %v5505_v36 = vpop.f32.mrf.mxu0  ;;  %v2385_v21 = vld [vmem:[%s8014_s28 + $0xc4] sm:$0xf]  ;;  %2432 = vst [vmem:[#allocation2 + $0x600] sm:$0xf] %v2384_v43  ;;  %v5730_v40 = vpop.f32.mrf.mxu1  ;;  %v2814_v14 = vor.u32 %v2813_v6, %v9438_v47  ;;  %v9493_v43 = vadd.f32 %v9427_v63, %v5496_v35 }
 0x1b6   : > { %1987 = vst [vmem:[#allocation2 + $0x490] sm:$0xf] %v1756_v45  ;;  %v2200_v34 = vsel %vm8044_vm4, %v2198_v49, %v2199_v29  ;;  %v2201_v61 = vrot.slane %v2199_v29, 4  ;;  %v2821_v12 = vshrl.u32 %v2471_v60, 16  ;;  %v2827_v59 = vshll.u32 %v9468_v46, 16 }
 0x1b7   : > { %v9489_v11 = vld [vmem:[%s8014_s28 + $0x9c] sm:$0xf]  ;;  %2433 = vst [vmem:[#allocation2 + $0x624] sm:$0xf] %v2385_v21  ;;  %v7794_v30 = vld [vmem:[#allocation2 + $0x448] ss:$36 sps:$4 sm:$0xff]   ;;  %v9495_v45 = vadd.f32 %v5723_v33, %v5499_v4  ;;  %v5506_v49 = vpop.f32.mrf.mxu0  ;;  %v9501_v21 = vpop.f32.mrf.mxu1 }
 0x1b8   : > { %v7796_v2 = vld [vmem:[#allocation2 + $0x44c] ss:$36 sps:$4 sm:$0xff]   ;;  %v1761_v56 = vrot.slane %v1760_v13, 4  ;;  %2326 = vst [vmem:[#allocation2 + $0x494] sm:$0xf] %v2200_v34  ;;  %10259 = vst [vmem:[#allocation6_spill] sm:$0xff] %v9493_v43  ;;  %v2203_v60 = vsel %vm8044_vm4, %v2201_v61, %v2202_v57 }
 0x1b9   : > { %10260 = vst [vmem:[#allocation7_spill] sm:$0xff] %v9495_v45  ;;  %v2819_v29 = vrot.slane %v2817_v26, 5  ;;  %v2823_v36 = vrot.slane %v2821_v12, 4  ;;  %v9499_v40 = vrot.slane %v2827_v59, 5  ;;  %5935 = vmatprep.mubr.bf16.mxu0 %v7796_v2  ;;  %2327 = vst [vmem:[#allocation2 + $0x4b8] sm:$0xf] %v2203_v60  ;;  %v5508_v4 = vpop.f32.mrf.mxu0  ;;  %v5733_v12 = vpop.f32.mrf.mxu1 }
 0x1ba   : > { %v1766_v47 = vsel %vm8057_vm5, %v1761_v56, %v9465_v0  ;;  %v2815_v35 = vrot.slane %v2814_v14, 4  ;;  %v2831_v63 = vshrl.u32 %v9468_v46, 16  ;;  %v1769_v33 = vrot.slane %v1767_v41, 4  ;;  %5936 = vmatmul.mubr.bf16.gmra.mxu0 %v7794_v30  ;;  %v2038_v61 = vld [vmem:[%s8014_s28 + $0x98] sm:$0xf] }
 0x1bb   : > { %1988 = vst [vmem:[#allocation2 + $0x4b4] sm:$0xf] %v1766_v47  ;;  %v2824_v13 = vor.u32 %v2823_v36, %v2819_v29  ;;  %v1773_v6 = vshll.u32 %v1409_v17, 16  ;;  %v1777_v26 = vshrl.u32 %v1409_v17, 16  ;;  %v1783_v34 = vshll.u32 %v9489_v11, 16  ;;  %v5511_v14 = vpop.f32.mrf.mxu0 }
 0x1bc   : > { %v2820_v59 = vsel %vm8057_vm5, %v2815_v35, %v2819_v29  ;;  %v1770_v2 = vor.u32 %v1769_v33, %v9465_v0  ;;  %v1787_v56 = vshrl.u32 %v9489_v11, 16  ;;  %v9514_v46 = vld [vmem:[%s8014_s28 + $0x9c] sm:$0xf]  ;;  %v2204_v41 = vrot.slane %v2202_v57, 4  ;;  %v2473_v30 = vld [vmem:[%s8014_s28 + $0xa4] sm:$0xf]  ;;  %v5736_v35 = vpop.f32.mrf.mxu1 }
 0x1bd   : > { %v7797_v60 = vld [vmem:[#allocation2 + $0x450] ss:$36 sps:$4 sm:$0xff]   ;;  %v2825_v17 = vrot.slane %v2824_v13, 4  ;;  %3051 = vst [vmem:[#allocation2 + $0x49c] sm:$0xf] %v2820_v59  ;;  %v5504_v47 = vadd.f32 %v9447_v51, %v9470_v9  ;;  %v5507_v29 = vadd.f32 %v9447_v51, %v5506_v49  ;;  %v5512_v0 = vadd.f32 %v9447_v51, %v5511_v14  ;;  %v5513_v45 = vpop.f32.mrf.mxu0 }
 0x1be   : > { %v7799_v36 = vld [vmem:[#allocation2 + $0x454] ss:$36 sps:$4 sm:$0xff]   ;;  %v1771_v11 = vrot.slane %v1770_v2, 4  ;;  %v1775_v33 = vrot.slane %v1773_v6, 5  ;;  %v1779_v4 = vrot.slane %v1777_v26, 4  ;;  %v9521_v12 = vrot.slane %v1783_v34, 5  ;;  %v5738_v14 = vpop.f32.mrf.mxu1 }
 0x1bf   : > { %v9524_v57 = vld [vmem:[%s8014_s28 + $0xa8] sm:$0xf]  ;;  %6160 = vmatprep.mubr.bf16.mxu1 %v7799_v36  ;;  %v2830_v9 = vsel %vm8057_vm5, %v2825_v17, %v9499_v40  ;;  %v2205_v13 = vrot.slane %v2038_v61, 5  ;;  %v2208_v49 = vrot.slane %v9514_v46, 5  ;;  %v2833_v59 = vrot.slane %v2831_v63, 4  ;;  %v5514_v36 = vpop.f32.mrf.mxu0 }
 0x1c0   : > { %v2386_v2 = vld [vmem:[%s8014_s28 + $0xc8] sm:$0xf]  ;;  %6161 = vmatmul.mubr.bf16.gmra.mxu1 %v7797_v60  ;;  %3052 = vst [vmem:[#allocation2 + $0x4c0] sm:$0xf] %v2830_v9  ;;  %v1776_v6 = vsel %vm8057_vm5, %v1771_v11, %v1775_v33  ;;  %v1780_v26 = vor.u32 %v1779_v4, %v1775_v33  ;;  %v2837_v34 = vshll.u32 %v2473_v30, 16  ;;  %v2841_v45 = vshrl.u32 %v2473_v30, 16  ;;  %v9539_v9 = vpop.f32.mrf.mxu1 }
 0x1c1   : > { %v2387_v43 = vld [vmem:[%s8014_s28 + $0xcc] sm:$0xf]  ;;  %2434 = vst [vmem:[#allocation2 + $0x648] sm:$0xf] %v2386_v2  ;;  %1989 = vst [vmem:[#allocation2 + $0x4d8] sm:$0xf] %v1776_v6  ;;  %v2206_v61 = vsel %vm8044_vm4, %v2204_v41, %v2205_v13  ;;  %v2834_v63 = vor.u32 %v2833_v59, %v9499_v40  ;;  %v9542_v4 = vadd.f32 %v9478_v39, %v5504_v47 }
 0x1c2   : > { %v2207_v46 = vrot.slane %v2205_v13, 4  ;;  %v2847_v17 = vshll.u32 %v9524_v57, 16  ;;  %v1411_v60 = vld [vmem:[%s8014_s28 + $0xa0] sm:$0xf]  ;;  %2435 = vst [vmem:[#allocation2 + $0x66c] sm:$0xf] %v2387_v43  ;;  %v9545_v41 = vadd.f32 %v9501_v21, %v5507_v29  ;;  %v9547_v40 = vadd.f32 %v5736_v35, %v5512_v0  ;;  %v5516_v13 = vpop.f32.mrf.mxu0 }
 0x1c3   : > { %v7801_v11 = vld [vmem:[#allocation2 + $0x490] ss:$36 sps:$4 sm:$0xff]   ;;  %v1781_v30 = vrot.slane %v1780_v26, 4  ;;  %2328 = vst [vmem:[#allocation2 + $0x4dc] sm:$0xf] %v2206_v61  ;;  %10261 = vst [vmem:[#allocation8_spill] sm:$0xff] %v9542_v4  ;;  %v5741_v26 = vpop.f32.mrf.mxu1 }
 0x1c4   : > { %v7803_v33 = vld [vmem:[#allocation2 + $0x494] ss:$36 sps:$4 sm:$0xff]   ;;  %10262 = vst [vmem:[#allocation9_spill] sm:$0xff] %v9545_v41  ;;  %10263 = vst [vmem:[#allocation10_spill] sm:$0xff] %v9547_v40  ;;  %v2209_v59 = vsel %vm8044_vm4, %v2207_v46, %v2208_v49  ;;  %v2835_v14 = vrot.slane %v2834_v63, 4  ;;  %v2839_v43 = vrot.slane %v2837_v34, 5  ;;  %v5519_v34 = vpop.f32.mrf.mxu0 }
 0x1c5   : > { %v2843_v2 = vrot.slane %v2841_v45, 4  ;;  %v9552_v6 = vld [vmem:[%s8014_s28 + $0xa4] sm:$0xf]  ;;  %5943 = vmatprep.mubr.bf16.mxu0 %v7803_v33  ;;  %v1786_v39 = vsel %vm8057_vm5, %v1781_v30, %v9521_v12  ;;  %2329 = vst [vmem:[#allocation2 + $0x500] sm:$0xf] %v2209_v59  ;;  %v9557_v21 = vrot.slane %v2847_v17, 5  ;;  %v5744_v30 = vpop.f32.mrf.mxu1 }
 0x1c6   : > { %v2851_v47 = vshrl.u32 %v9524_v57, 16  ;;  %v1789_v29 = vrot.slane %v1787_v56, 4  ;;  %v2040_v0 = vld [vmem:[%s8014_s28 + $0xa0] sm:$0xf]  ;;  %v9562_v35 = vld [vmem:[%s8014_s28 + $0xa4] sm:$0xf]  ;;  %5944 = vmatmul.mubr.bf16.gmra.mxu0 %v7801_v11  ;;  %v2840_v45 = vsel %vm8057_vm5, %v2835_v14, %v2839_v43  ;;  %v5521_v11 = vpop.f32.mrf.mxu0 }
 0x1c7   : > { %1990 = vst [vmem:[#allocation2 + $0x4fc] sm:$0xf] %v1786_v39  ;;  %v2844_v61 = vor.u32 %v2843_v2, %v2839_v43  ;;  %v1793_v46 = vshll.u32 %v1411_v60, 16  ;;  %v1797_v63 = vshrl.u32 %v1411_v60, 16  ;;  %v2475_v33 = vld [vmem:[%s8014_s28 + $0xac] sm:$0xf]  ;;  %v5515_v60 = vadd.f32 %v9447_v51, %v5514_v36  ;;  %v5746_v40 = vpop.f32.mrf.mxu1 }
 0x1c8   : > { %v2388_v17 = vld [vmem:[%s8014_s28 + $0xd0] sm:$0xf]  ;;  %3053 = vst [vmem:[#allocation2 + $0x4e4] sm:$0xf] %v2840_v45  ;;  %v1790_v57 = vor.u32 %v1789_v29, %v9521_v12  ;;  %v1803_v56 = vshll.u32 %v9552_v6, 16  ;;  %v1807_v13 = vshrl.u32 %v9552_v6, 16  ;;  %v5520_v2 = vadd.f32 %v9447_v51, %v5519_v34 }
 0x1c9   : > { %v2210_v59 = vrot.slane %v2208_v49, 4  ;;  %v2389_v26 = vld [vmem:[%s8014_s28 + $0xd4] sm:$0xf]  ;;  %2436 = vst [vmem:[#allocation2 + $0x690] sm:$0xf] %v2388_v17  ;;  %v2845_v43 = vrot.slane %v2844_v61, 4  ;;  %v5522_v49 = vpop.f32.mrf.mxu0  ;;  %v5747_v40 = vpop.f32.mrf.mxu1 }
 0x1ca   : > { %v7804_v39 = vld [vmem:[#allocation2 + $0x498] ss:$36 sps:$4 sm:$0xff]   ;;  %2437 = vst [vmem:[#allocation2 + $0x6b4] sm:$0xf] %v2389_v26  ;;  %v1791_v45 = vrot.slane %v1790_v57, 4  ;;  %v1795_v12 = vrot.slane %v1793_v46, 5 }
 0x1cb   : > { %v7806_v14 = vld [vmem:[#allocation2 + $0x49c] ss:$36 sps:$4 sm:$0xff]   ;;  %v1799_v29 = vrot.slane %v1797_v63, 4  ;;  %v9574_v41 = vrot.slane %v1803_v56, 5  ;;  %v9577_v6 = vld [vmem:[%s8014_s28 + $0xb0] sm:$0xf]  ;;  %v2850_v17 = vsel %vm8057_vm5, %v2845_v43, %v9557_v21  ;;  %v5524_v11 = vpop.f32.mrf.mxu0 }
 0x1cc   : > { %6168 = vmatprep.mubr.bf16.mxu1 %v7806_v14  ;;  %v2211_v61 = vrot.slane %v2040_v0, 5  ;;  %v2214_v36 = vrot.slane %v9562_v35, 5  ;;  %v2853_v34 = vrot.slane %v2851_v47, 4  ;;  %3054 = vst [vmem:[#allocation2 + $0x508] sm:$0xf] %v2850_v17  ;;  %v1796_v46 = vsel %vm8057_vm5, %v1791_v45, %v1795_v12 }
 0x1cd   : > { %6169 = vmatmul.mubr.bf16.gmra.mxu1 %v7804_v39  ;;  %v1800_v63 = vor.u32 %v1799_v29, %v1795_v12  ;;  %v2857_v57 = vshll.u32 %v2475_v33, 16  ;;  %v2861_v56 = vshrl.u32 %v2475_v33, 16  ;;  %1991 = vst [vmem:[#allocation2 + $0x520] sm:$0xf] %v1796_v46  ;;  %v2867_v47 = vshll.u32 %v9577_v6, 16  ;;  %v5749_v39 = vpop.f32.mrf.mxu1 }
 0x1ce   : > { %v2212_v26 = vsel %vm8044_vm4, %v2210_v59, %v2211_v61  ;;  %v2213_v14 = vrot.slane %v2211_v61, 4  ;;  %v2854_v0 = vor.u32 %v2853_v34, %v9557_v21  ;;  %v1413_v35 = vld [vmem:[%s8014_s28 + $0xa8] sm:$0xf]  ;;  %v7807_v43 = vld [vmem:[#allocation2 + $0x4d8] ss:$36 sps:$4 sm:$0xff]   ;;  %v9591_v45 = vadd.f32 %v9539_v9, %v5515_v60  ;;  %v5527_v59 = vpop.f32.mrf.mxu0 }
 0x1cf   : > { %v7809_v17 = vld [vmem:[#allocation2 + $0x4dc] ss:$36 sps:$4 sm:$0xff]   ;;  %v1801_v4 = vrot.slane %v1800_v63, 4  ;;  %2330 = vst [vmem:[#allocation2 + $0x524] sm:$0xf] %v2212_v26  ;;  %v9593_v33 = vadd.f32 %v5744_v30, %v5520_v2  ;;  %v5523_v12 = vadd.f32 %v9447_v51, %v5522_v49  ;;  %v2859_v61 = vrot.slane %v2857_v57, 5  ;;  %v5752_v63 = vpop.f32.mrf.mxu1 }
 0x1d0   : > { %v2215_v21 = vsel %vm8044_vm4, %v2213_v14, %v2214_v36  ;;  %v2855_v29 = vrot.slane %v2854_v0, 4  ;;  %v2863_v34 = vrot.slane %v2861_v56, 4  ;;  %v9599_v46 = vld [vmem:[%s8014_s28 + $0xac] sm:$0xf]  ;;  %5951 = vmatprep.mubr.bf16.mxu0 %v7809_v17  ;;  %v9604_v30 = vrot.slane %v2867_v47, 5  ;;  %v5529_v49 = vpop.f32.mrf.mxu0 }
 0x1d1   : > { %10264 = vst [vmem:[#allocation11_spill] sm:$0xff] %v9593_v33  ;;  %v1806_v9 = vsel %vm8057_vm5, %v1801_v4, %v9574_v41  ;;  %2331 = vst [vmem:[#allocation2 + $0x548] sm:$0xf] %v2215_v21  ;;  %v2871_v60 = vshrl.u32 %v9577_v6, 16  ;;  %v1809_v2 = vrot.slane %v1807_v13, 4  ;;  %5952 = vmatmul.mubr.bf16.gmra.mxu0 %v7807_v43  ;;  %v1813_v11 = vshll.u32 %v1413_v35, 16  ;;  %v5754_v4 = vpop.f32.mrf.mxu1 }
 0x1d2   : > { %1992 = vst [vmem:[#allocation2 + $0x544] sm:$0xf] %v1806_v9  ;;  %v2860_v57 = vsel %vm8057_vm5, %v2855_v29, %v2859_v61  ;;  %v2864_v56 = vor.u32 %v2863_v34, %v2859_v61  ;;  %v1817_v26 = vshrl.u32 %v1413_v35, 16  ;;  %v2042_v14 = vld [vmem:[%s8014_s28 + $0xa8] sm:$0xf]  ;;  %v1823_v6 = vshll.u32 %v9599_v46, 16  ;;  %v5530_v17 = vpop.f32.mrf.mxu0 }
 0x1d3   : > { %v9611_v0 = vld [vmem:[%s8014_s28 + $0xac] sm:$0xf]  ;;  %3055 = vst [vmem:[#allocation2 + $0x52c] sm:$0xf] %v2860_v57  ;;  %v1810_v47 = vor.u32 %v1809_v2, %v9574_v41  ;;  %v1827_v13 = vshrl.u32 %v9599_v46, 16  ;;  %v2216_v39 = vrot.slane %v2214_v36, 4  ;;  %v9617_v34 = vadd.f32 %v5747_v40, %v5523_v12  ;;  %v5755_v49 = vpop.f32.mrf.mxu1 }
 0x1d4   : > { %v2477_v43 = vld [vmem:[%s8014_s28 + $0xb4] sm:$0xf]  ;;  %v7810_v21 = vld [vmem:[#allocation2 + $0x4e0] ss:$36 sps:$4 sm:$0xff]   ;;  %v2865_v61 = vrot.slane %v2864_v56, 4  ;;  %v5528_v35 = vadd.f32 %v9447_v51, %v5527_v59  ;;  %v5531_v9 = vadd.f32 %v9447_v51, %v5530_v17  ;;  %v1815_v41 = vrot.slane %v1813_v11, 5  ;;  %v5532_v36 = vpop.f32.mrf.mxu0 }
 0x1d5   : > { %v7812_v29 = vld [vmem:[#allocation2 + $0x4e4] ss:$36 sps:$4 sm:$0xff]   ;;  %10265 = vst [vmem:[#allocation12_spill] sm:$0xff] %v9617_v34  ;;  %v1811_v57 = vrot.slane %v1810_v47, 4  ;;  %v1819_v2 = vrot.slane %v1817_v26, 4  ;;  %v9621_v4 = vrot.slane %v1823_v6, 5  ;;  %v5757_v56 = vpop.f32.mrf.mxu1 }
 0x1d6   : > { %v9624_v33 = vld [vmem:[%s8014_s28 + $0xb8] sm:$0xf]  ;;  %6176 = vmatprep.mubr.bf16.mxu1 %v7812_v29  ;;  %v2870_v46 = vsel %vm8057_vm5, %v2865_v61, %v9604_v30  ;;  %v2217_v40 = vrot.slane %v2042_v14, 5  ;;  %v2220_v12 = vrot.slane %v9611_v0, 5  ;;  %v2873_v59 = vrot.slane %v2871_v60, 4  ;;  %v5535_v17 = vpop.f32.mrf.mxu0 }
 0x1d7   : > { %6177 = vmatmul.mubr.bf16.gmra.mxu1 %v7810_v21  ;;  %3056 = vst [vmem:[#allocation2 + $0x550] sm:$0xf] %v2870_v46  ;;  %v1816_v11 = vsel %vm8057_vm5, %v1811_v57, %v1815_v41  ;;  %v1820_v26 = vor.u32 %v1819_v2, %v1815_v41  ;;  %v2877_v47 = vshll.u32 %v2477_v43, 16  ;;  %v2881_v6 = vshrl.u32 %v2477_v43, 16  ;;  %v1415_v0 = vld [vmem:[%s8014_s28 + $0xb0] sm:$0xf]  ;;  %v5760_v21 = vpop.f32.mrf.mxu1 }
 0x1d8   : > { %1993 = vst [vmem:[#allocation2 + $0x568] sm:$0xf] %v1816_v11  ;;  %v2218_v29 = vsel %vm8044_vm4, %v2216_v39, %v2217_v40  ;;  %v2219_v61 = vrot.slane %v2217_v40, 4  ;;  %v2874_v14 = vor.u32 %v2873_v59, %v9604_v30  ;;  %v2887_v60 = vshll.u32 %v9624_v33, 16  ;;  %v7815_v46 = vld [vmem:[#allocation2 + $0x524] ss:$36 sps:$4 sm:$0xff]   ;;  %v5537_v2 = vpop.f32.mrf.mxu0 }
 0x1d9   : > { %v7813_v36 = vld [vmem:[#allocation2 + $0x520] ss:$36 sps:$4 sm:$0xff]   ;;  %v1821_v56 = vrot.slane %v1820_v26, 4  ;;  %2332 = vst [vmem:[#allocation2 + $0x56c] sm:$0xf] %v2218_v29  ;;  %v9637_v57 = vadd.f32 %v5752_v63, %v5528_v35  ;;  %v9639_v43 = vadd.f32 %v5755_v49, %v5531_v9  ;;  %v5536_v41 = vadd.f32 %v9447_v51, %v5535_v17  ;;  %v5762_v34 = vpop.f32.mrf.mxu1  ;;  %5959 = vmatprep.mubr.bf16.mxu0 %v7815_v46 }
 0x1da   : > { %v2221_v39 = vsel %vm8044_vm4, %v2219_v61, %v2220_v12  ;;  %v2875_v30 = vrot.slane %v2874_v14, 4  ;;  %v2879_v40 = vrot.slane %v2877_v47, 5  ;;  %v2883_v59 = vrot.slane %v2881_v6, 4  ;;  %v9645_v11 = vld [vmem:[%s8014_s28 + $0xb4] sm:$0xf]  ;;  %v5538_v26 = vpop.f32.mrf.mxu0  ;;  %5960 = vmatmul.mubr.bf16.gmra.mxu0 %v7813_v36 }
 0x1db   : > { %10266 = vst [vmem:[#allocation13_spill] sm:$0xff] %v9637_v57  ;;  %10267 = vst [vmem:[#allocation14_spill] sm:$0xff] %v9639_v43  ;;  %v1826_v63 = vsel %vm8057_vm5, %v1821_v56, %v9621_v4  ;;  %v2889_v35 = vrot.slane %v2887_v60, 5  ;;  %v2891_v9 = vshrl.u32 %v9624_v33, 16  ;;  %v1829_v49 = vrot.slane %v1827_v13, 4  ;;  %v5763_v14 = vpop.f32.mrf.mxu1 }
 0x1dc   : > { %2333 = vst [vmem:[#allocation2 + $0x590] sm:$0xf] %v2221_v39  ;;  %1994 = vst [vmem:[#allocation2 + $0x58c] sm:$0xf] %v1826_v63  ;;  %v2880_v47 = vsel %vm8057_vm5, %v2875_v30, %v2879_v40  ;;  %v2884_v6 = vor.u32 %v2883_v59, %v2879_v40  ;;  %v1833_v17 = vshll.u32 %v1415_v0, 16  ;;  %v1837_v34 = vshrl.u32 %v1415_v0, 16  ;;  %v5540_v56 = vpop.f32.mrf.mxu0 }
 0x1dd   : > { %v2044_v29 = vld [vmem:[%s8014_s28 + $0xb0] sm:$0xf]  ;;  %v9655_v61 = vld [vmem:[%s8014_s28 + $0xb4] sm:$0xf]  ;;  %3057 = vst [vmem:[#allocation2 + $0x574] sm:$0xf] %v2880_v47  ;;  %v1830_v60 = vor.u32 %v1829_v49, %v9621_v4  ;;  %v9661_v40 = vadd.f32 %v5760_v21, %v5536_v41  ;;  %v5539_v0 = vadd.f32 %v9447_v51, %v5538_v26  ;;  %v5765_v59 = vpop.f32.mrf.mxu1 }
 0x1de   : > { %v1843_v33 = vshll.u32 %v9645_v11, 16  ;;  %v1847_v13 = vshrl.u32 %v9645_v11, 16  ;;  %v2222_v36 = vrot.slane %v2220_v12, 4  ;;  %v2479_v46 = vld [vmem:[%s8014_s28 + $0xbc] sm:$0xf]  ;;  %v2885_v30 = vrot.slane %v2884_v6, 4  ;;  %v5543_v57 = vpop.f32.mrf.mxu0 }
 0x1df   : > { %v7816_v2 = vld [vmem:[#allocation2 + $0x528] ss:$36 sps:$4 sm:$0xff]   ;;  %10268 = vst [vmem:[#allocation15_spill] sm:$0xff] %v9661_v40  ;;  %v1831_v63 = vrot.slane %v1830_v60, 4  ;;  %v1835_v47 = vrot.slane %v1833_v17, 5  ;;  %v1839_v43 = vrot.slane %v1837_v34, 4  ;;  %v5768_v6 = vpop.f32.mrf.mxu1 }
 0x1e0   : > { %v7818_v39 = vld [vmem:[#allocation2 + $0x52c] ss:$36 sps:$4 sm:$0xff]   ;;  %v9664_v4 = vrot.slane %v1843_v33, 5  ;;  %v9667_v49 = vld [vmem:[%s8014_s28 + $0xc0] sm:$0xf]  ;;  %v2890_v12 = vsel %vm8057_vm5, %v2885_v30, %v2889_v35  ;;  %v2223_v11 = vrot.slane %v2044_v29, 5  ;;  %v5545_v33 = vpop.f32.mrf.mxu0 }
 0x1e1   : > { %6184 = vmatprep.mubr.bf16.mxu1 %v7818_v39  ;;  %v2226_v21 = vrot.slane %v9655_v61, 5  ;;  %v2893_v41 = vrot.slane %v2891_v9, 4  ;;  %3058 = vst [vmem:[#allocation2 + $0x598] sm:$0xf] %v2890_v12  ;;  %v1836_v26 = vsel %vm8057_vm5, %v1831_v63, %v1835_v47  ;;  %v1840_v17 = vor.u32 %v1839_v43, %v1835_v47  ;;  %v1417_v9 = vld [vmem:[%s8014_s28 + $0xb8] sm:$0xf]  ;;  %v5770_v30 = vpop.f32.mrf.mxu1 }
 0x1e2   : > { %6185 = vmatmul.mubr.bf16.gmra.mxu1 %v7816_v2  ;;  %v2897_v34 = vshll.u32 %v2479_v46, 16  ;;  %v2901_v60 = vshrl.u32 %v2479_v46, 16  ;;  %1995 = vst [vmem:[#allocation2 + $0x5b0] sm:$0xf] %v1836_v26  ;;  %v2224_v56 = vsel %vm8044_vm4, %v2222_v36, %v2223_v11  ;;  %v2225_v39 = vrot.slane %v2223_v11, 4  ;;  %v5546_v46 = vpop.f32.mrf.mxu0 }
 0x1e3   : > { %v2894_v29 = vor.u32 %v2893_v41, %v2889_v35  ;;  %v2907_v61 = vshll.u32 %v9667_v49, 16  ;;  %v7820_v2 = vld [vmem:[#allocation2 + $0x568] ss:$36 sps:$4 sm:$0xff]   ;;  %v1841_v12 = vrot.slane %v1840_v17, 4  ;;  %2334 = vst [vmem:[#allocation2 + $0x5b4] sm:$0xf] %v2224_v56  ;;  %v9678_v63 = vadd.f32 %v5763_v14, %v5539_v0  ;;  %v5771_v41 = vpop.f32.mrf.mxu1 }
 0x1e4   : > { %v7822_v59 = vld [vmem:[#allocation2 + $0x56c] ss:$36 sps:$4 sm:$0xff]   ;;  %v5544_v43 = vadd.f32 %v9447_v51, %v5543_v57  ;;  %v2227_v47 = vsel %vm8044_vm4, %v2225_v39, %v2226_v21  ;;  %v2899_v11 = vrot.slane %v2897_v34, 5  ;;  %v2903_v26 = vrot.slane %v2901_v60, 4  ;;  %v9684_v35 = vld [vmem:[%s8014_s28 + $0xbc] sm:$0xf]  ;;  %v5548_v33 = vpop.f32.mrf.mxu0 }
 0x1e5   : > { %10269 = vst [vmem:[#allocation16_spill] sm:$0xff] %v9678_v63  ;;  %v2895_v36 = vrot.slane %v2894_v29, 4  ;;  %5967 = vmatprep.mubr.bf16.mxu0 %v7822_v59  ;;  %v1846_v14 = vsel %vm8057_vm5, %v1841_v12, %v9664_v4  ;;  %2335 = vst [vmem:[#allocation2 + $0x5d8] sm:$0xf] %v2227_v47  ;;  %v9689_v0 = vrot.slane %v2907_v61, 5  ;;  %v2911_v57 = vshrl.u32 %v9667_v49, 16  ;;  %v5773_v59 = vpop.f32.mrf.mxu1 }
 0x1e6   : > { %v1849_v17 = vrot.slane %v1847_v13, 4  ;;  %5968 = vmatmul.mubr.bf16.gmra.mxu0 %v7820_v2  ;;  %1996 = vst [vmem:[#allocation2 + $0x5d4] sm:$0xf] %v1846_v14  ;;  %v2904_v60 = vor.u32 %v2903_v26, %v2899_v11  ;;  %v1853_v56 = vshll.u32 %v1417_v9, 16  ;;  %v1857_v39 = vshrl.u32 %v1417_v9, 16  ;;  %v5551_v47 = vpop.f32.mrf.mxu0 }
 0x1e7   : > { %v2900_v34 = vsel %vm8057_vm5, %v2895_v36, %v2899_v11  ;;  %v2046_v29 = vld [vmem:[%s8014_s28 + $0xb8] sm:$0xf]  ;;  %v9696_v30 = vld [vmem:[%s8014_s28 + $0xbc] sm:$0xf]  ;;  %v1863_v49 = vshll.u32 %v9684_v35, 16  ;;  %v1867_v13 = vshrl.u32 %v9684_v35, 16  ;;  %v9702_v26 = vadd.f32 %v5768_v6, %v5544_v43 }
 0x1e8   : > { %3059 = vst [vmem:[#allocation2 + $0x5bc] sm:$0xf] %v2900_v34  ;;  %v1850_v61 = vor.u32 %v1849_v17, %v9664_v4  ;;  %v2228_v2 = vrot.slane %v2226_v21, 4  ;;  %v2481_v12 = vld [vmem:[%s8014_s28 + $0xc4] sm:$0xf]  ;;  %v2905_v11 = vrot.slane %v2904_v60, 4  ;;  %v5547_v9 = vadd.f32 %v9447_v51, %v5546_v46  ;;  %v5776_v34 = vpop.f32.mrf.mxu1  ;;  %v5553_v21 = vpop.f32.mrf.mxu0 }
 0x1e9   : > { %v7823_v14 = vld [vmem:[#allocation2 + $0x570] ss:$36 sps:$4 sm:$0xff]   ;;  %10270 = vst [vmem:[#allocation17_spill] sm:$0xff] %v9702_v26  ;;  %v5552_v33 = vadd.f32 %v9447_v51, %v5551_v47  ;;  %v1855_v4 = vrot.slane %v1853_v56, 5  ;;  %v1859_v17 = vrot.slane %v1857_v39, 4  ;;  %v9706_v63 = vrot.slane %v1863_v49, 5 }
 0x1ea   : > { %v7825_v36 = vld [vmem:[#allocation2 + $0x574] ss:$36 sps:$4 sm:$0xff]   ;;  %v1851_v59 = vrot.slane %v1850_v61, 4  ;;  %v9709_v40 = vld [vmem:[%s8014_s28 + $0xc8] sm:$0xf]  ;;  %v2910_v35 = vsel %vm8057_vm5, %v2905_v11, %v9689_v0  ;;  %v2229_v6 = vrot.slane %v2046_v29, 5  ;;  %v5778_v60 = vpop.f32.mrf.mxu1  ;;  %v5554_v47 = vpop.f32.mrf.mxu0 }
 0x1eb   : > { %6192 = vmatprep.mubr.bf16.mxu1 %v7825_v36  ;;  %v2232_v43 = vrot.slane %v9696_v30, 5  ;;  %v2913_v46 = vrot.slane %v2911_v57, 4  ;;  %3060 = vst [vmem:[#allocation2 + $0x5e0] sm:$0xf] %v2910_v35  ;;  %v1860_v39 = vor.u32 %v1859_v17, %v1855_v4  ;;  %v2917_v61 = vshll.u32 %v2481_v12, 16 }
 0x1ec   : > { %6193 = vmatmul.mubr.bf16.gmra.mxu1 %v7823_v14  ;;  %v1856_v56 = vsel %vm8057_vm5, %v1851_v59, %v1855_v4  ;;  %v2921_v49 = vshrl.u32 %v2481_v12, 16  ;;  %v2230_v36 = vsel %vm8044_vm4, %v2228_v2, %v2229_v6  ;;  %v2231_v11 = vrot.slane %v2229_v6, 4  ;;  %v1419_v30 = vld [vmem:[%s8014_s28 + $0xc0] sm:$0xf]  ;;  %v5779_v14 = vpop.f32.mrf.mxu1  ;;  %v7828_v35 = vld [vmem:[#allocation2 + $0x5b4] ss:$36 sps:$4 sm:$0xff]   ;;  %v5556_v17 = vpop.f32.mrf.mxu0 }
 0x1ed   : > { %1997 = vst [vmem:[#allocation2 + $0x5f8] sm:$0xf] %v1856_v56  ;;  %v2914_v29 = vor.u32 %v2913_v46, %v9689_v0  ;;  %v2927_v57 = vshll.u32 %v9709_v40, 16  ;;  %v7826_v21 = vld [vmem:[#allocation2 + $0x5b0] ss:$36 sps:$4 sm:$0xff]   ;;  %v1861_v60 = vrot.slane %v1860_v39, 4  ;;  %v9722_v59 = vadd.f32 %v5771_v41, %v5547_v9  ;;  %5975 = vmatprep.mubr.bf16.mxu0 %v7828_v35 }
 0x1ee   : > { %2336 = vst [vmem:[#allocation2 + $0x5fc] sm:$0xf] %v2230_v36  ;;  %v9724_v12 = vadd.f32 %v5776_v34, %v5552_v33  ;;  %v5555_v4 = vadd.f32 %v9447_v51, %v5554_v47  ;;  %v2233_v2 = vsel %vm8044_vm4, %v2231_v11, %v2232_v43  ;;  %v2919_v6 = vrot.slane %v2917_v61, 5  ;;  %v9730_v56 = vld [vmem:[%s8014_s28 + $0xc4] sm:$0xf]  ;;  %v5781_v26 = vpop.f32.mrf.mxu1  ;;  %v5817_v34 = vpop.f32.mrf.mxu0  ;;  %5976 = vmatmul.mubr.bf16.gmra.mxu0 %v7826_v21 }
 0x1ef   : > { %10271 = vst [vmem:[#allocation18_spill] sm:$0xff] %v9722_v59  ;;  %v2915_v0 = vrot.slane %v2914_v29, 4  ;;  %v2923_v46 = vrot.slane %v2921_v49, 4  ;;  %v1866_v41 = vsel %vm8057_vm5, %v1861_v60, %v9706_v63  ;;  %2337 = vst [vmem:[#allocation2 + $0x620] sm:$0xf] %v2233_v2  ;;  %v2929_v9 = vrot.slane %v2927_v57, 5 }
 0x1f0   : > { %v2931_v51 = vshrl.u32 %v9709_v40, 16  ;;  %v1869_v33 = vrot.slane %v1867_v13, 4  ;;  %1998 = vst [vmem:[#allocation2 + $0x61c] sm:$0xf] %v1866_v41  ;;  %v1873_v49 = vshll.u32 %v1419_v30, 16  ;;  %v1877_v26 = vshrl.u32 %v1419_v30, 16  ;;  %v6042_v11 = vpop.f32.mrf.mxu1  ;;  %v5819_v35 = vpop.f32.mrf.mxu0 }
 0x1f1   : > { %v2920_v39 = vsel %vm8057_vm5, %v2915_v0, %v2919_v6  ;;  %v2924_v61 = vor.u32 %v2923_v46, %v2919_v6  ;;  %v2048_v47 = vld [vmem:[%s8014_s28 + $0xc0] sm:$0xf]  ;;  %v9740_v36 = vld [vmem:[%s8014_s28 + $0xc4] sm:$0xf]  ;;  %v1883_v40 = vshll.u32 %v9730_v56, 16  ;;  %v1887_v13 = vshrl.u32 %v9730_v56, 16 }
 0x1f2   : > { %3061 = vst [vmem:[#allocation2 + $0x604] sm:$0xf] %v2920_v39  ;;  %v1870_v29 = vor.u32 %v1869_v33, %v9706_v63  ;;  %v2234_v57 = vrot.slane %v2232_v43, 4  ;;  %v2483_v21 = vld [vmem:[%s8014_s28 + $0xcc] sm:$0xf]  ;;  %v9746_v0 = vadd.f32 %v5779_v14, %v5555_v4  ;;  %v5818_v30 = vadd.f32 %v5817_v34, %v8755_v23  ;;  %v6044_v6 = vpop.f32.mrf.mxu1  ;;  %v5820_v59 = vpop.f32.mrf.mxu0 }
 0x1f3   : > { %v7829_v60 = vld [vmem:[#allocation2 + $0x5b8] ss:$36 sps:$4 sm:$0xff]   ;;  %v2925_v2 = vrot.slane %v2924_v61, 4  ;;  %v1875_v41 = vrot.slane %v1873_v49, 5  ;;  %v1879_v39 = vrot.slane %v1877_v26, 4  ;;  %v9749_v63 = vrot.slane %v1883_v40, 5 }
 0x1f4   : > { %v7831_v17 = vld [vmem:[#allocation2 + $0x5bc] ss:$36 sps:$4 sm:$0xff]   ;;  %10272 = vst [vmem:[#allocation19_spill] sm:$0xff] %v9746_v0  ;;  %v1871_v46 = vrot.slane %v1870_v29, 4  ;;  %v9752_v33 = vld [vmem:[%s8014_s28 + $0xd0] sm:$0xf]  ;;  %v6045_v23 = vpop.f32.mrf.mxu1  ;;  %v5822_v29 = vpop.f32.mrf.mxu0 }
 0x1f5   : > { %6200 = vmatprep.mubr.bf16.mxu1 %v7831_v17  ;;  %v2930_v43 = vsel %vm8057_vm5, %v2925_v2, %v2929_v9  ;;  %v2235_v56 = vrot.slane %v2048_v47, 5  ;;  %v2238_v14 = vrot.slane %v9740_v36, 5  ;;  %v2933_v4 = vrot.slane %v2931_v51, 4  ;;  %v1421_v51 = vld [vmem:[%s8014_s28 + $0xc8] sm:$0xf] }
 0x1f6   : > { %6201 = vmatmul.mubr.bf16.gmra.mxu1 %v7829_v60  ;;  %3062 = vst [vmem:[#allocation2 + $0x628] sm:$0xf] %v2930_v43  ;;  %v1876_v34 = vsel %vm8057_vm5, %v1871_v46, %v1875_v41  ;;  %v1880_v61 = vor.u32 %v1879_v39, %v1875_v41  ;;  %v2937_v49 = vshll.u32 %v2483_v21, 16  ;;  %v2941_v26 = vshrl.u32 %v2483_v21, 16  ;;  %v1422_v17 = vld [vmem:[%s8014_s28 + $0xcc] sm:$0x1]  ;;  %v6047_v60 = vpop.f32.mrf.mxu1  ;;  %v5825_v41 = vpop.f32.mrf.mxu0 }
 0x1f7   : > { %1999 = vst [vmem:[#allocation2 + $0x640] sm:$0xf] %v1876_v34  ;;  %v2236_v40 = vsel %vm8044_vm4, %v2234_v57, %v2235_v56  ;;  %v2237_v47 = vrot.slane %v2235_v56, 4  ;;  %v2934_v35 = vor.u32 %v2933_v4, %v2929_v9  ;;  %v2947_v36 = vshll.u32 %v9752_v33, 16  ;;  %v7832_v2 = vld [vmem:[#allocation2 + $0x5f8] ss:$36 sps:$4 sm:$0xff]  }
 0x1f8   : > { %v7834_v6 = vld [vmem:[#allocation2 + $0x5fc] ss:$36 sps:$4 sm:$0xff]   ;;  %v1881_v43 = vrot.slane %v1880_v61, 4  ;;  %2338 = vst [vmem:[#allocation2 + $0x644] sm:$0xf] %v2236_v40  ;;  %v9764_v46 = vadd.f32 %v6042_v11, %v5818_v30  ;;  %v5821_v21 = vadd.f32 %v5820_v59, %v8782_v52  ;;  %v2939_v9 = vrot.slane %v2937_v49, 5  ;;  %v9770_v34 = vpop.f32.mrf.mxu1  ;;  %v5827_v61 = vpop.f32.mrf.mxu0 }
 0x1f9   : > { %v2239_v57 = vsel %vm8044_vm4, %v2237_v47, %v2238_v14  ;;  %v2935_v39 = vrot.slane %v2934_v35, 4  ;;  %v2943_v56 = vrot.slane %v2941_v26, 4  ;;  %v2050_v4 = vld [vmem:[%s8014_s28 + $0xc8] sm:$0xf]  ;;  %5983 = vmatprep.mubr.bf16.mxu0 %v7834_v6  ;;  %v9775_v30 = vrot.slane %v2947_v36, 5 }
 0x1fa   : > { %v1886_v11 = vsel %vm8057_vm5, %v1881_v43, %v9749_v63  ;;  %2339 = vst [vmem:[#allocation2 + $0x668] sm:$0xf] %v2239_v57  ;;  %v2951_v52 = vshrl.u32 %v9752_v33, 16  ;;  %v1889_v59 = vrot.slane %v1887_v13, 4  ;;  %5984 = vmatmul.mubr.bf16.gmra.mxu0 %v7832_v2  ;;  %v1893_v29 = vshll.u32 %v1421_v51, 16  ;;  %v6052_v60 = vpop.f32.mrf.mxu1  ;;  %v5828_v2 = vpop.f32.mrf.mxu0 }
 0x1fb   : > { %2000 = vst [vmem:[#allocation2 + $0x664] sm:$0xf] %v1886_v11  ;;  %v2940_v49 = vsel %vm8057_vm5, %v2935_v39, %v2939_v9  ;;  %v2944_v26 = vor.u32 %v2943_v56, %v2939_v9  ;;  %v1897_v40 = vshrl.u32 %v1421_v51, 16  ;;  %v2051_v47 = vld [vmem:[%s8014_s28 + $0xcc] sm:$0x1]  ;;  %v1903_v6 = vshll.u32 %v1422_v17, 16 }
 0x1fc   : > { %v2485_v35 = vld [vmem:[%s8014_s28 + $0xd4] sm:$0xf]  ;;  %3063 = vst [vmem:[#allocation2 + $0x64c] sm:$0xf] %v2940_v49  ;;  %v1890_v36 = vor.u32 %v1889_v59, %v9749_v63  ;;  %v2240_v33 = vrot.slane %v2238_v14, 4  ;;  %v2241_v13 = vrot.slane %v2050_v4, 5  ;;  %v9787_v9 = vadd.f32 %v6045_v23, %v5821_v21  ;;  %v6053_v49 = vpop.f32.mrf.mxu1  ;;  %v5830_v60 = vpop.f32.mrf.mxu0 }
 0x1fd   : > { %v2486_v43 = vld [vmem:[%s8014_s28 + $0xd8] sm:$0x1]  ;;  %v9785_v57 = vld [vmem:[%s8014_s28 + $0x18] sm:$0xe]  ;;  %v7835_v11 = vld [vmem:[#allocation2 + $0x600] ss:$36 sps:$4 sm:$0xff]   ;;  %v5826_v51 = vadd.f32 %v5825_v41, %v8808_v15  ;;  %v5829_v56 = vadd.f32 %v5828_v2, %v8840_v42 }
 0x1fe   : > { %v7837_v61 = vld [vmem:[#allocation2 + $0x604] ss:$36 sps:$4 sm:$0xff]   ;;  %v2945_v39 = vrot.slane %v2944_v26, 4  ;;  %v1891_v63 = vrot.slane %v1890_v36, 4  ;;  %v1895_v17 = vrot.slane %v1893_v29, 5  ;;  %v1899_v14 = vrot.slane %v1897_v40, 4  ;;  %v6055_v41 = vpop.f32.mrf.mxu1 }
 0x1ff   : > { %v1905_v59 = vrot.slane %v1903_v6, 5  ;;  %v3068_v4 = vld [vmem:[%s8014_s28 + $0x1c] sm:$0xf]  ;;  %6208 = vmatprep.mubr.bf16.mxu1 %v7837_v61  ;;  %v2242_v23 = vsel %vm8044_vm4, %v2240_v33, %v2241_v13  ;;  %v2243_v15 = vrot.slane %v2241_v13, 4  ;;  %v2244_v21 = vrot.slane %v2051_v47, 5 }
 0x200   : > { %v2950_v26 = vsel %vm8057_vm5, %v2945_v39, %v9775_v30  ;;  %v3069_v42 = vld [vmem:[%s8014_s28 + $0x20] sm:$0xf]  ;;  %6209 = vmatmul.mubr.bf16.gmra.mxu1 %v7835_v11  ;;  %v1896_v29 = vsel %vm8057_vm5, %v1891_v63, %v1895_v17  ;;  %v1900_v40 = vor.u32 %v1899_v14, %v1895_v17  ;;  %2340 = vst [vmem:[#allocation2 + $0x68c] sm:$0xf] %v2242_v23  ;;  %v2953_v36 = vrot.slane %v2951_v52, 4  ;;  %v5833_v39 = vpop.f32.mrf.mxu0  ;;  %v9810_v63 = vpop.f32.mrf.mxu1 }
 0x201   : > { %3064 = vst [vmem:[#allocation2 + $0x670] sm:$0xf] %v2950_v26  ;;  %v2957_v6 = vshll.u32 %v2485_v35, 16  ;;  %v3070_v2 = vld [vmem:[%s8014_s28 + $0x24] sm:$0xf]  ;;  %v2245_v47 = vsel %vm8044_vm4, %v2243_v15, %v2244_v21  ;;  %v2961_v33 = vshrl.u32 %v2485_v35, 16  ;;  %v9814_v23 = vadd.f32 %v9770_v34, %v5826_v51 }
 0x202   : > { %v9802_v61 = vld [vmem:[%s8014_s28 + $0x78] sm:$0xf]  ;;  %2001 = vst [vmem:[#allocation2 + $0x688] sm:$0xf] %v1896_v29  ;;  %v2967_v13 = vshll.u32 %v2486_v43, 16  ;;  %v6847_v11 = vrot.slane %v9785_v57, 9  ;;  %v2954_v26 = vor.u32 %v2953_v36, %v9775_v30  ;;  %v9816_v15 = vadd.f32 %v6053_v49, %v5829_v56  ;;  %v5835_v35 = vpop.f32.mrf.mxu0  ;;  %v6060_v0 = vpop.f32.mrf.mxu1 }
 0x203   : > { %v9808_v60 = vld [vmem:[%s8014_s28 + $0x7c] sm:$0xf]  ;;  %v7839_v17 = vld [vmem:[#allocation2 + $0x640] ss:$36 sps:$4 sm:$0xff]   ;;  %v1901_v14 = vrot.slane %v1900_v40, 4  ;;  %v2959_v43 = vrot.slane %v2957_v6, 5 }
 0x204   : > { %v7841_v52 = vld [vmem:[#allocation2 + $0x644] ss:$36 sps:$4 sm:$0xff]   ;;  %2341 = vst [vmem:[#allocation2 + $0x6b0] sm:$0xf] %v2245_v47  ;;  %v2963_v21 = vrot.slane %v2961_v33, 4  ;;  %v2969_v57 = vrot.slane %v2967_v13, 5  ;;  %v5836_v51 = vpop.f32.mrf.mxu0  ;;  %v6061_v13 = vpop.f32.mrf.mxu1 }
 0x205   : > { %v3167_v41 = vrot.slane %v3068_v4, 5  ;;  %v3093_v29 = vld [vmem:[%s8014_s28 + $0x80] sm:$0xf]  ;;  %5991 = vmatprep.mubr.bf16.mxu0 %v7841_v52  ;;  %v1906_v40 = vsel %vm8057_vm5, %v1901_v14, %v1905_v59  ;;  %v2955_v47 = vrot.slane %v2954_v26, 4  ;;  %v3170_v30 = vrot.slane %v3069_v42, 5 }
 0x206   : > { %v3173_v36 = vrot.slane %v3070_v2, 5  ;;  %v9822_v34 = vld [vmem:[%s8014_s28 + $0x84] sm:$0xf]  ;;  %5992 = vmatmul.mubr.bf16.gmra.mxu0 %v7839_v17  ;;  %2002 = vst [vmem:[#allocation2 + $0x6ac] sm:$0xf] %v1906_v40  ;;  %v2964_v56 = vor.u32 %v2963_v21, %v2959_v43  ;;  %v3236_v0 = vrot.slane %v9802_v61, 5  ;;  %v5838_v14 = vpop.f32.mrf.mxu0  ;;  %v6063_v40 = vpop.f32.mrf.mxu1 }
 0x207   : > { %v3168_v49 = vsel %vm8044_vm4, %v6847_v11, %v3167_v41  ;;  %v3169_v4 = vrot.slane %v3167_v41, 4  ;;  %v3071_v6 = vld [vmem:[%s8014_s28 + $0x28] sm:$0xf]  ;;  %v2960_v59 = vsel %vm8057_vm5, %v2955_v47, %v2959_v43  ;;  %v3172_v42 = vrot.slane %v3170_v30, 4  ;;  %v3072_v17 = vld [vmem:[%s8014_s28 + $0x2c] sm:$0xf] }
 0x208   : > { %v3095_v33 = vld [vmem:[%s8014_s28 + $0x88] sm:$0xf]  ;;  %v3175_v2 = vrot.slane %v3173_v36, 4  ;;  %3358 = vst [vmem:[#allocation2 + $0x20] sm:$0xf] %v3168_v49  ;;  %v3239_v52 = vrot.slane %v9808_v60, 5  ;;  %v5834_v41 = vadd.f32 %v5833_v39, %v8872_v10  ;;  %v5837_v43 = vadd.f32 %v5836_v51, %v8897_v37  ;;  %v5841_v14 = vpop.f32.mrf.mxu0 }
 0x209   : > { %v7842_v26 = vld [vmem:[#allocation2 + $0x648] ss:$36 sps:$4 sm:$0xff]   ;;  %v2965_v11 = vrot.slane %v2964_v56, 4  ;;  %3065 = vst [vmem:[#allocation2 + $0x694] sm:$0xf] %v2960_v59  ;;  %v3171_v21 = vsel %vm8044_vm4, %v3169_v4, %v3170_v30  ;;  %v3174_v60 = vsel %vm8044_vm4, %v3172_v42, %v3173_v36  ;;  %v3238_v47 = vrot.slane %v3236_v0, 4  ;;  %v9849_v4 = vpop.f32.mrf.mxu1 }
 0x20a   : > { %v7844_v35 = vld [vmem:[#allocation2 + $0x64c] ss:$36 sps:$4 sm:$0xff]   ;;  %3359 = vst [vmem:[#allocation2 + $0x44] sm:$0xf] %v3171_v21  ;;  %v3241_v49 = vrot.slane %v3239_v52, 4  ;;  %v3242_v56 = vrot.slane %v3093_v29, 5 }
 0x20b   : > { %v3073_v59 = vld [vmem:[%s8014_s28 + $0x30] sm:$0xf]  ;;  %6216 = vmatprep.mubr.bf16.mxu1 %v7844_v35  ;;  %v2970_v10 = vsel %vm8057_vm5, %v2965_v11, %v2969_v57  ;;  %3360 = vst [vmem:[#allocation2 + $0x68] sm:$0xf] %v3174_v60  ;;  %v3245_v37 = vrot.slane %v9822_v34, 5  ;;  %v3176_v39 = vrot.slane %v3071_v6, 5  ;;  %v3240_v29 = vsel %vm8044_vm4, %v3238_v47, %v3239_v52  ;;  %v5843_v6 = vpop.f32.mrf.mxu0  ;;  %v6068_v60 = vpop.f32.mrf.mxu1 }
 0x20c   : > { %v3248_v30 = vrot.slane %v3095_v33, 5  ;;  %v3096_v36 = vld [vmem:[%s8014_s28 + $0x8c] sm:$0xf]  ;;  %v9847_v51 = vld [vmem:[%s8014_s28 + $0x90] sm:$0xf]  ;;  %6217 = vmatmul.mubr.bf16.gmra.mxu1 %v7842_v26  ;;  %v3243_v50 = vsel %vm8044_vm4, %v3241_v49, %v3242_v56  ;;  %v3244_v57 = vrot.slane %v3242_v56, 4  ;;  %v9865_v56 = vadd.f32 %v9810_v63, %v5834_v41 }
 0x20d   : > { %3066 = vst [vmem:[#allocation2 + $0x6b8] sm:$0xf] %v2970_v10  ;;  %v3179_v42 = vrot.slane %v3072_v17, 5  ;;  %v3074_v35 = vld [vmem:[%s8014_s28 + $0x34] sm:$0xf]  ;;  %v3247_v33 = vrot.slane %v3245_v37, 4  ;;  %v3177_v11 = vsel %vm8044_vm4, %v3175_v2, %v3176_v39  ;;  %v9867_v10 = vadd.f32 %v6061_v13, %v5837_v43 }
 0x20e   : > { %v9857_v34 = vld [vmem:[%s8014_s28 + $0x38] sm:$0xf]  ;;  %3382 = vst [vmem:[#allocation2 + $0x380] sm:$0xf] %v3240_v29  ;;  %3383 = vst [vmem:[#allocation2 + $0x3a4] sm:$0xf] %v3243_v50  ;;  %v3246_v49 = vsel %vm8044_vm4, %v3244_v57, %v3245_v37  ;;  %v5844_v29 = vpop.f32.mrf.mxu0  ;;  %v6069_v37 = vpop.f32.mrf.mxu1 }
 0x20f   : > { %v3178_v26 = vrot.slane %v3176_v39, 4  ;;  %v3182_v21 = vrot.slane %v3073_v59, 5  ;;  %v3098_v40 = vld [vmem:[%s8014_s28 + $0x94] sm:$0xf]  ;;  %v7845_v52 = vld [vmem:[#allocation2 + $0x688] ss:$36 sps:$4 sm:$0xff]   ;;  %v3249_v2 = vsel %vm8044_vm4, %v3247_v33, %v3248_v30 }
 0x210   : > { %v7847_v47 = vld [vmem:[#allocation2 + $0x68c] ss:$36 sps:$4 sm:$0xff]   ;;  %3361 = vst [vmem:[#allocation2 + $0x8c] sm:$0xf] %v3177_v11  ;;  %v3181_v17 = vrot.slane %v3179_v42, 4  ;;  %v3250_v50 = vrot.slane %v3248_v30, 4  ;;  %v5846_v6 = vpop.f32.mrf.mxu0  ;;  %v6071_v60 = vpop.f32.mrf.mxu1 }
 0x211   : > { %3384 = vst [vmem:[#allocation2 + $0x3c8] sm:$0xf] %v3246_v49  ;;  %v3180_v59 = vsel %vm8044_vm4, %v3178_v26, %v3179_v42  ;;  %v3184_v39 = vrot.slane %v3182_v21, 4  ;;  %5999 = vmatprep.mubr.bf16.mxu0 %v7847_v47  ;;  %3385 = vst [vmem:[#allocation2 + $0x3ec] sm:$0xf] %v3249_v2  ;;  %v3251_v13 = vrot.slane %v3096_v36, 5  ;;  %v5845_v36 = vadd.f32 %v5844_v29, %v8934_v31 }
 0x212   : > { %v3183_v63 = vsel %vm8044_vm4, %v3181_v17, %v3182_v21  ;;  %3362 = vst [vmem:[#allocation2 + $0xb0] sm:$0xf] %v3180_v59  ;;  %v3254_v41 = vrot.slane %v9847_v51, 5  ;;  %v3185_v43 = vrot.slane %v3074_v35, 5  ;;  %v9877_v57 = vld [vmem:[%s8014_s28 + $0x98] sm:$0xf]  ;;  %6000 = vmatmul.mubr.bf16.gmra.mxu0 %v7845_v52  ;;  %v5842_v21 = vadd.f32 %v5841_v14, %v8917_v62  ;;  %v6074_v2 = vpop.f32.mrf.mxu1 }
 0x213   : > { %v7851_v42 = vld [vmem:[#allocation2 + $0x20] ss:$36 sps:$4 sm:$0xff]   ;;  %3363 = vst [vmem:[#allocation2 + $0xd4] sm:$0xf] %v3183_v63  ;;  %v3188_v30 = vrot.slane %v9857_v34, 5  ;;  %v3257_v33 = vrot.slane %v3098_v40, 5  ;;  %v3252_v51 = vsel %vm8044_vm4, %v3250_v50, %v3251_v13  ;;  %v5849_v34 = vpop.f32.mrf.mxu0  ;;  %v9896_v14 = vadd.f32 %v6069_v37, %v5845_v36 }
 0x214   : > { %v3076_v11 = vld [vmem:[%s8014_s28 + $0x3c] sm:$0xf]  ;;  %v9882_v26 = vld [vmem:[%s8014_s28 + $0x40] sm:$0xf]  ;;  %v3253_v35 = vrot.slane %v3251_v13, 4  ;;  %v3256_v47 = vrot.slane %v3254_v41, 4  ;;  %v3186_v52 = vsel %vm8044_vm4, %v3184_v39, %v3185_v43  ;;  %7426 = vmatprep.mubr.bf16.mxu0 %v7851_v42  ;;  %v9894_v31 = vadd.f32 %v9849_v4, %v5842_v21  ;;  %v6076_v21 = vpop.f32.mrf.mxu1 }
 0x215   : > { %v9891_v49 = vld [vmem:[%s8014_s28 + $0x9c] sm:$0xf]  ;;  %v7848_v40 = vld [vmem:[#allocation2 + $0x690] ss:$36 sps:$4 sm:$0xff]   ;;  %3386 = vst [vmem:[#allocation2 + $0x410] sm:$0xf] %v3252_v51  ;;  %v5850_v29 = vadd.f32 %v5849_v34, %v8956_v58 }
 0x216   : > { %v7850_v17 = vld [vmem:[#allocation2 + $0x694] ss:$36 sps:$4 sm:$0xff]   ;;  %v3187_v62 = vrot.slane %v3185_v43, 4  ;;  %3364 = vst [vmem:[#allocation2 + $0xf8] sm:$0xf] %v3186_v52  ;;  %v3255_v39 = vsel %vm8044_vm4, %v3253_v35, %v3254_v41  ;;  %v3258_v50 = vsel %vm8044_vm4, %v3256_v47, %v3257_v33  ;;  %v5851_v43 = vpop.f32.mrf.mxu0  ;;  %v3259_v37 = vrot.slane %v3257_v33, 4  ;;  %v6077_v34 = vpop.f32.mrf.mxu1 }
 0x217   : > { %v7852_v59 = vld [vmem:[#allocation2 + $0x380] ss:$36 sps:$4 sm:$0xff]   ;;  %6224 = vmatprep.mubr.bf16.mxu1 %v7850_v17  ;;  %v7853_v6 = vld [vmem:[#allocation2 + $0x68] ss:$36 sps:$4 sm:$0xff]   ;;  %3387 = vst [vmem:[#allocation2 + $0x434] sm:$0xf] %v3255_v39  ;;  %v9911_v41 = vadd.f32 %v6074_v2, %v5850_v29 }
 0x218   : > { %v3101_v63 = vld [vmem:[%s8014_s28 + $0xa0] sm:$0xf]  ;;  %v3078_v13 = vld [vmem:[%s8014_s28 + $0x44] sm:$0xf]  ;;  %v3189_v4 = vsel %vm8044_vm4, %v3187_v62, %v3188_v30  ;;  %v3260_v58 = vrot.slane %v9877_v57, 5  ;;  %6225 = vmatmul.mubr.bf16.gmra.mxu1 %v7848_v40  ;;  %v3190_v36 = vrot.slane %v3188_v30, 4  ;;  %v5852_v47 = vpop.f32.mrf.mxu0  ;;  %v6079_v43 = vpop.f32.mrf.mxu1 }
 0x219   : > { %3388 = vst [vmem:[#allocation2 + $0x458] sm:$0xf] %v3258_v50  ;;  %v9909_v42 = vld [vmem:[%s8014_s28 + $0x48] sm:$0xf]  ;;  %3365 = vst [vmem:[#allocation2 + $0x11c] sm:$0xf] %v3189_v4  ;;  %7450 = vmatprep.mubr.bf16.mxu1 %v7852_v59  ;;  %v5853_v52 = vadd.f32 %v5852_v47, %v8973_v25 }
 0x21a   : > { %v3191_v60 = vrot.slane %v3076_v11, 5  ;;  %v3194_v51 = vrot.slane %v9882_v26, 5  ;;  %v3263_v35 = vrot.slane %v9891_v49, 5  ;;  %v3261_v33 = vsel %vm8044_vm4, %v3259_v37, %v3260_v58  ;;  %v3102_v57 = vld [vmem:[%s8014_s28 + $0xa4] sm:$0xf]  ;;  %v5854_v49 = vpop.f32.mrf.mxu0  ;;  %7427 = vmatmul.mubr.bf16.vlgmr.msra.gmra.mxu0 %v7853_v6 }
 0x21b   : > { %v7855_v40 = vld [vmem:[#allocation2 + $0xb0] ss:$36 sps:$4 sm:$0xff]   ;;  %3389 = vst [vmem:[#allocation2 + $0x47c] sm:$0xf] %v3261_v33  ;;  %v7854_v17 = vld [vmem:[#allocation2 + $0x3c8] ss:$36 sps:$4 sm:$0xff]   ;;  %v9929_v21 = vadd.f32 %v6077_v34, %v5853_v52 }
 0x21c   : > { %v3192_v30 = vsel %vm8044_vm4, %v3190_v36, %v3191_v60  ;;  %v3193_v11 = vrot.slane %v3191_v60, 4  ;;  %v3196_v26 = vrot.slane %v3194_v51, 4  ;;  %v3262_v62 = vrot.slane %v3260_v58, 4  ;;  %v3103_v25 = vld [vmem:[%s8014_s28 + $0xa8] sm:$0xf]  ;;  %7430 = vmatprep.mubr.bf16.mxu0 %v7855_v40  ;;  %v5857_v58 = vpop.f32.mrf.mxu0 }
 0x21d   : > { %3366 = vst [vmem:[#allocation2 + $0x140] sm:$0xf] %v3192_v30  ;;  %v3265_v29 = vrot.slane %v3263_v35, 4  ;;  %v3266_v2 = vrot.slane %v3101_v63, 5  ;;  %v3197_v59 = vrot.slane %v3078_v13, 5  ;;  %v3200_v6 = vrot.slane %v9909_v42, 5 }
 0x21e   : > { %v3080_v39 = vld [vmem:[%s8014_s28 + $0x4c] sm:$0xf]  ;;  %v9924_v50 = vld [vmem:[%s8014_s28 + $0x50] sm:$0xf]  ;;  %v3195_v4 = vsel %vm8044_vm4, %v3193_v11, %v3194_v51  ;;  %v3269_v37 = vrot.slane %v3102_v57, 5  ;;  %v3264_v63 = vsel %vm8044_vm4, %v3262_v62, %v3263_v35  ;;  %v5858_v57 = vadd.f32 %v5857_v58, %v8990_v48  ;;  %v5859_v52 = vpop.f32.mrf.mxu0 }
 0x21f   : > { %3367 = vst [vmem:[#allocation2 + $0x164] sm:$0xf] %v3195_v4  ;;  %v3267_v13 = vsel %vm8044_vm4, %v3265_v29, %v3266_v2  ;;  %v3268_v36 = vrot.slane %v3266_v2, 4  ;;  %v3198_v60 = vsel %vm8044_vm4, %v3196_v26, %v3197_v59  ;;  %v3104_v51 = vld [vmem:[%s8014_s28 + $0xac] sm:$0xf]  ;;  %v3199_v34 = vrot.slane %v3197_v59, 4  ;;  %v6082_v26 = vpop.f32.mrf.mxu1 }
 0x220   : > { %v3105_v47 = vld [vmem:[%s8014_s28 + $0xb0] sm:$0xf]  ;;  %3390 = vst [vmem:[#allocation2 + $0x4a0] sm:$0xf] %v3264_v63  ;;  %3391 = vst [vmem:[#allocation2 + $0x4c4] sm:$0xf] %v3267_v13  ;;  %7451 = vmatmul.mubr.bf16.vlgmr.msra.gmra.mxu1 %v7854_v17  ;;  %v5860_v59 = vpop.f32.mrf.mxu0  ;;  %v9951_v63 = vadd.f32 %v6082_v26, %v5858_v57 }
 0x221   : > { %v7856_v33 = vld [vmem:[#allocation2 + $0x410] ss:$36 sps:$4 sm:$0xff]   ;;  %3368 = vst [vmem:[#allocation2 + $0x188] sm:$0xf] %v3198_v60  ;;  %v7857_v35 = vld [vmem:[#allocation2 + $0xf8] ss:$36 sps:$4 sm:$0xff]   ;;  %v3270_v40 = vsel %vm8044_vm4, %v3268_v36, %v3269_v37  ;;  %v3201_v43 = vsel %vm8044_vm4, %v3199_v34, %v3200_v6  ;;  %v6084_v17 = vpop.f32.mrf.mxu1 }
 0x222   : > { %v3082_v42 = vld [vmem:[%s8014_s28 + $0x54] sm:$0xf]  ;;  %v3271_v30 = vrot.slane %v3269_v37, 4  ;;  %v9944_v11 = vld [vmem:[%s8014_s28 + $0x58] sm:$0xf]  ;;  %v3272_v49 = vrot.slane %v3103_v25, 5  ;;  %7454 = vmatprep.mubr.bf16.mxu1 %v7856_v33  ;;  %7431 = vmatmul.mubr.bf16.gmra.mxu0 %v7857_v35  ;;  %v5861_v17 = vadd.f32 %v5860_v59, %v9008_v16 }
 0x223   : > { %3392 = vst [vmem:[#allocation2 + $0x4e8] sm:$0xf] %v3270_v40  ;;  %v3202_v62 = vrot.slane %v3200_v6, 4  ;;  %v3203_v29 = vrot.slane %v3080_v39, 5  ;;  %v3206_v2 = vrot.slane %v9924_v50, 5  ;;  %v3275_v4 = vrot.slane %v3104_v51, 5  ;;  %v5862_v51 = vpop.f32.mrf.mxu0 }
 0x224   : > { %v3106_v48 = vld [vmem:[%s8014_s28 + $0xb4] sm:$0xf]  ;;  %v3278_v37 = vrot.slane %v3105_v47, 5  ;;  %v3107_v58 = vld [vmem:[%s8014_s28 + $0xb8] sm:$0xf]  ;;  %v3273_v25 = vsel %vm8044_vm4, %v3271_v30, %v3272_v49  ;;  %v3274_v33 = vrot.slane %v3272_v49, 4  ;;  %v6085_v30 = vpop.f32.mrf.mxu1 }
 0x225   : > { %3369 = vst [vmem:[#allocation2 + $0x1ac] sm:$0xf] %v3201_v43  ;;  %v3204_v39 = vsel %vm8044_vm4, %v3202_v62, %v3203_v29  ;;  %v3205_v50 = vrot.slane %v3203_v29, 4  ;;  %v3208_v13 = vrot.slane %v3206_v2, 4  ;;  %v3084_v36 = vld [vmem:[%s8014_s28 + $0x5c] sm:$0xf]  ;;  %v5865_v35 = vpop.f32.mrf.mxu0 }
 0x226   : > { %v9959_v60 = vld [vmem:[%s8014_s28 + $0x60] sm:$0xf]  ;;  %v9962_v6 = vld [vmem:[%s8014_s28 + $0xbc] sm:$0xf]  ;;  %3393 = vst [vmem:[#allocation2 + $0x50c] sm:$0xf] %v3273_v25  ;;  %v3276_v49 = vsel %vm8044_vm4, %v3274_v33, %v3275_v4  ;;  %v6087_v51 = vpop.f32.mrf.mxu1 }
 0x227   : > { %v7858_v47 = vld [vmem:[#allocation2 + $0x458] ss:$36 sps:$4 sm:$0xff]   ;;  %3370 = vst [vmem:[#allocation2 + $0x1d0] sm:$0xf] %v3204_v39  ;;  %v3277_v57 = vrot.slane %v3275_v4, 4  ;;  %v3280_v52 = vrot.slane %v3278_v37, 4  ;;  %v3207_v62 = vsel %vm8044_vm4, %v3205_v50, %v3206_v2  ;;  %v5866_v2 = vadd.f32 %v5865_v35, %v9031_v1 }
 0x228   : > { %v3209_v34 = vrot.slane %v3082_v42, 5  ;;  %v9965_v40 = vld [vmem:[%s8014_s28 + $0xc0] sm:$0xf]  ;;  %v3212_v29 = vrot.slane %v9944_v11, 5  ;;  %v3281_v43 = vrot.slane %v3106_v48, 5  ;;  %v3284_v59 = vrot.slane %v3107_v58, 5  ;;  %7455 = vmatmul.mubr.bf16.gmra.mxu1 %v7858_v47 }
 0x229   : > { %v7859_v26 = vld [vmem:[#allocation2 + $0x140] ss:$36 sps:$4 sm:$0xff]   ;;  %3371 = vst [vmem:[#allocation2 + $0x1f4] sm:$0xf] %v3207_v62  ;;  %v3279_v42 = vsel %vm8044_vm4, %v3277_v57, %v3278_v37  ;;  %3394 = vst [vmem:[#allocation2 + $0x530] sm:$0xf] %v3276_v49  ;;  %v5867_v37 = vpop.f32.mrf.mxu0 }
 0x22a   : > { %v7860_v25 = vld [vmem:[#allocation2 + $0x4a0] ss:$36 sps:$4 sm:$0xff]   ;;  %v3210_v39 = vsel %vm8044_vm4, %v3208_v13, %v3209_v34  ;;  %7434 = vmatprep.mubr.bf16.mxu0 %v7859_v26  ;;  %3395 = vst [vmem:[#allocation2 + $0x554] sm:$0xf] %v3279_v42  ;;  %v3211_v16 = vrot.slane %v3209_v34, 4  ;;  %v3282_v11 = vsel %vm8044_vm4, %v3280_v52, %v3281_v43  ;;  %v3283_v48 = vrot.slane %v3281_v43, 4 }
 0x22b   : > { %3372 = vst [vmem:[#allocation2 + $0x218] sm:$0xf] %v3210_v39  ;;  %v3086_v4 = vld [vmem:[%s8014_s28 + $0x64] sm:$0xf]  ;;  %3396 = vst [vmem:[#allocation2 + $0x578] sm:$0xf] %v3282_v11  ;;  %7458 = vmatprep.mubr.bf16.mxu1 %v7860_v25  ;;  %v9992_v43 = vadd.f32 %v6085_v30, %v5861_v17  ;;  %v6090_v39 = vpop.f32.mrf.mxu1 }
 0x22c   : > { %v3214_v50 = vrot.slane %v3212_v29, 4  ;;  %v3215_v13 = vrot.slane %v3084_v36, 5  ;;  %v3218_v33 = vrot.slane %v9959_v60, 5  ;;  %v3287_v1 = vrot.slane %v9962_v6, 5  ;;  %v3087_v26 = vld [vmem:[%s8014_s28 + $0x68] sm:$0xf]  ;;  %v5868_v36 = vpop.f32.mrf.mxu0 }
 0x22d   : > { %v3213_v57 = vsel %vm8044_vm4, %v3211_v16, %v3212_v29  ;;  %v3285_v34 = vsel %vm8044_vm4, %v3283_v48, %v3284_v59  ;;  %v3286_v52 = vrot.slane %v3284_v59, 4  ;;  %v3290_v58 = vrot.slane %v9965_v40, 5  ;;  %v3110_v62 = vld [vmem:[%s8014_s28 + $0xc4] sm:$0xf]  ;;  %v7861_v60 = vld [vmem:[#allocation2 + $0x188] ss:$36 sps:$4 sm:$0xff]  }
 0x22e   : > { %3373 = vst [vmem:[#allocation2 + $0x23c] sm:$0xf] %v3213_v57  ;;  %3397 = vst [vmem:[#allocation2 + $0x59c] sm:$0xf] %v3285_v34  ;;  %v3216_v6 = vsel %vm8044_vm4, %v3214_v50, %v3215_v13  ;;  %v3217_v47 = vrot.slane %v3215_v13, 4  ;;  %v3220_v29 = vrot.slane %v3218_v33, 4  ;;  %v5869_v25 = vadd.f32 %v5868_v36, %v9051_v18  ;;  %v5870_v51 = vpop.f32.mrf.mxu0  ;;  %7435 = vmatmul.mubr.bf16.gmra.mxu0 %v7861_v60  ;;  %v6092_v18 = vpop.f32.mrf.mxu1 }
 0x22f   : > { %3374 = vst [vmem:[#allocation2 + $0x260] sm:$0xf] %v3216_v6  ;;  %v3288_v35 = vsel %vm8044_vm4, %v3286_v52, %v3287_v1  ;;  %v3111_v40 = vld [vmem:[%s8014_s28 + $0xc8] sm:$0xf]  ;;  %v3088_v49 = vld [vmem:[%s8014_s28 + $0x6c] sm:$0xf]  ;;  %v10002_v13 = vadd.f32 %v6090_v39, %v5866_v2 }
 0x230   : > { %v3089_v42 = vld [vmem:[%s8014_s28 + $0x70] sm:$0xf]  ;;  %v7862_v16 = vld [vmem:[#allocation2 + $0x4e8] ss:$36 sps:$4 sm:$0xff]   ;;  %v3219_v11 = vsel %vm8044_vm4, %v3217_v47, %v3218_v33  ;;  %v3289_v30 = vrot.slane %v3287_v1, 4  ;;  %v3292_v17 = vrot.slane %v3290_v58, 4  ;;  %v6093_v60 = vpop.f32.mrf.mxu1  ;;  %v5873_v6 = vpop.f32.mrf.mxu0 }
 0x231   : > { %3398 = vst [vmem:[#allocation2 + $0x5c0] sm:$0xf] %v3288_v35  ;;  %v3221_v48 = vrot.slane %v3086_v4, 5  ;;  %v7863_v59 = vld [vmem:[#allocation2 + $0x1d0] ss:$36 sps:$4 sm:$0xff]   ;;  %v3224_v37 = vrot.slane %v3087_v26, 5  ;;  %7459 = vmatmul.mubr.bf16.gmra.mxu1 %v7862_v16 }
 0x232   : > { %3375 = vst [vmem:[#allocation2 + $0x284] sm:$0xf] %v3219_v11  ;;  %v3293_v50 = vrot.slane %v3110_v62, 5  ;;  %v7864_v57 = vld [vmem:[#allocation2 + $0x530] ss:$36 sps:$4 sm:$0xff]   ;;  %v3291_v34 = vsel %vm8044_vm4, %v3289_v30, %v3290_v58  ;;  %7438 = vmatprep.mubr.bf16.mxu0 %v7863_v59  ;;  %v3296_v47 = vrot.slane %v3111_v40, 5  ;;  %v10017_v30 = vadd.f32 %v6093_v60, %v5869_v25  ;;  %v5875_v59 = vpop.f32.mrf.mxu0 }
 0x233   : > { %v3222_v33 = vsel %vm8044_vm4, %v3220_v29, %v3221_v48  ;;  %v3112_v52 = vld [vmem:[%s8014_s28 + $0xcc] sm:$0xf]  ;;  %v3113_v1 = vld [vmem:[%s8014_s28 + $0xd0] sm:$0xf]  ;;  %v3090_v36 = vld [vmem:[%s8014_s28 + $0x74] sm:$0xf]  ;;  %7462 = vmatprep.mubr.bf16.mxu1 %v7864_v57 }
 0x234   : > { %3399 = vst [vmem:[#allocation2 + $0x5e4] sm:$0xf] %v3291_v34  ;;  %v3223_v4 = vrot.slane %v3221_v48, 4  ;;  %3376 = vst [vmem:[#allocation2 + $0x2a8] sm:$0xf] %v3222_v33  ;;  %v3294_v2 = vsel %vm8044_vm4, %v3292_v17, %v3293_v50  ;;  %v3295_v26 = vrot.slane %v3293_v50, 4  ;;  %v6095_v48 = vpop.f32.mrf.mxu1  ;;  %v5874_v17 = vadd.f32 %v5873_v6, %v9072_v53  ;;  %v5876_v34 = vpop.f32.mrf.mxu0 }
 0x235   : > { %v3114_v62 = vld [vmem:[%s8014_s28 + $0xd4] sm:$0xf]  ;;  %3400 = vst [vmem:[#allocation2 + $0x608] sm:$0xf] %v3294_v2  ;;  %v3226_v58 = vrot.slane %v3224_v37, 4  ;;  %v3227_v35 = vrot.slane %v3088_v49, 5  ;;  %v5877_v2 = vadd.f32 %v5876_v34, %v9094_v20 }
 0x236   : > { %v3230_v29 = vrot.slane %v3089_v42, 5  ;;  %v3115_v39 = vld [vmem:[%s8014_s28 + $0xd8] sm:$0x1]  ;;  %v3225_v11 = vsel %vm8044_vm4, %v3223_v4, %v3224_v37  ;;  %v3297_v40 = vsel %vm8044_vm4, %v3295_v26, %v3296_v47  ;;  %v3298_v50 = vrot.slane %v3296_v47, 4  ;;  %s7491_s28 = smul.u32 192, %s10309_s12 }
 0x237   : > { %v7865_v51 = vld [vmem:[#allocation2 + $0x218] ss:$36 sps:$4 sm:$0xff]   ;;  %3377 = vst [vmem:[#allocation2 + $0x2cc] sm:$0xf] %v3225_v11  ;;  %v3228_v49 = vsel %vm8044_vm4, %v3226_v58, %v3227_v35  ;;  %v3229_v42 = vrot.slane %v3227_v35, 4  ;;  %v3299_v37 = vrot.slane %v3112_v52, 5  ;;  %v6098_v58 = vpop.f32.mrf.mxu1 }
 0x238   : > { %v3232_v16 = vrot.slane %v3230_v29, 4  ;;  %3401 = vst [vmem:[#allocation2 + $0x62c] sm:$0xf] %v3297_v40  ;;  %3378 = vst [vmem:[#allocation2 + $0x2f0] sm:$0xf] %v3228_v49  ;;  %v3302_v25 = vrot.slane %v3113_v1, 5  ;;  %7439 = vmatmul.mubr.bf16.gmra.mxu0 %v7865_v51  ;;  %v5878_v1 = vpop.f32.mrf.mxu0  ;;  %s10158_s16 = scalar_lea.vmem %s10249_s3, %s7491_s28 }
 0x239   : > { %v3233_v18 = vrot.slane %v3090_v36, 5  ;;  %v7867_v53 = vld [vmem:[#allocation2 + $0x260] ss:$36 sps:$4 sm:$0xff]   ;;  %v3231_v57 = vsel %vm8044_vm4, %v3229_v42, %v3230_v29  ;;  %v3305_v33 = vrot.slane %v3114_v62, 5  ;;  %v3308_v4 = vrot.slane %v3115_v39, 5  ;;  %v6100_v51 = vpop.f32.mrf.mxu1 }
 0x23a   : > { %v7866_v26 = vld [vmem:[#allocation2 + $0x578] ss:$36 sps:$4 sm:$0xff]   ;;  %3379 = vst [vmem:[#allocation2 + $0x314] sm:$0xf] %v3231_v57  ;;  %v3300_v60 = vsel %vm8044_vm4, %v3298_v50, %v3299_v37  ;;  %v3301_v6 = vrot.slane %v3299_v37, 4  ;;  %v3304_v47 = vrot.slane %v3302_v25, 4  ;;  %7442 = vmatprep.mubr.bf16.mxu0 %v7867_v53  ;;  %v10035_v39 = vadd.f32 %v6098_v58, %v5874_v17  ;;  %v5881_v49 = vpop.f32.mrf.mxu0 }
 0x23b   : > { %v3234_v52 = vsel %vm8044_vm4, %v3232_v16, %v3233_v18  ;;  %v7868_v36 = vld [vmem:[#allocation2 + $0x5c0] ss:$36 sps:$4 sm:$0xff]   ;;  %3402 = vst [vmem:[#allocation2 + $0x650] sm:$0xf] %v3300_v60  ;;  %v3235_v20 = vrot.slane %v3233_v18, 4  ;;  %v3307_v29 = vrot.slane %v3305_v33, 4  ;;  %7463 = vmatmul.mubr.bf16.gmra.mxu1 %v7866_v26  ;;  %v6101_v40 = vpop.f32.mrf.mxu1  ;;  %v5882_v17 = vadd.f32 %v5881_v49, %v9115_v54 }
 0x23c   : > { %3380 = vst [vmem:[#allocation2 + $0x338] sm:$0xf] %v3234_v52  ;;  %v3303_v62 = vsel %vm8044_vm4, %v3301_v6, %v3302_v25  ;;  %v3306_v35 = vsel %vm8044_vm4, %v3304_v47, %v3305_v33  ;;  %7466 = vmatprep.mubr.bf16.mxu1 %v7868_v36  ;;  %v10043_v42 = vadd.f32 %v6101_v40, %v5877_v2  ;;  %v5883_v37 = vpop.f32.mrf.mxu0 }
 0x23d   : > { %3403 = vst [vmem:[#allocation2 + $0x674] sm:$0xf] %v3303_v62  ;;  %3404 = vst [vmem:[#allocation2 + $0x698] sm:$0xf] %v3306_v35  ;;  %v3237_v48 = vsel %vm8044_vm4, %v3235_v20, %v3236_v0  ;;  %v3309_v59 = vsel %vm8044_vm4, %v3307_v29, %v3308_v4  ;;  %v6103_v50 = vpop.f32.mrf.mxu1 }
 0x23e   : > { %v7869_v11 = vld [vmem:[#allocation2 + $0x2a8] ss:$36 sps:$4 sm:$0xff]   ;;  %3381 = vst [vmem:[#allocation2 + $0x35c] sm:$0xf] %v3237_v48  ;;  %3405 = vst [vmem:[#allocation2 + $0x6bc] sm:$0xf] %v3309_v59  ;;  %v5884_v25 = vpop.f32.mrf.mxu0 }
 0x23f   : > { %v7870_v61 = vld [vmem:[#allocation2 + $0x608] ss:$36 sps:$4 sm:$0xff]   ;;  %v5885_v38 = vadd.f32 %v5884_v25, %v9134_v28  ;;  %v6106_v18 = vpop.f32.mrf.mxu1 }
 0x240   : > { %7443 = vmatmul.mubr.bf16.gmra.mxu0 %v7869_v11  ;;  %v5886_v34 = vpop.f32.mrf.mxu0  ;;  %v10047_v57 = vadd.f32 %v6106_v18, %v5882_v17 }
 0x241   : > { %v7871_v16 = vld [vmem:[#allocation2 + $0x2f0] ss:$36 sps:$4 sm:$0xff]   ;;  %v6108_v33 = vpop.f32.mrf.mxu1 }
 0x242   : > { %7446 = vmatprep.mubr.bf16.mxu0 %v7871_v16  ;;  %v5889_v26 = vpop.f32.mrf.mxu0 }
 0x243   : > { %7467 = vmatmul.mubr.bf16.gmra.mxu1 %v7870_v61  ;;  %v6109_v54 = vpop.f32.mrf.mxu1  ;;  %v5890_v6 = vadd.f32 %v5889_v26, %v9151_v55 }
 0x244   : > { %v7872_v0 = vld [vmem:[#allocation2 + $0x650] ss:$36 sps:$4 sm:$0xff]   ;;  %v10049_v2 = vadd.f32 %v6109_v54, %v5885_v38  ;;  %v5891_v47 = vpop.f32.mrf.mxu0 }
 0x245   : > { %v7873_v53 = vld [vmem:[#allocation2 + $0x338] ss:$36 sps:$4 sm:$0xff]   ;;  %7470 = vmatprep.mubr.bf16.mxu1 %v7872_v0  ;;  %v6111_v60 = vpop.f32.mrf.mxu1 }
 0x246   : > { %v7874_v4 = vld [vmem:[#allocation2 + $0x698] ss:$36 sps:$4 sm:$0xff]   ;;  %v5892_v28 = vpop.f32.mrf.mxu0 }
 0x247   : > { %v5893_v52 = vadd.f32 %v5892_v28, %v9176_v3  ;;  %v6114_v36 = vpop.f32.mrf.mxu1 }
 0x248   : > { %7447 = vmatmul.mubr.bf16.gmra.mxu0 %v7873_v53  ;;  %v5894_v1 = vpop.f32.mrf.mxu0  ;;  %v10053_v58 = vadd.f32 %v6114_v36, %v5890_v6 }
 0x249   : > { %v6116_v62 = vpop.f32.mrf.mxu1 }
 0x24a   : > { %v5897_v20 = vpop.f32.mrf.mxu0 }
 0x24b   : > { %7471 = vmatmul.mubr.bf16.gmra.mxu1 %v7874_v4  ;;  %v6117_v35 = vpop.f32.mrf.mxu1  ;;  %v5898_v29 = vadd.f32 %v5897_v20, %v9199_v7 }
 0x24c   : > { %v10056_v51 = vadd.f32 %v6117_v35, %v5893_v52  ;;  %v5899_v11 = vpop.f32.mrf.mxu0 }
 0x24d   : > { %v6119_v48 = vpop.f32.mrf.mxu1 }
 0x24e   : > { %v5900_v59 = vpop.f32.mrf.mxu0 }
 0x24f   : > { %v5901_v55 = vadd.f32 %v5900_v59, %v9215_v24  ;;  %v6122_v49 = vpop.f32.mrf.mxu1 }
 0x250   : > { %v5902_v40 = vpop.f32.mrf.mxu0  ;;  %v10059_v17 = vadd.f32 %v6122_v49, %v5898_v29 }
 0x251   : > { %v6124_v3 = vpop.f32.mrf.mxu1 }
 0x252   : > { %v5905_v50 = vpop.f32.mrf.mxu0 }
 0x253   : > { %v6125_v16 = vpop.f32.mrf.mxu1  ;;  %v5906_v61 = vadd.f32 %v5905_v50, %v9243_v5 }
 0x254   : > { %v10061_v37 = vadd.f32 %v6125_v16, %v5901_v55  ;;  %v5907_v7 = vpop.f32.mrf.mxu0 }
 0x255   : > { %v6127_v25 = vpop.f32.mrf.mxu1 }
 0x256   : > { %10273 = vst [vmem:[#allocation20_spill] sm:$0xff] %v10061_v37  ;;  %v5908_v0 = vpop.f32.mrf.mxu0 }
 0x257   : > { %v5909_v38 = vadd.f32 %v5908_v0, %v9252_v8  ;;  %v6130_v34 = vpop.f32.mrf.mxu1 }
 0x258   : > { %v5910_v18 = vpop.f32.mrf.mxu0  ;;  %v10065_v53 = vadd.f32 %v6130_v34, %v5906_v61 }
 0x259   : > { %v6132_v24 = vpop.f32.mrf.mxu1 }
 0x25a   : > { %v5913_v54 = vpop.f32.mrf.mxu0 }
 0x25b   : > { %v6133_v33 = vpop.f32.mrf.mxu1  ;;  %v5914_v26 = vadd.f32 %v5913_v54, %v9281_v32 }
 0x25c   : > { %v10067_v4 = vadd.f32 %v6133_v33, %v5909_v38  ;;  %v5915_v6 = vpop.f32.mrf.mxu0 }
 0x25d   : > { %v6135_v60 = vpop.f32.mrf.mxu1 }
 0x25e   : > { %10274 = vst [vmem:[#allocation21_spill] sm:$0xff] %v10067_v4  ;;  %v5916_v47 = vpop.f32.mrf.mxu0  ;;  %v10276_v60 = vld [vmem:[#allocation4_spill] sm:$0xff] }
 0x25f   : > { %v5917_v5 = vadd.f32 %v5916_v47, %v9301_v44  ;;  %v6138_v28 = vpop.f32.mrf.mxu1 }
 0x260   : > { %v5918_v52 = vpop.f32.mrf.mxu0  ;;  %v10071_v1 = vadd.f32 %v6138_v28, %v5914_v26 }
 0x261   : > { %v6140_v8 = vpop.f32.mrf.mxu1 }
 0x262   : > { %v5921_v20 = vpop.f32.mrf.mxu0 }
 0x263   : > { %v6141_v36 = vpop.f32.mrf.mxu1  ;;  %v5922_v29 = vadd.f32 %v5921_v20, %v9324_v19  ;;  %v10275_v19 = vld [vmem:[#allocation3_spill] sm:$0xff] }
 0x264   : > { %v10073_v62 = vadd.f32 %v6141_v36, %v5917_v5  ;;  %v5923_v11 = vpop.f32.mrf.mxu0 }
 0x265   : > { %v6143_v35 = vpop.f32.mrf.mxu1 }
 0x266   : > { %v5924_v32 = vpop.f32.mrf.mxu0 }
 0x267   : > { %v6146_v48 = vpop.f32.mrf.mxu1  ;;  %v5925_v55 = vadd.f32 %v5924_v32, %v9347_v22  ;;  %v10278_v32 = vld [vmem:[#allocation6_spill] sm:$0xff] }
 0x268   : > { %v10076_v59 = vadd.f32 %v6146_v48, %v5922_v29  ;;  %v5926_v40 = vpop.f32.mrf.mxu0 }
 0x269   : > { %v6148_v44 = vpop.f32.mrf.mxu1 }
 0x26b   : > { %v6149_v49 = vpop.f32.mrf.mxu1 }
 0x26c   : > { %v10079_v3 = vadd.f32 %v6149_v49, %v5925_v55 }
 0x26d   : > { %v6151_v16 = vpop.f32.mrf.mxu1 }
 0x26e   : > { %v5929_v50 = vpop.f32.mrf.mxu0  ;;  %v10279_v16 = vld [vmem:[#allocation7_spill] sm:$0xff] }
 0x26f   : > { %v5930_v61 = vadd.f32 %v5929_v50, %v9371_v27  ;;  %v10277_v27 = vld [vmem:[#allocation5_spill] sm:$0xff] }
 0x270   : > { %v5931_v25 = vpop.f32.mrf.mxu0 }
 0x272   : > { %v5932_v7 = vpop.f32.mrf.mxu0 }
 0x273   : > { %v5933_v38 = vadd.f32 %v5932_v7, %v10275_v19 }
 0x274   : > { %v6154_v0 = vpop.f32.mrf.mxu1  ;;  %v5934_v34 = vpop.f32.mrf.mxu0 }
 0x275   : > { %v10083_v18 = vadd.f32 %v6154_v0, %v5930_v61 }
 0x276   : > { %v6156_v24 = vpop.f32.mrf.mxu1 }
 0x277   : > { %v10280_v24 = vld [vmem:[#allocation8_spill] sm:$0xff] }
 0x278   : > { %v6157_v33 = vpop.f32.mrf.mxu1 }
 0x279   : > { %v10085_v22 = vadd.f32 %v6157_v33, %v5933_v38 }
 0x27a   : > { %v5937_v54 = vpop.f32.mrf.mxu0  ;;  %v6159_v26 = vpop.f32.mrf.mxu1 }
 0x27b   : > { %v5938_v6 = vadd.f32 %v5937_v54, %v10276_v60 }
 0x27c   : > { %v5939_v47 = vpop.f32.mrf.mxu0 }
 0x27e   : > { %v5940_v5 = vpop.f32.mrf.mxu0 }
 0x27f   : > { %v5941_v52 = vadd.f32 %v5940_v5, %v10277_v27 }
 0x280   : > { %v6162_v28 = vpop.f32.mrf.mxu1  ;;  %v5942_v36 = vpop.f32.mrf.mxu0 }
 0x281   : > { %v10089_v8 = vadd.f32 %v6162_v28, %v5938_v6  ;;  %v10281_v6 = vld [vmem:[#allocation9_spill] sm:$0xff] }
 0x282   : > { %v6164_v20 = vpop.f32.mrf.mxu1 }
 0x284   : > { %v6165_v35 = vpop.f32.mrf.mxu1 }
 0x285   : > { %v10091_v29 = vadd.f32 %v6165_v35, %v5941_v52 }
 0x286   : > { %v5945_v11 = vpop.f32.mrf.mxu0  ;;  %v6167_v48 = vpop.f32.mrf.mxu1 }
 0x287   : > { %v5946_v55 = vadd.f32 %v5945_v11, %v10278_v32  ;;  %v10282_v11 = vld [vmem:[#allocation10_spill] sm:$0xff] }
 0x288   : > { %v5947_v44 = vpop.f32.mrf.mxu0 }
 0x28a   : > { %v5948_v40 = vpop.f32.mrf.mxu0 }
 0x28b   : > { %v5949_v50 = vadd.f32 %v5948_v40, %v10279_v16 }
 0x28c   : > { %v5950_v25 = vpop.f32.mrf.mxu0 }
 0x28d   : > { %v6170_v49 = vpop.f32.mrf.mxu1 }
 0x28e   : > { %v10095_v61 = vadd.f32 %v6170_v49, %v5946_v55 }
 0x28f   : > { %v6172_v7 = vpop.f32.mrf.mxu1 }
 0x291   : > { %v6173_v0 = vpop.f32.mrf.mxu1  ;;  %v5953_v38 = vpop.f32.mrf.mxu0 }
 0x292   : > { %v10097_v19 = vadd.f32 %v6173_v0, %v5949_v50  ;;  %v5954_v33 = vadd.f32 %v5953_v38, %v10280_v24 }
 0x293   : > { %v6175_v34 = vpop.f32.mrf.mxu1  ;;  %v5955_v54 = vpop.f32.mrf.mxu0 }
 0x294   : > { %v10283_v34 = vld [vmem:[#allocation11_spill] sm:$0xff] }
 0x295   : > { %v5956_v26 = vpop.f32.mrf.mxu0 }
 0x296   : > { %v5957_v47 = vadd.f32 %v5956_v26, %v10281_v6 }
 0x297   : > { %v6178_v60 = vpop.f32.mrf.mxu1  ;;  %v5958_v28 = vpop.f32.mrf.mxu0 }
 0x298   : > { %v10101_v5 = vadd.f32 %v6178_v60, %v5954_v33  ;;  %v10284_v60 = vld [vmem:[#allocation12_spill] sm:$0xff] }
 0x299   : > { %v6180_v27 = vpop.f32.mrf.mxu1 }
 0x29a   : > { %v5961_v20 = vpop.f32.mrf.mxu0 }
 0x29b   : > { %v6181_v52 = vpop.f32.mrf.mxu1  ;;  %v5962_v48 = vadd.f32 %v5961_v20, %v10282_v11  ;;  %v10285_v11 = vld [vmem:[#allocation13_spill] sm:$0xff] }
 0x29c   : > { %v10103_v36 = vadd.f32 %v6181_v52, %v5957_v47  ;;  %v5963_v32 = vpop.f32.mrf.mxu0 }
 0x29d   : > { %v6183_v35 = vpop.f32.mrf.mxu1 }
 0x29e   : > { %v5964_v55 = vpop.f32.mrf.mxu0 }
 0x29f   : > { %v5965_v40 = vadd.f32 %v5964_v55, %v9591_v45 }
 0x2a0   : > { %v5966_v16 = vpop.f32.mrf.mxu0 }
 0x2a2   : > { %v6186_v44 = vpop.f32.mrf.mxu1 }
 0x2a3   : > { %v10107_v49 = vadd.f32 %v6186_v44, %v5962_v48 }
 0x2a4   : > { %v6188_v50 = vpop.f32.mrf.mxu1 }
 0x2a6   : > { %v6189_v25 = vpop.f32.mrf.mxu1  ;;  %v5969_v0 = vpop.f32.mrf.mxu0 }
 0x2a7   : > { %v10109_v7 = vadd.f32 %v6189_v25, %v5965_v40  ;;  %v5970_v24 = vadd.f32 %v5969_v0, %v10283_v34  ;;  %v10286_v40 = vld [vmem:[#allocation14_spill] sm:$0xff] }
 0x2a8   : > { %v6191_v38 = vpop.f32.mrf.mxu1  ;;  %v5971_v33 = vpop.f32.mrf.mxu0 }
 0x2aa   : > { %v5972_v54 = vpop.f32.mrf.mxu0 }
 0x2ab   : > { %v5973_v6 = vadd.f32 %v5972_v54, %v10284_v60  ;;  %v10287_v54 = vld [vmem:[#allocation15_spill] sm:$0xff] }
 0x2ac   : > { %v6194_v26 = vpop.f32.mrf.mxu1  ;;  %v5974_v28 = vpop.f32.mrf.mxu0 }
 0x2ad   : > { %v10113_v47 = vadd.f32 %v6194_v26, %v5970_v24 }
 0x2ae   : > { %v6196_v45 = vpop.f32.mrf.mxu1  ;;  %v5977_v20 = vpop.f32.mrf.mxu0 }
 0x2af   : > { %v5978_v48 = vadd.f32 %v5977_v20, %v10285_v11 }
 0x2b0   : > { %v6197_v27 = vpop.f32.mrf.mxu1  ;;  %v5979_v32 = vpop.f32.mrf.mxu0 }
 0x2b1   : > { %v10115_v52 = vadd.f32 %v6197_v27, %v5973_v6 }
 0x2b2   : > { %v6199_v35 = vpop.f32.mrf.mxu1  ;;  %v5980_v55 = vpop.f32.mrf.mxu0 }
 0x2b3   : > { %v5981_v16 = vadd.f32 %v5980_v55, %v10286_v40 }
 0x2b4   : > { %v5982_v25 = vpop.f32.mrf.mxu0 }
 0x2b6   : > { %v6202_v44 = vpop.f32.mrf.mxu1 }
 0x2b7   : > { %v10119_v50 = vadd.f32 %v6202_v44, %v5978_v48  ;;  %v10288_v48 = vld [vmem:[#allocation17_spill] sm:$0xff] }
 0x2b8   : > { %v6204_v0 = vpop.f32.mrf.mxu1 }
 0x2ba   : > { %v6205_v38 = vpop.f32.mrf.mxu1  ;;  %v5985_v24 = vpop.f32.mrf.mxu0 }
 0x2bb   : > { %v10121_v34 = vadd.f32 %v6205_v38, %v5981_v16  ;;  %v10124_v26 = vadd.f32 %v5985_v24, %v10287_v54 }
 0x2bc   : > { %v6207_v33 = vpop.f32.mrf.mxu1  ;;  %v5987_v60 = vpop.f32.mrf.mxu0 }
 0x2be   : > { %v10126_v6 = vpop.f32.mrf.mxu0 }
 0x2c0   : > { %v10128_v28 = vpop.f32.mrf.mxu1  ;;  %v5990_v45 = vpop.f32.mrf.mxu0 }
 0x2c2   : > { %v6212_v27 = vpop.f32.mrf.mxu1 }
 0x2c4   : > { %v10130_v20 = vpop.f32.mrf.mxu1 }
 0x2c6   : > { %v5993_v35 = vpop.f32.mrf.mxu0  ;;  %v6215_v11 = vpop.f32.mrf.mxu1 }
 0x2c7   : > { %v10133_v32 = vadd.f32 %v5993_v35, %v10288_v48 }
 0x2c8   : > { %v5995_v55 = vpop.f32.mrf.mxu0 }
 0x2c9   : > { %10289 = vst [vmem:[#allocation3_spill] sm:$0xff] %v10133_v32 }
 0x2ca   : > { %v10135_v44 = vpop.f32.mrf.mxu0 }
 0x2cc   : > { %v10137_v40 = vpop.f32.mrf.mxu1  ;;  %v5998_v16 = vpop.f32.mrf.mxu0 }
 0x2cd   : > { %10290 = vst [vmem:[#allocation4_spill] sm:$0xff] %v10137_v40 }
 0x2ce   : > { %v6220_v25 = vpop.f32.mrf.mxu1 }
 0x2d0   : > { %v10139_v0 = vpop.f32.mrf.mxu1 }
 0x2d1   : > { %10291 = vst [vmem:[#allocation5_spill] sm:$0xff] %v10139_v0 }
 0x2d2   : > { %v10141_v38 = vpop.f32.mrf.mxu0  ;;  %v6223_v24 = vpop.f32.mrf.mxu1 }
 0x2d4   : > { %v6003_v33 = vpop.f32.mrf.mxu0 }
 0x2d6   : > { %v10143_v54 = vpop.f32.mrf.mxu0 }
 0x2d8   : > { %v10145_v60 = vpop.f32.mrf.mxu1  ;;  %v6006_v45 = vpop.f32.mrf.mxu0 }
 0x2d9   : > { %10292 = vst [vmem:[#allocation6_spill] sm:$0xff] %v10145_v60 }
 0x2da   : > { %v6228_v27 = vpop.f32.mrf.mxu1  ;;  %v7428_v35 = vpop.f32.mrf.mxu0 }
 0x2db   : > { %v6276_v16 = vadd.f32 %v7428_v35, %v9814_v23 }
 0x2dc   : > { %v10147_v11 = vpop.f32.mrf.mxu1  ;;  %v6267_v48 = vpop.f32.mrf.mxu0 }
 0x2dd   : > { %10293 = vst [vmem:[#allocation7_spill] sm:$0xff] %v10147_v11  ;;  %v6268_v40 = vadd.f32 %v6267_v48, %v9764_v46  ;;  %v6460_v32 = vmax.f32 %v6276_v16, 0.0 }
 0x2de   : > { %v6231_v55 = vpop.f32.mrf.mxu1  ;;  %v7429_v25 = vpop.f32.mrf.mxu0 }
 0x2df   : > { %v6279_v24 = vadd.f32 %v7429_v25, %v9816_v15  ;;  %v6458_v35 = vmax.f32 %v6268_v40, 0.0 }
 0x2e0   : > { %v7452_v0 = vpop.f32.mrf.mxu1  ;;  %v6270_v33 = vpop.f32.mrf.mxu0 }
 0x2e1   : > { %v6461_v60 = vmax.f32 %v6279_v24, 0.0  ;;  %v6271_v45 = vadd.f32 %v6270_v33, %v9787_v9  ;;  %v6372_v27 = vadd.f32 %v7452_v0, %v10076_v59 }
 0x2e2   : > { %v6363_v37 = vpop.f32.mrf.mxu1  ;;  %v7432_v23 = vpop.f32.mrf.mxu0 }
 0x2e3   : > { %v7243_v46 = vpack.c.bf16 %v6461_v60, %v6460_v32  ;;  %v6459_v15 = vmax.f32 %v6271_v45, 0.0  ;;  %v6364_v55 = vadd.f32 %v6363_v37, %v10071_v1  ;;  %v6292_v0 = vadd.f32 %v7432_v23, %v9894_v31 }
 0x2e4   : > { %v7453_v48 = vpop.f32.mrf.mxu1  ;;  %v6283_v25 = vpop.f32.mrf.mxu0  ;;  %v6484_v24 = vmax.f32 %v6372_v27, 0.0 }
 0x2e5   : > { %v6375_v16 = vadd.f32 %v7453_v48, %v10079_v3  ;;  %7355 = vst [vmem:[%s10158_s16 + $0x8] sm:$0xff] %v7243_v46   ;;  %v7238_v9 = vpack.c.bf16 %v6459_v15, %v6458_v35  ;;  %v6284_v40 = vadd.f32 %v6283_v25, %v9865_v56  ;;  %v6482_v1 = vmax.f32 %v6364_v55, 0.0 }
 0x2e6   : > { %v6366_v59 = vpop.f32.mrf.mxu1  ;;  %v7433_v4 = vpop.f32.mrf.mxu0  ;;  %v6464_v35 = vmax.f32 %v6292_v0, 0.0 }
 0x2e7   : > { %v6485_v33 = vmax.f32 %v6375_v16, 0.0  ;;  %v6367_v11 = vadd.f32 %v6366_v59, %v10073_v62  ;;  %7239 = vst [vmem:[%s10158_s16] sm:$0xff] %v7238_v9   ;;  %v6295_v37 = vadd.f32 %v7433_v4, %v9896_v14  ;;  %v6462_v15 = vmax.f32 %v6284_v40, 0.0 }
 0x2e8   : > { %v7456_v32 = vpop.f32.mrf.mxu1  ;;  %v6286_v45 = vpop.f32.mrf.mxu0 }
 0x2e9   : > { %v7303_v3 = vpack.c.bf16 %v6485_v33, %v6484_v24  ;;  %v6483_v60 = vmax.f32 %v6367_v11, 0.0  ;;  %v6465_v27 = vmax.f32 %v6295_v37, 0.0  ;;  %v6287_v23 = vadd.f32 %v6286_v45, %v9867_v10 }
 0x2ea   : > { %v6379_v31 = vpop.f32.mrf.mxu1  ;;  %v6388_v46 = vadd.f32 %v7456_v32, %v10089_v8 }
 0x2eb   : > { %7367 = vst [vmem:[%s10158_s16 + $0x68] sm:$0xff] %v7303_v3   ;;  %v7298_v62 = vpack.c.bf16 %v6483_v60, %v6482_v1  ;;  %v7253_v56 = vpack.c.bf16 %v6465_v27, %v6464_v35  ;;  %v6463_v4 = vmax.f32 %v6287_v23, 0.0  ;;  %v6380_v11 = vadd.f32 %v6379_v31, %v10083_v18 }
 0x2ec   : > { %v7457_v14 = vpop.f32.mrf.mxu1  ;;  %v6488_v59 = vmax.f32 %v6388_v46, 0.0 }
 0x2ed   : > { %7366 = vst [vmem:[%s10158_s16 + $0x60] sm:$0xff] %v7298_v62   ;;  %v6391_v55 = vadd.f32 %v7457_v14, %v10091_v29  ;;  %7357 = vst [vmem:[%s10158_s16 + $0x18] sm:$0xff] %v7253_v56   ;;  %v7248_v25 = vpack.c.bf16 %v6463_v4, %v6462_v15  ;;  %v6486_v40 = vmax.f32 %v6380_v11, 0.0 }
 0x2ee   : > { %v7436_v48 = vpop.f32.mrf.mxu0  ;;  %v6382_v9 = vpop.f32.mrf.mxu1 }
 0x2ef   : > { %v6308_v10 = vadd.f32 %v7436_v48, %v9951_v63  ;;  %v6489_v8 = vmax.f32 %v6391_v55, 0.0  ;;  %v6383_v0 = vadd.f32 %v6382_v9, %v10085_v22  ;;  %7356 = vst [vmem:[%s10158_s16 + $0x10] sm:$0xff] %v7248_v25  }
 0x2f0   : > { %v6299_v16 = vpop.f32.mrf.mxu0 }
 0x2f1   : > { %v7460_v33 = vpop.f32.mrf.mxu1  ;;  %v6300_v32 = vadd.f32 %v6299_v16, %v9911_v41  ;;  %v7313_v29 = vpack.c.bf16 %v6489_v8, %v6488_v59  ;;  %v6487_v37 = vmax.f32 %v6383_v0, 0.0  ;;  %v6468_v3 = vmax.f32 %v6308_v10, 0.0 }
 0x2f2   : > { %v7437_v24 = vpop.f32.mrf.mxu0  ;;  %v6404_v35 = vadd.f32 %v7460_v33, %v10101_v5 }
 0x2f3   : > { %v6311_v18 = vadd.f32 %v7437_v24, %v9992_v43  ;;  %v6395_v63 = vpop.f32.mrf.mxu1  ;;  %7369 = vst [vmem:[%s10158_s16 + $0x78] sm:$0xff] %v7313_v29   ;;  %v7308_v22 = vpack.c.bf16 %v6487_v37, %v6486_v40  ;;  %v6466_v27 = vmax.f32 %v6300_v32, 0.0 }
 0x2f4   : > { %v6302_v1 = vpop.f32.mrf.mxu0  ;;  %v6396_v62 = vadd.f32 %v6395_v63, %v10095_v61  ;;  %v6492_v14 = vmax.f32 %v6404_v35, 0.0  ;;  %v10294_v63 = vld [vmem:[#allocation16_spill] sm:$0xff] }
 0x2f5   : > { %v6469_v60 = vmax.f32 %v6311_v18, 0.0  ;;  %v6303_v45 = vadd.f32 %v6302_v1, %v9929_v21  ;;  %v7461_v43 = vpop.f32.mrf.mxu1  ;;  %7368 = vst [vmem:[%s10158_s16 + $0x70] sm:$0xff] %v7308_v22  }
 0x2f6   : > { %v6407_v46 = vadd.f32 %v7461_v43, %v10103_v36  ;;  %v6490_v25 = vmax.f32 %v6396_v62, 0.0 }
 0x2f7   : > { %v7263_v41 = vpack.c.bf16 %v6469_v60, %v6468_v3  ;;  %v6467_v23 = vmax.f32 %v6303_v45, 0.0  ;;  %v6398_v56 = vpop.f32.mrf.mxu1 }
 0x2f8   : > { %v7440_v31 = vpop.f32.mrf.mxu0  ;;  %v6493_v5 = vmax.f32 %v6407_v46, 0.0  ;;  %v6399_v4 = vadd.f32 %v6398_v56, %v10097_v19 }
 0x2f9   : > { %7359 = vst [vmem:[%s10158_s16 + $0x28] sm:$0xff] %v7263_v41   ;;  %v7258_v15 = vpack.c.bf16 %v6467_v23, %v6466_v27  ;;  %v6324_v21 = vadd.f32 %v7440_v31, %v10035_v39  ;;  %v6211_v27 = vadd.f32 %v10128_v28, %v10124_v26 }
 0x2fa   : > { %v6315_v48 = vpop.f32.mrf.mxu0  ;;  %v7323_v36 = vpack.c.bf16 %v6493_v5, %v6492_v14  ;;  %v6491_v9 = vmax.f32 %v6399_v4, 0.0  ;;  %v6002_v14 = vadd.f32 %v10141_v38, %v9724_v12 }
 0x2fb   : > { %7358 = vst [vmem:[%s10158_s16 + $0x20] sm:$0xff] %v7258_v15   ;;  %v7464_v55 = vpop.f32.mrf.mxu1  ;;  %v6316_v16 = vadd.f32 %v6315_v48, %v10002_v13  ;;  %v6472_v59 = vmax.f32 %v6324_v21, 0.0 }
 0x2fc   : > { %v7441_v11 = vpop.f32.mrf.mxu0  ;;  %7371 = vst [vmem:[%s10158_s16 + $0x88] sm:$0xff] %v7323_v36   ;;  %v7318_v19 = vpack.c.bf16 %v6491_v9, %v6490_v25  ;;  %v6420_v24 = vadd.f32 %v7464_v55, %v10113_v47  ;;  %v5989_v47 = vadd.f32 %v10126_v6, %v10294_v63 }
 0x2fd   : > { %v6327_v61 = vadd.f32 %v7441_v11, %v10043_v42  ;;  %v6411_v39 = vpop.f32.mrf.mxu1  ;;  %v6470_v32 = vmax.f32 %v6316_v16, 0.0  ;;  %v10295_v16 = vld [vmem:[#allocation19_spill] sm:$0xff] }
 0x2fe   : > { %v6318_v10 = vpop.f32.mrf.mxu0  ;;  %7370 = vst [vmem:[%s10158_s16 + $0x80] sm:$0xff] %v7318_v19   ;;  %v6412_v40 = vadd.f32 %v6411_v39, %v10107_v49  ;;  %v6496_v60 = vmax.f32 %v6420_v24, 0.0  ;;  %v6214_v48 = vadd.f32 %v10130_v20, %v5989_v47  ;;  %v10297_v39 = vld [vmem:[#allocation21_spill] sm:$0xff] }
 0x2ff   : > { %v6473_v8 = vmax.f32 %v6327_v61, 0.0  ;;  %v6319_v0 = vadd.f32 %v6318_v10, %v10017_v30  ;;  %v7465_v42 = vpop.f32.mrf.mxu1  ;;  %v6005_v61 = vadd.f32 %v10143_v54, %v10295_v16 }
 0x300   : > { %v7444_v33 = vpop.f32.mrf.mxu0  ;;  %v6423_v29 = vadd.f32 %v7465_v42, %v10115_v52  ;;  %v6494_v41 = vmax.f32 %v6412_v40, 0.0  ;;  %v10299_v42 = vld [vmem:[#allocation20_spill] sm:$0xff] }
 0x301   : > { %v7273_v13 = vpack.c.bf16 %v6473_v8, %v6472_v59  ;;  %v6471_v18 = vmax.f32 %v6319_v0, 0.0  ;;  %v6414_v3 = vpop.f32.mrf.mxu1  ;;  %v6340_v30 = vadd.f32 %v7444_v33, %v10053_v58  ;;  %v10296_v59 = vld [vmem:[#allocation18_spill] sm:$0xff]  ;;  %v10301_v40 = vld [vmem:[#allocation4_spill] sm:$0xff] }
 0x302   : > { %v6331_v37 = vpop.f32.mrf.mxu0  ;;  %v6497_v45 = vmax.f32 %v6423_v29, 0.0  ;;  %v6415_v22 = vadd.f32 %v6414_v3, %v10109_v7  ;;  %v5997_v12 = vadd.f32 %v10135_v44, %v10296_v59  ;;  %v10298_v0 = vld [vmem:[#allocation6_spill] sm:$0xff] }
 0x303   : > { %7361 = vst [vmem:[%s10158_s16 + $0x38] sm:$0xff] %v7273_v13   ;;  %v7268_v1 = vpack.c.bf16 %v6471_v18, %v6470_v32  ;;  %v7468_v31 = vpop.f32.mrf.mxu1  ;;  %v6332_v49 = vadd.f32 %v6331_v37, %v10047_v57  ;;  %v6476_v23 = vmax.f32 %v6340_v30, 0.0  ;;  %v10300_v18 = vld [vmem:[#allocation3_spill] sm:$0xff] }
 0x304   : > { %v7445_v35 = vpop.f32.mrf.mxu0  ;;  %v7333_v58 = vpack.c.bf16 %v6497_v45, %v6496_v60  ;;  %v6495_v43 = vmax.f32 %v6415_v22, 0.0  ;;  %v6436_v15 = vadd.f32 %v7468_v31, %v6211_v27  ;;  %v6219_v29 = vadd.f32 %v10301_v40, %v10300_v18  ;;  %v10302_v37 = vld [vmem:[#allocation7_spill] sm:$0xff]  ;;  %v10303_v45 = vld [vmem:[#allocation5_spill] sm:$0xff] }
 0x305   : > { %7360 = vst [vmem:[%s10158_s16 + $0x30] sm:$0xff] %v7268_v1   ;;  %v6343_v52 = vadd.f32 %v7445_v35, %v10056_v51  ;;  %v6427_v62 = vpop.f32.mrf.mxu1  ;;  %v6474_v56 = vmax.f32 %v6332_v49, 0.0  ;;  %v6222_v22 = vadd.f32 %v10303_v45, %v5997_v12 }
 0x306   : > { %v6334_v6 = vpop.f32.mrf.mxu0  ;;  %7373 = vst [vmem:[%s10158_s16 + $0x98] sm:$0xff] %v7333_v58   ;;  %v7328_v57 = vpack.c.bf16 %v6495_v43, %v6494_v41  ;;  %v6428_v5 = vadd.f32 %v6427_v62, %v10119_v50  ;;  %v6500_v25 = vmax.f32 %v6436_v15, 0.0 }
 0x307   : > { %v6477_v46 = vmax.f32 %v6343_v52, 0.0  ;;  %v6335_v7 = vadd.f32 %v6334_v6, %v10049_v2  ;;  %v7469_v26 = vpop.f32.mrf.mxu1 }
 0x308   : > { %v7448_v51 = vpop.f32.mrf.mxu0  ;;  %7372 = vst [vmem:[%s10158_s16 + $0x90] sm:$0xff] %v7328_v57   ;;  %v6439_v4 = vadd.f32 %v7469_v26, %v6214_v48  ;;  %v6498_v19 = vmax.f32 %v6428_v5, 0.0 }
 0x309   : > { %v7283_v21 = vpack.c.bf16 %v6477_v46, %v6476_v23  ;;  %v6475_v28 = vmax.f32 %v6335_v7, 0.0  ;;  %v6430_v20 = vpop.f32.mrf.mxu1  ;;  %v6356_v55 = vadd.f32 %v7448_v51, %v10065_v53  ;;  %v6227_v53 = vadd.f32 %v10298_v0, %v6002_v14 }
 0x30a   : > { %v6347_v11 = vpop.f32.mrf.mxu0  ;;  %v6501_v36 = vmax.f32 %v6439_v4, 0.0  ;;  %v6431_v9 = vadd.f32 %v6430_v20, %v10121_v34 }
 0x30b   : > { %7363 = vst [vmem:[%s10158_s16 + $0x48] sm:$0xff] %v7283_v21   ;;  %v7278_v2 = vpack.c.bf16 %v6475_v28, %v6474_v56  ;;  %v7472_v50 = vpop.f32.mrf.mxu1  ;;  %v6348_v38 = vadd.f32 %v6347_v11, %v10059_v17  ;;  %v6480_v32 = vmax.f32 %v6356_v55, 0.0  ;;  %v6230_v17 = vadd.f32 %v10302_v37, %v6005_v61 }
 0x30c   : > { %v7449_v10 = vpop.f32.mrf.mxu0  ;;  %v7343_v24 = vpack.c.bf16 %v6501_v36, %v6500_v25  ;;  %v6499_v54 = vmax.f32 %v6431_v9, 0.0  ;;  %v6452_v3 = vadd.f32 %v7472_v50, %v6227_v53 }
 0x30d   : > { %7362 = vst [vmem:[%s10158_s16 + $0x40] sm:$0xff] %v7278_v2   ;;  %v6359_v8 = vadd.f32 %v7449_v10, %v10297_v39  ;;  %v6443_v34 = vpop.f32.mrf.mxu1  ;;  %v6478_v30 = vmax.f32 %v6348_v38, 0.0 }
 0x30e   : > { %v6350_v33 = vpop.f32.mrf.mxu0  ;;  %7375 = vst [vmem:[%s10158_s16 + $0xa8] sm:$0xff] %v7343_v24   ;;  %v7338_v1 = vpack.c.bf16 %v6499_v54, %v6498_v19  ;;  %v6444_v35 = vadd.f32 %v6443_v34, %v6219_v29  ;;  %v6504_v27 = vmax.f32 %v6452_v3, 0.0 }
 0x30f   : > { %v6481_v13 = vmax.f32 %v6359_v8, 0.0  ;;  %v6351_v44 = vadd.f32 %v6350_v33, %v10299_v42  ;;  %v7473_v47 = vpop.f32.mrf.mxu1 }
 0x310   : > { %7374 = vst [vmem:[%s10158_s16 + $0xa0] sm:$0xff] %v7338_v1   ;;  %v6455_v31 = vadd.f32 %v7473_v47, %v6230_v17  ;;  %v6502_v43 = vmax.f32 %v6444_v35, 0.0 }
 0x311   : > { %v7293_v63 = vpack.c.bf16 %v6481_v13, %v6480_v32  ;;  %v6479_v60 = vmax.f32 %v6351_v44, 0.0  ;;  %v6446_v52 = vpop.f32.mrf.mxu1 }
 0x312   : > { %v6505_v41 = vmax.f32 %v6455_v31, 0.0  ;;  %v6447_v58 = vadd.f32 %v6446_v52, %v6222_v22 }
 0x313   : > { %7365 = vst [vmem:[%s10158_s16 + $0x58] sm:$0xff] %v7293_v63   ;;  %v7288_v49 = vpack.c.bf16 %v6479_v60, %v6478_v30 }
 0x314   : > { %v7353_v6 = vpack.c.bf16 %v6505_v41, %v6504_v27  ;;  %v6503_v23 = vmax.f32 %v6447_v58, 0.0 }
 0x315   : > { %7364 = vst [vmem:[%s10158_s16 + $0x50] sm:$0xff] %v7288_v49  }
 0x316   : > { %7377 = vst [vmem:[%s10158_s16 + $0xb8] sm:$0xff] %v7353_v6   ;;  %v7348_v62 = vpack.c.bf16 %v6503_v23, %v6502_v43 }
 0x318   : > { %7376 = vst [vmem:[%s10158_s16 + $0xb0] sm:$0xff] %v7348_v62  }
 0x319 PF: > { %s13_s14 = sadd.s32 1, %s7899_s14   ;;  %s10304_s12 = smov %s7895_s13 }
 0x31a   : > { %p10_p5 = scmp.ge.s32.totalorder %s13_s14, 4   ;;  %s10305_s13 = smov %s10307_s15 }
 0x31c   :  { %12 = sbr.rel (!%p10_p5) target bundleno = 2 (0x2), region = 62 }

</bundles_post_ra>
